<compile_context>
chip_gen: v6e
topology: v6e:2x2x1
jax: 0.10.0
libtpu: 0.0.40
codegen_flags: <defaults>
</compile_context>

<pallas_src>
import functools

import jax
import jax.numpy as jnp
from jax import lax
from jax.experimental import pallas as pl
from jax.experimental.pallas import tpu as pltpu

LANES = 128
SUBLANES = 8


def _round_up(x, m):
    return ((x + m - 1) // m) * m


# ---------------------------------------------------------------------------
# conv_1 tap grouping (shared between wrapper weight prep and kernel).
#
# conv_1 (4x4, stride 2, pad 1) is computed per output parity (r, s): output
# pixel y1[2*mm + 1 - r, 2*nn + 1 - s] reads padded-input rows
# 4*mm + (2 - 2r + di), di in 0..3.  With the input pre-arranged as a depth-4
# space-to-depth tensor X4[p, q, (u*4+v)*cin_p + c] = xpad[4p+u, 4q+v, c],
# the taps split into groups by block offset (p_off, q_off) in {0,1}^2, and
# each group becomes ONE unit-stride slab matmul
#     acc += dot(X4[p_off:p_off+ho, q_off:q_off+wo, :], Wg)
# where Wg packs the group's taps into a (16*cin_p, c1p) matrix.
# ---------------------------------------------------------------------------
def _conv1_group_list():
    groups = []
    for r in range(2):
        for s in range(2):
            for p_off in range(2 - r):      # r=0 -> rows span 2 blocks
                for q_off in range(2 - s):
                    groups.append((r, s, p_off, q_off))
    return groups                            # 9 groups total


# ---------------------------------------------------------------------------
# Fused encoder kernel.  One grid step == one image; all intermediates
# (conv_1 output, conv_2/3 activations, every residual h) live only in VMEM.
# ---------------------------------------------------------------------------
def _encoder_kernel(x4_ref, w1g_ref, b1_ref, w2t_ref, b2_ref, w3t_ref, b3_ref,
                    *rest, ho, wo, num_res_layers):
    # x4_ref : (1, ho+1, wo+1, 16*cin_p) bf16   depth-4 s2d of padded input
    # w1g_ref: (9, 16*cin_p, c1p) bf16          b1_ref: (1, c1p) f32
    # w2t_ref: (16, c1p, c2p) bf16              b2_ref: (1, c2p) f32
    # w3t_ref: (9, c2p, c2p) bf16               b3_ref: (1, c2p) f32
    # wr1_ref: (L, 9, c2p, rhp) bf16            wr2_ref: (L, rhp, c2p) bf16
    # o_ref  : (1, ho, wo, c2p) f32
    # y1par  : (4, ho+1, wo+1, c1p) bf16  conv_1 output, parity layout, padded
    # x2pad  : (ho+2, wo+2, c2p) bf16     padded input of every 3x3 conv
    # xacc   : (ho*wo, c2p) f32           running residual-stack x
    if num_res_layers:
        wr1_ref, wr2_ref, o_ref, y1par, x2pad, xacc = rest
    else:
        wr1_ref = wr2_ref = None
        o_ref, y1par, x2pad, xacc = rest

    m = ho * wo
    c1p = y1par.shape[-1]
    c2p = x2pad.shape[-1]
    f32 = jnp.float32

    # ---- zero only the 1-pixel pad borders (interiors are overwritten) -----
    z1r = jnp.zeros((wo + 1, c1p), dtype=y1par.dtype)
    z1c = jnp.zeros((ho + 1, c1p), dtype=y1par.dtype)
    for r in range(2):
        for s in range(2):
            pi = 2 * r + s
            y1par[pi, 0 if r == 0 else ho] = z1r
            y1par[pi, :, 0 if s == 0 else wo, :] = z1c
    z2r = jnp.zeros((wo + 2, c2p), dtype=x2pad.dtype)
    z2c = jnp.zeros((ho + 2, c2p), dtype=x2pad.dtype)
    x2pad[0] = z2r
    x2pad[ho + 1] = z2r
    x2pad[:, 0, :] = z2c
    x2pad[:, wo + 1, :] = z2c

    # ---- conv_1 (4x4 s2 p1) + bias + ReLU, per output parity ---------------
    b1 = b1_ref[...]
    groups = _conv1_group_list()
    for r in range(2):
        for s in range(2):
            acc = b1                                          # (1, c1p) f32
            for gi, (gr, gs, p_off, q_off) in enumerate(groups):
                if (gr, gs) != (r, s):
                    continue
                slab = x4_ref[0, p_off:p_off + ho, q_off:q_off + wo, :]
                acc = acc + jnp.dot(slab.reshape(m, slab.shape[-1]),
                                    w1g_ref[gi],
                                    preferred_element_type=f32)
            y1par[2 * r + s, 1 - r:1 - r + ho, 1 - s:1 - s + wo, :] = (
                jnp.maximum(acc, 0.0).reshape(ho, wo, c1p).astype(y1par.dtype))

    # ---- conv_2 (4x4 s2 p1) + bias + ReLU -> padded 3x3 input buffer -------
    acc = b2_ref[...]
    for di in range(4):
        for dj in range(4):
            slab = y1par[2 * (di % 2) + (dj % 2),
                         di // 2:di // 2 + ho, dj // 2:dj // 2 + wo, :]
            acc = acc + jnp.dot(slab.reshape(m, c1p), w2t_ref[4 * di + dj],
                                preferred_element_type=f32)
    x2pad[1:1 + ho, 1:1 + wo, :] = (
        jnp.maximum(acc, 0.0).reshape(ho, wo, c2p).astype(x2pad.dtype))

    # ---- conv_3 (3x3 s1 p1) + bias (no activation before residual stack) ---
    acc = b3_ref[...]
    for di in range(3):
        for dj in range(3):
            slab = x2pad[di:di + ho, dj:dj + wo, :]
            acc = acc + jnp.dot(slab.reshape(m, c2p), w3t_ref[3 * di + dj],
                                preferred_element_type=f32)
    xacc[...] = acc

    # ---- residual stack: x += conv1x1(relu(conv3x3(relu(x)))) per layer ----
    for li in range(num_res_layers):
        x2pad[1:1 + ho, 1:1 + wo, :] = (
            jnp.maximum(xacc[...], 0.0).reshape(ho, wo, c2p).astype(x2pad.dtype))
        hacc = None
        for di in range(3):
            for dj in range(3):
                slab = x2pad[di:di + ho, dj:dj + wo, :]
                d = jnp.dot(slab.reshape(m, c2p), wr1_ref[li, 3 * di + dj],
                            preferred_element_type=f32)
                hacc = d if hacc is None else hacc + d
        h = jnp.maximum(hacc, 0.0).astype(jnp.bfloat16)       # (m, rhp)
        xacc[...] = xacc[...] + jnp.dot(h, wr2_ref[li],
                                        preferred_element_type=f32)

    # ---- ResidualStack's trailing F.relu, lane-dense f32 store -------------
    o_ref[0] = jnp.maximum(xacc[...], 0.0).reshape(ho, wo, c2p)


# ---------------------------------------------------------------------------
# Wrapper-side weight / input layout helpers (tiny, run once per call)
# ---------------------------------------------------------------------------
def _pad_bias(b, cp):
    return jnp.pad(b.astype(jnp.float32), (0, cp - b.shape[0])).reshape(1, cp)


def _conv_tap_weights(w, cin_p, cout_p):
    """PyTorch conv weight (cout, cin, kh, kw) -> per-tap GEMM weights
    (kh*kw, cin_p, cout_p), tap order di*kw + dj."""
    cout, cin, kh, kw = w.shape
    wt = jnp.transpose(w, (2, 3, 1, 0))                       # (kh, kw, ci, co)
    wt = jnp.pad(wt, ((0, 0), (0, 0),
                      (0, cin_p - cin), (0, cout_p - cout)))
    return wt.reshape(kh * kw, cin_p, cout_p).astype(jnp.bfloat16)


def _conv1_group_weights(w1, cin_p, c1p):
    """conv_1 weight (c1, cin, 4, 4) -> grouped weights (9, 16*cin_p, c1p)
    matching _conv1_group_list() / the kernel's X4 channel layout."""
    c1, cin, _, _ = w1.shape
    mats = []
    for (r, s, p_off, q_off) in _conv1_group_list():
        blocks = [jnp.zeros((cin_p, c1p), w1.dtype) for _ in range(16)]
        for di in range(4):
            row = 2 - 2 * r + di
            if row // 4 != p_off:
                continue
            u = row % 4
            for dj in range(4):
                col = 2 - 2 * s + dj
                if col // 4 != q_off:
                    continue
                v = col % 4
                tap = jnp.pad(w1[:, :, di, dj].T,             # (cin, c1)
                              ((0, cin_p - cin), (0, c1p - c1)))
                blocks[u * 4 + v] = tap
        mats.append(jnp.concatenate(blocks, axis=0))          # (16*cin_p, c1p)
    return jnp.stack(mats).astype(jnp.bfloat16)


# ---------------------------------------------------------------------------
# pallas_call wrapper
# ---------------------------------------------------------------------------
def _encoder_call(x4, w1g, b1k, w2t, b2k, w3t, b3k, wr1t, wr2t,
                  ho, wo, num_res_layers, c1p, c2p, rhp):
    n = x4.shape[0]
    kcin = x4.shape[-1]
    m = ho * wo
    kernel = functools.partial(_encoder_kernel, ho=ho, wo=wo,
                               num_res_layers=num_res_layers)

    in_specs = [
        pl.BlockSpec((1, ho + 1, wo + 1, kcin), lambda b: (b, 0, 0, 0)),
        pl.BlockSpec(w1g.shape, lambda b: (0, 0, 0)),
        pl.BlockSpec(b1k.shape, lambda b: (0, 0)),
        pl.BlockSpec(w2t.shape, lambda b: (0, 0, 0)),
        pl.BlockSpec(b2k.shape, lambda b: (0, 0)),
        pl.BlockSpec(w3t.shape, lambda b: (0, 0, 0)),
        pl.BlockSpec(b3k.shape, lambda b: (0, 0)),
    ]
    args = [x4, w1g, b1k, w2t, b2k, w3t, b3k]
    if num_res_layers:
        in_specs += [pl.BlockSpec(wr1t.shape, lambda b: (0, 0, 0, 0)),
                     pl.BlockSpec(wr2t.shape, lambda b: (0, 0, 0))]
        args += [wr1t, wr2t]

    scratch_shapes = [
        pltpu.VMEM((4, ho + 1, wo + 1, c1p), jnp.bfloat16),   # conv_1 (parity)
        pltpu.VMEM((ho + 2, wo + 2, c2p), jnp.bfloat16),      # padded 3x3 input
        pltpu.VMEM((m, c2p), jnp.float32),                    # running x (f32)
    ]

    weight_bytes = sum(int(a.size) * a.dtype.itemsize for a in args[1:])
    block_bytes = (ho + 1) * (wo + 1) * kcin * 2 + m * c2p * 4
    scratch_bytes = (4 * (ho + 1) * (wo + 1) * c1p * 2
                     + (ho + 2) * (wo + 2) * c2p * 2 + m * c2p * 4)
    vmem_limit = max(32 * 1024 * 1024,
                     min(int(1.5 * (weight_bytes + 2 * block_bytes
                                    + scratch_bytes)), 100 * 1024 * 1024))

    flops = 2 * n * m * (9 * kcin * c1p + 16 * c1p * c2p + 9 * c2p * c2p
                         + num_res_layers * (9 * c2p * rhp + rhp * c2p))
    bytes_accessed = int(sum(int(a.size) * a.dtype.itemsize for a in args)
                         + n * m * c2p * 4)

    # TODO(synk): for v7x with batch == 1, add a second "parallel" grid axis
    # (spatial row blocks with a 1-row halo) so both TensorCores are used.
    return pl.pallas_call(
        kernel,
        out_shape=jax.ShapeDtypeStruct((n, ho, wo, c2p), jnp.float32),
        grid=(n,),
        in_specs=in_specs,
        out_specs=pl.BlockSpec((1, ho, wo, c2p), lambda b: (b, 0, 0, 0)),
        scratch_shapes=scratch_shapes,
        compiler_params=pltpu.CompilerParams(
            dimension_semantics=("parallel",),
            vmem_limit_bytes=vmem_limit),
        cost_estimate=pl.CostEstimate(flops=flops, transcendentals=0,
                                      bytes_accessed=bytes_accessed),
    )(*args)


# ---------------------------------------------------------------------------
# Parameter init (deterministic, PyTorch-like uniform(-1/sqrt(fan_in), ...))
# ---------------------------------------------------------------------------
def _conv_params(key, cout, cin, kh, kw, bias=True):
    k1, k2 = jax.random.split(key)
    fan_in = cin * kh * kw
    bound = 1.0 / float(fan_in) ** 0.5
    w = jax.random.uniform(k1, (cout, cin, kh, kw), jnp.float32, -bound, bound)
    b = jax.random.uniform(k2, (cout,), jnp.float32, -bound, bound) if bias else None
    return w, b


def init_encoder_params(key, in_channels, num_hiddens, num_residual_layers,
                        num_residual_hiddens):
    keys = jax.random.split(key, 3 + 2 * num_residual_layers)
    w1, b1 = _conv_params(keys[0], num_hiddens // 2, in_channels, 4, 4)
    w2, b2 = _conv_params(keys[1], num_hiddens, num_hiddens // 2, 4, 4)
    w3, b3 = _conv_params(keys[2], num_hiddens, num_hiddens, 3, 3)
    res = []
    for li in range(num_residual_layers):
        wr1, _ = _conv_params(keys[3 + 2 * li], num_residual_hiddens,
                              num_hiddens, 3, 3, bias=False)
        wr2, _ = _conv_params(keys[4 + 2 * li], num_hiddens,
                              num_residual_hiddens, 1, 1, bias=False)
        res.append((wr1, wr2))
    return {"w1": w1, "b1": b1, "w2": w2, "b2": b2, "w3": w3, "b3": b3,
            "res": res}


# ---------------------------------------------------------------------------
# Encoder forward
# ---------------------------------------------------------------------------
def encoder_forward(params, x_nchw):
    c1 = params["w1"].shape[0]                  # num_hiddens // 2
    c2 = params["w3"].shape[0]                  # num_hiddens
    num_res_layers = len(params["res"])
    rh = params["res"][0][0].shape[0] if num_res_layers else 1
    c1p = _round_up(c1, LANES)                  # per-layer lane padding
    c2p = _round_up(c2, LANES)
    rhp = _round_up(rh, LANES)

    x = jnp.transpose(x_nchw, (0, 2, 3, 1)).astype(jnp.float32)   # NHWC
    n, h, w, cin = x.shape
    assert h % 4 == 0 and w % 4 == 0, "spatial dims must be divisible by 4"
    ho, wo = h // 4, w // 4
    cin_p = _round_up(cin, SUBLANES)            # 16*cin_p is a lane multiple

    # Depth-4 space-to-depth of the (pad 1) input: one cheap layout pass that
    # turns BOTH stride-2 convs into unit-stride per-tap slab matmuls.
    xp = jnp.pad(x, ((0, 0), (1, 3), (1, 3), (0, cin_p - cin)))
    x4 = xp.reshape(n, ho + 1, 4, wo + 1, 4, cin_p)
    x4 = jnp.transpose(x4, (0, 1, 3, 2, 4, 5))
    x4 = x4.reshape(n, ho + 1, wo + 1, 16 * cin_p).astype(jnp.bfloat16)

    # Weights / biases in kernel layout (tiny; negligible per-call cost).
    w1g = _conv1_group_weights(params["w1"], cin_p, c1p)    # (9, 16*cin_p, c1p)
    b1k = _pad_bias(params["b1"], c1p)
    w2t = _conv_tap_weights(params["w2"], c1p, c2p)         # (16, c1p, c2p)
    b2k = _pad_bias(params["b2"], c2p)
    w3t = _conv_tap_weights(params["w3"], c2p, c2p)         # (9, c2p, c2p)
    b3k = _pad_bias(params["b3"], c2p)
    if num_res_layers:
        wr1t = jnp.stack([_conv_tap_weights(wa, c2p, rhp)
                          for wa, _ in params["res"]])      # (L, 9, c2p, rhp)
        wr2t = jnp.stack([_conv_tap_weights(wb, rhp, c2p)[0]
                          for _, wb in params["res"]])      # (L, rhp, c2p)
    else:
        wr1t = wr2t = None

    out = _encoder_call(x4, w1g, b1k, w2t, b2k, w3t, b3k, wr1t, wr2t,
                        ho, wo, num_res_layers, c1p, c2p, rhp)
    out = out[..., :c2]                                     # drop lane padding
    return jnp.transpose(out, (0, 3, 1, 2))                 # NHWC -> NCHW


# ---------------------------------------------------------------------------
# Pure-JAX reference (for correctness check)
# ---------------------------------------------------------------------------
def _conv2d_ref(x_nhwc, w_oihw, b, stride, pad):
    dn = lax.conv_dimension_numbers(x_nhwc.shape, w_oihw.shape,
                                    ("NHWC", "OIHW", "NHWC"))
    out = lax.conv_general_dilated(
        x_nhwc, w_oihw, (stride, stride), ((pad, pad), (pad, pad)),
        dimension_numbers=dn, precision=lax.Precision.HIGHEST)
    if b is not None:
        out = out + b
    return out


def encoder_reference(params, x_nchw):
    x = jnp.transpose(x_nchw, (0, 2, 3, 1)).astype(jnp.float32)
    y = jax.nn.relu(_conv2d_ref(x, params["w1"], params["b1"], 2, 1))
    y = jax.nn.relu(_conv2d_ref(y, params["w2"], params["b2"], 2, 1))
    y = _conv2d_ref(y, params["w3"], params["b3"], 1, 1)
    for wa, wb in params["res"]:
        h = jax.nn.relu(y)
        h = _conv2d_ref(h, wa, None, 1, 1)
        h = jax.nn.relu(h)
        h = _conv2d_ref(h, wb, None, 1, 0)
        y = y + h
    y = jax.nn.relu(y)
    return jnp.transpose(y, (0, 3, 1, 2))


if __name__ == "__main__":
    batch = 2
    in_channels = 3
    spatial = 16
    num_hiddens = 32
    num_residual_layers = 2
    num_residual_hiddens = 8

    key = jax.random.PRNGKey(0)
    k_params, k_x = jax.random.split(key)
    params = init_encoder_params(k_params, in_channels, num_hiddens,
                                 num_residual_layers, num_residual_hiddens)
    x = jax.random.normal(k_x, (batch, in_channels, spatial, spatial),
                          jnp.float32)

    out = jax.jit(encoder_forward)(params, x)
    out = jax.block_until_ready(out)

    expected_shape = (batch, num_hiddens, spatial // 4, spatial // 4)
    assert out.shape == expected_shape, (out.shape, expected_shape)
    assert bool(jnp.all(jnp.isfinite(out)))

    ref = jax.block_until_ready(jax.jit(encoder_reference)(params, x))
    max_err = float(jnp.max(jnp.abs(out - ref)))
    assert max_err < 5e-2, f"max abs error vs reference: {max_err}"

    print("KERNEL_OK")
</pallas_src>

<mosaic_0001>
module attributes {stable_mosaic.version = 11 : i64} {
  func.func @_encoder_kernel(%arg0: i32, %arg1: memref<1x5x5x128xbf16, #tpu.memory_space<vmem>>, %arg2: memref<9x128x128xbf16, #tpu.memory_space<vmem>>, %arg3: memref<1x128xf32, #tpu.memory_space<vmem>>, %arg4: memref<16x128x128xbf16, #tpu.memory_space<vmem>>, %arg5: memref<1x128xf32, #tpu.memory_space<vmem>>, %arg6: memref<9x128x128xbf16, #tpu.memory_space<vmem>>, %arg7: memref<1x128xf32, #tpu.memory_space<vmem>>, %arg8: memref<2x9x128x128xbf16, #tpu.memory_space<vmem>>, %arg9: memref<2x128x128xbf16, #tpu.memory_space<vmem>>, %arg10: memref<1x4x4x128xf32, #tpu.memory_space<vmem>>, %arg11: memref<4x5x5x128xbf16, #tpu.memory_space<vmem>>, %arg12: memref<6x6x128xbf16, #tpu.memory_space<vmem>>, %arg13: memref<16x128xf32, #tpu.memory_space<vmem>>) attributes {dimension_semantics = [#tpu.dimension_semantics<parallel>], iteration_bounds = array<i64: 2>, scalar_prefetch = 0 : i64, scratch_operands = 3 : i64, tpu.core_type = #tpu.core_type<tc>, window_params = [{transform_indices = @transform_0, window_bounds = array<i64: 1, 5, 5, 128>}, {pipeline_mode = #tpu.pipeline_mode<synchronous>, transform_indices = @transform_1, window_bounds = array<i64: 9, 128, 128>}, {pipeline_mode = #tpu.pipeline_mode<synchronous>, transform_indices = @transform_2, window_bounds = array<i64: 1, 128>}, {pipeline_mode = #tpu.pipeline_mode<synchronous>, transform_indices = @transform_3, window_bounds = array<i64: 16, 128, 128>}, {pipeline_mode = #tpu.pipeline_mode<synchronous>, transform_indices = @transform_4, window_bounds = array<i64: 1, 128>}, {pipeline_mode = #tpu.pipeline_mode<synchronous>, transform_indices = @transform_5, window_bounds = array<i64: 9, 128, 128>}, {pipeline_mode = #tpu.pipeline_mode<synchronous>, transform_indices = @transform_6, window_bounds = array<i64: 1, 128>}, {pipeline_mode = #tpu.pipeline_mode<synchronous>, transform_indices = @transform_7, window_bounds = array<i64: 2, 9, 128, 128>}, {pipeline_mode = #tpu.pipeline_mode<synchronous>, transform_indices = @transform_8, window_bounds = array<i64: 2, 128, 128>}, {transform_indices = @transform_9, window_bounds = array<i64: 1, 4, 4, 128>}]} {
    %cst = arith.constant 0.000000e+00 : bf16
    %0 = vector.broadcast %cst : bf16 to vector<5x128xbf16>
    %cst_0 = arith.constant 0.000000e+00 : bf16
    %1 = vector.broadcast %cst_0 : bf16 to vector<5x128xbf16>
    %c0 = arith.constant 0 : index
    %c0_1 = arith.constant 0 : index
    %c0_2 = arith.constant 0 : index
    %c0_3 = arith.constant 0 : index
    %2 = vector.load %arg11[%c0, %c0_1, %c0_2, %c0_3] : memref<4x5x5x128xbf16, #tpu.memory_space<vmem>>, vector<1x1x5x128xbf16>
    %3 = vector.shape_cast %2 : vector<1x1x5x128xbf16> to vector<5x128xbf16>
    %4 = vector.shape_cast %0 : vector<5x128xbf16> to vector<1x1x5x128xbf16>
    tpu.vector_store %arg11[%c0, %c0_1, %c0_2, %c0_3], %4 {strides = array<i32>} : memref<4x5x5x128xbf16, #tpu.memory_space<vmem>>, vector<1x1x5x128xbf16>,
    %c0_4 = arith.constant 0 : index
    %c0_5 = arith.constant 0 : index
    %c0_6 = arith.constant 0 : index
    %c0_7 = arith.constant 0 : index
    %5 = vector.load %arg11[%c0_4, %c0_5, %c0_6, %c0_7] : memref<4x5x5x128xbf16, #tpu.memory_space<vmem>>, vector<1x5x1x128xbf16>
    %6 = vector.shape_cast %5 : vector<1x5x1x128xbf16> to vector<5x128xbf16>
    %7 = vector.shape_cast %1 : vector<5x128xbf16> to vector<1x5x1x128xbf16>
    tpu.vector_store %arg11[%c0_4, %c0_5, %c0_6, %c0_7], %7 {strides = array<i32>} : memref<4x5x5x128xbf16, #tpu.memory_space<vmem>>, vector<1x5x1x128xbf16>,
    %c1 = arith.constant 1 : index
    %c0_8 = arith.constant 0 : index
    %c0_9 = arith.constant 0 : index
    %c0_10 = arith.constant 0 : index
    %8 = vector.load %arg11[%c1, %c0_8, %c0_9, %c0_10] : memref<4x5x5x128xbf16, #tpu.memory_space<vmem>>, vector<1x1x5x128xbf16>
    %9 = vector.shape_cast %8 : vector<1x1x5x128xbf16> to vector<5x128xbf16>
    %10 = vector.shape_cast %0 : vector<5x128xbf16> to vector<1x1x5x128xbf16>
    tpu.vector_store %arg11[%c1, %c0_8, %c0_9, %c0_10], %10 {strides = array<i32>} : memref<4x5x5x128xbf16, #tpu.memory_space<vmem>>, vector<1x1x5x128xbf16>,
    %c1_11 = arith.constant 1 : index
    %c0_12 = arith.constant 0 : index
    %c4 = arith.constant 4 : index
    %c0_13 = arith.constant 0 : index
    %11 = vector.load %arg11[%c1_11, %c0_12, %c4, %c0_13] : memref<4x5x5x128xbf16, #tpu.memory_space<vmem>>, vector<1x5x1x128xbf16>
    %12 = vector.shape_cast %11 : vector<1x5x1x128xbf16> to vector<5x128xbf16>
    %13 = vector.shape_cast %1 : vector<5x128xbf16> to vector<1x5x1x128xbf16>
    tpu.vector_store %arg11[%c1_11, %c0_12, %c4, %c0_13], %13 {strides = array<i32>} : memref<4x5x5x128xbf16, #tpu.memory_space<vmem>>, vector<1x5x1x128xbf16>,
    %c2 = arith.constant 2 : index
    %c4_14 = arith.constant 4 : index
    %c0_15 = arith.constant 0 : index
    %c0_16 = arith.constant 0 : index
    %14 = vector.load %arg11[%c2, %c4_14, %c0_15, %c0_16] : memref<4x5x5x128xbf16, #tpu.memory_space<vmem>>, vector<1x1x5x128xbf16>
    %15 = vector.shape_cast %14 : vector<1x1x5x128xbf16> to vector<5x128xbf16>
    %16 = vector.shape_cast %0 : vector<5x128xbf16> to vector<1x1x5x128xbf16>
    tpu.vector_store %arg11[%c2, %c4_14, %c0_15, %c0_16], %16 {strides = array<i32>} : memref<4x5x5x128xbf16, #tpu.memory_space<vmem>>, vector<1x1x5x128xbf16>,
    %c2_17 = arith.constant 2 : index
    %c0_18 = arith.constant 0 : index
    %c0_19 = arith.constant 0 : index
    %c0_20 = arith.constant 0 : index
    %17 = vector.load %arg11[%c2_17, %c0_18, %c0_19, %c0_20] : memref<4x5x5x128xbf16, #tpu.memory_space<vmem>>, vector<1x5x1x128xbf16>
    %18 = vector.shape_cast %17 : vector<1x5x1x128xbf16> to vector<5x128xbf16>
    %19 = vector.shape_cast %1 : vector<5x128xbf16> to vector<1x5x1x128xbf16>
    tpu.vector_store %arg11[%c2_17, %c0_18, %c0_19, %c0_20], %19 {strides = array<i32>} : memref<4x5x5x128xbf16, #tpu.memory_space<vmem>>, vector<1x5x1x128xbf16>,
    %c3 = arith.constant 3 : index
    %c4_21 = arith.constant 4 : index
    %c0_22 = arith.constant 0 : index
    %c0_23 = arith.constant 0 : index
    %20 = vector.load %arg11[%c3, %c4_21, %c0_22, %c0_23] : memref<4x5x5x128xbf16, #tpu.memory_space<vmem>>, vector<1x1x5x128xbf16>
    %21 = vector.shape_cast %20 : vector<1x1x5x128xbf16> to vector<5x128xbf16>
    %22 = vector.shape_cast %0 : vector<5x128xbf16> to vector<1x1x5x128xbf16>
    tpu.vector_store %arg11[%c3, %c4_21, %c0_22, %c0_23], %22 {strides = array<i32>} : memref<4x5x5x128xbf16, #tpu.memory_space<vmem>>, vector<1x1x5x128xbf16>,
    %c3_24 = arith.constant 3 : index
    %c0_25 = arith.constant 0 : index
    %c4_26 = arith.constant 4 : index
    %c0_27 = arith.constant 0 : index
    %23 = vector.load %arg11[%c3_24, %c0_25, %c4_26, %c0_27] : memref<4x5x5x128xbf16, #tpu.memory_space<vmem>>, vector<1x5x1x128xbf16>
    %24 = vector.shape_cast %23 : vector<1x5x1x128xbf16> to vector<5x128xbf16>
    %25 = vector.shape_cast %1 : vector<5x128xbf16> to vector<1x5x1x128xbf16>
    tpu.vector_store %arg11[%c3_24, %c0_25, %c4_26, %c0_27], %25 {strides = array<i32>} : memref<4x5x5x128xbf16, #tpu.memory_space<vmem>>, vector<1x5x1x128xbf16>,
    %cst_28 = arith.constant 0.000000e+00 : bf16
    %26 = vector.broadcast %cst_28 : bf16 to vector<6x128xbf16>
    %cst_29 = arith.constant 0.000000e+00 : bf16
    %27 = vector.broadcast %cst_29 : bf16 to vector<6x128xbf16>
    %c0_30 = arith.constant 0 : index
    %c0_31 = arith.constant 0 : index
    %c0_32 = arith.constant 0 : index
    %28 = vector.load %arg12[%c0_30, %c0_31, %c0_32] : memref<6x6x128xbf16, #tpu.memory_space<vmem>>, vector<1x6x128xbf16>
    %29 = vector.shape_cast %28 : vector<1x6x128xbf16> to vector<6x128xbf16>
    %30 = vector.shape_cast %26 : vector<6x128xbf16> to vector<1x6x128xbf16>
    tpu.vector_store %arg12[%c0_30, %c0_31, %c0_32], %30 {strides = array<i32>} : memref<6x6x128xbf16, #tpu.memory_space<vmem>>, vector<1x6x128xbf16>,
    %c5 = arith.constant 5 : index
    %c0_33 = arith.constant 0 : index
    %c0_34 = arith.constant 0 : index
    %31 = vector.load %arg12[%c5, %c0_33, %c0_34] : memref<6x6x128xbf16, #tpu.memory_space<vmem>>, vector<1x6x128xbf16>
    %32 = vector.shape_cast %31 : vector<1x6x128xbf16> to vector<6x128xbf16>
    %33 = vector.shape_cast %26 : vector<6x128xbf16> to vector<1x6x128xbf16>
    tpu.vector_store %arg12[%c5, %c0_33, %c0_34], %33 {strides = array<i32>} : memref<6x6x128xbf16, #tpu.memory_space<vmem>>, vector<1x6x128xbf16>,
    %c0_35 = arith.constant 0 : index
    %c0_36 = arith.constant 0 : index
    %c0_37 = arith.constant 0 : index
    %34 = vector.load %arg12[%c0_35, %c0_36, %c0_37] : memref<6x6x128xbf16, #tpu.memory_space<vmem>>, vector<6x1x128xbf16>
    %35 = vector.shape_cast %34 : vector<6x1x128xbf16> to vector<6x128xbf16>
    %36 = vector.shape_cast %27 : vector<6x128xbf16> to vector<6x1x128xbf16>
    tpu.vector_store %arg12[%c0_35, %c0_36, %c0_37], %36 {strides = array<i32>} : memref<6x6x128xbf16, #tpu.memory_space<vmem>>, vector<6x1x128xbf16>,
    %c0_38 = arith.constant 0 : index
    %c5_39 = arith.constant 5 : index
    %c0_40 = arith.constant 0 : index
    %37 = vector.load %arg12[%c0_38, %c5_39, %c0_40] : memref<6x6x128xbf16, #tpu.memory_space<vmem>>, vector<6x1x128xbf16>
    %38 = vector.shape_cast %37 : vector<6x1x128xbf16> to vector<6x128xbf16>
    %39 = vector.shape_cast %27 : vector<6x128xbf16> to vector<6x1x128xbf16>
    tpu.vector_store %arg12[%c0_38, %c5_39, %c0_40], %39 {strides = array<i32>} : memref<6x6x128xbf16, #tpu.memory_space<vmem>>, vector<6x1x128xbf16>,
    %c0_41 = arith.constant 0 : index
    %c0_42 = arith.constant 0 : index
    %40 = vector.load %arg3[%c0_41, %c0_42] : memref<1x128xf32, #tpu.memory_space<vmem>>, vector<1x128xf32>
    %c0_43 = arith.constant 0 : index
    %c0_44 = arith.constant 0 : index
    %c0_45 = arith.constant 0 : index
    %c0_46 = arith.constant 0 : index
    %41 = vector.load %arg1[%c0_43, %c0_44, %c0_45, %c0_46] : memref<1x5x5x128xbf16, #tpu.memory_space<vmem>>, vector<1x4x4x128xbf16>
    %42 = vector.shape_cast %41 : vector<1x4x4x128xbf16> to vector<4x4x128xbf16>
    %43 = vector.shape_cast %42 : vector<4x4x128xbf16> to vector<16x128xbf16>
    %c0_47 = arith.constant 0 : index
    %c0_48 = arith.constant 0 : index
    %c0_49 = arith.constant 0 : index
    %44 = vector.load %arg2[%c0_47, %c0_48, %c0_49] : memref<9x128x128xbf16, #tpu.memory_space<vmem>>, vector<1x128x128xbf16>
    %45 = vector.shape_cast %44 : vector<1x128x128xbf16> to vector<128x128xbf16>
    %cst_50 = arith.constant dense<0.000000e+00> : vector<16x128xf32>
    %46 = tpu.matmul %43, %45, %cst_50 {dimension_numbers = #tpu.dot_dimension_numbers<[1], [0], [0], [1], [0, 0, 1, 1], [], []>} : vector<16x128xbf16>, vector<128x128xbf16>, vector<16x128xf32> -> vector<16x128xf32>
    %47 = vector.broadcast %40 : vector<1x128xf32> to vector<16x128xf32>
    %48 = arith.addf %47, %46 : vector<16x128xf32>
    %c0_51 = arith.constant 0 : index
    %c0_52 = arith.constant 0 : index
    %c1_53 = arith.constant 1 : index
    %c0_54 = arith.constant 0 : index
    %49 = vector.load %arg1[%c0_51, %c0_52, %c1_53, %c0_54] : memref<1x5x5x128xbf16, #tpu.memory_space<vmem>>, vector<1x4x4x128xbf16>
    %50 = vector.shape_cast %49 : vector<1x4x4x128xbf16> to vector<4x4x128xbf16>
    %51 = vector.shape_cast %50 : vector<4x4x128xbf16> to vector<16x128xbf16>
    %c1_55 = arith.constant 1 : index
    %c0_56 = arith.constant 0 : index
    %c0_57 = arith.constant 0 : index
    %52 = vector.load %arg2[%c1_55, %c0_56, %c0_57] : memref<9x128x128xbf16, #tpu.memory_space<vmem>>, vector<1x128x128xbf16>
    %53 = vector.shape_cast %52 : vector<1x128x128xbf16> to vector<128x128xbf16>
    %cst_58 = arith.constant dense<0.000000e+00> : vector<16x128xf32>
    %54 = tpu.matmul %51, %53, %cst_58 {dimension_numbers = #tpu.dot_dimension_numbers<[1], [0], [0], [1], [0, 0, 1, 1], [], []>} : vector<16x128xbf16>, vector<128x128xbf16>, vector<16x128xf32> -> vector<16x128xf32>
    %55 = arith.addf %48, %54 : vector<16x128xf32>
    %c0_59 = arith.constant 0 : index
    %c1_60 = arith.constant 1 : index
    %c0_61 = arith.constant 0 : index
    %c0_62 = arith.constant 0 : index
    %56 = vector.load %arg1[%c0_59, %c1_60, %c0_61, %c0_62] : memref<1x5x5x128xbf16, #tpu.memory_space<vmem>>, vector<1x4x4x128xbf16>
    %57 = vector.shape_cast %56 : vector<1x4x4x128xbf16> to vector<4x4x128xbf16>
    %58 = vector.shape_cast %57 : vector<4x4x128xbf16> to vector<16x128xbf16>
    %c2_63 = arith.constant 2 : index
    %c0_64 = arith.constant 0 : index
    %c0_65 = arith.constant 0 : index
    %59 = vector.load %arg2[%c2_63, %c0_64, %c0_65] : memref<9x128x128xbf16, #tpu.memory_space<vmem>>, vector<1x128x128xbf16>
    %60 = vector.shape_cast %59 : vector<1x128x128xbf16> to vector<128x128xbf16>
    %cst_66 = arith.constant dense<0.000000e+00> : vector<16x128xf32>
    %61 = tpu.matmul %58, %60, %cst_66 {dimension_numbers = #tpu.dot_dimension_numbers<[1], [0], [0], [1], [0, 0, 1, 1], [], []>} : vector<16x128xbf16>, vector<128x128xbf16>, vector<16x128xf32> -> vector<16x128xf32>
    %62 = arith.addf %55, %61 : vector<16x128xf32>
    %c0_67 = arith.constant 0 : index
    %c1_68 = arith.constant 1 : index
    %c1_69 = arith.constant 1 : index
    %c0_70 = arith.constant 0 : index
    %63 = vector.load %arg1[%c0_67, %c1_68, %c1_69, %c0_70] : memref<1x5x5x128xbf16, #tpu.memory_space<vmem>>, vector<1x4x4x128xbf16>
    %64 = vector.shape_cast %63 : vector<1x4x4x128xbf16> to vector<4x4x128xbf16>
    %65 = vector.shape_cast %64 : vector<4x4x128xbf16> to vector<16x128xbf16>
    %c3_71 = arith.constant 3 : index
    %c0_72 = arith.constant 0 : index
    %c0_73 = arith.constant 0 : index
    %66 = vector.load %arg2[%c3_71, %c0_72, %c0_73] : memref<9x128x128xbf16, #tpu.memory_space<vmem>>, vector<1x128x128xbf16>
    %67 = vector.shape_cast %66 : vector<1x128x128xbf16> to vector<128x128xbf16>
    %cst_74 = arith.constant dense<0.000000e+00> : vector<16x128xf32>
    %68 = tpu.matmul %65, %67, %cst_74 {dimension_numbers = #tpu.dot_dimension_numbers<[1], [0], [0], [1], [0, 0, 1, 1], [], []>} : vector<16x128xbf16>, vector<128x128xbf16>, vector<16x128xf32> -> vector<16x128xf32>
    %69 = arith.addf %62, %68 : vector<16x128xf32>
    %cst_75 = arith.constant 0.000000e+00 : f32
    %70 = vector.broadcast %cst_75 : f32 to vector<16x128xf32>
    %71 = arith.maximumf %69, %70 : vector<16x128xf32>
    %72 = vector.shape_cast %71 : vector<16x128xf32> to vector<4x4x128xf32>
    %73 = arith.truncf %72 : vector<4x4x128xf32> to vector<4x4x128xbf16>
    %c0_76 = arith.constant 0 : index
    %c1_77 = arith.constant 1 : index
    %c1_78 = arith.constant 1 : index
    %c0_79 = arith.constant 0 : index
    %74 = vector.load %arg11[%c0_76, %c1_77, %c1_78, %c0_79] : memref<4x5x5x128xbf16, #tpu.memory_space<vmem>>, vector<1x4x4x128xbf16>
    %75 = vector.shape_cast %74 : vector<1x4x4x128xbf16> to vector<4x4x128xbf16>
    %76 = vector.shape_cast %73 : vector<4x4x128xbf16> to vector<1x4x4x128xbf16>
    tpu.vector_store %arg11[%c0_76, %c1_77, %c1_78, %c0_79], %76 {strides = array<i32>} : memref<4x5x5x128xbf16, #tpu.memory_space<vmem>>, vector<1x4x4x128xbf16>,
    %c0_80 = arith.constant 0 : index
    %c0_81 = arith.constant 0 : index
    %c0_82 = arith.constant 0 : index
    %c0_83 = arith.constant 0 : index
    %77 = vector.load %arg1[%c0_80, %c0_81, %c0_82, %c0_83] : memref<1x5x5x128xbf16, #tpu.memory_space<vmem>>, vector<1x4x4x128xbf16>
    %78 = vector.shape_cast %77 : vector<1x4x4x128xbf16> to vector<4x4x128xbf16>
    %79 = vector.shape_cast %78 : vector<4x4x128xbf16> to vector<16x128xbf16>
    %c4_84 = arith.constant 4 : index
    %c0_85 = arith.constant 0 : index
    %c0_86 = arith.constant 0 : index
    %80 = vector.load %arg2[%c4_84, %c0_85, %c0_86] : memref<9x128x128xbf16, #tpu.memory_space<vmem>>, vector<1x128x128xbf16>
    %81 = vector.shape_cast %80 : vector<1x128x128xbf16> to vector<128x128xbf16>
    %cst_87 = arith.constant dense<0.000000e+00> : vector<16x128xf32>
    %82 = tpu.matmul %79, %81, %cst_87 {dimension_numbers = #tpu.dot_dimension_numbers<[1], [0], [0], [1], [0, 0, 1, 1], [], []>} : vector<16x128xbf16>, vector<128x128xbf16>, vector<16x128xf32> -> vector<16x128xf32>
    %83 = vector.broadcast %40 : vector<1x128xf32> to vector<16x128xf32>
    %84 = arith.addf %83, %82 : vector<16x128xf32>
    %c0_88 = arith.constant 0 : index
    %c1_89 = arith.constant 1 : index
    %c0_90 = arith.constant 0 : index
    %c0_91 = arith.constant 0 : index
    %85 = vector.load %arg1[%c0_88, %c1_89, %c0_90, %c0_91] : memref<1x5x5x128xbf16, #tpu.memory_space<vmem>>, vector<1x4x4x128xbf16>
    %86 = vector.shape_cast %85 : vector<1x4x4x128xbf16> to vector<4x4x128xbf16>
    %87 = vector.shape_cast %86 : vector<4x4x128xbf16> to vector<16x128xbf16>
    %c5_92 = arith.constant 5 : index
    %c0_93 = arith.constant 0 : index
    %c0_94 = arith.constant 0 : index
    %88 = vector.load %arg2[%c5_92, %c0_93, %c0_94] : memref<9x128x128xbf16, #tpu.memory_space<vmem>>, vector<1x128x128xbf16>
    %89 = vector.shape_cast %88 : vector<1x128x128xbf16> to vector<128x128xbf16>
    %cst_95 = arith.constant dense<0.000000e+00> : vector<16x128xf32>
    %90 = tpu.matmul %87, %89, %cst_95 {dimension_numbers = #tpu.dot_dimension_numbers<[1], [0], [0], [1], [0, 0, 1, 1], [], []>} : vector<16x128xbf16>, vector<128x128xbf16>, vector<16x128xf32> -> vector<16x128xf32>
    %91 = arith.addf %84, %90 : vector<16x128xf32>
    %cst_96 = arith.constant 0.000000e+00 : f32
    %92 = vector.broadcast %cst_96 : f32 to vector<16x128xf32>
    %93 = arith.maximumf %91, %92 : vector<16x128xf32>
    %94 = vector.shape_cast %93 : vector<16x128xf32> to vector<4x4x128xf32>
    %95 = arith.truncf %94 : vector<4x4x128xf32> to vector<4x4x128xbf16>
    %c1_97 = arith.constant 1 : index
    %c1_98 = arith.constant 1 : index
    %c0_99 = arith.constant 0 : index
    %c0_100 = arith.constant 0 : index
    %96 = vector.load %arg11[%c1_97, %c1_98, %c0_99, %c0_100] : memref<4x5x5x128xbf16, #tpu.memory_space<vmem>>, vector<1x4x4x128xbf16>
    %97 = vector.shape_cast %96 : vector<1x4x4x128xbf16> to vector<4x4x128xbf16>
    %98 = vector.shape_cast %95 : vector<4x4x128xbf16> to vector<1x4x4x128xbf16>
    tpu.vector_store %arg11[%c1_97, %c1_98, %c0_99, %c0_100], %98 {strides = array<i32>} : memref<4x5x5x128xbf16, #tpu.memory_space<vmem>>, vector<1x4x4x128xbf16>,
    %c0_101 = arith.constant 0 : index
    %c0_102 = arith.constant 0 : index
    %c0_103 = arith.constant 0 : index
    %c0_104 = arith.constant 0 : index
    %99 = vector.load %arg1[%c0_101, %c0_102, %c0_103, %c0_104] : memref<1x5x5x128xbf16, #tpu.memory_space<vmem>>, vector<1x4x4x128xbf16>
    %100 = vector.shape_cast %99 : vector<1x4x4x128xbf16> to vector<4x4x128xbf16>
    %101 = vector.shape_cast %100 : vector<4x4x128xbf16> to vector<16x128xbf16>
    %c6 = arith.constant 6 : index
    %c0_105 = arith.constant 0 : index
    %c0_106 = arith.constant 0 : index
    %102 = vector.load %arg2[%c6, %c0_105, %c0_106] : memref<9x128x128xbf16, #tpu.memory_space<vmem>>, vector<1x128x128xbf16>
    %103 = vector.shape_cast %102 : vector<1x128x128xbf16> to vector<128x128xbf16>
    %cst_107 = arith.constant dense<0.000000e+00> : vector<16x128xf32>
    %104 = tpu.matmul %101, %103, %cst_107 {dimension_numbers = #tpu.dot_dimension_numbers<[1], [0], [0], [1], [0, 0, 1, 1], [], []>} : vector<16x128xbf16>, vector<128x128xbf16>, vector<16x128xf32> -> vector<16x128xf32>
    %105 = vector.broadcast %40 : vector<1x128xf32> to vector<16x128xf32>
    %106 = arith.addf %105, %104 : vector<16x128xf32>
    %c0_108 = arith.constant 0 : index
    %c0_109 = arith.constant 0 : index
    %c1_110 = arith.constant 1 : index
    %c0_111 = arith.constant 0 : index
    %107 = vector.load %arg1[%c0_108, %c0_109, %c1_110, %c0_111] : memref<1x5x5x128xbf16, #tpu.memory_space<vmem>>, vector<1x4x4x128xbf16>
    %108 = vector.shape_cast %107 : vector<1x4x4x128xbf16> to vector<4x4x128xbf16>
    %109 = vector.shape_cast %108 : vector<4x4x128xbf16> to vector<16x128xbf16>
    %c7 = arith.constant 7 : index
    %c0_112 = arith.constant 0 : index
    %c0_113 = arith.constant 0 : index
    %110 = vector.load %arg2[%c7, %c0_112, %c0_113] : memref<9x128x128xbf16, #tpu.memory_space<vmem>>, vector<1x128x128xbf16>
    %111 = vector.shape_cast %110 : vector<1x128x128xbf16> to vector<128x128xbf16>
    %cst_114 = arith.constant dense<0.000000e+00> : vector<16x128xf32>
    %112 = tpu.matmul %109, %111, %cst_114 {dimension_numbers = #tpu.dot_dimension_numbers<[1], [0], [0], [1], [0, 0, 1, 1], [], []>} : vector<16x128xbf16>, vector<128x128xbf16>, vector<16x128xf32> -> vector<16x128xf32>
    %113 = arith.addf %106, %112 : vector<16x128xf32>
    %cst_115 = arith.constant 0.000000e+00 : f32
    %114 = vector.broadcast %cst_115 : f32 to vector<16x128xf32>
    %115 = arith.maximumf %113, %114 : vector<16x128xf32>
    %116 = vector.shape_cast %115 : vector<16x128xf32> to vector<4x4x128xf32>
    %117 = arith.truncf %116 : vector<4x4x128xf32> to vector<4x4x128xbf16>
    %c2_116 = arith.constant 2 : index
    %c0_117 = arith.constant 0 : index
    %c1_118 = arith.constant 1 : index
    %c0_119 = arith.constant 0 : index
    %118 = vector.load %arg11[%c2_116, %c0_117, %c1_118, %c0_119] : memref<4x5x5x128xbf16, #tpu.memory_space<vmem>>, vector<1x4x4x128xbf16>
    %119 = vector.shape_cast %118 : vector<1x4x4x128xbf16> to vector<4x4x128xbf16>
    %120 = vector.shape_cast %117 : vector<4x4x128xbf16> to vector<1x4x4x128xbf16>
    tpu.vector_store %arg11[%c2_116, %c0_117, %c1_118, %c0_119], %120 {strides = array<i32>} : memref<4x5x5x128xbf16, #tpu.memory_space<vmem>>, vector<1x4x4x128xbf16>,
    %c0_120 = arith.constant 0 : index
    %c0_121 = arith.constant 0 : index
    %c0_122 = arith.constant 0 : index
    %c0_123 = arith.constant 0 : index
    %121 = vector.load %arg1[%c0_120, %c0_121, %c0_122, %c0_123] : memref<1x5x5x128xbf16, #tpu.memory_space<vmem>>, vector<1x4x4x128xbf16>
    %122 = vector.shape_cast %121 : vector<1x4x4x128xbf16> to vector<4x4x128xbf16>
    %123 = vector.shape_cast %122 : vector<4x4x128xbf16> to vector<16x128xbf16>
    %c8 = arith.constant 8 : index
    %c0_124 = arith.constant 0 : index
    %c0_125 = arith.constant 0 : index
    %124 = vector.load %arg2[%c8, %c0_124, %c0_125] : memref<9x128x128xbf16, #tpu.memory_space<vmem>>, vector<1x128x128xbf16>
    %125 = vector.shape_cast %124 : vector<1x128x128xbf16> to vector<128x128xbf16>
    %cst_126 = arith.constant dense<0.000000e+00> : vector<16x128xf32>
    %126 = tpu.matmul %123, %125, %cst_126 {dimension_numbers = #tpu.dot_dimension_numbers<[1], [0], [0], [1], [0, 0, 1, 1], [], []>} : vector<16x128xbf16>, vector<128x128xbf16>, vector<16x128xf32> -> vector<16x128xf32>
    %127 = vector.broadcast %40 : vector<1x128xf32> to vector<16x128xf32>
    %128 = arith.addf %127, %126 : vector<16x128xf32>
    %cst_127 = arith.constant 0.000000e+00 : f32
    %129 = vector.broadcast %cst_127 : f32 to vector<16x128xf32>
    %130 = arith.maximumf %128, %129 : vector<16x128xf32>
    %131 = vector.shape_cast %130 : vector<16x128xf32> to vector<4x4x128xf32>
    %132 = arith.truncf %131 : vector<4x4x128xf32> to vector<4x4x128xbf16>
    %c3_128 = arith.constant 3 : index
    %c0_129 = arith.constant 0 : index
    %c0_130 = arith.constant 0 : index
    %c0_131 = arith.constant 0 : index
    %133 = vector.load %arg11[%c3_128, %c0_129, %c0_130, %c0_131] : memref<4x5x5x128xbf16, #tpu.memory_space<vmem>>, vector<1x4x4x128xbf16>
    %134 = vector.shape_cast %133 : vector<1x4x4x128xbf16> to vector<4x4x128xbf16>
    %135 = vector.shape_cast %132 : vector<4x4x128xbf16> to vector<1x4x4x128xbf16>
    tpu.vector_store %arg11[%c3_128, %c0_129, %c0_130, %c0_131], %135 {strides = array<i32>} : memref<4x5x5x128xbf16, #tpu.memory_space<vmem>>, vector<1x4x4x128xbf16>,
    %c0_132 = arith.constant 0 : index
    %c0_133 = arith.constant 0 : index
    %136 = vector.load %arg5[%c0_132, %c0_133] : memref<1x128xf32, #tpu.memory_space<vmem>>, vector<1x128xf32>
    %c0_134 = arith.constant 0 : index
    %c0_135 = arith.constant 0 : index
    %c0_136 = arith.constant 0 : index
    %c0_137 = arith.constant 0 : index
    %137 = vector.load %arg11[%c0_134, %c0_135, %c0_136, %c0_137] : memref<4x5x5x128xbf16, #tpu.memory_space<vmem>>, vector<1x4x4x128xbf16>
    %138 = vector.shape_cast %137 : vector<1x4x4x128xbf16> to vector<4x4x128xbf16>
    %139 = vector.shape_cast %138 : vector<4x4x128xbf16> to vector<16x128xbf16>
    %c0_138 = arith.constant 0 : index
    %c0_139 = arith.constant 0 : index
    %c0_140 = arith.constant 0 : index
    %140 = vector.load %arg4[%c0_138, %c0_139, %c0_140] : memref<16x128x128xbf16, #tpu.memory_space<vmem>>, vector<1x128x128xbf16>
    %141 = vector.shape_cast %140 : vector<1x128x128xbf16> to vector<128x128xbf16>
    %cst_141 = arith.constant dense<0.000000e+00> : vector<16x128xf32>
    %142 = tpu.matmul %139, %141, %cst_141 {dimension_numbers = #tpu.dot_dimension_numbers<[1], [0], [0], [1], [0, 0, 1, 1], [], []>} : vector<16x128xbf16>, vector<128x128xbf16>, vector<16x128xf32> -> vector<16x128xf32>
    %143 = vector.broadcast %136 : vector<1x128xf32> to vector<16x128xf32>
    %144 = arith.addf %143, %142 : vector<16x128xf32>
    %c1_142 = arith.constant 1 : index
    %c0_143 = arith.constant 0 : index
    %c0_144 = arith.constant 0 : index
    %c0_145 = arith.constant 0 : index
    %145 = vector.load %arg11[%c1_142, %c0_143, %c0_144, %c0_145] : memref<4x5x5x128xbf16, #tpu.memory_space<vmem>>, vector<1x4x4x128xbf16>
    %146 = vector.shape_cast %145 : vector<1x4x4x128xbf16> to vector<4x4x128xbf16>
    %147 = vector.shape_cast %146 : vector<4x4x128xbf16> to vector<16x128xbf16>
    %c1_146 = arith.constant 1 : index
    %c0_147 = arith.constant 0 : index
    %c0_148 = arith.constant 0 : index
    %148 = vector.load %arg4[%c1_146, %c0_147, %c0_148] : memref<16x128x128xbf16, #tpu.memory_space<vmem>>, vector<1x128x128xbf16>
    %149 = vector.shape_cast %148 : vector<1x128x128xbf16> to vector<128x128xbf16>
    %cst_149 = arith.constant dense<0.000000e+00> : vector<16x128xf32>
    %150 = tpu.matmul %147, %149, %cst_149 {dimension_numbers = #tpu.dot_dimension_numbers<[1], [0], [0], [1], [0, 0, 1, 1], [], []>} : vector<16x128xbf16>, vector<128x128xbf16>, vector<16x128xf32> -> vector<16x128xf32>
    %151 = arith.addf %144, %150 : vector<16x128xf32>
    %c0_150 = arith.constant 0 : index
    %c0_151 = arith.constant 0 : index
    %c1_152 = arith.constant 1 : index
    %c0_153 = arith.constant 0 : index
    %152 = vector.load %arg11[%c0_150, %c0_151, %c1_152, %c0_153] : memref<4x5x5x128xbf16, #tpu.memory_space<vmem>>, vector<1x4x4x128xbf16>
    %153 = vector.shape_cast %152 : vector<1x4x4x128xbf16> to vector<4x4x128xbf16>
    %154 = vector.shape_cast %153 : vector<4x4x128xbf16> to vector<16x128xbf16>
    %c2_154 = arith.constant 2 : index
    %c0_155 = arith.constant 0 : index
    %c0_156 = arith.constant 0 : index
    %155 = vector.load %arg4[%c2_154, %c0_155, %c0_156] : memref<16x128x128xbf16, #tpu.memory_space<vmem>>, vector<1x128x128xbf16>
    %156 = vector.shape_cast %155 : vector<1x128x128xbf16> to vector<128x128xbf16>
    %cst_157 = arith.constant dense<0.000000e+00> : vector<16x128xf32>
    %157 = tpu.matmul %154, %156, %cst_157 {dimension_numbers = #tpu.dot_dimension_numbers<[1], [0], [0], [1], [0, 0, 1, 1], [], []>} : vector<16x128xbf16>, vector<128x128xbf16>, vector<16x128xf32> -> vector<16x128xf32>
    %158 = arith.addf %151, %157 : vector<16x128xf32>
    %c1_158 = arith.constant 1 : index
    %c0_159 = arith.constant 0 : index
    %c1_160 = arith.constant 1 : index
    %c0_161 = arith.constant 0 : index
    %159 = vector.load %arg11[%c1_158, %c0_159, %c1_160, %c0_161] : memref<4x5x5x128xbf16, #tpu.memory_space<vmem>>, vector<1x4x4x128xbf16>
    %160 = vector.shape_cast %159 : vector<1x4x4x128xbf16> to vector<4x4x128xbf16>
    %161 = vector.shape_cast %160 : vector<4x4x128xbf16> to vector<16x128xbf16>
    %c3_162 = arith.constant 3 : index
    %c0_163 = arith.constant 0 : index
    %c0_164 = arith.constant 0 : index
    %162 = vector.load %arg4[%c3_162, %c0_163, %c0_164] : memref<16x128x128xbf16, #tpu.memory_space<vmem>>, vector<1x128x128xbf16>
    %163 = vector.shape_cast %162 : vector<1x128x128xbf16> to vector<128x128xbf16>
    %cst_165 = arith.constant dense<0.000000e+00> : vector<16x128xf32>
    %164 = tpu.matmul %161, %163, %cst_165 {dimension_numbers = #tpu.dot_dimension_numbers<[1], [0], [0], [1], [0, 0, 1, 1], [], []>} : vector<16x128xbf16>, vector<128x128xbf16>, vector<16x128xf32> -> vector<16x128xf32>
    %165 = arith.addf %158, %164 : vector<16x128xf32>
    %c2_166 = arith.constant 2 : index
    %c0_167 = arith.constant 0 : index
    %c0_168 = arith.constant 0 : index
    %c0_169 = arith.constant 0 : index
    %166 = vector.load %arg11[%c2_166, %c0_167, %c0_168, %c0_169] : memref<4x5x5x128xbf16, #tpu.memory_space<vmem>>, vector<1x4x4x128xbf16>
    %167 = vector.shape_cast %166 : vector<1x4x4x128xbf16> to vector<4x4x128xbf16>
    %168 = vector.shape_cast %167 : vector<4x4x128xbf16> to vector<16x128xbf16>
    %c4_170 = arith.constant 4 : index
    %c0_171 = arith.constant 0 : index
    %c0_172 = arith.constant 0 : index
    %169 = vector.load %arg4[%c4_170, %c0_171, %c0_172] : memref<16x128x128xbf16, #tpu.memory_space<vmem>>, vector<1x128x128xbf16>
    %170 = vector.shape_cast %169 : vector<1x128x128xbf16> to vector<128x128xbf16>
    %cst_173 = arith.constant dense<0.000000e+00> : vector<16x128xf32>
    %171 = tpu.matmul %168, %170, %cst_173 {dimension_numbers = #tpu.dot_dimension_numbers<[1], [0], [0], [1], [0, 0, 1, 1], [], []>} : vector<16x128xbf16>, vector<128x128xbf16>, vector<16x128xf32> -> vector<16x128xf32>
    %172 = arith.addf %165, %171 : vector<16x128xf32>
    %c3_174 = arith.constant 3 : index
    %c0_175 = arith.constant 0 : index
    %c0_176 = arith.constant 0 : index
    %c0_177 = arith.constant 0 : index
    %173 = vector.load %arg11[%c3_174, %c0_175, %c0_176, %c0_177] : memref<4x5x5x128xbf16, #tpu.memory_space<vmem>>, vector<1x4x4x128xbf16>
    %174 = vector.shape_cast %173 : vector<1x4x4x128xbf16> to vector<4x4x128xbf16>
    %175 = vector.shape_cast %174 : vector<4x4x128xbf16> to vector<16x128xbf16>
    %c5_178 = arith.constant 5 : index
    %c0_179 = arith.constant 0 : index
    %c0_180 = arith.constant 0 : index
    %176 = vector.load %arg4[%c5_178, %c0_179, %c0_180] : memref<16x128x128xbf16, #tpu.memory_space<vmem>>, vector<1x128x128xbf16>
    %177 = vector.shape_cast %176 : vector<1x128x128xbf16> to vector<128x128xbf16>
    %cst_181 = arith.constant dense<0.000000e+00> : vector<16x128xf32>
    %178 = tpu.matmul %175, %177, %cst_181 {dimension_numbers = #tpu.dot_dimension_numbers<[1], [0], [0], [1], [0, 0, 1, 1], [], []>} : vector<16x128xbf16>, vector<128x128xbf16>, vector<16x128xf32> -> vector<16x128xf32>
    %179 = arith.addf %172, %178 : vector<16x128xf32>
    %c2_182 = arith.constant 2 : index
    %c0_183 = arith.constant 0 : index
    %c1_184 = arith.constant 1 : index
    %c0_185 = arith.constant 0 : index
    %180 = vector.load %arg11[%c2_182, %c0_183, %c1_184, %c0_185] : memref<4x5x5x128xbf16, #tpu.memory_space<vmem>>, vector<1x4x4x128xbf16>
    %181 = vector.shape_cast %180 : vector<1x4x4x128xbf16> to vector<4x4x128xbf16>
    %182 = vector.shape_cast %181 : vector<4x4x128xbf16> to vector<16x128xbf16>
    %c6_186 = arith.constant 6 : index
    %c0_187 = arith.constant 0 : index
    %c0_188 = arith.constant 0 : index
    %183 = vector.load %arg4[%c6_186, %c0_187, %c0_188] : memref<16x128x128xbf16, #tpu.memory_space<vmem>>, vector<1x128x128xbf16>
    %184 = vector.shape_cast %183 : vector<1x128x128xbf16> to vector<128x128xbf16>
    %cst_189 = arith.constant dense<0.000000e+00> : vector<16x128xf32>
    %185 = tpu.matmul %182, %184, %cst_189 {dimension_numbers = #tpu.dot_dimension_numbers<[1], [0], [0], [1], [0, 0, 1, 1], [], []>} : vector<16x128xbf16>, vector<128x128xbf16>, vector<16x128xf32> -> vector<16x128xf32>
    %186 = arith.addf %179, %185 : vector<16x128xf32>
    %c3_190 = arith.constant 3 : index
    %c0_191 = arith.constant 0 : index
    %c1_192 = arith.constant 1 : index
    %c0_193 = arith.constant 0 : index
    %187 = vector.load %arg11[%c3_190, %c0_191, %c1_192, %c0_193] : memref<4x5x5x128xbf16, #tpu.memory_space<vmem>>, vector<1x4x4x128xbf16>
    %188 = vector.shape_cast %187 : vector<1x4x4x128xbf16> to vector<4x4x128xbf16>
    %189 = vector.shape_cast %188 : vector<4x4x128xbf16> to vector<16x128xbf16>
    %c7_194 = arith.constant 7 : index
    %c0_195 = arith.constant 0 : index
    %c0_196 = arith.constant 0 : index
    %190 = vector.load %arg4[%c7_194, %c0_195, %c0_196] : memref<16x128x128xbf16, #tpu.memory_space<vmem>>, vector<1x128x128xbf16>
    %191 = vector.shape_cast %190 : vector<1x128x128xbf16> to vector<128x128xbf16>
    %cst_197 = arith.constant dense<0.000000e+00> : vector<16x128xf32>
    %192 = tpu.matmul %189, %191, %cst_197 {dimension_numbers = #tpu.dot_dimension_numbers<[1], [0], [0], [1], [0, 0, 1, 1], [], []>} : vector<16x128xbf16>, vector<128x128xbf16>, vector<16x128xf32> -> vector<16x128xf32>
    %193 = arith.addf %186, %192 : vector<16x128xf32>
    %c0_198 = arith.constant 0 : index
    %c1_199 = arith.constant 1 : index
    %c0_200 = arith.constant 0 : index
    %c0_201 = arith.constant 0 : index
    %194 = vector.load %arg11[%c0_198, %c1_199, %c0_200, %c0_201] : memref<4x5x5x128xbf16, #tpu.memory_space<vmem>>, vector<1x4x4x128xbf16>
    %195 = vector.shape_cast %194 : vector<1x4x4x128xbf16> to vector<4x4x128xbf16>
    %196 = vector.shape_cast %195 : vector<4x4x128xbf16> to vector<16x128xbf16>
    %c8_202 = arith.constant 8 : index
    %c0_203 = arith.constant 0 : index
    %c0_204 = arith.constant 0 : index
    %197 = vector.load %arg4[%c8_202, %c0_203, %c0_204] : memref<16x128x128xbf16, #tpu.memory_space<vmem>>, vector<1x128x128xbf16>
    %198 = vector.shape_cast %197 : vector<1x128x128xbf16> to vector<128x128xbf16>
    %cst_205 = arith.constant dense<0.000000e+00> : vector<16x128xf32>
    %199 = tpu.matmul %196, %198, %cst_205 {dimension_numbers = #tpu.dot_dimension_numbers<[1], [0], [0], [1], [0, 0, 1, 1], [], []>} : vector<16x128xbf16>, vector<128x128xbf16>, vector<16x128xf32> -> vector<16x128xf32>
    %200 = arith.addf %193, %199 : vector<16x128xf32>
    %c1_206 = arith.constant 1 : index
    %c1_207 = arith.constant 1 : index
    %c0_208 = arith.constant 0 : index
    %c0_209 = arith.constant 0 : index
    %201 = vector.load %arg11[%c1_206, %c1_207, %c0_208, %c0_209] : memref<4x5x5x128xbf16, #tpu.memory_space<vmem>>, vector<1x4x4x128xbf16>
    %202 = vector.shape_cast %201 : vector<1x4x4x128xbf16> to vector<4x4x128xbf16>
    %203 = vector.shape_cast %202 : vector<4x4x128xbf16> to vector<16x128xbf16>
    %c9 = arith.constant 9 : index
    %c0_210 = arith.constant 0 : index
    %c0_211 = arith.constant 0 : index
    %204 = vector.load %arg4[%c9, %c0_210, %c0_211] : memref<16x128x128xbf16, #tpu.memory_space<vmem>>, vector<1x128x128xbf16>
    %205 = vector.shape_cast %204 : vector<1x128x128xbf16> to vector<128x128xbf16>
    %cst_212 = arith.constant dense<0.000000e+00> : vector<16x128xf32>
    %206 = tpu.matmul %203, %205, %cst_212 {dimension_numbers = #tpu.dot_dimension_numbers<[1], [0], [0], [1], [0, 0, 1, 1], [], []>} : vector<16x128xbf16>, vector<128x128xbf16>, vector<16x128xf32> -> vector<16x128xf32>
    %207 = arith.addf %200, %206 : vector<16x128xf32>
    %c0_213 = arith.constant 0 : index
    %c1_214 = arith.constant 1 : index
    %c1_215 = arith.constant 1 : index
    %c0_216 = arith.constant 0 : index
    %208 = vector.load %arg11[%c0_213, %c1_214, %c1_215, %c0_216] : memref<4x5x5x128xbf16, #tpu.memory_space<vmem>>, vector<1x4x4x128xbf16>
    %209 = vector.shape_cast %208 : vector<1x4x4x128xbf16> to vector<4x4x128xbf16>
    %210 = vector.shape_cast %209 : vector<4x4x128xbf16> to vector<16x128xbf16>
    %c10 = arith.constant 10 : index
    %c0_217 = arith.constant 0 : index
    %c0_218 = arith.constant 0 : index
    %211 = vector.load %arg4[%c10, %c0_217, %c0_218] : memref<16x128x128xbf16, #tpu.memory_space<vmem>>, vector<1x128x128xbf16>
    %212 = vector.shape_cast %211 : vector<1x128x128xbf16> to vector<128x128xbf16>
    %cst_219 = arith.constant dense<0.000000e+00> : vector<16x128xf32>
    %213 = tpu.matmul %210, %212, %cst_219 {dimension_numbers = #tpu.dot_dimension_numbers<[1], [0], [0], [1], [0, 0, 1, 1], [], []>} : vector<16x128xbf16>, vector<128x128xbf16>, vector<16x128xf32> -> vector<16x128xf32>
    %214 = arith.addf %207, %213 : vector<16x128xf32>
    %c1_220 = arith.constant 1 : index
    %c1_221 = arith.constant 1 : index
    %c1_222 = arith.constant 1 : index
    %c0_223 = arith.constant 0 : index
    %215 = vector.load %arg11[%c1_220, %c1_221, %c1_222, %c0_223] : memref<4x5x5x128xbf16, #tpu.memory_space<vmem>>, vector<1x4x4x128xbf16>
    %216 = vector.shape_cast %215 : vector<1x4x4x128xbf16> to vector<4x4x128xbf16>
    %217 = vector.shape_cast %216 : vector<4x4x128xbf16> to vector<16x128xbf16>
    %c11 = arith.constant 11 : index
    %c0_224 = arith.constant 0 : index
    %c0_225 = arith.constant 0 : index
    %218 = vector.load %arg4[%c11, %c0_224, %c0_225] : memref<16x128x128xbf16, #tpu.memory_space<vmem>>, vector<1x128x128xbf16>
    %219 = vector.shape_cast %218 : vector<1x128x128xbf16> to vector<128x128xbf16>
    %cst_226 = arith.constant dense<0.000000e+00> : vector<16x128xf32>
    %220 = tpu.matmul %217, %219, %cst_226 {dimension_numbers = #tpu.dot_dimension_numbers<[1], [0], [0], [1], [0, 0, 1, 1], [], []>} : vector<16x128xbf16>, vector<128x128xbf16>, vector<16x128xf32> -> vector<16x128xf32>
    %221 = arith.addf %214, %220 : vector<16x128xf32>
    %c2_227 = arith.constant 2 : index
    %c1_228 = arith.constant 1 : index
    %c0_229 = arith.constant 0 : index
    %c0_230 = arith.constant 0 : index
    %222 = vector.load %arg11[%c2_227, %c1_228, %c0_229, %c0_230] : memref<4x5x5x128xbf16, #tpu.memory_space<vmem>>, vector<1x4x4x128xbf16>
    %223 = vector.shape_cast %222 : vector<1x4x4x128xbf16> to vector<4x4x128xbf16>
    %224 = vector.shape_cast %223 : vector<4x4x128xbf16> to vector<16x128xbf16>
    %c12 = arith.constant 12 : index
    %c0_231 = arith.constant 0 : index
    %c0_232 = arith.constant 0 : index
    %225 = vector.load %arg4[%c12, %c0_231, %c0_232] : memref<16x128x128xbf16, #tpu.memory_space<vmem>>, vector<1x128x128xbf16>
    %226 = vector.shape_cast %225 : vector<1x128x128xbf16> to vector<128x128xbf16>
    %cst_233 = arith.constant dense<0.000000e+00> : vector<16x128xf32>
    %227 = tpu.matmul %224, %226, %cst_233 {dimension_numbers = #tpu.dot_dimension_numbers<[1], [0], [0], [1], [0, 0, 1, 1], [], []>} : vector<16x128xbf16>, vector<128x128xbf16>, vector<16x128xf32> -> vector<16x128xf32>
    %228 = arith.addf %221, %227 : vector<16x128xf32>
    %c3_234 = arith.constant 3 : index
    %c1_235 = arith.constant 1 : index
    %c0_236 = arith.constant 0 : index
    %c0_237 = arith.constant 0 : index
    %229 = vector.load %arg11[%c3_234, %c1_235, %c0_236, %c0_237] : memref<4x5x5x128xbf16, #tpu.memory_space<vmem>>, vector<1x4x4x128xbf16>
    %230 = vector.shape_cast %229 : vector<1x4x4x128xbf16> to vector<4x4x128xbf16>
    %231 = vector.shape_cast %230 : vector<4x4x128xbf16> to vector<16x128xbf16>
    %c13 = arith.constant 13 : index
    %c0_238 = arith.constant 0 : index
    %c0_239 = arith.constant 0 : index
    %232 = vector.load %arg4[%c13, %c0_238, %c0_239] : memref<16x128x128xbf16, #tpu.memory_space<vmem>>, vector<1x128x128xbf16>
    %233 = vector.shape_cast %232 : vector<1x128x128xbf16> to vector<128x128xbf16>
    %cst_240 = arith.constant dense<0.000000e+00> : vector<16x128xf32>
    %234 = tpu.matmul %231, %233, %cst_240 {dimension_numbers = #tpu.dot_dimension_numbers<[1], [0], [0], [1], [0, 0, 1, 1], [], []>} : vector<16x128xbf16>, vector<128x128xbf16>, vector<16x128xf32> -> vector<16x128xf32>
    %235 = arith.addf %228, %234 : vector<16x128xf32>
    %c2_241 = arith.constant 2 : index
    %c1_242 = arith.constant 1 : index
    %c1_243 = arith.constant 1 : index
    %c0_244 = arith.constant 0 : index
    %236 = vector.load %arg11[%c2_241, %c1_242, %c1_243, %c0_244] : memref<4x5x5x128xbf16, #tpu.memory_space<vmem>>, vector<1x4x4x128xbf16>
    %237 = vector.shape_cast %236 : vector<1x4x4x128xbf16> to vector<4x4x128xbf16>
    %238 = vector.shape_cast %237 : vector<4x4x128xbf16> to vector<16x128xbf16>
    %c14 = arith.constant 14 : index
    %c0_245 = arith.constant 0 : index
    %c0_246 = arith.constant 0 : index
    %239 = vector.load %arg4[%c14, %c0_245, %c0_246] : memref<16x128x128xbf16, #tpu.memory_space<vmem>>, vector<1x128x128xbf16>
    %240 = vector.shape_cast %239 : vector<1x128x128xbf16> to vector<128x128xbf16>
    %cst_247 = arith.constant dense<0.000000e+00> : vector<16x128xf32>
    %241 = tpu.matmul %238, %240, %cst_247 {dimension_numbers = #tpu.dot_dimension_numbers<[1], [0], [0], [1], [0, 0, 1, 1], [], []>} : vector<16x128xbf16>, vector<128x128xbf16>, vector<16x128xf32> -> vector<16x128xf32>
    %242 = arith.addf %235, %241 : vector<16x128xf32>
    %c3_248 = arith.constant 3 : index
    %c1_249 = arith.constant 1 : index
    %c1_250 = arith.constant 1 : index
    %c0_251 = arith.constant 0 : index
    %243 = vector.load %arg11[%c3_248, %c1_249, %c1_250, %c0_251] : memref<4x5x5x128xbf16, #tpu.memory_space<vmem>>, vector<1x4x4x128xbf16>
    %244 = vector.shape_cast %243 : vector<1x4x4x128xbf16> to vector<4x4x128xbf16>
    %245 = vector.shape_cast %244 : vector<4x4x128xbf16> to vector<16x128xbf16>
    %c15 = arith.constant 15 : index
    %c0_252 = arith.constant 0 : index
    %c0_253 = arith.constant 0 : index
    %246 = vector.load %arg4[%c15, %c0_252, %c0_253] : memref<16x128x128xbf16, #tpu.memory_space<vmem>>, vector<1x128x128xbf16>
    %247 = vector.shape_cast %246 : vector<1x128x128xbf16> to vector<128x128xbf16>
    %cst_254 = arith.constant dense<0.000000e+00> : vector<16x128xf32>
    %248 = tpu.matmul %245, %247, %cst_254 {dimension_numbers = #tpu.dot_dimension_numbers<[1], [0], [0], [1], [0, 0, 1, 1], [], []>} : vector<16x128xbf16>, vector<128x128xbf16>, vector<16x128xf32> -> vector<16x128xf32>
    %249 = arith.addf %242, %248 : vector<16x128xf32>
    %cst_255 = arith.constant 0.000000e+00 : f32
    %250 = vector.broadcast %cst_255 : f32 to vector<16x128xf32>
    %251 = arith.maximumf %249, %250 : vector<16x128xf32>
    %252 = vector.shape_cast %251 : vector<16x128xf32> to vector<4x4x128xf32>
    %253 = arith.truncf %252 : vector<4x4x128xf32> to vector<4x4x128xbf16>
    %c1_256 = arith.constant 1 : index
    %c1_257 = arith.constant 1 : index
    %c0_258 = arith.constant 0 : index
    %254 = vector.load %arg12[%c1_256, %c1_257, %c0_258] : memref<6x6x128xbf16, #tpu.memory_space<vmem>>, vector<4x4x128xbf16>
    tpu.vector_store %arg12[%c1_256, %c1_257, %c0_258], %253 {strides = array<i32>} : memref<6x6x128xbf16, #tpu.memory_space<vmem>>, vector<4x4x128xbf16>,
    %c0_259 = arith.constant 0 : index
    %c0_260 = arith.constant 0 : index
    %255 = vector.load %arg7[%c0_259, %c0_260] : memref<1x128xf32, #tpu.memory_space<vmem>>, vector<1x128xf32>
    %c0_261 = arith.constant 0 : index
    %c0_262 = arith.constant 0 : index
    %c0_263 = arith.constant 0 : index
    %256 = vector.load %arg12[%c0_261, %c0_262, %c0_263] : memref<6x6x128xbf16, #tpu.memory_space<vmem>>, vector<4x4x128xbf16>
    %257 = vector.shape_cast %256 : vector<4x4x128xbf16> to vector<16x128xbf16>
    %c0_264 = arith.constant 0 : index
    %c0_265 = arith.constant 0 : index
    %c0_266 = arith.constant 0 : index
    %258 = vector.load %arg6[%c0_264, %c0_265, %c0_266] : memref<9x128x128xbf16, #tpu.memory_space<vmem>>, vector<1x128x128xbf16>
    %259 = vector.shape_cast %258 : vector<1x128x128xbf16> to vector<128x128xbf16>
    %cst_267 = arith.constant dense<0.000000e+00> : vector<16x128xf32>
    %260 = tpu.matmul %257, %259, %cst_267 {dimension_numbers = #tpu.dot_dimension_numbers<[1], [0], [0], [1], [0, 0, 1, 1], [], []>} : vector<16x128xbf16>, vector<128x128xbf16>, vector<16x128xf32> -> vector<16x128xf32>
    %261 = vector.broadcast %255 : vector<1x128xf32> to vector<16x128xf32>
    %262 = arith.addf %261, %260 : vector<16x128xf32>
    %c0_268 = arith.constant 0 : index
    %c1_269 = arith.constant 1 : index
    %c0_270 = arith.constant 0 : index
    %263 = vector.load %arg12[%c0_268, %c1_269, %c0_270] : memref<6x6x128xbf16, #tpu.memory_space<vmem>>, vector<4x4x128xbf16>
    %264 = vector.shape_cast %263 : vector<4x4x128xbf16> to vector<16x128xbf16>
    %c1_271 = arith.constant 1 : index
    %c0_272 = arith.constant 0 : index
    %c0_273 = arith.constant 0 : index
    %265 = vector.load %arg6[%c1_271, %c0_272, %c0_273] : memref<9x128x128xbf16, #tpu.memory_space<vmem>>, vector<1x128x128xbf16>
    %266 = vector.shape_cast %265 : vector<1x128x128xbf16> to vector<128x128xbf16>
    %cst_274 = arith.constant dense<0.000000e+00> : vector<16x128xf32>
    %267 = tpu.matmul %264, %266, %cst_274 {dimension_numbers = #tpu.dot_dimension_numbers<[1], [0], [0], [1], [0, 0, 1, 1], [], []>} : vector<16x128xbf16>, vector<128x128xbf16>, vector<16x128xf32> -> vector<16x128xf32>
    %268 = arith.addf %262, %267 : vector<16x128xf32>
    %c0_275 = arith.constant 0 : index
    %c2_276 = arith.constant 2 : index
    %c0_277 = arith.constant 0 : index
    %269 = vector.load %arg12[%c0_275, %c2_276, %c0_277] : memref<6x6x128xbf16, #tpu.memory_space<vmem>>, vector<4x4x128xbf16>
    %270 = vector.shape_cast %269 : vector<4x4x128xbf16> to vector<16x128xbf16>
    %c2_278 = arith.constant 2 : index
    %c0_279 = arith.constant 0 : index
    %c0_280 = arith.constant 0 : index
    %271 = vector.load %arg6[%c2_278, %c0_279, %c0_280] : memref<9x128x128xbf16, #tpu.memory_space<vmem>>, vector<1x128x128xbf16>
    %272 = vector.shape_cast %271 : vector<1x128x128xbf16> to vector<128x128xbf16>
    %cst_281 = arith.constant dense<0.000000e+00> : vector<16x128xf32>
    %273 = tpu.matmul %270, %272, %cst_281 {dimension_numbers = #tpu.dot_dimension_numbers<[1], [0], [0], [1], [0, 0, 1, 1], [], []>} : vector<16x128xbf16>, vector<128x128xbf16>, vector<16x128xf32> -> vector<16x128xf32>
    %274 = arith.addf %268, %273 : vector<16x128xf32>
    %c1_282 = arith.constant 1 : index
    %c0_283 = arith.constant 0 : index
    %c0_284 = arith.constant 0 : index
    %275 = vector.load %arg12[%c1_282, %c0_283, %c0_284] : memref<6x6x128xbf16, #tpu.memory_space<vmem>>, vector<4x4x128xbf16>
    %276 = vector.shape_cast %275 : vector<4x4x128xbf16> to vector<16x128xbf16>
    %c3_285 = arith.constant 3 : index
    %c0_286 = arith.constant 0 : index
    %c0_287 = arith.constant 0 : index
    %277 = vector.load %arg6[%c3_285, %c0_286, %c0_287] : memref<9x128x128xbf16, #tpu.memory_space<vmem>>, vector<1x128x128xbf16>
    %278 = vector.shape_cast %277 : vector<1x128x128xbf16> to vector<128x128xbf16>
    %cst_288 = arith.constant dense<0.000000e+00> : vector<16x128xf32>
    %279 = tpu.matmul %276, %278, %cst_288 {dimension_numbers = #tpu.dot_dimension_numbers<[1], [0], [0], [1], [0, 0, 1, 1], [], []>} : vector<16x128xbf16>, vector<128x128xbf16>, vector<16x128xf32> -> vector<16x128xf32>
    %280 = arith.addf %274, %279 : vector<16x128xf32>
    %c1_289 = arith.constant 1 : index
    %c1_290 = arith.constant 1 : index
    %c0_291 = arith.constant 0 : index
    %281 = vector.load %arg12[%c1_289, %c1_290, %c0_291] : memref<6x6x128xbf16, #tpu.memory_space<vmem>>, vector<4x4x128xbf16>
    %282 = vector.shape_cast %281 : vector<4x4x128xbf16> to vector<16x128xbf16>
    %c4_292 = arith.constant 4 : index
    %c0_293 = arith.constant 0 : index
    %c0_294 = arith.constant 0 : index
    %283 = vector.load %arg6[%c4_292, %c0_293, %c0_294] : memref<9x128x128xbf16, #tpu.memory_space<vmem>>, vector<1x128x128xbf16>
    %284 = vector.shape_cast %283 : vector<1x128x128xbf16> to vector<128x128xbf16>
    %cst_295 = arith.constant dense<0.000000e+00> : vector<16x128xf32>
    %285 = tpu.matmul %282, %284, %cst_295 {dimension_numbers = #tpu.dot_dimension_numbers<[1], [0], [0], [1], [0, 0, 1, 1], [], []>} : vector<16x128xbf16>, vector<128x128xbf16>, vector<16x128xf32> -> vector<16x128xf32>
    %286 = arith.addf %280, %285 : vector<16x128xf32>
    %c1_296 = arith.constant 1 : index
    %c2_297 = arith.constant 2 : index
    %c0_298 = arith.constant 0 : index
    %287 = vector.load %arg12[%c1_296, %c2_297, %c0_298] : memref<6x6x128xbf16, #tpu.memory_space<vmem>>, vector<4x4x128xbf16>
    %288 = vector.shape_cast %287 : vector<4x4x128xbf16> to vector<16x128xbf16>
    %c5_299 = arith.constant 5 : index
    %c0_300 = arith.constant 0 : index
    %c0_301 = arith.constant 0 : index
    %289 = vector.load %arg6[%c5_299, %c0_300, %c0_301] : memref<9x128x128xbf16, #tpu.memory_space<vmem>>, vector<1x128x128xbf16>
    %290 = vector.shape_cast %289 : vector<1x128x128xbf16> to vector<128x128xbf16>
    %cst_302 = arith.constant dense<0.000000e+00> : vector<16x128xf32>
    %291 = tpu.matmul %288, %290, %cst_302 {dimension_numbers = #tpu.dot_dimension_numbers<[1], [0], [0], [1], [0, 0, 1, 1], [], []>} : vector<16x128xbf16>, vector<128x128xbf16>, vector<16x128xf32> -> vector<16x128xf32>
    %292 = arith.addf %286, %291 : vector<16x128xf32>
    %c2_303 = arith.constant 2 : index
    %c0_304 = arith.constant 0 : index
    %c0_305 = arith.constant 0 : index
    %293 = vector.load %arg12[%c2_303, %c0_304, %c0_305] : memref<6x6x128xbf16, #tpu.memory_space<vmem>>, vector<4x4x128xbf16>
    %294 = vector.shape_cast %293 : vector<4x4x128xbf16> to vector<16x128xbf16>
    %c6_306 = arith.constant 6 : index
    %c0_307 = arith.constant 0 : index
    %c0_308 = arith.constant 0 : index
    %295 = vector.load %arg6[%c6_306, %c0_307, %c0_308] : memref<9x128x128xbf16, #tpu.memory_space<vmem>>, vector<1x128x128xbf16>
    %296 = vector.shape_cast %295 : vector<1x128x128xbf16> to vector<128x128xbf16>
    %cst_309 = arith.constant dense<0.000000e+00> : vector<16x128xf32>
    %297 = tpu.matmul %294, %296, %cst_309 {dimension_numbers = #tpu.dot_dimension_numbers<[1], [0], [0], [1], [0, 0, 1, 1], [], []>} : vector<16x128xbf16>, vector<128x128xbf16>, vector<16x128xf32> -> vector<16x128xf32>
    %298 = arith.addf %292, %297 : vector<16x128xf32>
    %c2_310 = arith.constant 2 : index
    %c1_311 = arith.constant 1 : index
    %c0_312 = arith.constant 0 : index
    %299 = vector.load %arg12[%c2_310, %c1_311, %c0_312] : memref<6x6x128xbf16, #tpu.memory_space<vmem>>, vector<4x4x128xbf16>
    %300 = vector.shape_cast %299 : vector<4x4x128xbf16> to vector<16x128xbf16>
    %c7_313 = arith.constant 7 : index
    %c0_314 = arith.constant 0 : index
    %c0_315 = arith.constant 0 : index
    %301 = vector.load %arg6[%c7_313, %c0_314, %c0_315] : memref<9x128x128xbf16, #tpu.memory_space<vmem>>, vector<1x128x128xbf16>
    %302 = vector.shape_cast %301 : vector<1x128x128xbf16> to vector<128x128xbf16>
    %cst_316 = arith.constant dense<0.000000e+00> : vector<16x128xf32>
    %303 = tpu.matmul %300, %302, %cst_316 {dimension_numbers = #tpu.dot_dimension_numbers<[1], [0], [0], [1], [0, 0, 1, 1], [], []>} : vector<16x128xbf16>, vector<128x128xbf16>, vector<16x128xf32> -> vector<16x128xf32>
    %304 = arith.addf %298, %303 : vector<16x128xf32>
    %c2_317 = arith.constant 2 : index
    %c2_318 = arith.constant 2 : index
    %c0_319 = arith.constant 0 : index
    %305 = vector.load %arg12[%c2_317, %c2_318, %c0_319] : memref<6x6x128xbf16, #tpu.memory_space<vmem>>, vector<4x4x128xbf16>
    %306 = vector.shape_cast %305 : vector<4x4x128xbf16> to vector<16x128xbf16>
    %c8_320 = arith.constant 8 : index
    %c0_321 = arith.constant 0 : index
    %c0_322 = arith.constant 0 : index
    %307 = vector.load %arg6[%c8_320, %c0_321, %c0_322] : memref<9x128x128xbf16, #tpu.memory_space<vmem>>, vector<1x128x128xbf16>
    %308 = vector.shape_cast %307 : vector<1x128x128xbf16> to vector<128x128xbf16>
    %cst_323 = arith.constant dense<0.000000e+00> : vector<16x128xf32>
    %309 = tpu.matmul %306, %308, %cst_323 {dimension_numbers = #tpu.dot_dimension_numbers<[1], [0], [0], [1], [0, 0, 1, 1], [], []>} : vector<16x128xbf16>, vector<128x128xbf16>, vector<16x128xf32> -> vector<16x128xf32>
    %310 = arith.addf %304, %309 : vector<16x128xf32>
    %c0_324 = arith.constant 0 : index
    %c0_325 = arith.constant 0 : index
    %311 = vector.load %arg13[%c0_324, %c0_325] : memref<16x128xf32, #tpu.memory_space<vmem>>, vector<16x128xf32>
    tpu.vector_store %arg13[%c0_324, %c0_325], %310 {strides = array<i32>} : memref<16x128xf32, #tpu.memory_space<vmem>>, vector<16x128xf32>,
    %c0_326 = arith.constant 0 : index
    %c0_327 = arith.constant 0 : index
    %312 = vector.load %arg13[%c0_326, %c0_327] : memref<16x128xf32, #tpu.memory_space<vmem>>, vector<16x128xf32>
    %cst_328 = arith.constant 0.000000e+00 : f32
    %313 = vector.broadcast %cst_328 : f32 to vector<16x128xf32>
    %314 = arith.maximumf %312, %313 : vector<16x128xf32>
    %315 = vector.shape_cast %314 : vector<16x128xf32> to vector<4x4x128xf32>
    %316 = arith.truncf %315 : vector<4x4x128xf32> to vector<4x4x128xbf16>
    %c1_329 = arith.constant 1 : index
    %c1_330 = arith.constant 1 : index
    %c0_331 = arith.constant 0 : index
    %317 = vector.load %arg12[%c1_329, %c1_330, %c0_331] : memref<6x6x128xbf16, #tpu.memory_space<vmem>>, vector<4x4x128xbf16>
    tpu.vector_store %arg12[%c1_329, %c1_330, %c0_331], %316 {strides = array<i32>} : memref<6x6x128xbf16, #tpu.memory_space<vmem>>, vector<4x4x128xbf16>,
    %c0_332 = arith.constant 0 : index
    %c0_333 = arith.constant 0 : index
    %c0_334 = arith.constant 0 : index
    %318 = vector.load %arg12[%c0_332, %c0_333, %c0_334] : memref<6x6x128xbf16, #tpu.memory_space<vmem>>, vector<4x4x128xbf16>
    %319 = vector.shape_cast %318 : vector<4x4x128xbf16> to vector<16x128xbf16>
    %c0_335 = arith.constant 0 : index
    %c0_336 = arith.constant 0 : index
    %c0_337 = arith.constant 0 : index
    %c0_338 = arith.constant 0 : index
    %320 = vector.load %arg8[%c0_335, %c0_336, %c0_337, %c0_338] : memref<2x9x128x128xbf16, #tpu.memory_space<vmem>>, vector<1x1x128x128xbf16>
    %321 = vector.shape_cast %320 : vector<1x1x128x128xbf16> to vector<128x128xbf16>
    %cst_339 = arith.constant dense<0.000000e+00> : vector<16x128xf32>
    %322 = tpu.matmul %319, %321, %cst_339 {dimension_numbers = #tpu.dot_dimension_numbers<[1], [0], [0], [1], [0, 0, 1, 1], [], []>} : vector<16x128xbf16>, vector<128x128xbf16>, vector<16x128xf32> -> vector<16x128xf32>
    %c0_340 = arith.constant 0 : index
    %c1_341 = arith.constant 1 : index
    %c0_342 = arith.constant 0 : index
    %323 = vector.load %arg12[%c0_340, %c1_341, %c0_342] : memref<6x6x128xbf16, #tpu.memory_space<vmem>>, vector<4x4x128xbf16>
    %324 = vector.shape_cast %323 : vector<4x4x128xbf16> to vector<16x128xbf16>
    %c0_343 = arith.constant 0 : index
    %c1_344 = arith.constant 1 : index
    %c0_345 = arith.constant 0 : index
    %c0_346 = arith.constant 0 : index
    %325 = vector.load %arg8[%c0_343, %c1_344, %c0_345, %c0_346] : memref<2x9x128x128xbf16, #tpu.memory_space<vmem>>, vector<1x1x128x128xbf16>
    %326 = vector.shape_cast %325 : vector<1x1x128x128xbf16> to vector<128x128xbf16>
    %cst_347 = arith.constant dense<0.000000e+00> : vector<16x128xf32>
    %327 = tpu.matmul %324, %326, %cst_347 {dimension_numbers = #tpu.dot_dimension_numbers<[1], [0], [0], [1], [0, 0, 1, 1], [], []>} : vector<16x128xbf16>, vector<128x128xbf16>, vector<16x128xf32> -> vector<16x128xf32>
    %328 = arith.addf %322, %327 : vector<16x128xf32>
    %c0_348 = arith.constant 0 : index
    %c2_349 = arith.constant 2 : index
    %c0_350 = arith.constant 0 : index
    %329 = vector.load %arg12[%c0_348, %c2_349, %c0_350] : memref<6x6x128xbf16, #tpu.memory_space<vmem>>, vector<4x4x128xbf16>
    %330 = vector.shape_cast %329 : vector<4x4x128xbf16> to vector<16x128xbf16>
    %c0_351 = arith.constant 0 : index
    %c2_352 = arith.constant 2 : index
    %c0_353 = arith.constant 0 : index
    %c0_354 = arith.constant 0 : index
    %331 = vector.load %arg8[%c0_351, %c2_352, %c0_353, %c0_354] : memref<2x9x128x128xbf16, #tpu.memory_space<vmem>>, vector<1x1x128x128xbf16>
    %332 = vector.shape_cast %331 : vector<1x1x128x128xbf16> to vector<128x128xbf16>
    %cst_355 = arith.constant dense<0.000000e+00> : vector<16x128xf32>
    %333 = tpu.matmul %330, %332, %cst_355 {dimension_numbers = #tpu.dot_dimension_numbers<[1], [0], [0], [1], [0, 0, 1, 1], [], []>} : vector<16x128xbf16>, vector<128x128xbf16>, vector<16x128xf32> -> vector<16x128xf32>
    %334 = arith.addf %328, %333 : vector<16x128xf32>
    %c1_356 = arith.constant 1 : index
    %c0_357 = arith.constant 0 : index
    %c0_358 = arith.constant 0 : index
    %335 = vector.load %arg12[%c1_356, %c0_357, %c0_358] : memref<6x6x128xbf16, #tpu.memory_space<vmem>>, vector<4x4x128xbf16>
    %336 = vector.shape_cast %335 : vector<4x4x128xbf16> to vector<16x128xbf16>
    %c0_359 = arith.constant 0 : index
    %c3_360 = arith.constant 3 : index
    %c0_361 = arith.constant 0 : index
    %c0_362 = arith.constant 0 : index
    %337 = vector.load %arg8[%c0_359, %c3_360, %c0_361, %c0_362] : memref<2x9x128x128xbf16, #tpu.memory_space<vmem>>, vector<1x1x128x128xbf16>
    %338 = vector.shape_cast %337 : vector<1x1x128x128xbf16> to vector<128x128xbf16>
    %cst_363 = arith.constant dense<0.000000e+00> : vector<16x128xf32>
    %339 = tpu.matmul %336, %338, %cst_363 {dimension_numbers = #tpu.dot_dimension_numbers<[1], [0], [0], [1], [0, 0, 1, 1], [], []>} : vector<16x128xbf16>, vector<128x128xbf16>, vector<16x128xf32> -> vector<16x128xf32>
    %340 = arith.addf %334, %339 : vector<16x128xf32>
    %c1_364 = arith.constant 1 : index
    %c1_365 = arith.constant 1 : index
    %c0_366 = arith.constant 0 : index
    %341 = vector.load %arg12[%c1_364, %c1_365, %c0_366] : memref<6x6x128xbf16, #tpu.memory_space<vmem>>, vector<4x4x128xbf16>
    %342 = vector.shape_cast %341 : vector<4x4x128xbf16> to vector<16x128xbf16>
    %c0_367 = arith.constant 0 : index
    %c4_368 = arith.constant 4 : index
    %c0_369 = arith.constant 0 : index
    %c0_370 = arith.constant 0 : index
    %343 = vector.load %arg8[%c0_367, %c4_368, %c0_369, %c0_370] : memref<2x9x128x128xbf16, #tpu.memory_space<vmem>>, vector<1x1x128x128xbf16>
    %344 = vector.shape_cast %343 : vector<1x1x128x128xbf16> to vector<128x128xbf16>
    %cst_371 = arith.constant dense<0.000000e+00> : vector<16x128xf32>
    %345 = tpu.matmul %342, %344, %cst_371 {dimension_numbers = #tpu.dot_dimension_numbers<[1], [0], [0], [1], [0, 0, 1, 1], [], []>} : vector<16x128xbf16>, vector<128x128xbf16>, vector<16x128xf32> -> vector<16x128xf32>
    %346 = arith.addf %340, %345 : vector<16x128xf32>
    %c1_372 = arith.constant 1 : index
    %c2_373 = arith.constant 2 : index
    %c0_374 = arith.constant 0 : index
    %347 = vector.load %arg12[%c1_372, %c2_373, %c0_374] : memref<6x6x128xbf16, #tpu.memory_space<vmem>>, vector<4x4x128xbf16>
    %348 = vector.shape_cast %347 : vector<4x4x128xbf16> to vector<16x128xbf16>
    %c0_375 = arith.constant 0 : index
    %c5_376 = arith.constant 5 : index
    %c0_377 = arith.constant 0 : index
    %c0_378 = arith.constant 0 : index
    %349 = vector.load %arg8[%c0_375, %c5_376, %c0_377, %c0_378] : memref<2x9x128x128xbf16, #tpu.memory_space<vmem>>, vector<1x1x128x128xbf16>
    %350 = vector.shape_cast %349 : vector<1x1x128x128xbf16> to vector<128x128xbf16>
    %cst_379 = arith.constant dense<0.000000e+00> : vector<16x128xf32>
    %351 = tpu.matmul %348, %350, %cst_379 {dimension_numbers = #tpu.dot_dimension_numbers<[1], [0], [0], [1], [0, 0, 1, 1], [], []>} : vector<16x128xbf16>, vector<128x128xbf16>, vector<16x128xf32> -> vector<16x128xf32>
    %352 = arith.addf %346, %351 : vector<16x128xf32>
    %c2_380 = arith.constant 2 : index
    %c0_381 = arith.constant 0 : index
    %c0_382 = arith.constant 0 : index
    %353 = vector.load %arg12[%c2_380, %c0_381, %c0_382] : memref<6x6x128xbf16, #tpu.memory_space<vmem>>, vector<4x4x128xbf16>
    %354 = vector.shape_cast %353 : vector<4x4x128xbf16> to vector<16x128xbf16>
    %c0_383 = arith.constant 0 : index
    %c6_384 = arith.constant 6 : index
    %c0_385 = arith.constant 0 : index
    %c0_386 = arith.constant 0 : index
    %355 = vector.load %arg8[%c0_383, %c6_384, %c0_385, %c0_386] : memref<2x9x128x128xbf16, #tpu.memory_space<vmem>>, vector<1x1x128x128xbf16>
    %356 = vector.shape_cast %355 : vector<1x1x128x128xbf16> to vector<128x128xbf16>
    %cst_387 = arith.constant dense<0.000000e+00> : vector<16x128xf32>
    %357 = tpu.matmul %354, %356, %cst_387 {dimension_numbers = #tpu.dot_dimension_numbers<[1], [0], [0], [1], [0, 0, 1, 1], [], []>} : vector<16x128xbf16>, vector<128x128xbf16>, vector<16x128xf32> -> vector<16x128xf32>
    %358 = arith.addf %352, %357 : vector<16x128xf32>
    %c2_388 = arith.constant 2 : index
    %c1_389 = arith.constant 1 : index
    %c0_390 = arith.constant 0 : index
    %359 = vector.load %arg12[%c2_388, %c1_389, %c0_390] : memref<6x6x128xbf16, #tpu.memory_space<vmem>>, vector<4x4x128xbf16>
    %360 = vector.shape_cast %359 : vector<4x4x128xbf16> to vector<16x128xbf16>
    %c0_391 = arith.constant 0 : index
    %c7_392 = arith.constant 7 : index
    %c0_393 = arith.constant 0 : index
    %c0_394 = arith.constant 0 : index
    %361 = vector.load %arg8[%c0_391, %c7_392, %c0_393, %c0_394] : memref<2x9x128x128xbf16, #tpu.memory_space<vmem>>, vector<1x1x128x128xbf16>
    %362 = vector.shape_cast %361 : vector<1x1x128x128xbf16> to vector<128x128xbf16>
    %cst_395 = arith.constant dense<0.000000e+00> : vector<16x128xf32>
    %363 = tpu.matmul %360, %362, %cst_395 {dimension_numbers = #tpu.dot_dimension_numbers<[1], [0], [0], [1], [0, 0, 1, 1], [], []>} : vector<16x128xbf16>, vector<128x128xbf16>, vector<16x128xf32> -> vector<16x128xf32>
    %364 = arith.addf %358, %363 : vector<16x128xf32>
    %c2_396 = arith.constant 2 : index
    %c2_397 = arith.constant 2 : index
    %c0_398 = arith.constant 0 : index
    %365 = vector.load %arg12[%c2_396, %c2_397, %c0_398] : memref<6x6x128xbf16, #tpu.memory_space<vmem>>, vector<4x4x128xbf16>
    %366 = vector.shape_cast %365 : vector<4x4x128xbf16> to vector<16x128xbf16>
    %c0_399 = arith.constant 0 : index
    %c8_400 = arith.constant 8 : index
    %c0_401 = arith.constant 0 : index
    %c0_402 = arith.constant 0 : index
    %367 = vector.load %arg8[%c0_399, %c8_400, %c0_401, %c0_402] : memref<2x9x128x128xbf16, #tpu.memory_space<vmem>>, vector<1x1x128x128xbf16>
    %368 = vector.shape_cast %367 : vector<1x1x128x128xbf16> to vector<128x128xbf16>
    %cst_403 = arith.constant dense<0.000000e+00> : vector<16x128xf32>
    %369 = tpu.matmul %366, %368, %cst_403 {dimension_numbers = #tpu.dot_dimension_numbers<[1], [0], [0], [1], [0, 0, 1, 1], [], []>} : vector<16x128xbf16>, vector<128x128xbf16>, vector<16x128xf32> -> vector<16x128xf32>
    %370 = arith.addf %364, %369 : vector<16x128xf32>
    %cst_404 = arith.constant 0.000000e+00 : f32
    %371 = vector.broadcast %cst_404 : f32 to vector<16x128xf32>
    %372 = arith.maximumf %370, %371 : vector<16x128xf32>
    %373 = arith.truncf %372 : vector<16x128xf32> to vector<16x128xbf16>
    %c0_405 = arith.constant 0 : index
    %c0_406 = arith.constant 0 : index
    %374 = vector.load %arg13[%c0_405, %c0_406] : memref<16x128xf32, #tpu.memory_space<vmem>>, vector<16x128xf32>
    %c0_407 = arith.constant 0 : index
    %c0_408 = arith.constant 0 : index
    %c0_409 = arith.constant 0 : index
    %375 = vector.load %arg9[%c0_407, %c0_408, %c0_409] : memref<2x128x128xbf16, #tpu.memory_space<vmem>>, vector<1x128x128xbf16>
    %376 = vector.shape_cast %375 : vector<1x128x128xbf16> to vector<128x128xbf16>
    %cst_410 = arith.constant dense<0.000000e+00> : vector<16x128xf32>
    %377 = tpu.matmul %373, %376, %cst_410 {dimension_numbers = #tpu.dot_dimension_numbers<[1], [0], [0], [1], [0, 0, 1, 1], [], []>} : vector<16x128xbf16>, vector<128x128xbf16>, vector<16x128xf32> -> vector<16x128xf32>
    %378 = arith.addf %374, %377 : vector<16x128xf32>
    %c0_411 = arith.constant 0 : index
    %c0_412 = arith.constant 0 : index
    %379 = vector.load %arg13[%c0_411, %c0_412] : memref<16x128xf32, #tpu.memory_space<vmem>>, vector<16x128xf32>
    tpu.vector_store %arg13[%c0_411, %c0_412], %378 {strides = array<i32>} : memref<16x128xf32, #tpu.memory_space<vmem>>, vector<16x128xf32>,
    %c0_413 = arith.constant 0 : index
    %c0_414 = arith.constant 0 : index
    %380 = vector.load %arg13[%c0_413, %c0_414] : memref<16x128xf32, #tpu.memory_space<vmem>>, vector<16x128xf32>
    %cst_415 = arith.constant 0.000000e+00 : f32
    %381 = vector.broadcast %cst_415 : f32 to vector<16x128xf32>
    %382 = arith.maximumf %380, %381 : vector<16x128xf32>
    %383 = vector.shape_cast %382 : vector<16x128xf32> to vector<4x4x128xf32>
    %384 = arith.truncf %383 : vector<4x4x128xf32> to vector<4x4x128xbf16>
    %c1_416 = arith.constant 1 : index
    %c1_417 = arith.constant 1 : index
    %c0_418 = arith.constant 0 : index
    %385 = vector.load %arg12[%c1_416, %c1_417, %c0_418] : memref<6x6x128xbf16, #tpu.memory_space<vmem>>, vector<4x4x128xbf16>
    tpu.vector_store %arg12[%c1_416, %c1_417, %c0_418], %384 {strides = array<i32>} : memref<6x6x128xbf16, #tpu.memory_space<vmem>>, vector<4x4x128xbf16>,
    %c0_419 = arith.constant 0 : index
    %c0_420 = arith.constant 0 : index
    %c0_421 = arith.constant 0 : index
    %386 = vector.load %arg12[%c0_419, %c0_420, %c0_421] : memref<6x6x128xbf16, #tpu.memory_space<vmem>>, vector<4x4x128xbf16>
    %387 = vector.shape_cast %386 : vector<4x4x128xbf16> to vector<16x128xbf16>
    %c1_422 = arith.constant 1 : index
    %c0_423 = arith.constant 0 : index
    %c0_424 = arith.constant 0 : index
    %c0_425 = arith.constant 0 : index
    %388 = vector.load %arg8[%c1_422, %c0_423, %c0_424, %c0_425] : memref<2x9x128x128xbf16, #tpu.memory_space<vmem>>, vector<1x1x128x128xbf16>
    %389 = vector.shape_cast %388 : vector<1x1x128x128xbf16> to vector<128x128xbf16>
    %cst_426 = arith.constant dense<0.000000e+00> : vector<16x128xf32>
    %390 = tpu.matmul %387, %389, %cst_426 {dimension_numbers = #tpu.dot_dimension_numbers<[1], [0], [0], [1], [0, 0, 1, 1], [], []>} : vector<16x128xbf16>, vector<128x128xbf16>, vector<16x128xf32> -> vector<16x128xf32>
    %c0_427 = arith.constant 0 : index
    %c1_428 = arith.constant 1 : index
    %c0_429 = arith.constant 0 : index
    %391 = vector.load %arg12[%c0_427, %c1_428, %c0_429] : memref<6x6x128xbf16, #tpu.memory_space<vmem>>, vector<4x4x128xbf16>
    %392 = vector.shape_cast %391 : vector<4x4x128xbf16> to vector<16x128xbf16>
    %c1_430 = arith.constant 1 : index
    %c1_431 = arith.constant 1 : index
    %c0_432 = arith.constant 0 : index
    %c0_433 = arith.constant 0 : index
    %393 = vector.load %arg8[%c1_430, %c1_431, %c0_432, %c0_433] : memref<2x9x128x128xbf16, #tpu.memory_space<vmem>>, vector<1x1x128x128xbf16>
    %394 = vector.shape_cast %393 : vector<1x1x128x128xbf16> to vector<128x128xbf16>
    %cst_434 = arith.constant dense<0.000000e+00> : vector<16x128xf32>
    %395 = tpu.matmul %392, %394, %cst_434 {dimension_numbers = #tpu.dot_dimension_numbers<[1], [0], [0], [1], [0, 0, 1, 1], [], []>} : vector<16x128xbf16>, vector<128x128xbf16>, vector<16x128xf32> -> vector<16x128xf32>
    %396 = arith.addf %390, %395 : vector<16x128xf32>
    %c0_435 = arith.constant 0 : index
    %c2_436 = arith.constant 2 : index
    %c0_437 = arith.constant 0 : index
    %397 = vector.load %arg12[%c0_435, %c2_436, %c0_437] : memref<6x6x128xbf16, #tpu.memory_space<vmem>>, vector<4x4x128xbf16>
    %398 = vector.shape_cast %397 : vector<4x4x128xbf16> to vector<16x128xbf16>
    %c1_438 = arith.constant 1 : index
    %c2_439 = arith.constant 2 : index
    %c0_440 = arith.constant 0 : index
    %c0_441 = arith.constant 0 : index
    %399 = vector.load %arg8[%c1_438, %c2_439, %c0_440, %c0_441] : memref<2x9x128x128xbf16, #tpu.memory_space<vmem>>, vector<1x1x128x128xbf16>
    %400 = vector.shape_cast %399 : vector<1x1x128x128xbf16> to vector<128x128xbf16>
    %cst_442 = arith.constant dense<0.000000e+00> : vector<16x128xf32>
    %401 = tpu.matmul %398, %400, %cst_442 {dimension_numbers = #tpu.dot_dimension_numbers<[1], [0], [0], [1], [0, 0, 1, 1], [], []>} : vector<16x128xbf16>, vector<128x128xbf16>, vector<16x128xf32> -> vector<16x128xf32>
    %402 = arith.addf %396, %401 : vector<16x128xf32>
    %c1_443 = arith.constant 1 : index
    %c0_444 = arith.constant 0 : index
    %c0_445 = arith.constant 0 : index
    %403 = vector.load %arg12[%c1_443, %c0_444, %c0_445] : memref<6x6x128xbf16, #tpu.memory_space<vmem>>, vector<4x4x128xbf16>
    %404 = vector.shape_cast %403 : vector<4x4x128xbf16> to vector<16x128xbf16>
    %c1_446 = arith.constant 1 : index
    %c3_447 = arith.constant 3 : index
    %c0_448 = arith.constant 0 : index
    %c0_449 = arith.constant 0 : index
    %405 = vector.load %arg8[%c1_446, %c3_447, %c0_448, %c0_449] : memref<2x9x128x128xbf16, #tpu.memory_space<vmem>>, vector<1x1x128x128xbf16>
    %406 = vector.shape_cast %405 : vector<1x1x128x128xbf16> to vector<128x128xbf16>
    %cst_450 = arith.constant dense<0.000000e+00> : vector<16x128xf32>
    %407 = tpu.matmul %404, %406, %cst_450 {dimension_numbers = #tpu.dot_dimension_numbers<[1], [0], [0], [1], [0, 0, 1, 1], [], []>} : vector<16x128xbf16>, vector<128x128xbf16>, vector<16x128xf32> -> vector<16x128xf32>
    %408 = arith.addf %402, %407 : vector<16x128xf32>
    %c1_451 = arith.constant 1 : index
    %c1_452 = arith.constant 1 : index
    %c0_453 = arith.constant 0 : index
    %409 = vector.load %arg12[%c1_451, %c1_452, %c0_453] : memref<6x6x128xbf16, #tpu.memory_space<vmem>>, vector<4x4x128xbf16>
    %410 = vector.shape_cast %409 : vector<4x4x128xbf16> to vector<16x128xbf16>
    %c1_454 = arith.constant 1 : index
    %c4_455 = arith.constant 4 : index
    %c0_456 = arith.constant 0 : index
    %c0_457 = arith.constant 0 : index
    %411 = vector.load %arg8[%c1_454, %c4_455, %c0_456, %c0_457] : memref<2x9x128x128xbf16, #tpu.memory_space<vmem>>, vector<1x1x128x128xbf16>
    %412 = vector.shape_cast %411 : vector<1x1x128x128xbf16> to vector<128x128xbf16>
    %cst_458 = arith.constant dense<0.000000e+00> : vector<16x128xf32>
    %413 = tpu.matmul %410, %412, %cst_458 {dimension_numbers = #tpu.dot_dimension_numbers<[1], [0], [0], [1], [0, 0, 1, 1], [], []>} : vector<16x128xbf16>, vector<128x128xbf16>, vector<16x128xf32> -> vector<16x128xf32>
    %414 = arith.addf %408, %413 : vector<16x128xf32>
    %c1_459 = arith.constant 1 : index
    %c2_460 = arith.constant 2 : index
    %c0_461 = arith.constant 0 : index
    %415 = vector.load %arg12[%c1_459, %c2_460, %c0_461] : memref<6x6x128xbf16, #tpu.memory_space<vmem>>, vector<4x4x128xbf16>
    %416 = vector.shape_cast %415 : vector<4x4x128xbf16> to vector<16x128xbf16>
    %c1_462 = arith.constant 1 : index
    %c5_463 = arith.constant 5 : index
    %c0_464 = arith.constant 0 : index
    %c0_465 = arith.constant 0 : index
    %417 = vector.load %arg8[%c1_462, %c5_463, %c0_464, %c0_465] : memref<2x9x128x128xbf16, #tpu.memory_space<vmem>>, vector<1x1x128x128xbf16>
    %418 = vector.shape_cast %417 : vector<1x1x128x128xbf16> to vector<128x128xbf16>
    %cst_466 = arith.constant dense<0.000000e+00> : vector<16x128xf32>
    %419 = tpu.matmul %416, %418, %cst_466 {dimension_numbers = #tpu.dot_dimension_numbers<[1], [0], [0], [1], [0, 0, 1, 1], [], []>} : vector<16x128xbf16>, vector<128x128xbf16>, vector<16x128xf32> -> vector<16x128xf32>
    %420 = arith.addf %414, %419 : vector<16x128xf32>
    %c2_467 = arith.constant 2 : index
    %c0_468 = arith.constant 0 : index
    %c0_469 = arith.constant 0 : index
    %421 = vector.load %arg12[%c2_467, %c0_468, %c0_469] : memref<6x6x128xbf16, #tpu.memory_space<vmem>>, vector<4x4x128xbf16>
    %422 = vector.shape_cast %421 : vector<4x4x128xbf16> to vector<16x128xbf16>
    %c1_470 = arith.constant 1 : index
    %c6_471 = arith.constant 6 : index
    %c0_472 = arith.constant 0 : index
    %c0_473 = arith.constant 0 : index
    %423 = vector.load %arg8[%c1_470, %c6_471, %c0_472, %c0_473] : memref<2x9x128x128xbf16, #tpu.memory_space<vmem>>, vector<1x1x128x128xbf16>
    %424 = vector.shape_cast %423 : vector<1x1x128x128xbf16> to vector<128x128xbf16>
    %cst_474 = arith.constant dense<0.000000e+00> : vector<16x128xf32>
    %425 = tpu.matmul %422, %424, %cst_474 {dimension_numbers = #tpu.dot_dimension_numbers<[1], [0], [0], [1], [0, 0, 1, 1], [], []>} : vector<16x128xbf16>, vector<128x128xbf16>, vector<16x128xf32> -> vector<16x128xf32>
    %426 = arith.addf %420, %425 : vector<16x128xf32>
    %c2_475 = arith.constant 2 : index
    %c1_476 = arith.constant 1 : index
    %c0_477 = arith.constant 0 : index
    %427 = vector.load %arg12[%c2_475, %c1_476, %c0_477] : memref<6x6x128xbf16, #tpu.memory_space<vmem>>, vector<4x4x128xbf16>
    %428 = vector.shape_cast %427 : vector<4x4x128xbf16> to vector<16x128xbf16>
    %c1_478 = arith.constant 1 : index
    %c7_479 = arith.constant 7 : index
    %c0_480 = arith.constant 0 : index
    %c0_481 = arith.constant 0 : index
    %429 = vector.load %arg8[%c1_478, %c7_479, %c0_480, %c0_481] : memref<2x9x128x128xbf16, #tpu.memory_space<vmem>>, vector<1x1x128x128xbf16>
    %430 = vector.shape_cast %429 : vector<1x1x128x128xbf16> to vector<128x128xbf16>
    %cst_482 = arith.constant dense<0.000000e+00> : vector<16x128xf32>
    %431 = tpu.matmul %428, %430, %cst_482 {dimension_numbers = #tpu.dot_dimension_numbers<[1], [0], [0], [1], [0, 0, 1, 1], [], []>} : vector<16x128xbf16>, vector<128x128xbf16>, vector<16x128xf32> -> vector<16x128xf32>
    %432 = arith.addf %426, %431 : vector<16x128xf32>
    %c2_483 = arith.constant 2 : index
    %c2_484 = arith.constant 2 : index
    %c0_485 = arith.constant 0 : index
    %433 = vector.load %arg12[%c2_483, %c2_484, %c0_485] : memref<6x6x128xbf16, #tpu.memory_space<vmem>>, vector<4x4x128xbf16>
    %434 = vector.shape_cast %433 : vector<4x4x128xbf16> to vector<16x128xbf16>
    %c1_486 = arith.constant 1 : index
    %c8_487 = arith.constant 8 : index
    %c0_488 = arith.constant 0 : index
    %c0_489 = arith.constant 0 : index
    %435 = vector.load %arg8[%c1_486, %c8_487, %c0_488, %c0_489] : memref<2x9x128x128xbf16, #tpu.memory_space<vmem>>, vector<1x1x128x128xbf16>
    %436 = vector.shape_cast %435 : vector<1x1x128x128xbf16> to vector<128x128xbf16>
    %cst_490 = arith.constant dense<0.000000e+00> : vector<16x128xf32>
    %437 = tpu.matmul %434, %436, %cst_490 {dimension_numbers = #tpu.dot_dimension_numbers<[1], [0], [0], [1], [0, 0, 1, 1], [], []>} : vector<16x128xbf16>, vector<128x128xbf16>, vector<16x128xf32> -> vector<16x128xf32>
    %438 = arith.addf %432, %437 : vector<16x128xf32>
    %cst_491 = arith.constant 0.000000e+00 : f32
    %439 = vector.broadcast %cst_491 : f32 to vector<16x128xf32>
    %440 = arith.maximumf %438, %439 : vector<16x128xf32>
    %441 = arith.truncf %440 : vector<16x128xf32> to vector<16x128xbf16>
    %c0_492 = arith.constant 0 : index
    %c0_493 = arith.constant 0 : index
    %442 = vector.load %arg13[%c0_492, %c0_493] : memref<16x128xf32, #tpu.memory_space<vmem>>, vector<16x128xf32>
    %c1_494 = arith.constant 1 : index
    %c0_495 = arith.constant 0 : index
    %c0_496 = arith.constant 0 : index
    %443 = vector.load %arg9[%c1_494, %c0_495, %c0_496] : memref<2x128x128xbf16, #tpu.memory_space<vmem>>, vector<1x128x128xbf16>
    %444 = vector.shape_cast %443 : vector<1x128x128xbf16> to vector<128x128xbf16>
    %cst_497 = arith.constant dense<0.000000e+00> : vector<16x128xf32>
    %445 = tpu.matmul %441, %444, %cst_497 {dimension_numbers = #tpu.dot_dimension_numbers<[1], [0], [0], [1], [0, 0, 1, 1], [], []>} : vector<16x128xbf16>, vector<128x128xbf16>, vector<16x128xf32> -> vector<16x128xf32>
    %446 = arith.addf %442, %445 : vector<16x128xf32>
    %c0_498 = arith.constant 0 : index
    %c0_499 = arith.constant 0 : index
    %447 = vector.load %arg13[%c0_498, %c0_499] : memref<16x128xf32, #tpu.memory_space<vmem>>, vector<16x128xf32>
    tpu.vector_store %arg13[%c0_498, %c0_499], %446 {strides = array<i32>} : memref<16x128xf32, #tpu.memory_space<vmem>>, vector<16x128xf32>,
    %c0_500 = arith.constant 0 : index
    %c0_501 = arith.constant 0 : index
    %448 = vector.load %arg13[%c0_500, %c0_501] : memref<16x128xf32, #tpu.memory_space<vmem>>, vector<16x128xf32>
    %cst_502 = arith.constant 0.000000e+00 : f32
    %449 = vector.broadcast %cst_502 : f32 to vector<16x128xf32>
    %450 = arith.maximumf %448, %449 : vector<16x128xf32>
    %451 = vector.shape_cast %450 : vector<16x128xf32> to vector<4x4x128xf32>
    %c0_503 = arith.constant 0 : index
    %c0_504 = arith.constant 0 : index
    %c0_505 = arith.constant 0 : index
    %c0_506 = arith.constant 0 : index
    %452 = vector.load %arg10[%c0_503, %c0_504, %c0_505, %c0_506] : memref<1x4x4x128xf32, #tpu.memory_space<vmem>>, vector<1x4x4x128xf32>
    %453 = vector.shape_cast %452 : vector<1x4x4x128xf32> to vector<4x4x128xf32>
    %454 = vector.shape_cast %451 : vector<4x4x128xf32> to vector<1x4x4x128xf32>
    tpu.vector_store %arg10[%c0_503, %c0_504, %c0_505, %c0_506], %454 {strides = array<i32>} : memref<1x4x4x128xf32, #tpu.memory_space<vmem>>, vector<1x4x4x128xf32>,
    return
  }
  func.func @transform_0(%arg0: i32) -> (i32, i32, i32, i32) {
    %c0_i32 = arith.constant 0 : i32
    %c0_i32_0 = arith.constant 0 : i32
    %c0_i32_1 = arith.constant 0 : i32
    %c0_i32_2 = arith.constant 0 : i32
    return %arg0, %c0_i32, %c0_i32_0, %c0_i32_1 : i32, i32, i32, i32
  }
  func.func @transform_1(%arg0: i32) -> (i32, i32, i32) {
    %c0_i32 = arith.constant 0 : i32
    %c0_i32_0 = arith.constant 0 : i32
    %c0_i32_1 = arith.constant 0 : i32
    %c0_i32_2 = arith.constant 0 : i32
    return %c0_i32, %c0_i32_0, %c0_i32_1 : i32, i32, i32
  }
  func.func @transform_2(%arg0: i32) -> (i32, i32) {
    %c0_i32 = arith.constant 0 : i32
    %c0_i32_0 = arith.constant 0 : i32
    %c0_i32_1 = arith.constant 0 : i32
    return %c0_i32, %c0_i32_0 : i32, i32
  }
  func.func @transform_3(%arg0: i32) -> (i32, i32, i32) {
    %c0_i32 = arith.constant 0 : i32
    %c0_i32_0 = arith.constant 0 : i32
    %c0_i32_1 = arith.constant 0 : i32
    %c0_i32_2 = arith.constant 0 : i32
    return %c0_i32, %c0_i32_0, %c0_i32_1 : i32, i32, i32
  }
  func.func @transform_4(%arg0: i32) -> (i32, i32) {
    %c0_i32 = arith.constant 0 : i32
    %c0_i32_0 = arith.constant 0 : i32
    %c0_i32_1 = arith.constant 0 : i32
    return %c0_i32, %c0_i32_0 : i32, i32
  }
  func.func @transform_5(%arg0: i32) -> (i32, i32, i32) {
    %c0_i32 = arith.constant 0 : i32
    %c0_i32_0 = arith.constant 0 : i32
    %c0_i32_1 = arith.constant 0 : i32
    %c0_i32_2 = arith.constant 0 : i32
    return %c0_i32, %c0_i32_0, %c0_i32_1 : i32, i32, i32
  }
  func.func @transform_6(%arg0: i32) -> (i32, i32) {
    %c0_i32 = arith.constant 0 : i32
    %c0_i32_0 = arith.constant 0 : i32
    %c0_i32_1 = arith.constant 0 : i32
    return %c0_i32, %c0_i32_0 : i32, i32
  }
  func.func @transform_7(%arg0: i32) -> (i32, i32, i32, i32) {
    %c0_i32 = arith.constant 0 : i32
    %c0_i32_0 = arith.constant 0 : i32
    %c0_i32_1 = arith.constant 0 : i32
    %c0_i32_2 = arith.constant 0 : i32
    %c0_i32_3 = arith.constant 0 : i32
    return %c0_i32, %c0_i32_0, %c0_i32_1, %c0_i32_2 : i32, i32, i32, i32
  }
  func.func @transform_8(%arg0: i32) -> (i32, i32, i32) {
    %c0_i32 = arith.constant 0 : i32
    %c0_i32_0 = arith.constant 0 : i32
    %c0_i32_1 = arith.constant 0 : i32
    %c0_i32_2 = arith.constant 0 : i32
    return %c0_i32, %c0_i32_0, %c0_i32_1 : i32, i32, i32
  }
  func.func @transform_9(%arg0: i32) -> (i32, i32, i32, i32) {
    %c0_i32 = arith.constant 0 : i32
    %c0_i32_0 = arith.constant 0 : i32
    %c0_i32_1 = arith.constant 0 : i32
    %c0_i32_2 = arith.constant 0 : i32
    return %arg0, %c0_i32, %c0_i32_0, %c0_i32_1 : i32, i32, i32, i32
  }
}

</mosaic_0001>

<bundles_post_ra>
// kernel: encoder_forward.1
= control target key start
LH: loop header
LB: loop body
LE: loop exit
PB: predicated region body
PF: predicated region fallthrough
CT: control target
= control target key end

     0   :  { %s13925_s30 = smov 0   ;;  %s16507_s0 = inlined_call_operand.vmem [shape: bf16[2,5,5,128], index: 0, kind: input, shape index: {}]   ;;  %s16508_s1 = inlined_call_operand.vmem [shape: bf16[9,128,128], index: 1, kind: input, shape index: {}]   ;;  %s16509_s2 = inlined_call_operand.vmem [shape: f32[1,128], index: 2, kind: input, shape index: {}]   ;;  %s16510_s3 = inlined_call_operand.vmem [shape: bf16[16,128,128], index: 3, kind: input, shape index: {}]   ;;  %s16511_s4 = inlined_call_operand.vmem [shape: f32[1,128], index: 4, kind: input, shape index: {}]   ;;  %s16512_s5 = inlined_call_operand.vmem [shape: bf16[9,128,128], index: 5, kind: input, shape index: {}]   ;;  %s16513_s6 = inlined_call_operand.vmem [shape: f32[1,128], index: 6, kind: input, shape index: {}]   ;;  %s16514_s7 = inlined_call_operand.vmem [shape: bf16[2,9,128,128], index: 7, kind: input, shape index: {}]   ;;  %s16515_s8 = inlined_call_operand.vmem [shape: bf16[2,128,128], index: 8, kind: input, shape index: {}]   ;;  %s16516_s9 = inlined_call_operand.vmem [shape: f32[2,4,4,128], index: 9, kind: output, shape index: {}]  }
   0x1 LB: > { %s10326_s10 = sadd.s32 4294967295, %s13869_s30   ;;  %p10330_p0 = scmp.ge.s32.totalorder %s13869_s30, 1  ;;  %s13869_s30 = sphi %s13925_s30, %s19_s30  }
   0x2   : > { %p287_p1 = scmp.lt.s32.totalorder %s13869_s30, 3 }
   0x4   : > { %p288_p2 = pnand %p10330_p0, %p287_p1 }
   0x5   : > { %p323_p3 = scmp.lt.s32.totalorder (!%p288_p2), %s10326_s10, 1 }
   0x6   : > { %291 = sbr.rel (%p288_p2) target bundleno = 2229 (0x8b5), region = 56 }
   0xb   : > { %v13339_v0 = vld [vmem:[%s16508_s1 + $0x38] sm:$0xff]   ;;  %v13871_v1 = vmov 0.0   ;;  %v13341_v3 = vld [vmem:[%s16508_s1 + $0x30] sm:$0xff]   ;;  %vm13872_vm0 = vmmov 0   ;;  %v13343_v5 = vld [vmem:[%s16508_s1 + $0x28] sm:$0xff]   ;;  %s16536_s10 = smov (!%p323_p3, %s10326_s10), 1  ;;  %v490_v9 = vlaneseq }
   0xc   : > { %12246 = vmatprep.subr.bf16.mxu0 %v13871_v1  ;;  %12266 = vmatprep.subr.bf16.mxu1 %v13871_v1  ;;  %v13340_v2 = vld [vmem:[%s16508_s1 + $0x78] sm:$0xff]   ;;  %v13342_v4 = vld [vmem:[%s16508_s1 + $0x70] sm:$0xff]   ;;  %v13344_v6 = vld [vmem:[%s16508_s1 + $0x68] sm:$0xff]   ;;  %s13326_s27 = smul.u32 20, %s16536_s10  ;;  %v13873_v18 = vmov 1983009808  }
   0xd   : > { %12247 = vmatpush3.bf16.msra.mxu0 %v13339_v0  ;;  %12262 = vmatprep.mubr.msk.bf16.mxu0 %vm13872_vm0, %v13871_v1  ;;  %v13345_v7 = vld [vmem:[%s16508_s1 + $0x20] sm:$0xff]   ;;  %v13347_v10 = vld [vmem:[%s16508_s1 + $0x18] sm:$0xff]   ;;  %v13349_v12 = vld [vmem:[%s16508_s1 + $0x10] sm:$0xff]   ;;  %v491_v14 = vshrl.u32 %v490_v9, 7  ;;  %v488_v19 = vunpack.c.l.s4 %v13873_v18  ;;  %vm640_vm1 = vsmask.f32 1280 }
   0xe   : > { %12267 = vmatpush3.bf16.msra.mxu1 %v13340_v2  ;;  %12248 = vmatprep.subr.bf16.mxu0 %v13871_v1  ;;  %v13346_v8 = vld [vmem:[%s16508_s1 + $0x60] sm:$0xff]   ;;  %v13348_v11 = vld [vmem:[%s16508_s1 + $0x58] sm:$0xff]   ;;  %s13982_s15 = scalar_lea.vmem %s16507_s0, %s13326_s27  ;;  %v13350_v13 = vld [vmem:[%s16508_s1 + $0x50] sm:$0xff]   ;;  %vm641_vm2 = vsmask.f32 3336  ;;  %vm340_vm8 = vcmask 1040384  }
   0xf   : > { %12268 = vmatprep.subr.bf16.mxu1 %v13871_v1  ;;  %12282 = vmatprep.mubr.msk.bf16.mxu1 %vm13872_vm0, %v13871_v1  ;;  %v10343_v15 = vld.sshfl [vmem:[%s13982_s15] sm:$0x13 pattern:$0x76325410]  ;;  %v13351_v22 = vld [vmem:[%s16508_s1 + $0x8] sm:$0xff]   ;;  %v489_v25 = vunpack.c.0.s8 %v488_v19  ;;  %vm14006_vm3 = vmor %vm640_vm1, %vm641_vm2  ;;  %vm334_vm11 = vcmask 1042432  }
  0x10   : > { %v13994_v16 = vld.sshfl [vmem:[%s13982_s15] sm:$0xf pattern:$0x76325410]  ;;  %v615_v21 = vcombine.high %v10343_v15, %v10343_v15  ;;  %vm643_vm4 = vsmask.f32 5392 }
  0x11   : > { %12249 = vmatpush3.bf16.msra.mxu0 %v13341_v3  ;;  %v13997_v17 = vld.sshfl [vmem:[%s13982_s15 + $0x8] sm:$0xf pattern:$0x76325410]  ;;  %vm645_vm5 = vsmask.f32 7448  ;;  %v14014_v33 = vsub.s32 %v489_v25, %v491_v14  ;;  %vm14019_vm6 = vmor %vm14006_vm3, %vm643_vm4 }
  0x12   : > { %12269 = vmatpush3.bf16.msra.mxu1 %v13342_v4  ;;  %12250 = vmatprep.subr.bf16.mxu0 %v13871_v1  ;;  %v10344_v20 = vld.sshfl [vmem:[%s13982_s15 + $0x4] sm:$0x13 pattern:$0x76325410]  ;;  %v648_v30 = vshrl.u32 %v10343_v15, 16  ;;  %v651_v31 = vshll.u32 %v10343_v15, 16  ;;  %vm14033_vm7 = vmor %vm14019_vm6, %vm645_vm5  ;;  %v501_v58 = vcombine.low %v13994_v16, %v13997_v17 }
  0x13   : > { %12270 = vmatprep.subr.bf16.mxu1 %v13871_v1  ;;  %v10345_v23 = vld.sshfl [vmem:[%s13982_s15 + $0x8] sm:$0x13 pattern:$0x76325410]  ;;  %v623_v24 = vcombine.high %v10344_v20, %v10344_v20  ;;  %v657_v34 = vshll.u32 %v615_v21, 16  ;;  %v662_v35 = vshrl.u32 %v10344_v20, 16 }
  0x14   : > { %v10346_v26 = vld.sshfl [vmem:[%s13982_s15 + $0xc] sm:$0x13 pattern:$0x76325410]  ;;  %v631_v27 = vcombine.high %v10345_v23, %v10345_v23  ;;  %v665_v36 = vshll.u32 %v10344_v20, 16  ;;  %v650_v38 = vrot.slane %v648_v30, 6 }
  0x15   : > { %12251 = vmatpush3.bf16.msra.mxu0 %v13343_v5  ;;  %v639_v29 = vcombine.high %v10346_v26, %v10346_v26  ;;  %v13352_v32 = vld [vmem:[%s16508_s1 + $0x48] sm:$0xff]   ;;  %v653_v39 = vrot.slane %v651_v31, 7  ;;  %v671_v40 = vshll.u32 %v623_v24, 16  ;;  %v676_v41 = vshrl.u32 %v10345_v23, 16  ;;  %v13353_v42 = vld [vmem:[%s16508_s1] sm:$0xff]   ;;  %v13357_v3 = vld [vmem:[%s16508_s1 + $0xb8] sm:$0xff]  }
  0x16   : > { %12271 = vmatpush3.bf16.msra.mxu1 %v13344_v6  ;;  %12252 = vmatprep.subr.bf16.mxu0 %v13871_v1  ;;  %v664_v43 = vrot.slane %v662_v35, 6  ;;  %v13354_v44 = vld [vmem:[%s16508_s1 + $0x40] sm:$0xff]   ;;  %v659_v46 = vrot.slane %v657_v34, 7  ;;  %v667_v47 = vrot.slane %v665_v36, 7  ;;  %v679_v51 = vshll.u32 %v10345_v23, 16  ;;  %v13361_v15 = vld [vmem:[%s16508_s1 + $0xa8] sm:$0xff]  }
  0x17   : > { %12272 = vmatprep.subr.bf16.mxu1 %v13871_v1  ;;  %v654_v45 = vor.u32 %v653_v39, %v650_v38  ;;  %v673_v48 = vrot.slane %v671_v40, 7  ;;  %v678_v50 = vrot.slane %v676_v41, 6  ;;  %v685_v52 = vshll.u32 %v631_v27, 16  ;;  %v13358_v17 = vld [vmem:[%s16508_s1 + $0xf8] sm:$0xff]   ;;  %v13363_v19 = vld [vmem:[%s16508_s1 + $0xa0] sm:$0xff]   ;;  %v13360_v20 = vld [vmem:[%s16508_s1 + $0xf0] sm:$0xff]  }
  0x18   : > { %v690_v53 = vshrl.u32 %v10346_v26, 16  ;;  %v668_v55 = vor.u32 %v667_v47, %v664_v43  ;;  %v693_v56 = vshll.u32 %v10346_v26, 16  ;;  %v699_v57 = vshll.u32 %v639_v29, 16  ;;  %v13365_v24 = vld [vmem:[%s16508_s1 + $0x98] sm:$0xff]   ;;  %v13362_v25 = vld [vmem:[%s16508_s1 + $0xe8] sm:$0xff]   ;;  %v13367_v29 = vld [vmem:[%s16508_s1 + $0x90] sm:$0xff]  }
  0x19   : > { %12253 = vmatpush3.bf16.msra.mxu0 %v13345_v7  ;;  %v655_v54 = vrot.slane %v654_v45, 2  ;;  %v681_v59 = vrot.slane %v679_v51, 7  ;;  %v687_v60 = vrot.slane %v685_v52, 7  ;;  %v13364_v31 = vld [vmem:[%s16508_s1 + $0xe0] sm:$0xff]   ;;  %v13369_v36 = vld [vmem:[%s16508_s1 + $0x88] sm:$0xff]   ;;  %v13366_v37 = vld [vmem:[%s16508_s1 + $0xd8] sm:$0xff]  }
  0x1a   : > { %12273 = vmatpush3.bf16.msra.mxu1 %v13346_v8  ;;  %12254 = vmatprep.subr.bf16.mxu0 %v13871_v1  ;;  %v692_v61 = vrot.slane %v690_v53, 6  ;;  %v669_v63 = vrot.slane %v668_v55, 2  ;;  %v695_v0 = vrot.slane %v693_v56, 7  ;;  %v701_v2 = vrot.slane %v699_v57, 7  ;;  %v13371_v40 = vld [vmem:[%s16508_s1 + $0x80] sm:$0xff]   ;;  %v13368_v41 = vld [vmem:[%s16508_s1 + $0xd0] sm:$0xff]  }
  0x1b   : > { %12274 = vmatprep.subr.bf16.mxu1 %v13871_v1  ;;  %v660_v62 = vsel %vm14033_vm7, %v655_v54, %v659_v46  ;;  %v682_v4 = vor.u32 %v681_v59, %v678_v50  ;;  %v10406_v21 = vld.sshfl [vmem:[%s13982_s15 + $0x10] sm:$0x13 pattern:$0x76325410]  ;;  %v13370_v47 = vld [vmem:[%s16508_s1 + $0xc8] sm:$0xff]   ;;  %v13372_v52 = vld [vmem:[%s16508_s1 + $0xc0] sm:$0xff]  }
  0x1c   : > { %v14048_v5 = vsel %vm14033_vm7, %v669_v63, %v673_v48  ;;  %v696_v6 = vor.u32 %v695_v0, %v692_v61  ;;  %v1050_v23 = vshll.u32 %v10406_v21, 16  ;;  %v1003_v26 = vcombine.high %v10406_v21, %v10406_v21  ;;  %v13819_v30 = vld.sshfl [vmem:[%s13982_s15 + $0x4] sm:$0xf pattern:$0x76325410]  ;;  %v13377_v48 = vld [vmem:[%s16508_s1 + $0x130] sm:$0xff]  }
  0x1d   : > { %12255 = vmatpush3.bf16.msra.mxu0 %v13347_v10  ;;  %v683_v7 = vrot.slane %v682_v4, 2  ;;  %v720_v8 = vcombine.low %v660_v62, %v14048_v5  ;;  %v13359_v10 = vld [vmem:[%s16508_s1 + $0xb0] sm:$0xff]   ;;  %v13379_v53 = vld [vmem:[%s16508_s1 + $0x128] sm:$0xff]   ;;  %v13376_v55 = vld [vmem:[%s16508_s1 + $0x178] sm:$0xff]   ;;  %vm341_vm9 = vsmask.f32 256 }
  0x1e   : > { %12275 = vmatpush3.bf16.msra.mxu1 %v13348_v11  ;;  %12256 = vmatprep.subr.bf16.mxu0 %v13871_v1  ;;  %v697_v9 = vrot.slane %v696_v6, 2  ;;  %v1052_v28 = vrot.slane %v1050_v23, 7  ;;  %v1056_v34 = vshll.u32 %v1003_v26, 16  ;;  %v13381_v56 = vld [vmem:[%s16508_s1 + $0x120] sm:$0xff]   ;;  %v13378_v57 = vld [vmem:[%s16508_s1 + $0x170] sm:$0xff]   ;;  %v13380_v59 = vld [vmem:[%s16508_s1 + $0x168] sm:$0xff]  }
  0x1f   : > { %12276 = vmatprep.subr.bf16.mxu1 %v13871_v1  ;;  %v14059_v11 = vsel %vm14033_vm7, %v683_v7, %v687_v60  ;;  %v728_v14 = vrot.slane %v720_v8, %v14014_v33  ;;  %v13820_v35 = vld.sshfl [vmem:[%s13982_s15 + $0xc] sm:$0xf pattern:$0x76325410]  ;;  %v13382_v61 = vld [vmem:[%s16508_s1 + $0x160] sm:$0xff]   ;;  %vm14292_vm10 = vmand %vm340_vm8, %vm341_vm9  ;;  %vm362_vm14 = vcmask 1042434  }
  0x20   : > { %v1058_v39 = vrot.slane %v1056_v34, 7  ;;  %v871_v43 = vcombine.low %v13819_v30, %v13820_v35  ;;  %v1077_v45 = vcombine.low %v14048_v5, %v14059_v11  ;;  %v13385_v60 = vld [vmem:[%s16508_s1 + $0x110] sm:$0xff]   ;;  %v13821_v62 = vld.sshfl [vmem:[%s13982_s15] sm:$0xf pattern:$0x76325410]  ;;  %vm5443_vm5 = vmor %vm340_vm8, %vm362_vm14 }
  0x21   : > { %12257 = vmatpush3.bf16.msra.mxu0 %v13349_v12  ;;  %v14064_v12 = vsel %vm14033_vm7, %v697_v9, %v701_v2  ;;  %v13822_v63 = vld.sshfl [vmem:[%s13982_s15 + $0x8] sm:$0xf pattern:$0x76325410]  ;;  %v13384_v2 = vld [vmem:[%s16508_s1 + $0x158] sm:$0xff]   ;;  %v13386_v4 = vld [vmem:[%s16508_s1 + $0x150] sm:$0xff]  }
  0x22   : > { %12277 = vmatpush3.bf16.msra.mxu1 %v13350_v13  ;;  %12258 = vmatprep.subr.bf16.mxu0 %v13871_v1  ;;  %v721_v13 = vcombine.low %v14059_v11, %v14064_v12  ;;  %v1085_v50 = vrot.slane %v1077_v45, %v14014_v33  ;;  %v13387_v0 = vld [vmem:[%s16508_s1 + $0x108] sm:$0xff]   ;;  %v13395_v5 = vld [vmem:[%s16508_s1 + $0x1b8] sm:$0xff]   ;;  %v1298_v6 = vcombine.low %v13821_v62, %v13822_v63  ;;  %v13390_v11 = vld [vmem:[%s16508_s1 + $0x140] sm:$0xff]   ;;  %vm335_vm12 = vsmask.f32 2304  ;;  %s11739_s18 = sshll.u32 %s16536_s10, 4 }
  0x23   : > { %12278 = vmatprep.subr.bf16.mxu1 %v13871_v1  ;;  %v13823_v7 = vld.sshfl [vmem:[%s13982_s15 + $0x4] sm:$0xf pattern:$0x76325410]  ;;  %vm14326_vm13 = vmand %vm334_vm11, %vm335_vm12  ;;  %v13418_v45 = vld [vmem:[%s16508_s1 + $0x210] sm:$0xff]   ;;  %vm5444_vm6 = vcmask 1044484   ;;  %s332_s20 = scalar_lea.vmem %s16516_s9, %s11739_s18 }
  0x24   : > { %v735_v16 = vrot.slane %v721_v13, %v14014_v33  ;;  %v13824_v8 = vld.sshfl [vmem:[%s13982_s15 + $0xc] sm:$0xf pattern:$0x76325410]  ;;  %v13396_v13 = vld [vmem:[%s16508_s1 + $0x1f8] sm:$0xff]   ;;  %v13409_v26 = vld [vmem:[%s16508_s1 + $0x180] sm:$0xff]  }
  0x25   : > { %12259 = vmatpush3.bf16.msra.mxu0 %v13351_v22  ;;  %v1047_v22 = vshrl.u32 %v10406_v21, 16  ;;  %v13388_v9 = vld [vmem:[%s16508_s1 + $0x148] sm:$0xff]   ;;  %v13402_v21 = vld [vmem:[%s16508_s1 + $0x1e0] sm:$0xff]   ;;  %v13428_v62 = vld [vmem:[%s16510_s3 + $0x10] sm:$0xff]   ;;  %vm1243_vm1 = vsmask.f32 2306 }
  0x26   : > { %12279 = vmatpush3.bf16.msra.mxu1 %v13352_v32  ;;  %12260 = vmatprep.subr.bf16.mxu0 %v13871_v1  ;;  %v14077_v18 = vcombine.low %v728_v14, %v735_v16  ;;  %v1432_v14 = vcombine.low %v13823_v7, %v13824_v8  ;;  %v13398_v16 = vld [vmem:[%s16508_s1 + $0x1f0] sm:$0xff]   ;;  %v13826_v23 = vld.sshfl [vmem:[%s13982_s15 + $0x8] sm:$0xf pattern:$0x76325410]  ;;  %v13430_v63 = vld [vmem:[%s16510_s3 + $0x78] sm:$0xff]  }
  0x27   : > { %12280 = vmatprep.subr.bf16.mxu1 %v13871_v1  ;;  %v1049_v27 = vrot.slane %v1047_v22, 6  ;;  %v13825_v22 = vld.sshfl [vmem:[%s13982_s15] sm:$0xf pattern:$0x76325410]  ;;  %v13408_v30 = vld [vmem:[%s16508_s1 + $0x1c8] sm:$0xff]   ;;  %vm14399_vm15 = vmand %vm362_vm14, %vm335_vm12 }
  0x28   : > { %v346_v34 = vld [vmem:[#allocation2 + $0x4] sm:$0x1]  ;;  %vm14462_vm2 = vmand %vm334_vm11, %vm1243_vm1  ;;  %vm440_vm3 = vsmask.f32 7946  ;;  %vm5446_vm9 = vcmask 1046534   ;;  %v13794_v49 = vld [vmem:[%s16514_s7 + $0x3d8] sm:$0xff]  }
  0x29   : > { %12261 = vmatpush3.bf16.msra.mxu0 %v13353_v42  ;;  %v1053_v32 = vor.u32 %v1052_v28, %v1049_v27  ;;  %v13406_v27 = vld [vmem:[%s16508_s1 + $0x1d0] sm:$0xff]   ;;  %v13413_v28 = vld [vmem:[%s16508_s1 + $0x238] sm:$0xff]   ;;  %v13438_v7 = vld [vmem:[%s16510_s3 + $0x60] sm:$0xff]  }
  0x2a   : > { %12281 = vmatpush3.bf16.msra.mxu1 %v13354_v44  ;;  %12286 = vmatprep.subr.bf16.mxu0 %v13871_v1  ;;  %v13375_v44 = vld [vmem:[%s16508_s1 + $0x138] sm:$0xff]   ;;  %vm15219_vm4 = vmand %vm362_vm14, %vm440_vm3 }
  0x2b   : > { %12306 = vmatprep.subr.bf16.mxu1 %v13871_v1  ;;  %v1054_v38 = vrot.slane %v1053_v32, 2  ;;  %v13414_v32 = vld [vmem:[%s16508_s1 + $0x230] sm:$0xff]   ;;  %vm5445_vm8 = vmor %vm5443_vm5, %vm5444_vm6 }
  0x2c   : > { %12263 = vmatmul.mubr.bf16.vlgmr.msra.gmra.mxu0 %v501_v58  ;;  %v13383_v58 = vld [vmem:[%s16508_s1 + $0x118] sm:$0xff]  }
  0x2d   : > { %12287 = vmatpush3.bf16.msra.mxu0 %v13357_v3  ;;  %12302 = vmatprep.mubr.msk.bf16.mxu0 %vm13872_vm0, %v13871_v1  ;;  %v1059_v42 = vsel %vm14033_vm7, %v1054_v38, %v1058_v39  ;;  %v13389_v3 = vld [vmem:[%s16508_s1 + $0x100] sm:$0xff]   ;;  %v347_v38 = vsel %vm14292_vm10, 0, %v346_v34 }
  0x2e   : > { %12288 = vmatprep.subr.bf16.mxu0 %v13871_v1  ;;  %12283 = vmatmul.mubr.bf16.vlgmr.msra.gmra.mxu1 %v14077_v18  ;;  %v1078_v46 = vcombine.low %v14064_v12, %v1059_v42  ;;  %v13399_v12 = vld [vmem:[%s16508_s1 + $0x1a8] sm:$0xff]   ;;  %348 = vst [vmem:[#allocation2 + $0x4] sm:$0x1] %v347_v38  ;;  %v13417_v42 = vld [vmem:[%s16508_s1 + $0x218] sm:$0xff]  }
  0x2f   : > { %12307 = vmatpush3.bf16.msra.mxu1 %v13358_v17  ;;  %12322 = vmatprep.mubr.msk.bf16.mxu1 %vm13872_vm0, %v13871_v1  ;;  %v13403_v17 = vld [vmem:[%s16508_s1 + $0x198] sm:$0xff]  }
  0x30   : > { %12308 = vmatprep.subr.bf16.mxu1 %v13871_v1  ;;  %v1092_v51 = vrot.slane %v1078_v46, %v14014_v33 }
  0x31   : > { %12289 = vmatpush3.bf16.msra.mxu0 %v13359_v10  ;;  %v13397_v10 = vld [vmem:[%s16508_s1 + $0x1b0] sm:$0xff]  }
  0x32   : > { %12290 = vmatprep.subr.bf16.mxu0 %v13871_v1  ;;  %v1093_v54 = vcombine.low %v1085_v50, %v1092_v51  ;;  %v13828_v50 = vld.sshfl [vmem:[%s13982_s15 + $0x8] sm:$0xf pattern:$0x76325410] }
  0x33   : > { %12309 = vmatpush3.bf16.msra.mxu1 %v13360_v20  ;;  %v13405_v20 = vld [vmem:[%s16508_s1 + $0x190] sm:$0xff]   ;;  %v352_v51 = vld [vmem:[#allocation2 + $0xc] sm:$0x1] }
  0x34   : > { %12310 = vmatprep.subr.bf16.mxu1 %v13871_v1 }
  0x35   : > { %12291 = vmatpush3.bf16.msra.mxu0 %v13361_v15  ;;  %v13401_v15 = vld [vmem:[%s16508_s1 + $0x1a0] sm:$0xff]  }
  0x36   : > { %12292 = vmatprep.subr.bf16.mxu0 %v13871_v1 }
  0x37   : > { %12311 = vmatpush3.bf16.msra.mxu1 %v13362_v25  ;;  %v13404_v25 = vld [vmem:[%s16508_s1 + $0x1d8] sm:$0xff]  }
  0x38   : > { %12312 = vmatprep.subr.bf16.mxu1 %v13871_v1 }
  0x39   : > { %12293 = vmatpush3.bf16.msra.mxu0 %v13363_v19  ;;  %v13400_v19 = vld [vmem:[%s16508_s1 + $0x1e8] sm:$0xff]  }
  0x3a   : > { %12294 = vmatprep.subr.bf16.mxu0 %v13871_v1 }
  0x3b   : > { %12313 = vmatpush3.bf16.msra.mxu1 %v13364_v31  ;;  %v13410_v31 = vld [vmem:[%s16508_s1 + $0x1c0] sm:$0xff]  }
  0x3c   : > { %12314 = vmatprep.subr.bf16.mxu1 %v13871_v1 }
  0x3d   : > { %12295 = vmatpush3.bf16.msra.mxu0 %v13365_v24  ;;  %v13407_v24 = vld [vmem:[%s16508_s1 + $0x188] sm:$0xff]  }
  0x3e   : > { %12296 = vmatprep.subr.bf16.mxu0 %v13871_v1 }
  0x3f   : > { %12315 = vmatpush3.bf16.msra.mxu1 %v13366_v37  ;;  %v13415_v37 = vld [vmem:[%s16508_s1 + $0x228] sm:$0xff]  }
  0x40   : > { %12316 = vmatprep.subr.bf16.mxu1 %v13871_v1 }
  0x41   : > { %12297 = vmatpush3.bf16.msra.mxu0 %v13367_v29  ;;  %v1583_v29 = vcombine.low %v13825_v22, %v13826_v23  ;;  %v384_v22 = vld [vmem:[#allocation2 + $0x28] sm:$0x1]  ;;  %v387_v23 = vld [vmem:[#allocation2 + $0x2c] sm:$0x1] }
  0x42   : > { %12298 = vmatprep.subr.bf16.mxu0 %v13871_v1 }
  0x43   : > { %12317 = vmatpush3.bf16.msra.mxu1 %v13368_v41  ;;  %v13423_v41 = vld [vmem:[%s16510_s3 + $0x38] sm:$0xff]  }
  0x44   : > { %12318 = vmatprep.subr.bf16.mxu1 %v13871_v1 }
  0x45   : > { %12299 = vmatpush3.bf16.msra.mxu0 %v13369_v36  ;;  %v349_v36 = vld [vmem:[#allocation2 + $0x8] sm:$0x1] }
  0x46   : > { %12300 = vmatprep.subr.bf16.mxu0 %v13871_v1  ;;  %v350_v39 = vsel %vm14292_vm10, 0, %v349_v36 }
  0x47   : > { %12319 = vmatpush3.bf16.msra.mxu1 %v13370_v47  ;;  %351 = vst [vmem:[#allocation2 + $0x8] sm:$0x1] %v350_v39  ;;  %v13425_v47 = vld [vmem:[%s16510_s3 + $0x28] sm:$0xff]  }
  0x48   : > { %12320 = vmatprep.subr.bf16.mxu1 %v13871_v1 }
  0x49   : > { %12301 = vmatpush3.bf16.msra.mxu0 %v13371_v40  ;;  %v13416_v40 = vld [vmem:[%s16508_s1 + $0x220] sm:$0xff]  }
  0x4a   : > { %12326 = vmatprep.subr.bf16.mxu0 %v13871_v1 }
  0x4b   : > { %12321 = vmatpush3.bf16.msra.mxu1 %v13372_v52  ;;  %v13419_v52 = vld [vmem:[%s16508_s1 + $0x208] sm:$0xff]  }
  0x4c   : > { %12303 = vmatmul.mubr.bf16.vlgmr.msra.gmra.mxu0 %v871_v43  ;;  %12346 = vmatprep.subr.bf16.mxu1 %v13871_v1  ;;  %v13424_v43 = vld [vmem:[%s16510_s3 + $0x30] sm:$0xff]  }
  0x4d   : > { %12327 = vmatpush3.bf16.msra.mxu0 %v13375_v44  ;;  %12342 = vmatprep.mubr.msk.bf16.mxu0 %vm13872_vm0, %v13871_v1  ;;  %v337_v44 = vld [vmem:[#allocation2] sm:$0x7] }
  0x4e   : > { %12328 = vmatprep.subr.bf16.mxu0 %v13871_v1  ;;  %12323 = vmatmul.mubr.bf16.vlgmr.msra.gmra.mxu1 %v1093_v54  ;;  %v338_v46 = vsel %vm14326_vm13, 0, %v337_v44  ;;  %v355_v54 = vld [vmem:[#allocation2 + $0x10] sm:$0x1]  ;;  %v404_v44 = vld [vmem:[#allocation2 + $0x3c] sm:$0x4] }
  0x4f   : > { %12347 = vmatpush3.bf16.msra.mxu1 %v13376_v55  ;;  %12362 = vmatprep.mubr.msk.bf16.mxu1 %vm13872_vm0, %v13871_v1  ;;  %339 = vst [vmem:[#allocation2] sm:$0x7] %v338_v46  ;;  %v13426_v55 = vld [vmem:[%s16510_s3 + $0x20] sm:$0xff]  }
  0x50   : > { %12348 = vmatprep.subr.bf16.mxu1 %v13871_v1  ;;  %v407_v46 = vld [vmem:[#allocation2 + $0x40] sm:$0x4] }
  0x51   : > { %12329 = vmatpush3.bf16.msra.mxu0 %v13377_v48  ;;  %v13827_v48 = vld.sshfl [vmem:[%s13982_s15] sm:$0xf pattern:$0x76325410] }
  0x52   : > { %12330 = vmatprep.subr.bf16.mxu0 %v13871_v1 }
  0x53   : > { %12349 = vmatpush3.bf16.msra.mxu1 %v13378_v57  ;;  %v13420_v57 = vld [vmem:[%s16508_s1 + $0x200] sm:$0xff]  }
  0x54   : > { %12350 = vmatprep.subr.bf16.mxu1 %v13871_v1 }
  0x55   : > { %12331 = vmatpush3.bf16.msra.mxu0 %v13379_v53  ;;  %v353_v53 = vsel %vm14292_vm10, 0, %v352_v51  ;;  %v413_v51 = vld [vmem:[#allocation2 + $0x48] sm:$0x4] }
  0x56   : > { %12332 = vmatprep.subr.bf16.mxu0 %v13871_v1  ;;  %354 = vst [vmem:[#allocation2 + $0xc] sm:$0x1] %v353_v53  ;;  %v414_v53 = vsel %vm14399_vm15, 0, %v413_v51 }
  0x57   : > { %12351 = vmatpush3.bf16.msra.mxu1 %v13380_v59  ;;  %v13427_v59 = vld [vmem:[%s16510_s3 + $0x18] sm:$0xff]   ;;  %415 = vst [vmem:[#allocation2 + $0x48] sm:$0x4] %v414_v53 }
  0x58   : > { %12352 = vmatprep.subr.bf16.mxu1 %v13871_v1 }
  0x59   : > { %12333 = vmatpush3.bf16.msra.mxu0 %v13381_v56  ;;  %v356_v56 = vsel %vm14292_vm10, 0, %v355_v54 }
  0x5a   : > { %12334 = vmatprep.subr.bf16.mxu0 %v13871_v1  ;;  %357 = vst [vmem:[#allocation2 + $0x10] sm:$0x1] %v356_v56 }
  0x5b   : > { %12353 = vmatpush3.bf16.msra.mxu1 %v13382_v61  ;;  %v2007_v61 = vcombine.low %v13827_v48, %v13828_v50  ;;  %v410_v48 = vld [vmem:[#allocation2 + $0x44] sm:$0x4] }
  0x5c   : > { %12354 = vmatprep.subr.bf16.mxu1 %v13871_v1  ;;  %v411_v50 = vsel %vm14399_vm15, 0, %v410_v48 }
  0x5d   : > { %12335 = vmatpush3.bf16.msra.mxu0 %v13383_v58  ;;  %v343_v58 = vld [vmem:[#allocation2] sm:$0x1]  ;;  %412 = vst [vmem:[#allocation2 + $0x44] sm:$0x4] %v411_v50 }
  0x5e   : > { %12336 = vmatprep.subr.bf16.mxu0 %v13871_v1 }
  0x5f   : > { %12355 = vmatpush3.bf16.msra.mxu1 %v13384_v2  ;;  %v13432_v2 = vld [vmem:[%s16510_s3 + $0x70] sm:$0xff]  }
  0x60   : > { %12356 = vmatprep.subr.bf16.mxu1 %v13871_v1 }
  0x61   : > { %12337 = vmatpush3.bf16.msra.mxu0 %v13385_v60  ;;  %v344_v60 = vsel %vm14292_vm10, 0, %v343_v58 }
  0x62   : > { %12338 = vmatprep.subr.bf16.mxu0 %v13871_v1  ;;  %345 = vst [vmem:[#allocation2] sm:$0x1] %v344_v60 }
  0x63   : > { %12357 = vmatpush3.bf16.msra.mxu1 %v13386_v4  ;;  %v359_v4 = vld [vmem:[#allocation2 + $0x14] sm:$0x7] }
  0x64   : > { %12358 = vmatprep.subr.bf16.mxu1 %v13871_v1 }
  0x65   : > { %12339 = vmatpush3.bf16.msra.mxu0 %v13387_v0  ;;  %v13429_v0 = vld [vmem:[%s16510_s3 + $0x8] sm:$0xff]  }
  0x66   : > { %12340 = vmatprep.subr.bf16.mxu0 %v13871_v1 }
  0x67   : > { %12359 = vmatpush3.bf16.msra.mxu1 %v13388_v9 }
  0x68   : > { %12360 = vmatprep.subr.bf16.mxu1 %v13871_v1 }
  0x69   : > { %12341 = vmatpush3.bf16.msra.mxu0 %v13389_v3  ;;  %v13431_v3 = vld [vmem:[%s16510_s3] sm:$0xff]  }
  0x6a   : > { %12366 = vmatprep.subr.bf16.mxu0 %v13871_v1 }
  0x6b   : > { %12361 = vmatpush3.bf16.msra.mxu1 %v13390_v11 }
  0x6c   : > { %12343 = vmatmul.mubr.bf16.vlgmr.msra.gmra.mxu0 %v1298_v6  ;;  %12386 = vmatprep.subr.bf16.mxu1 %v13871_v1  ;;  %v13436_v6 = vld [vmem:[%s16510_s3 + $0x68] sm:$0xff]  }
  0x6d   : > { %12367 = vmatpush3.bf16.msra.mxu0 %v13395_v5  ;;  %12382 = vmatprep.mubr.msk.bf16.mxu0 %vm13872_vm0, %v13871_v1  ;;  %v360_v5 = vsel %vm14326_vm13, 0, %v359_v4 }
  0x6e   : > { %12368 = vmatprep.subr.bf16.mxu0 %v13871_v1  ;;  %12363 = vmatmul.mubr.bf16.vlgmr.msra.gmra.mxu1 %v1432_v14  ;;  %361 = vst [vmem:[#allocation2 + $0x14] sm:$0x7] %v360_v5  ;;  %v370_v14 = vld [vmem:[#allocation2 + $0x1c] sm:$0x4] }
  0x6f   : > { %12387 = vmatpush3.bf16.msra.mxu1 %v13396_v13  ;;  %12402 = vmatprep.mubr.msk.bf16.mxu1 %vm13872_vm0, %v13871_v1 }
  0x70   : > { %12388 = vmatprep.subr.bf16.mxu1 %v13871_v1 }
  0x71   : > { %12369 = vmatpush3.bf16.msra.mxu0 %v13397_v10  ;;  %v13440_v10 = vld [vmem:[%s16510_s3 + $0x58] sm:$0xff]  }
  0x72   : > { %12370 = vmatprep.subr.bf16.mxu0 %v13871_v1 }
  0x73   : > { %12389 = vmatpush3.bf16.msra.mxu1 %v13398_v16  ;;  %v13442_v16 = vld [vmem:[%s16510_s3 + $0x50] sm:$0xff]  }
  0x74   : > { %12390 = vmatprep.subr.bf16.mxu1 %v13871_v1 }
  0x75   : > { %12371 = vmatpush3.bf16.msra.mxu0 %v13399_v12  ;;  %v364_v9 = vld [vmem:[#allocation2 + $0x14] sm:$0x4]  ;;  %v367_v12 = vld [vmem:[#allocation2 + $0x18] sm:$0x4] }
  0x76   : > { %12372 = vmatprep.subr.bf16.mxu0 %v13871_v1  ;;  %v365_v11 = vsel %vm14399_vm15, 0, %v364_v9  ;;  %v368_v13 = vsel %vm14399_vm15, 0, %v367_v12 }
  0x77   : > { %12391 = vmatpush3.bf16.msra.mxu1 %v13400_v19  ;;  %366 = vst [vmem:[#allocation2 + $0x14] sm:$0x4] %v365_v11  ;;  %369 = vst [vmem:[#allocation2 + $0x18] sm:$0x4] %v368_v13 }
  0x78   : > { %12392 = vmatprep.subr.bf16.mxu1 %v13871_v1 }
  0x79   : > { %12373 = vmatpush3.bf16.msra.mxu0 %v13401_v15  ;;  %v371_v15 = vsel %vm14399_vm15, 0, %v370_v14 }
  0x7a   : > { %12374 = vmatprep.subr.bf16.mxu0 %v13871_v1  ;;  %372 = vst [vmem:[#allocation2 + $0x1c] sm:$0x4] %v371_v15 }
  0x7b   : > { %12393 = vmatpush3.bf16.msra.mxu1 %v13402_v21  ;;  %v13446_v21 = vld [vmem:[%s16510_s3 + $0x40] sm:$0xff]  }
  0x7c   : > { %12394 = vmatprep.subr.bf16.mxu1 %v13871_v1 }
  0x7d   : > { %12375 = vmatpush3.bf16.msra.mxu0 %v13403_v17  ;;  %v373_v17 = vld [vmem:[#allocation2 + $0x20] sm:$0x4] }
  0x7e   : > { %12376 = vmatprep.subr.bf16.mxu0 %v13871_v1  ;;  %v374_v19 = vsel %vm14399_vm15, 0, %v373_v17 }
  0x7f   : > { %12395 = vmatpush3.bf16.msra.mxu1 %v13404_v25  ;;  %375 = vst [vmem:[#allocation2 + $0x20] sm:$0x4] %v374_v19  ;;  %v388_v25 = vsel %vm14292_vm10, 0, %v387_v23 }
  0x80   : > { %12396 = vmatprep.subr.bf16.mxu1 %v13871_v1  ;;  %389 = vst [vmem:[#allocation2 + $0x2c] sm:$0x1] %v388_v25 }
  0x81   : > { %12377 = vmatpush3.bf16.msra.mxu0 %v13405_v20  ;;  %v13444_v20 = vld [vmem:[%s16510_s3 + $0x48] sm:$0xff]  }
  0x82   : > { %12378 = vmatprep.subr.bf16.mxu0 %v13871_v1 }
  0x83   : > { %12397 = vmatpush3.bf16.msra.mxu1 %v13406_v27 }
  0x84   : > { %12398 = vmatprep.subr.bf16.mxu1 %v13871_v1 }
  0x85   : > { %12379 = vmatpush3.bf16.msra.mxu0 %v13407_v24  ;;  %v385_v24 = vsel %vm14292_vm10, 0, %v384_v22 }
  0x86   : > { %12380 = vmatprep.subr.bf16.mxu0 %v13871_v1  ;;  %386 = vst [vmem:[#allocation2 + $0x28] sm:$0x1] %v385_v24 }
  0x87   : > { %12399 = vmatpush3.bf16.msra.mxu1 %v13408_v30  ;;  %v393_v30 = vld [vmem:[#allocation2 + $0x34] sm:$0x1] }
  0x88   : > { %12400 = vmatprep.subr.bf16.mxu1 %v13871_v1 }
  0x89   : > { %12381 = vmatpush3.bf16.msra.mxu0 %v13409_v26  ;;  %v376_v26 = vld [vmem:[#allocation2 + $0x24] sm:$0x4] }
  0x8a   : > { %12406 = vmatprep.subr.bf16.mxu0 %v13871_v1  ;;  %v377_v27 = vsel %vm14399_vm15, 0, %v376_v26  ;;  %v1248_v26 = vld [vmem:[#allocation2 + $0x8] sm:$0x7] }
  0x8b   : > { %12401 = vmatpush3.bf16.msra.mxu1 %v13410_v31  ;;  %378 = vst [vmem:[#allocation2 + $0x24] sm:$0x4] %v377_v27  ;;  %v394_v31 = vsel %vm14292_vm10, 0, %v393_v30 }
  0x8c   : > { %12383 = vmatmul.mubr.bf16.vlgmr.msra.gmra.mxu0 %v1583_v29  ;;  %12426 = vmatprep.subr.bf16.mxu1 %v13871_v1  ;;  %395 = vst [vmem:[#allocation2 + $0x34] sm:$0x1] %v394_v31 }
  0x8d   : > { %12407 = vmatpush3.bf16.msra.mxu0 %v13413_v28  ;;  %12422 = vmatprep.mubr.msk.bf16.mxu0 %vm13872_vm0, %v13871_v1  ;;  %v390_v28 = vld [vmem:[#allocation2 + $0x30] sm:$0x1] }
  0x8e   : > { %12408 = vmatprep.subr.bf16.mxu0 %v13871_v1  ;;  %12403 = vmatmul.mubr.bf16.vlgmr.msra.gmra.mxu1 %v14077_v18  ;;  %v391_v29 = vsel %vm14292_vm10, 0, %v390_v28 }
  0x8f   : > { %12427 = vmatpush3.bf16.msra.mxu1 %v13423_v41  ;;  %12442 = vmatprep.mubr.msk.bf16.mxu1 %vm13872_vm0, %v13871_v1  ;;  %392 = vst [vmem:[#allocation2 + $0x30] sm:$0x1] %v391_v29 }
  0x90   : > { %12428 = vmatprep.subr.bf16.mxu1 %v13871_v1 }
  0x91   : > { %12409 = vmatpush3.bf16.msra.mxu0 %v13414_v32 }
  0x92   : > { %12410 = vmatprep.subr.bf16.mxu0 %v13871_v1 }
  0x93   : > { %12429 = vmatpush3.bf16.msra.mxu1 %v13424_v43 }
  0x94   : > { %12430 = vmatprep.subr.bf16.mxu1 %v13871_v1 }
  0x95   : > { %12411 = vmatpush3.bf16.msra.mxu0 %v13415_v37 }
  0x96   : > { %12412 = vmatprep.subr.bf16.mxu0 %v13871_v1 }
  0x97   : > { %12431 = vmatpush3.bf16.msra.mxu1 %v13425_v47  ;;  %v408_v47 = vsel %vm14399_vm15, 0, %v407_v46 }
  0x98   : > { %12432 = vmatprep.subr.bf16.mxu1 %v13871_v1  ;;  %409 = vst [vmem:[#allocation2 + $0x40] sm:$0x4] %v408_v47 }
  0x99   : > { %12413 = vmatpush3.bf16.msra.mxu0 %v13416_v40 }
  0x9a   : > { %12414 = vmatprep.subr.bf16.mxu0 %v13871_v1 }
  0x9b   : > { %12433 = vmatpush3.bf16.msra.mxu1 %v13426_v55  ;;  %v14453_v55 = vld [vmem:[%s16509_s2] ss:$0 sm:$0xff] }
  0x9c   : > { %12434 = vmatprep.subr.bf16.mxu1 %v13871_v1 }
  0x9d   : > { %12415 = vmatpush3.bf16.msra.mxu0 %v13417_v42  ;;  %v380_v42 = vld [vmem:[#allocation2 + $0x38] sm:$0x7] }
  0x9e   : > { %12416 = vmatprep.subr.bf16.mxu0 %v13871_v1  ;;  %v381_v43 = vsel %vm14326_vm13, 0, %v380_v42 }
  0x9f   : > { %12435 = vmatpush3.bf16.msra.mxu1 %v13427_v59  ;;  %382 = vst [vmem:[#allocation2 + $0x38] sm:$0x7] %v381_v43 }
  0xa0   : > { %12436 = vmatprep.subr.bf16.mxu1 %v13871_v1 }
  0xa1   : > { %12417 = vmatpush3.bf16.msra.mxu0 %v13418_v45  ;;  %v405_v45 = vsel %vm14399_vm15, 0, %v404_v44  ;;  %v1254_v44 = vld [vmem:[#allocation2 + $0x10] sm:$0x7] }
  0xa2   : > { %12418 = vmatprep.subr.bf16.mxu0 %v13871_v1  ;;  %406 = vst [vmem:[#allocation2 + $0x3c] sm:$0x4] %v405_v45 }
  0xa3   : > { %12437 = vmatpush3.bf16.msra.mxu1 %v13428_v62 }
  0xa4   : > { %12438 = vmatprep.subr.bf16.mxu1 %v13871_v1 }
  0xa5   : > { %12419 = vmatpush3.bf16.msra.mxu0 %v13419_v52 }
  0xa6   : > { %12420 = vmatprep.subr.bf16.mxu0 %v13871_v1  ;;  %v396_v52 = vld [vmem:[#allocation2 + $0x38] sm:$0x1] }
  0xa7   : > { %12439 = vmatpush3.bf16.msra.mxu1 %v13429_v0  ;;  %v397_v54 = vsel %vm14292_vm10, 0, %v396_v52  ;;  %v400_v0 = vld [vmem:[#allocation2 + $0x4c] sm:$0x7] }
  0xa8   : > { %12440 = vmatprep.subr.bf16.mxu1 %v13871_v1  ;;  %398 = vst [vmem:[#allocation2 + $0x38] sm:$0x1] %v397_v54 }
  0xa9   : > { %12421 = vmatpush3.bf16.msra.mxu0 %v13420_v57 }
  0xaa   : > { %12446 = vmatprep.subr.bf16.mxu0 %v13871_v1 }
  0xab   : > { %12441 = vmatpush3.bf16.msra.mxu1 %v13431_v3 }
  0xac   : > { %12423 = vmatmul.mubr.bf16.vlgmr.msra.gmra.mxu0 %v2007_v61  ;;  %12466 = vmatprep.subr.bf16.mxu1 %v13871_v1 }
  0xad   : > { %12447 = vmatpush3.bf16.msra.mxu0 %v13430_v63  ;;  %12462 = vmatprep.mubr.msk.bf16.mxu0 %vm13872_vm0, %v13871_v1 }
  0xae   : > { %12448 = vmatprep.subr.bf16.mxu0 %v13871_v1 }
  0xb1   : > { %12449 = vmatpush3.bf16.msra.mxu0 %v13432_v2  ;;  %v401_v2 = vsel %vm14326_vm13, 0, %v400_v0 }
  0xb2   : > { %12450 = vmatprep.subr.bf16.mxu0 %v13871_v1  ;;  %402 = vst [vmem:[#allocation2 + $0x4c] sm:$0x7] %v401_v2  ;;  %v13437_v2 = vld [vmem:[%s16510_s3 + $0xb0] sm:$0xff]  }
  0xb5   : > { %12451 = vmatpush3.bf16.msra.mxu0 %v13436_v6 }
  0xb6   : > { %12452 = vmatprep.subr.bf16.mxu0 %v13871_v1 }
  0xb9   : > { %12453 = vmatpush3.bf16.msra.mxu0 %v13438_v7  ;;  %v416_v15 = vld [vmem:[#allocation2 + $0x4c] sm:$0x4] }
  0xba   : > { %12454 = vmatprep.subr.bf16.mxu0 %v13871_v1  ;;  %v417_v18 = vsel %vm14399_vm15, 0, %v416_v15 }
  0xbb   : > { %418 = vst [vmem:[#allocation2 + $0x4c] sm:$0x4] %v417_v18 }
  0xbd   : > { %12455 = vmatpush3.bf16.msra.mxu0 %v13440_v10 }
  0xbe   : > { %12456 = vmatprep.subr.bf16.mxu0 %v13871_v1 }
  0xc1   : > { %12457 = vmatpush3.bf16.msra.mxu0 %v13442_v16 }
  0xc2   : > { %12458 = vmatprep.subr.bf16.mxu0 %v13871_v1 }
  0xc5   : > { %12459 = vmatpush3.bf16.msra.mxu0 %v13444_v20  ;;  %v1245_v20 = vld [vmem:[#allocation2 + $0x4] sm:$0x7] }
  0xc6   : > { %12460 = vmatprep.subr.bf16.mxu0 %v13871_v1 }
  0xc9   : > { %12461 = vmatpush3.bf16.msra.mxu0 %v13446_v21 }
  0xca   : > { %12486 = vmatprep.subr.bf16.mxu0 %v13871_v1 }
  0xec   : > { %v585_v32 = vpop.f32.mrf.mxu0 }
  0xed   : > { %v598_v57 = vadd.f32 %v14453_v55, %v585_v32 }
  0xee   : > { %v12264_v34 = vpop.f32.mrf.mxu0  ;;  %v820_v38 = vpop.f32.mrf.mxu1 }
  0xef   : > { %v827_v60 = vadd.f32 %v820_v38, %v598_v57  ;;  %v13435_v57 = vld [vmem:[%s16510_s3 + $0xb8] sm:$0xff]  }
  0xf0   : > { %v588_v36 = vpop.f32.mrf.mxu0  ;;  %v12284_v39 = vpop.f32.mrf.mxu1 }
  0xf1   : > { %v599_v61 = vadd.f32 %v14453_v55, %v588_v36 }
  0xf2   : > { %v12265_v37 = vpop.f32.mrf.mxu0  ;;  %v823_v40 = vpop.f32.mrf.mxu1 }
  0xf3   : > { %v828_v3 = vadd.f32 %v823_v40, %v599_v61  ;;  %v1251_v37 = vld [vmem:[#allocation2 + $0xc] sm:$0x7] }
  0xf4   : > { %v12285_v41 = vpop.f32.mrf.mxu1 }
 0x10c   : > { %v955_v56 = vpop.f32.mrf.mxu0 }
 0x10d   : > { %v962_v63 = vadd.f32 %v955_v56, %v827_v60 }
 0x10e   : > { %v12304_v58 = vpop.f32.mrf.mxu0  ;;  %v1177_v4 = vpop.f32.mrf.mxu1 }
 0x10f   : > { %v1184_v5 = vadd.f32 %v1177_v4, %v962_v63  ;;  %v10600_v58 = vld.sshfl [vmem:[#allocation2] sm:$0x13 pattern:$0x76325410] }
 0x110   : > { %v958_v59 = vpop.f32.mrf.mxu0  ;;  %v12324_v7 = vpop.f32.mrf.mxu1  ;;  %v2431_v4 = vshrl.u32 %v10600_v58, 16  ;;  %v2405_v18 = vcombine.high %v10600_v58, %v10600_v58 }
 0x111   : > { %v963_v6 = vadd.f32 %v958_v59, %v828_v3  ;;  %v1186_v9 = vmax.f32 %v1184_v5, 0.0 }
 0x112   : > { %v12305_v62 = vpop.f32.mrf.mxu0  ;;  %v1180_v10 = vpop.f32.mrf.mxu1 }
 0x113   : > { %v1190_v11 = vcombine.high %v1186_v9, %v1186_v9  ;;  %v11740_v12 = vpack.c.bf16 %v1186_v9, %v1186_v9  ;;  %v1185_v13 = vadd.f32 %v1180_v10, %v963_v6  ;;  %v2434_v6 = vshll.u32 %v10600_v58, 16 }
 0x114   : > { %v12325_v14 = vpop.f32.mrf.mxu1 }
 0x115   : > { %v11741_v16 = vpack.c.bf16 %v1190_v11, %v1190_v11  ;;  %v1211_v17 = vshrl.u32 %v11740_v12, 16  ;;  %v1187_v19 = vmax.f32 %v1185_v13, 0.0  ;;  %v1214_v22 = vshll.u32 %v11740_v12, 16 }
 0x117   : > { %v1213_v21 = vrot.slane %v1211_v17, 7  ;;  %v1218_v23 = vshrl.u32 %v11741_v16, 16  ;;  %v1191_v25 = vcombine.high %v1187_v19, %v1187_v19  ;;  %v11742_v27 = vpack.c.bf16 %v1187_v19, %v1187_v19 }
 0x118   : > { %v1221_v30 = vshll.u32 %v11741_v16, 16 }
 0x119   : > { %v1216_v28 = vor.u32 %v1214_v22, %v1213_v21  ;;  %v1220_v29 = vrot.slane %v1218_v23, 7  ;;  %v11743_v31 = vpack.c.bf16 %v1191_v25, %v1191_v25  ;;  %v1225_v32 = vshrl.u32 %v11742_v27, 16 }
 0x11a   : > { %v1228_v39 = vshll.u32 %v11742_v27, 16  ;;  %v2433_v22 = vrot.slane %v2431_v4, 6  ;;  %v2436_v23 = vrot.slane %v2434_v6, 7  ;;  %v13450_v6 = vld [vmem:[%s16510_s3 + $0xf8] sm:$0xff]  }
 0x11b   : > { %v1223_v34 = vor.u32 %v1221_v30, %v1220_v29  ;;  %v1246_v8 = vsel %vm14462_vm2, %v1216_v28, %v1245_v20  ;;  %v1232_v36 = vshrl.u32 %v11743_v31, 16  ;;  %v1227_v38 = vrot.slane %v1225_v32, 7  ;;  %v13439_v20 = vld [vmem:[%s16510_s3 + $0xa8] sm:$0xff]  }
 0x11c   : > { %1247 = vst [vmem:[#allocation2 + $0x4] sm:$0x7] %v1246_v8  ;;  %v1235_v42 = vshll.u32 %v11743_v31, 16 }
 0x11d   : > { %v1249_v40 = vsel %vm14462_vm2, %v1223_v34, %v1248_v26  ;;  %v1234_v41 = vrot.slane %v1232_v36, 7  ;;  %v1230_v43 = vor.u32 %v1228_v39, %v1227_v38  ;;  %v10628_v4 = vld.sshfl [vmem:[#allocation2 + $0x14] sm:$0x13 pattern:$0x76325410] }
 0x11e   : > { %1250 = vst [vmem:[#allocation2 + $0x8] sm:$0x7] %v1249_v40 }
 0x11f   : > { %v1237_v45 = vor.u32 %v1235_v42, %v1234_v41  ;;  %v1252_v46 = vsel %vm14462_vm2, %v1230_v43, %v1251_v37  ;;  %v13441_v37 = vld [vmem:[%s16510_s3 + $0xa0] sm:$0xff]   ;;  %v2437_v42 = vor.u32 %v2436_v23, %v2433_v22  ;;  %v2440_v43 = vshll.u32 %v2405_v18, 16 }
 0x120   : > { %1253 = vst [vmem:[#allocation2 + $0xc] sm:$0x7] %v1252_v46 }
 0x121   : > { %v1255_v47 = vsel %vm14462_vm2, %v1237_v45, %v1254_v44 }
 0x122   : > { %1256 = vst [vmem:[#allocation2 + $0x10] sm:$0x7] %v1255_v47  ;;  %v13443_v47 = vld [vmem:[%s16510_s3 + $0x98] sm:$0xff]  }
 0x123   : > { %v13829_v51 = vld.sshfl [vmem:[#allocation2] sm:$0xf pattern:$0x76325410] }
 0x124   : > { %v10601_v60 = vld.sshfl [vmem:[#allocation2 + $0x4] sm:$0x13 pattern:$0x76325410] }
 0x125   : > { %v10602_v3 = vld.sshfl [vmem:[#allocation2 + $0x8] sm:$0x13 pattern:$0x76325410]  ;;  %v2445_v7 = vshrl.u32 %v10601_v60, 16  ;;  %v2448_v12 = vshll.u32 %v10601_v60, 16  ;;  %v2413_v38 = vcombine.high %v10601_v60, %v10601_v60 }
 0x126   : > { %v2459_v14 = vshrl.u32 %v10602_v3, 16  ;;  %v2462_v15 = vshll.u32 %v10602_v3, 16  ;;  %v2421_v39 = vcombine.high %v10602_v3, %v10602_v3 }
 0x127   : > { %v13830_v52 = vld.sshfl [vmem:[#allocation2 + $0x8] sm:$0xf pattern:$0x76325410]  ;;  %v2447_v29 = vrot.slane %v2445_v7, 6  ;;  %v2450_v30 = vrot.slane %v2448_v12, 7 }
 0x128   : > { %v2157_v59 = vcombine.low %v13829_v51, %v13830_v52  ;;  %v10603_v61 = vld.sshfl [vmem:[#allocation2 + $0xc] sm:$0x13 pattern:$0x76325410]  ;;  %v2461_v32 = vrot.slane %v2459_v14, 6  ;;  %v2464_v34 = vrot.slane %v2462_v15, 7 }
 0x129   : > { %v2473_v9 = vshrl.u32 %v10603_v61, 16  ;;  %v2476_v10 = vshll.u32 %v10603_v61, 16  ;;  %v2429_v31 = vcombine.high %v10603_v61, %v10603_v61  ;;  %v2451_v44 = vor.u32 %v2450_v30, %v2447_v29  ;;  %v13451_v14 = vld [vmem:[%s16510_s3 + $0x80] sm:$0xff]   ;;  %v13452_v15 = vld [vmem:[%s16510_s3 + $0xf0] sm:$0xff]  }
 0x12a   : > { %12443 = vmatmul.mubr.bf16.vlgmr.msra.gmra.mxu1 %v2157_v59  ;;  %v2465_v45 = vor.u32 %v2464_v34, %v2461_v32  ;;  %v2438_v52 = vrot.slane %v2437_v42, 2  ;;  %v13445_v59 = vld [vmem:[%s16510_s3 + $0x90] sm:$0xff]  }
 0x12b   : > { %12467 = vmatpush3.bf16.msra.mxu1 %v13435_v57  ;;  %12482 = vmatprep.mubr.msk.bf16.mxu1 %vm13872_vm0, %v13871_v1  ;;  %v2475_v25 = vrot.slane %v2473_v9, 6  ;;  %v2478_v26 = vrot.slane %v2476_v10, 7  ;;  %v2482_v46 = vshll.u32 %v2429_v31, 16 }
 0x12c   : > { %v1382_v48 = vpop.f32.mrf.mxu0  ;;  %12468 = vmatprep.subr.bf16.mxu1 %v13871_v1  ;;  %v2466_v57 = vrot.slane %v2465_v45, 2 }
 0x12d   : > { %v1389_v56 = vadd.f32 %v14453_v55, %v1382_v48  ;;  %v2479_v40 = vor.u32 %v2478_v26, %v2475_v25  ;;  %v2454_v48 = vshll.u32 %v2413_v38, 16  ;;  %v2484_v58 = vrot.slane %v2482_v46, 7 }
 0x12e   : > { %v12344_v50 = vpop.f32.mrf.mxu0  ;;  %v1516_v62 = vpop.f32.mrf.mxu1  ;;  %v2627_v38 = vcombine.high %v10628_v4, %v10628_v4 }
 0x12f   : > { %v1523_v63 = vadd.f32 %v1516_v62, %v1389_v56  ;;  %12469 = vmatpush3.bf16.msra.mxu1 %v13437_v2  ;;  %v2468_v50 = vshll.u32 %v2421_v39, 16  ;;  %v2480_v51 = vrot.slane %v2479_v40, 2  ;;  %v2456_v61 = vrot.slane %v2454_v48, 7 }
 0x130   : > { %v1385_v53 = vpop.f32.mrf.mxu0  ;;  %v12364_v5 = vpop.f32.mrf.mxu1  ;;  %12470 = vmatprep.subr.bf16.mxu1 %v13871_v1 }
 0x131   : > { %v1390_v0 = vadd.f32 %v14453_v55, %v1385_v53  ;;  %v1525_v11 = vmax.f32 %v1523_v63, 0.0  ;;  %v2442_v53 = vrot.slane %v2440_v43, 7  ;;  %v2470_v62 = vrot.slane %v2468_v50, 7  ;;  %v13447_v5 = vld [vmem:[%s16510_s3 + $0x88] sm:$0xff]  }
 0x132   : > { %v12345_v54 = vpop.f32.mrf.mxu0  ;;  %v1519_v13 = vpop.f32.mrf.mxu1  ;;  %v2485_v63 = vsel %vm14033_vm7, %v2480_v51, %v2484_v58  ;;  %v13455_v51 = vld [vmem:[%s16510_s3 + $0xe0] sm:$0xff]  }
 0x133   : > { %v1529_v16 = vcombine.high %v1525_v11, %v1525_v11  ;;  %v1533_v17 = vpack.c.bf16 %v1525_v11, %v1525_v11  ;;  %v1524_v19 = vadd.f32 %v1519_v13, %v1390_v0  ;;  %12471 = vmatpush3.bf16.msra.mxu1 %v13439_v20  ;;  %v2452_v54 = vrot.slane %v2451_v44, 2 }
 0x134   : > { %v12365_v21 = vpop.f32.mrf.mxu1  ;;  %12472 = vmatprep.subr.bf16.mxu1 %v13871_v1  ;;  %v2443_v0 = vsel %vm14033_vm7, %v2438_v52, %v2442_v53  ;;  %v2471_v3 = vsel %vm14033_vm7, %v2466_v57, %v2470_v62  ;;  %v13456_v52 = vld [vmem:[%s16510_s3 + $0x130] sm:$0xff]   ;;  %v13457_v62 = vld [vmem:[%s16510_s3 + $0xd8] sm:$0xff]  }
 0x135   : > { %v1534_v27 = vpack.c.bf16 %v1529_v16, %v1529_v16  ;;  %1538 = vst [vmem:[#allocation2 + $0x18] sm:$0x3] %v1533_v17  ;;  %v1526_v28 = vmax.f32 %v1524_v19, 0.0  ;;  %v2457_v2 = vsel %vm14033_vm7, %v2452_v54, %v2456_v61  ;;  %v2504_v7 = vcombine.low %v2471_v3, %v2485_v63 }
 0x136   : > { %v2503_v12 = vcombine.low %v2443_v0, %v2457_v2  ;;  %v2653_v17 = vshrl.u32 %v10628_v4, 16  ;;  %v2656_v19 = vshll.u32 %v10628_v4, 16  ;;  %v2662_v54 = vshll.u32 %v2627_v38, 16  ;;  %v13461_v38 = vld [vmem:[%s16510_s3 + $0xc8] sm:$0xff]  }
 0x137   : > { %1539 = vst [vmem:[#allocation2 + $0x1c] sm:$0x3] %v1534_v27  ;;  %v1530_v8 = vcombine.high %v1526_v28, %v1526_v28  ;;  %v1535_v36 = vpack.c.bf16 %v1526_v28, %v1526_v28  ;;  %12473 = vmatpush3.bf16.msra.mxu1 %v13441_v37  ;;  %v2518_v20 = vrot.slane %v2504_v7, %v14014_v33  ;;  %v13453_v28 = vld [vmem:[%s16510_s3 + $0xe8] sm:$0xff]   ;;  %v13454_v37 = vld [vmem:[%s16510_s3 + $0x138] sm:$0xff]  }
 0x138   : > { %12474 = vmatprep.subr.bf16.mxu1 %v13871_v1  ;;  %v2511_v27 = vrot.slane %v2503_v12, %v14014_v33  ;;  %v2655_v30 = vrot.slane %v2653_v17, 6  ;;  %v2658_v31 = vrot.slane %v2656_v19, 7  ;;  %v2664_v7 = vrot.slane %v2662_v54, 7  ;;  %v13459_v19 = vld [vmem:[%s16510_s3 + $0xd0] sm:$0xff]  }
 0x139   : > { %v1536_v41 = vpack.c.bf16 %v1530_v8, %v1530_v8  ;;  %1540 = vst [vmem:[#allocation2 + $0x20] sm:$0x3] %v1535_v36 }
 0x13a   : > { %v2519_v36 = vcombine.low %v2511_v27, %v2518_v20  ;;  %v2659_v45 = vor.u32 %v2658_v31, %v2655_v30  ;;  %v1954_v20 = vld [vmem:[#allocation2 + $0x28] sm:$0x7]  ;;  %v13460_v27 = vld [vmem:[%s16510_s3 + $0x120] sm:$0xff]  }
 0x13b   : > { %1541 = vst [vmem:[#allocation2 + $0x24] sm:$0x3] %v1536_v41  ;;  %12475 = vmatpush3.bf16.msra.mxu1 %v13443_v47 }
 0x13c   : > { %v13831_v56 = vld.sshfl [vmem:[#allocation2 + $0x14] sm:$0xf pattern:$0x76325410]  ;;  %12476 = vmatprep.subr.bf16.mxu1 %v13871_v1  ;;  %v2660_v63 = vrot.slane %v2659_v45, 2 }
 0x13d   : > { %v14516_v11 = vld.sshfl [vmem:[#allocation2 + $0x18] sm:$0x13 pattern:$0x76325410] }
 0x13e   : > { %v14527_v18 = vld.sshfl [vmem:[#allocation2 + $0x1c] sm:$0x13 pattern:$0x76325410]  ;;  %v2667_v22 = vshrl.u32 %v14516_v11, 16  ;;  %v2670_v23 = vshll.u32 %v14516_v11, 16  ;;  %v2635_v53 = vcombine.high %v14516_v11, %v14516_v11 }
 0x13f   : > { %12477 = vmatpush3.bf16.msra.mxu1 %v13445_v59  ;;  %v2681_v32 = vshrl.u32 %v14527_v18, 16  ;;  %v2684_v34 = vshll.u32 %v14527_v18, 16  ;;  %v2643_v57 = vcombine.high %v14527_v18, %v14527_v18  ;;  %v13462_v45 = vld [vmem:[%s16510_s3 + $0x118] sm:$0xff]  }
 0x140   : > { %v13832_v60 = vld.sshfl [vmem:[#allocation2 + $0x1c] sm:$0xf pattern:$0x76325410]  ;;  %12478 = vmatprep.subr.bf16.mxu1 %v13871_v1  ;;  %v2669_v39 = vrot.slane %v2667_v22, 6  ;;  %v2672_v40 = vrot.slane %v2670_v23, 7 }
 0x141   : > { %v2297_v9 = vcombine.low %v13831_v56, %v13832_v60  ;;  %v14518_v13 = vld.sshfl [vmem:[#allocation2 + $0x20] sm:$0x13 pattern:$0x76325410]  ;;  %v2683_v46 = vrot.slane %v2681_v32, 6  ;;  %v2686_v47 = vrot.slane %v2684_v34, 7 }
 0x142   : > { %v2695_v25 = vshrl.u32 %v14518_v13, 16  ;;  %v2698_v26 = vshll.u32 %v14518_v13, 16  ;;  %v2651_v44 = vcombine.high %v14518_v13, %v14518_v13  ;;  %v2673_v58 = vor.u32 %v2672_v40, %v2669_v39 }
 0x143   : > { %12463 = vmatmul.mubr.bf16.vlgmr.msra.gmra.mxu0 %v2297_v9  ;;  %12479 = vmatpush3.bf16.msra.mxu1 %v13447_v5  ;;  %v2687_v0 = vor.u32 %v2686_v47, %v2683_v46  ;;  %v2676_v11 = vshll.u32 %v2635_v53, 16  ;;  %v2690_v12 = vshll.u32 %v2643_v57, 16  ;;  %v2665_v39 = vsel %vm14033_vm7, %v2660_v63, %v2664_v7  ;;  %v10808_v47 = vld.sshfl [vmem:[#allocation2 + $0x4] sm:$0x13 pattern:$0x76325410] }
 0x144   : > { %12487 = vmatpush3.bf16.msra.mxu0 %v13450_v6  ;;  %12480 = vmatprep.subr.bf16.mxu1 %v13871_v1  ;;  %v2697_v41 = vrot.slane %v2695_v25, 6  ;;  %v2700_v42 = vrot.slane %v2698_v26, 7  ;;  %v2704_v2 = vshll.u32 %v2651_v44, 16  ;;  %v13458_v6 = vld [vmem:[%s16510_s3 + $0x128] sm:$0xff]   ;;  %v1960_v44 = vld [vmem:[#allocation2 + $0x30] sm:$0x7] }
 0x145   : > { %12488 = vmatprep.subr.bf16.mxu0 %v13871_v1  ;;  %12502 = vmatprep.mubr.msk.bf16.mxu0 %vm13872_vm0, %v13871_v1  ;;  %v2688_v18 = vrot.slane %v2687_v0, 2  ;;  %v2678_v30 = vrot.slane %v2676_v11, 7  ;;  %v2692_v31 = vrot.slane %v2690_v12, 7  ;;  %v13463_v57 = vld [vmem:[%s16510_s3 + $0xc0] sm:$0xff]   ;;  %v3855_v0 = vshrl.u32 %v10808_v47, 16 }
 0x146   : > { %v2701_v59 = vor.u32 %v2700_v42, %v2697_v41  ;;  %v3829_v11 = vcombine.high %v10808_v47, %v10808_v47 }
 0x147   : > { %12481 = vmatpush3.bf16.msra.mxu1 %v13451_v14  ;;  %v2693_v46 = vsel %vm14033_vm7, %v2688_v18, %v2692_v31  ;;  %v14631_v18 = vld.sshfl [vmem:[#allocation2 + $0xc] sm:$0x13 pattern:$0x76325410] }
 0x148   : > { %12489 = vmatpush3.bf16.msra.mxu0 %v13452_v15  ;;  %12506 = vmatprep.subr.bf16.mxu1 %v13871_v1  ;;  %v2702_v13 = vrot.slane %v2701_v59, 2  ;;  %v10811_v31 = vld.sshfl [vmem:[#allocation2 + $0x10] sm:$0x13 pattern:$0x76325410] }
 0x149   : > { %12490 = vmatprep.subr.bf16.mxu0 %v13871_v1 }
 0x14a   : > { %12483 = vmatmul.mubr.bf16.vlgmr.msra.gmra.mxu1 %v2519_v36 }
 0x14b   : > { %12507 = vmatpush3.bf16.msra.mxu1 %v13454_v37  ;;  %12522 = vmatprep.mubr.msk.bf16.mxu1 %vm13872_vm0, %v13871_v1 }
 0x14c   : > { %v1667_v10 = vpop.f32.mrf.mxu0  ;;  %12491 = vmatpush3.bf16.msra.mxu0 %v13453_v28  ;;  %12508 = vmatprep.subr.bf16.mxu1 %v13871_v1  ;;  %v1957_v28 = vld [vmem:[#allocation2 + $0x2c] sm:$0x7] }
 0x14d   : > { %v1674_v8 = vadd.f32 %v14453_v55, %v1667_v10  ;;  %12492 = vmatprep.subr.bf16.mxu0 %v13871_v1  ;;  %v2674_v10 = vrot.slane %v2673_v58, 2 }
 0x14e   : > { %v12384_v16 = vpop.f32.mrf.mxu0  ;;  %v1889_v43 = vpop.f32.mrf.mxu1 }
 0x14f   : > { %v1896_v48 = vadd.f32 %v1889_v43, %v1674_v8  ;;  %12509 = vmatpush3.bf16.msra.mxu1 %v13456_v52  ;;  %v2679_v40 = vsel %vm14033_vm7, %v2674_v10, %v2678_v30  ;;  %v10809_v10 = vld.sshfl [vmem:[#allocation2 + $0x8] sm:$0x13 pattern:$0x76325410] }
 0x150   : > { %v1670_v21 = vpop.f32.mrf.mxu0  ;;  %v12404_v56 = vpop.f32.mrf.mxu1  ;;  %12493 = vmatpush3.bf16.msra.mxu0 %v13455_v51  ;;  %12510 = vmatprep.subr.bf16.mxu1 %v13871_v1  ;;  %v1963_v51 = vld [vmem:[#allocation2 + $0x34] sm:$0x7]  ;;  %v2725_v59 = vcombine.low %v2665_v39, %v2679_v40 }
 0x151   : > { %v1675_v50 = vadd.f32 %v14453_v55, %v1670_v21  ;;  %v1898_v60 = vmax.f32 %v1896_v48, 0.0  ;;  %12494 = vmatprep.subr.bf16.mxu0 %v13871_v1  ;;  %v2706_v21 = vrot.slane %v2704_v2, 7  ;;  %v3858_v2 = vshll.u32 %v10808_v47, 16  ;;  %v13474_v47 = vld [vmem:[%s16510_s3 + $0x1b0] sm:$0xff]  }
 0x152   : > { %v12385_v29 = vpop.f32.mrf.mxu0  ;;  %v1892_v61 = vpop.f32.mrf.mxu1 }
 0x153   : > { %v1902_v3 = vcombine.high %v1898_v60, %v1898_v60  ;;  %v11744_v4 = vpack.c.bf16 %v1898_v60, %v1898_v60  ;;  %v1897_v5 = vadd.f32 %v1892_v61, %v1675_v50  ;;  %12511 = vmatpush3.bf16.msra.mxu1 %v13458_v6  ;;  %v2707_v36 = vsel %vm14033_vm7, %v2702_v13, %v2706_v21  ;;  %v13464_v61 = vld [vmem:[%s16510_s3 + $0x110] sm:$0xff]   ;;  %v13466_v6 = vld [vmem:[%s16510_s3 + $0x108] sm:$0xff]  }
 0x154   : > { %v12405_v9 = vpop.f32.mrf.mxu1  ;;  %12495 = vmatpush3.bf16.msra.mxu0 %v13457_v62  ;;  %12512 = vmatprep.subr.bf16.mxu1 %v13871_v1  ;;  %v2726_v52 = vcombine.low %v2693_v46, %v2707_v36  ;;  %v13467_v13 = vld [vmem:[%s16510_s3 + $0x170] sm:$0xff]   ;;  %v13469_v36 = vld [vmem:[%s16510_s3 + $0x168] sm:$0xff]   ;;  %v3886_v46 = vshll.u32 %v14631_v18, 16 }
 0x155   : > { %v11745_v14 = vpack.c.bf16 %v1902_v3, %v1902_v3  ;;  %v1923_v15 = vshrl.u32 %v11744_v4, 16  ;;  %v1926_v16 = vshll.u32 %v11744_v4, 16  ;;  %v1899_v17 = vmax.f32 %v1897_v5, 0.0  ;;  %12496 = vmatprep.subr.bf16.mxu0 %v13871_v1  ;;  %v13465_v5 = vld [vmem:[%s16510_s3 + $0x178] sm:$0xff]  }
 0x156   : > { %v2740_v63 = vrot.slane %v2726_v52, %v14014_v33  ;;  %v2733_v4 = vrot.slane %v2725_v59, %v14014_v33  ;;  %v3900_v52 = vshll.u32 %v10811_v31, 16 }
 0x157   : > { %v1925_v22 = vrot.slane %v1923_v15, 7  ;;  %v1930_v23 = vshrl.u32 %v11745_v14, 16  ;;  %v1933_v25 = vshll.u32 %v11745_v14, 16  ;;  %v1903_v26 = vcombine.high %v1899_v17, %v1899_v17  ;;  %12513 = vmatpush3.bf16.msra.mxu1 %v13460_v27 }
 0x158   : > { %v11746_v29 = vpack.c.bf16 %v1899_v17, %v1899_v17  ;;  %12497 = vmatpush3.bf16.msra.mxu0 %v13459_v19  ;;  %12514 = vmatprep.subr.bf16.mxu1 %v13871_v1  ;;  %v2741_v7 = vcombine.low %v2733_v4, %v2740_v63  ;;  %v3857_v15 = vrot.slane %v3855_v0, 6  ;;  %v13468_v19 = vld [vmem:[%s16510_s3 + $0x100] sm:$0xff]   ;;  %v13475_v4 = vld [vmem:[%s16510_s3 + $0x158] sm:$0xff]  }
 0x159   : > { %v1928_v32 = vor.u32 %v1926_v16, %v1925_v22  ;;  %v1932_v34 = vrot.slane %v1930_v23, 7  ;;  %v11747_v8 = vpack.c.bf16 %v1903_v26, %v1903_v26  ;;  %12498 = vmatprep.subr.bf16.mxu0 %v13871_v1  ;;  %v3860_v16 = vrot.slane %v3858_v2, 7 }
 0x15a   : > { %v1937_v37 = vshrl.u32 %v11746_v29, 16  ;;  %v1940_v50 = vshll.u32 %v11746_v29, 16  ;;  %v3837_v22 = vcombine.high %v10809_v10, %v10809_v10  ;;  %v14635_v23 = vshll.u32 %v3829_v11, 16 }
 0x15b   : > { %v1935_v41 = vor.u32 %v1933_v25, %v1932_v34  ;;  %v1955_v42 = vsel %vm14462_vm2, %v1928_v32, %v1954_v20  ;;  %v1944_v43 = vshrl.u32 %v11747_v8, 16  ;;  %v1947_v56 = vshll.u32 %v11747_v8, 16  ;;  %12515 = vmatpush3.bf16.msra.mxu1 %v13462_v45  ;;  %v13473_v45 = vld [vmem:[%s16510_s3 + $0x160] sm:$0xff]  }
 0x15c   : > { %1956 = vst [vmem:[#allocation2 + $0x28] sm:$0x7] %v1955_v42  ;;  %v1939_v48 = vrot.slane %v1937_v37, 7  ;;  %12499 = vmatpush3.bf16.msra.mxu0 %v13461_v38  ;;  %12516 = vmatprep.subr.bf16.mxu1 %v13871_v1  ;;  %v3869_v25 = vshrl.u32 %v10809_v10, 16  ;;  %v3861_v32 = vor.u32 %v3860_v16, %v3857_v15  ;;  %v3872_v34 = vshll.u32 %v10809_v10, 16  ;;  %v13477_v15 = vld [vmem:[%s16510_s3 + $0x150] sm:$0xff]  }
 0x15d   : > { %v1958_v53 = vsel %vm14462_vm2, %v1935_v41, %v1957_v28  ;;  %v1946_v54 = vrot.slane %v1944_v43, 7  ;;  %12500 = vmatprep.subr.bf16.mxu0 %v13871_v1  ;;  %v3866_v38 = vrot.slane %v14635_v23, 7  ;;  %v14649_v40 = vshll.u32 %v3837_v22, 16  ;;  %v13525_v23 = vld [vmem:[%s16510_s3 + $0x2e8] sm:$0xff]  }
 0x15e   : > { %1959 = vst [vmem:[#allocation2 + $0x2c] sm:$0x7] %v1958_v53  ;;  %v1942_v58 = vor.u32 %v1940_v50, %v1939_v48  ;;  %v3871_v39 = vrot.slane %v3869_v25, 6  ;;  %v3883_v41 = vshrl.u32 %v14631_v18, 16  ;;  %v14659_v48 = vrot.slane %v3861_v32, 2 }
 0x15f   : > { %v1949_v60 = vor.u32 %v1947_v56, %v1946_v54  ;;  %12517 = vmatpush3.bf16.msra.mxu1 %v13464_v61  ;;  %v3874_v50 = vrot.slane %v3872_v34, 7  ;;  %v3845_v56 = vcombine.high %v14631_v18, %v14631_v18  ;;  %v13478_v18 = vld [vmem:[%s16510_s3 + $0x1a0] sm:$0xff]  }
 0x160   : > { %v1961_v62 = vsel %vm14462_vm2, %v1942_v58, %v1960_v44  ;;  %12501 = vmatpush3.bf16.msra.mxu0 %v13463_v57  ;;  %12518 = vmatprep.subr.bf16.mxu1 %v13871_v1  ;;  %v3853_v57 = vcombine.high %v10811_v31, %v10811_v31  ;;  %v3885_v61 = vrot.slane %v3883_v41, 6 }
 0x161   : > { %1962 = vst [vmem:[#allocation2 + $0x30] sm:$0x7] %v1961_v62  ;;  %v1964_v3 = vsel %vm14462_vm2, %v1949_v60, %v1963_v51  ;;  %12526 = vmatprep.subr.bf16.mxu0 %v13871_v1  ;;  %v3897_v51 = vshrl.u32 %v10811_v31, 16  ;;  %v3888_v62 = vrot.slane %v3886_v46, 7  ;;  %v3875_v2 = vor.u32 %v3874_v50, %v3871_v39 }
 0x162   : > { %1965 = vst [vmem:[#allocation2 + $0x34] sm:$0x7] %v1964_v3  ;;  %v3880_v3 = vrot.slane %v14649_v40, 7  ;;  %v14686_v10 = vshll.u32 %v3853_v57, 16  ;;  %v13524_v40 = vld [vmem:[%s16510_s3 + $0x280] sm:$0xff]  }
 0x163   : > { %12503 = vmatmul.mubr.bf16.vlgmr.msra.gmra.mxu0 %v2741_v7  ;;  %12519 = vmatpush3.bf16.msra.mxu1 %v13466_v6  ;;  %v14666_v58 = vld.sshfl [vmem:[#allocation2 + $0x28] sm:$0x13 pattern:$0x76325410]  ;;  %v14684_v6 = vshll.u32 %v3845_v56, 16  ;;  %v3899_v7 = vrot.slane %v3897_v51, 6 }
 0x164   : > { %12527 = vmatpush3.bf16.msra.mxu0 %v13465_v5  ;;  %12520 = vmatprep.subr.bf16.mxu1 %v13871_v1  ;;  %v13476_v5 = vld [vmem:[%s16510_s3 + $0x1a8] sm:$0xff]   ;;  %v3143_v16 = vshrl.u32 %v14666_v58, 16  ;;  %v3117_v46 = vcombine.high %v14666_v58, %v14666_v58 }
 0x165   : > { %v13833_v20 = vld.sshfl [vmem:[#allocation2 + $0x28] sm:$0xf pattern:$0x76325410]  ;;  %12528 = vmatprep.subr.bf16.mxu0 %v13871_v1  ;;  %12542 = vmatprep.mubr.msk.bf16.mxu0 %vm13872_vm0, %v13871_v1 }
 0x166   : > { %v14668_v59 = vld.sshfl [vmem:[#allocation2 + $0x2c] sm:$0x13 pattern:$0x76325410] }
 0x167   : > { %12521 = vmatpush3.bf16.msra.mxu1 %v13468_v19  ;;  %v3157_v11 = vshrl.u32 %v14668_v59, 16  ;;  %v3889_v19 = vor.u32 %v3888_v62, %v3885_v61  ;;  %v3125_v41 = vcombine.high %v14668_v59, %v14668_v59 }
 0x168   : > { %12529 = vmatpush3.bf16.msra.mxu0 %v13467_v13  ;;  %12546 = vmatprep.subr.bf16.mxu1 %v13871_v1  ;;  %v14673_v60 = vld.sshfl [vmem:[#allocation2 + $0x30] sm:$0x13 pattern:$0x76325410] }
 0x169   : > { %v13834_v29 = vld.sshfl [vmem:[#allocation2 + $0x30] sm:$0xf pattern:$0x76325410]  ;;  %12530 = vmatprep.subr.bf16.mxu0 %v13871_v1  ;;  %v3171_v13 = vshrl.u32 %v14673_v60, 16 }
 0x16a   : > { %v2875_v44 = vcombine.low %v13833_v20, %v13834_v29  ;;  %v14661_v54 = vld.sshfl [vmem:[#allocation2 + $0x34] sm:$0x13 pattern:$0x76325410] }
 0x16b   : > { %v3185_v63 = vshrl.u32 %v14661_v54, 16  ;;  %v3188_v0 = vshll.u32 %v14661_v54, 16  ;;  %v10836_v20 = vld.sshfl [vmem:[#allocation2 + $0x18] sm:$0x13 pattern:$0x76325410]  ;;  %v3141_v25 = vcombine.high %v14661_v54, %v14661_v54 }
 0x16c   : > { %v2091_v9 = vpop.f32.mrf.mxu0  ;;  %12531 = vmatpush3.bf16.msra.mxu0 %v13469_v36  ;;  %12523 = vmatmul.mubr.bf16.vlgmr.msra.gmra.mxu1 %v2875_v44  ;;  %v10837_v29 = vld.sshfl [vmem:[#allocation2 + $0x1c] sm:$0x13 pattern:$0x76325410]  ;;  %v3173_v32 = vrot.slane %v3171_v13, 6  ;;  %v3908_v44 = vrot.slane %v14686_v10, 7 }
 0x16d   : > { %v2098_v12 = vadd.f32 %v14453_v55, %v2091_v9  ;;  %12532 = vmatprep.subr.bf16.mxu0 %v13871_v1  ;;  %12562 = vmatprep.mubr.msk.bf16.mxu1 %vm13872_vm0, %v13871_v1  ;;  %v3902_v9 = vrot.slane %v3900_v52, 7  ;;  %v3190_v22 = vrot.slane %v3188_v0, 7  ;;  %v4077_v50 = vshrl.u32 %v10836_v20, 16  ;;  %v13480_v52 = vld [vmem:[%s16510_s3 + $0x198] sm:$0xff]  }
 0x16e   : > { %v12424_v14 = vpop.f32.mrf.mxu0  ;;  %v4080_v51 = vshll.u32 %v10836_v20, 16  ;;  %v3194_v57 = vshll.u32 %v3141_v25, 16  ;;  %v4091_v61 = vshrl.u32 %v10837_v29, 16  ;;  %v4094_v62 = vshll.u32 %v10837_v29, 16 }
 0x16f   : > { %v2100_v17 = vmax.f32 %v2098_v12, 0.0  ;;  %v3160_v12 = vshll.u32 %v14668_v59, 16  ;;  %v3174_v14 = vshll.u32 %v14673_v60, 16  ;;  %v3166_v0 = vshll.u32 %v3125_v41, 16 }
 0x170   : > { %v2094_v21 = vpop.f32.mrf.mxu0  ;;  %12533 = vmatpush3.bf16.msra.mxu0 %v13473_v45  ;;  %v13479_v45 = vld [vmem:[%s16510_s3 + $0x148] sm:$0xff]  }
 0x171   : > { %v2104_v26 = vcombine.high %v2100_v17, %v2100_v17  ;;  %v2108_v27 = vpack.c.bf16 %v2100_v17, %v2100_v17  ;;  %v2099_v28 = vadd.f32 %v14453_v55, %v2094_v21  ;;  %v13472_v55 = vld [vmem:[%s16510_s3 + $0x1b8] sm:$0xff]   ;;  %12534 = vmatprep.subr.bf16.mxu0 %v13871_v1  ;;  %v3146_v17 = vshll.u32 %v14666_v58, 16 }
 0x172   : > { %v12425_v30 = vpop.f32.mrf.mxu0  ;;  %12547 = vmatpush3.bf16.msra.mxu1 %v13472_v55  ;;  %v3187_v21 = vrot.slane %v3185_v63, 6  ;;  %v3162_v31 = vrot.slane %v3160_v12, 7  ;;  %v3176_v34 = vrot.slane %v3174_v14, 7  ;;  %v4051_v55 = vcombine.high %v10836_v20, %v10836_v20  ;;  %v13481_v63 = vld [vmem:[%s16510_s3 + $0x140] sm:$0xff]   ;;  %v13482_v12 = vld [vmem:[%s16510_s3 + $0x190] sm:$0xff]  }
 0x173   : > { %v2109_v8 = vpack.c.bf16 %v2104_v26, %v2104_v26  ;;  %2112 = vst [vmem:[#allocation2 + $0x3c] sm:$0x3] %v2108_v27  ;;  %v2101_v37 = vmax.f32 %v2099_v28, 0.0  ;;  %12548 = vmatprep.subr.bf16.mxu1 %v13871_v1  ;;  %v14704_v26 = vrot.slane %v3875_v2, 2  ;;  %v3894_v27 = vrot.slane %v14684_v6, 7 }
 0x174   : > { %12535 = vmatpush3.bf16.msra.mxu0 %v13475_v4  ;;  %v3903_v28 = vor.u32 %v3902_v9, %v3899_v7  ;;  %v3159_v30 = vrot.slane %v3157_v11, 6  ;;  %v3148_v36 = vrot.slane %v3146_v17, 7  ;;  %v3177_v56 = vor.u32 %v3176_v34, %v3173_v32 }
 0x175   : > { %2113 = vst [vmem:[#allocation2 + $0x40] sm:$0x3] %v2109_v8  ;;  %v2105_v42 = vcombine.high %v2101_v37, %v2101_v37  ;;  %v2110_v43 = vpack.c.bf16 %v2101_v37, %v2101_v37  ;;  %12536 = vmatprep.subr.bf16.mxu0 %v13871_v1  ;;  %v3145_v8 = vrot.slane %v3143_v16, 6  ;;  %v14709_v37 = vrot.slane %v3889_v19, 2  ;;  %v13485_v16 = vld [vmem:[%s16510_s3 + $0x1f8] sm:$0xff]  }
 0x176   : > { %12549 = vmatpush3.bf16.msra.mxu1 %v13474_v47  ;;  %v4059_v47 = vcombine.high %v10837_v29, %v10837_v29  ;;  %v3163_v54 = vor.u32 %v3162_v31, %v3159_v30  ;;  %v14727_v59 = vrot.slane %v3903_v28, 2  ;;  %v14730_v58 = vshll.u32 %v4051_v55, 16  ;;  %v14756_v30 = vld.sshfl [vmem:[#allocation2 + $0x20] sm:$0x13 pattern:$0x76325410] }
 0x177   : > { %v2111_v53 = vpack.c.bf16 %v2105_v42, %v2105_v42  ;;  %2114 = vst [vmem:[#allocation2 + $0x44] sm:$0x3] %v2110_v43  ;;  %12550 = vmatprep.subr.bf16.mxu1 %v13871_v1  ;;  %v3133_v42 = vcombine.high %v14673_v60, %v14673_v60  ;;  %v3191_v43 = vor.u32 %v3190_v22, %v3187_v21  ;;  %v4079_v7 = vrot.slane %v4077_v50, 6  ;;  %v13486_v22 = vld [vmem:[%s16510_s3 + $0x188] sm:$0xff]  }
 0x178   : > { %12537 = vmatpush3.bf16.msra.mxu0 %v13477_v15  ;;  %v3149_v60 = vor.u32 %v3148_v36, %v3145_v8  ;;  %v4082_v9 = vrot.slane %v4080_v51, 7  ;;  %v14735_v11 = vshll.u32 %v4059_v47, 16  ;;  %v3164_v13 = vrot.slane %v3163_v54, 2 }
 0x179   : > { %2115 = vst [vmem:[#allocation2 + $0x48] sm:$0x3] %v2111_v53  ;;  %12538 = vmatprep.subr.bf16.mxu0 %v13871_v1  ;;  %v3180_v2 = vshll.u32 %v3133_v42, 16  ;;  %v3192_v4 = vrot.slane %v3191_v43, 2  ;;  %v3178_v14 = vrot.slane %v3177_v56, 2  ;;  %v3196_v15 = vrot.slane %v3194_v57, 7 }
 0x17a   : > { %12551 = vmatpush3.bf16.msra.mxu1 %v13476_v5  ;;  %v3152_v5 = vshll.u32 %v3117_v46, 16  ;;  %v3150_v17 = vrot.slane %v3149_v60, 2  ;;  %v4088_v19 = vrot.slane %v14730_v58, 7  ;;  %v14746_v20 = vrot.slane %v4091_v61, 6  ;;  %v13487_v43 = vld [vmem:[%s16510_s3 + $0x1f0] sm:$0xff]  }
 0x17b   : > { %12552 = vmatprep.subr.bf16.mxu1 %v13871_v1  ;;  %v3168_v25 = vrot.slane %v3166_v0, 7  ;;  %v3182_v28 = vrot.slane %v3180_v2, 7  ;;  %v3197_v29 = vsel %vm14033_vm7, %v3192_v4, %v3196_v15  ;;  %v14758_v31 = vld.sshfl [vmem:[#allocation2 + $0x3c] sm:$0x13 pattern:$0x76325410]  ;;  %v4083_v42 = vor.u32 %v4082_v9, %v4079_v7 }
 0x17c   : > { %v13836_v53 = vld.sshfl [vmem:[#allocation2 + $0x3c] sm:$0xf pattern:$0x76325410]  ;;  %12539 = vmatpush3.bf16.msra.mxu0 %v13479_v45  ;;  %v3154_v32 = vrot.slane %v3152_v5, 7  ;;  %v4102_v55 = vrot.slane %v14735_v11, 7  ;;  %v3895_v10 = vsel %vm14033_vm7, %v14709_v37, %v3894_v27 }
 0x17d   : > { %12540 = vmatprep.subr.bf16.mxu0 %v13871_v1  ;;  %v3169_v34 = vsel %vm14033_vm7, %v3164_v13, %v3168_v25  ;;  %v3183_v8 = vsel %vm14033_vm7, %v3178_v14, %v3182_v28  ;;  %v14765_v36 = vld.sshfl [vmem:[#allocation2 + $0x40] sm:$0x13 pattern:$0x76325410]  ;;  %v3365_v46 = vshrl.u32 %v14758_v31, 16  ;;  %v3368_v47 = vshll.u32 %v14758_v31, 16 }
 0x17e   : > { %12553 = vmatpush3.bf16.msra.mxu1 %v13478_v18  ;;  %v14748_v18 = vrot.slane %v4094_v62, 7  ;;  %v3155_v45 = vsel %vm14033_vm7, %v3150_v17, %v3154_v32  ;;  %v4105_v50 = vshrl.u32 %v14756_v30, 16  ;;  %v3379_v54 = vshrl.u32 %v14765_v36, 16  ;;  %v13490_v13 = vld [vmem:[%s16510_s3 + $0x238] sm:$0xff]   ;;  %v13527_v37 = vld [vmem:[%s16510_s3 + $0x2e0] sm:$0xff]  }
 0x17f   : > { %12554 = vmatprep.subr.bf16.mxu1 %v13871_v1  ;;  %v3215_v51 = vcombine.low %v3155_v45, %v3169_v34  ;;  %v3382_v56 = vshll.u32 %v14765_v36, 16  ;;  %v14791_v61 = vld.sshfl [vmem:[#allocation2 + $0x24] sm:$0x13 pattern:$0x76325410]  ;;  %v14797_v0 = vrot.slane %v4083_v42, 2  ;;  %v3339_v14 = vcombine.high %v14758_v31, %v14758_v31 }
 0x180   : > { %v14711_v39 = vld.sshfl [vmem:[#allocation2 + $0x44] sm:$0xf pattern:$0x76325410]  ;;  %12541 = vmatpush3.bf16.msra.mxu0 %v13481_v63  ;;  %v4067_v63 = vcombine.high %v14756_v30, %v14756_v30  ;;  %v4108_v2 = vshll.u32 %v14756_v30, 16  ;;  %v4097_v7 = vor.u32 %v14748_v18, %v14746_v20  ;;  %v3367_v15 = vrot.slane %v3365_v46, 6 }
 0x181   : > { %v3009_v21 = vcombine.low %v13836_v53, %v14711_v39  ;;  %12566 = vmatprep.subr.bf16.mxu0 %v13871_v1  ;;  %v3216_v39 = vcombine.low %v3183_v8, %v3197_v29  ;;  %v14769_v41 = vld.sshfl [vmem:[#allocation2 + $0x48] sm:$0x13 pattern:$0x76325410]  ;;  %v13488_v53 = vld [vmem:[%s16510_s3 + $0x180] sm:$0xff]   ;;  %v3223_v9 = vrot.slane %v3215_v51, %v14014_v33  ;;  %v3381_v17 = vrot.slane %v3379_v54, 6 }
 0x182   : > { %12555 = vmatpush3.bf16.msra.mxu1 %v13480_v52  ;;  %v14781_v52 = vld.sshfl [vmem:[#allocation2 + $0x44] sm:$0x13 pattern:$0x76325410]  ;;  %v3407_v57 = vshrl.u32 %v14769_v41, 16  ;;  %v3410_v60 = vshll.u32 %v14769_v41, 16  ;;  %v3363_v31 = vcombine.high %v14769_v41, %v14769_v41  ;;  %v4089_v11 = vsel %vm14033_vm7, %v14797_v0, %v4088_v19 }
 0x183   : > { %12556 = vmatprep.subr.bf16.mxu1 %v13871_v1  ;;  %12543 = vmatmul.mubr.bf16.vlgmr.msra.gmra.mxu0 %v3009_v21  ;;  %v3230_v62 = vrot.slane %v3216_v39, %v14014_v33  ;;  %v3393_v4 = vshrl.u32 %v14781_v52, 16  ;;  %v3396_v5 = vshll.u32 %v14781_v52, 16  ;;  %v3384_v20 = vrot.slane %v3382_v56, 7  ;;  %v13491_v30 = vld [vmem:[%s16510_s3 + $0x1e0] sm:$0xff]   ;;  %v13492_v41 = vld [vmem:[%s16510_s3 + $0x230] sm:$0xff]   ;;  %v13494_v54 = vld [vmem:[%s16510_s3 + $0x228] sm:$0xff]  }
 0x184   : > { %12567 = vmatpush3.bf16.msra.mxu0 %v13485_v16  ;;  %12582 = vmatprep.mubr.msk.bf16.mxu0 %vm13872_vm0, %v13871_v1  ;;  %v3370_v16 = vrot.slane %v3368_v47, 7  ;;  %v3409_v18 = vrot.slane %v3407_v57, 6  ;;  %v3412_v21 = vrot.slane %v3410_v60, 7  ;;  %v4107_v25 = vrot.slane %v4105_v50, 6  ;;  %v13537_v19 = vld [vmem:[%s16510_s3 + $0x378] sm:$0xff]  }
 0x185   : > { %12568 = vmatprep.subr.bf16.mxu0 %v13871_v1  ;;  %v14815_v28 = vshll.u32 %v4067_v63, 16  ;;  %v4119_v29 = vshrl.u32 %v14791_v61, 16  ;;  %v3395_v32 = vrot.slane %v3393_v4, 6  ;;  %v3398_v34 = vrot.slane %v3396_v5, 7 }
 0x186   : > { %12557 = vmatpush3.bf16.msra.mxu1 %v13482_v12  ;;  %v13489_v12 = vld [vmem:[%s16510_s3 + $0x1e8] sm:$0xff]   ;;  %v4122_v8 = vshll.u32 %v14791_v61, 16  ;;  %v3347_v39 = vcombine.high %v14765_v36, %v14765_v36  ;;  %v3355_v42 = vcombine.high %v14781_v52, %v14781_v52  ;;  %v4110_v45 = vrot.slane %v4108_v2, 7  ;;  %v13493_v36 = vld [vmem:[%s16510_s3 + $0x1d8] sm:$0xff]  }
 0x187   : > { %12558 = vmatprep.subr.bf16.mxu1 %v13871_v1  ;;  %v3371_v46 = vor.u32 %v3370_v16, %v3367_v15  ;;  %v3385_v47 = vor.u32 %v3384_v20, %v3381_v17  ;;  %v3413_v50 = vor.u32 %v3412_v21, %v3409_v18  ;;  %v14832_v51 = vrot.slane %v4097_v7, 2  ;;  %v13497_v18 = vld [vmem:[%s16510_s3 + $0x1c8] sm:$0xff]  }
 0x188   : > { %12569 = vmatpush3.bf16.msra.mxu0 %v13487_v43  ;;  %v3374_v43 = vshll.u32 %v3339_v14, 16  ;;  %v4116_v52 = vrot.slane %v14815_v28, 7  ;;  %v3399_v56 = vor.u32 %v3398_v34, %v3395_v32  ;;  %v3416_v57 = vshll.u32 %v3363_v31, 16  ;;  %v13499_v34 = vld [vmem:[%s16510_s3 + $0x1c0] sm:$0xff]  }
 0x189   : > { %12570 = vmatprep.subr.bf16.mxu0 %v13871_v1  ;;  %v4124_v60 = vrot.slane %v4122_v8, 7  ;;  %v3388_v63 = vshll.u32 %v3347_v39, 16  ;;  %v3372_v2 = vrot.slane %v3371_v46, 2  ;;  %v3386_v4 = vrot.slane %v3385_v47, 2  ;;  %v13500_v39 = vld [vmem:[%s16510_s3 + $0x210] sm:$0xff]   ;;  %v13501_v46 = vld [vmem:[%s16510_s3 + $0x278] sm:$0xff]  }
 0x18a   : > { %12559 = vmatpush3.bf16.msra.mxu1 %v13486_v22  ;;  %v3231_v22 = vcombine.low %v3223_v9, %v3230_v62  ;;  %v3376_v62 = vrot.slane %v3374_v43, 7  ;;  %v3402_v5 = vshll.u32 %v3355_v42, 16  ;;  %v3414_v7 = vrot.slane %v3413_v50, 2  ;;  %v13495_v9 = vld [vmem:[%s16510_s3 + $0x1d0] sm:$0xff]   ;;  %v13502_v50 = vld [vmem:[%s16510_s3 + $0x208] sm:$0xff]   ;;  %v13535_v28 = vld [vmem:[%s16510_s3 + $0x2c0] sm:$0xff]  }
 0x18b   : > { %12560 = vmatprep.subr.bf16.mxu1 %v13871_v1  ;;  %v3418_v14 = vrot.slane %v3416_v57, 7  ;;  %v3390_v15 = vrot.slane %v3388_v63, 7  ;;  %v4075_v17 = vcombine.high %v14791_v61, %v14791_v61  ;;  %v4111_v20 = vor.u32 %v4110_v45, %v4107_v25  ;;  %v13504_v57 = vld [vmem:[%s16510_s3 + $0x200] sm:$0xff]  }
 0x18c   : > { %12571 = vmatpush3.bf16.msra.mxu0 %v13489_v12  ;;  %v13496_v12 = vld [vmem:[%s16510_s3 + $0x220] sm:$0xff]   ;;  %v3404_v16 = vrot.slane %v3402_v5, 7  ;;  %v3377_v8 = vsel %vm14033_vm7, %v3372_v2, %v3376_v62  ;;  %v13508_v62 = vld [vmem:[%s16510_s3 + $0x2b8] sm:$0xff]  }
 0x18d   : > { %12572 = vmatprep.subr.bf16.mxu0 %v13871_v1  ;;  %v3419_v21 = vsel %vm14033_vm7, %v3414_v7, %v3418_v14  ;;  %v14871_v32 = vshll.u32 %v4075_v17, 16  ;;  %v13509_v2 = vld [vmem:[%s16510_s3 + $0x260] sm:$0xff]   ;;  %v13511_v5 = vld [vmem:[%s16510_s3 + $0x258] sm:$0xff]   ;;  %v13512_v7 = vld [vmem:[%s16510_s3 + $0x2a8] sm:$0xff]  }
 0x18e   : > { %12561 = vmatpush3.bf16.msra.mxu1 %v13488_v53  ;;  %v4121_v53 = vrot.slane %v4119_v29, 6  ;;  %v3391_v29 = vsel %vm14033_vm7, %v3386_v4, %v3390_v15  ;;  %v13510_v4 = vld [vmem:[%s16510_s3 + $0x2b0] sm:$0xff]   ;;  %v13516_v14 = vld [vmem:[%s16510_s3 + $0x298] sm:$0xff]   ;;  %v13517_v17 = vld [vmem:[%s16510_s3 + $0x240] sm:$0xff]  }
 0x18f   : > { %12586 = vmatprep.subr.bf16.mxu1 %v13871_v1  ;;  %v3437_v42 = vcombine.low %v3377_v8, %v3391_v29  ;;  %v13839_v15 = vld.sshfl [vmem:[#allocation2 + $0x20] sm:$0xf pattern:$0x76325410]  ;;  %v13531_v8 = vld [vmem:[%s16510_s3 + $0x2d0] sm:$0xff]  }
 0x190   : > { %12573 = vmatpush3.bf16.msra.mxu0 %v13491_v30  ;;  %v14869_v30 = vrot.slane %v4111_v20, 2  ;;  %v4125_v31 = vor.u32 %v4124_v60, %v4121_v53  ;;  %v13507_v60 = vld [vmem:[%s16510_s3 + $0x268] sm:$0xff]   ;;  %v13518_v20 = vld [vmem:[%s16510_s3 + $0x290] sm:$0xff]  }
 0x191   : > { %12563 = vmatmul.mubr.bf16.vlgmr.msra.gmra.mxu1 %v3231_v22  ;;  %12574 = vmatprep.subr.bf16.mxu0 %v13871_v1  ;;  %v13498_v22 = vld [vmem:[%s16510_s3 + $0x218] sm:$0xff]   ;;  %v3445_v47 = vrot.slane %v3437_v42, %v14014_v33  ;;  %v13533_v42 = vld [vmem:[%s16510_s3 + $0x2c8] sm:$0xff]  }
 0x192   : > { %12587 = vmatpush3.bf16.msra.mxu1 %v13490_v13  ;;  %12602 = vmatprep.mubr.msk.bf16.mxu1 %vm13872_vm0, %v13871_v1  ;;  %v3400_v13 = vrot.slane %v3399_v56, 2  ;;  %v14884_v45 = vrot.slane %v4125_v31, 2  ;;  %v13838_v56 = vld.sshfl [vmem:[#allocation2 + $0x4] sm:$0xf pattern:$0x76325410] }
 0x193   : > { %12588 = vmatprep.subr.bf16.mxu1 %v13871_v1  ;;  %v13529_v31 = vld [vmem:[%s16510_s3 + $0x2d8] sm:$0xff]  }
 0x194   : > { %12575 = vmatpush3.bf16.msra.mxu0 %v13493_v36  ;;  %v3405_v61 = vsel %vm14033_vm7, %v3400_v13, %v3404_v16  ;;  %v13837_v36 = vld.sshfl [vmem:[#allocation2 + $0xc] sm:$0xf pattern:$0x76325410] }
 0x195   : > { %12576 = vmatprep.subr.bf16.mxu0 %v13871_v1  ;;  %v3438_v25 = vcombine.low %v3405_v61, %v3419_v21  ;;  %v3587_v63 = vcombine.low %v13838_v56, %v13837_v36  ;;  %v13515_v13 = vld [vmem:[%s16510_s3 + $0x248] sm:$0xff]   ;;  %v13840_v16 = vld.sshfl [vmem:[#allocation2 + $0x18] sm:$0xf pattern:$0x76325410]  ;;  %v3881_v61 = vsel %vm14033_vm7, %v14704_v26, %v3880_v3  ;;  %v3867_v3 = vsel %vm14033_vm7, %v14659_v48, %v3866_v38 }
 0x196   : > { %12589 = vmatpush3.bf16.msra.mxu1 %v13492_v41  ;;  %v4130_v41 = vrot.slane %v14871_v32, 7  ;;  %v13522_v21 = vld [vmem:[%s16510_s3 + $0x288] sm:$0xff]   ;;  %v3721_v29 = vcombine.low %v13840_v16, %v13839_v15  ;;  %v3927_v6 = vcombine.low %v3867_v3, %v3881_v61  ;;  %v13526_v38 = vld [vmem:[%s16510_s3 + $0x338] sm:$0xff]  }
 0x197   : > { %12590 = vmatprep.subr.bf16.mxu1 %v13871_v1  ;;  %v3452_v43 = vrot.slane %v3438_v25, %v14014_v33  ;;  %v13528_v25 = vld [vmem:[%s16510_s3 + $0x330] sm:$0xff]   ;;  %v13534_v32 = vld [vmem:[%s16510_s3 + $0x318] sm:$0xff]  }
 0x198   : > { %12577 = vmatpush3.bf16.msra.mxu0 %v13495_v9  ;;  %v13513_v9 = vld [vmem:[%s16510_s3 + $0x250] sm:$0xff]   ;;  %v3935_v48 = vrot.slane %v3927_v6, %v14014_v33  ;;  %v13544_v56 = vld [vmem:[%s16510_s3 + $0x3b8] sm:$0xff]  }
 0x199   : > { %12578 = vmatprep.subr.bf16.mxu0 %v13871_v1  ;;  %v3453_v53 = vcombine.low %v3445_v47, %v3452_v43  ;;  %v4131_v43 = vsel %vm14033_vm7, %v14884_v45, %v4130_v41  ;;  %v4117_v47 = vsel %vm14033_vm7, %v14869_v30, %v4116_v52  ;;  %v13538_v30 = vld [vmem:[%s16510_s3 + $0x308] sm:$0xff]   ;;  %v13841_v41 = vld.sshfl [vmem:[#allocation2 + $0x34] sm:$0xf pattern:$0x76325410] }
 0x19a   : > { %12591 = vmatpush3.bf16.msra.mxu1 %v13494_v54  ;;  %v13503_v54 = vld [vmem:[%s16510_s3 + $0x270] sm:$0xff]   ;;  %v4150_v45 = vcombine.low %v4117_v47, %v4131_v43  ;;  %v13547_v16 = vld [vmem:[%s16510_s3 + $0x358] sm:$0xff]   ;;  %v13843_v43 = vld.sshfl [vmem:[#allocation2 + $0x48] sm:$0xf pattern:$0x76325410] }
 0x19b   : > { %12592 = vmatprep.subr.bf16.mxu1 %v13871_v1  ;;  %v13842_v36 = vld.sshfl [vmem:[#allocation2 + $0x2c] sm:$0xf pattern:$0x76325410] }
 0x19c   : > { %12579 = vmatpush3.bf16.msra.mxu0 %v13497_v18  ;;  %v13521_v18 = vld [vmem:[%s16510_s3 + $0x2f8] sm:$0xff]   ;;  %v4164_v52 = vrot.slane %v4150_v45, %v14014_v33  ;;  %v13549_v6 = vld [vmem:[%s16510_s3 + $0x350] sm:$0xff]  }
 0x19d   : > { %12580 = vmatprep.subr.bf16.mxu0 %v13871_v1 }
 0x19e   : > { %12593 = vmatpush3.bf16.msra.mxu1 %v13496_v12  ;;  %v13514_v12 = vld [vmem:[%s16510_s3 + $0x2a0] sm:$0xff]  }
 0x19f   : > { %12594 = vmatprep.subr.bf16.mxu1 %v13871_v1 }
 0x1a0   : > { %12581 = vmatpush3.bf16.msra.mxu0 %v13499_v34  ;;  %v13530_v34 = vld [vmem:[%s16510_s3 + $0x328] sm:$0xff]  }
 0x1a1   : > { %12606 = vmatprep.subr.bf16.mxu0 %v13871_v1 }
 0x1a2   : > { %12595 = vmatpush3.bf16.msra.mxu1 %v13498_v22  ;;  %v3909_v22 = vsel %vm14033_vm7, %v14727_v59, %v3908_v44  ;;  %v13523_v44 = vld [vmem:[%s16510_s3 + $0x2f0] sm:$0xff]  }
 0x1a3   : > { %12596 = vmatprep.subr.bf16.mxu1 %v13871_v1  ;;  %12583 = vmatmul.mubr.bf16.vlgmr.msra.gmra.mxu0 %v3453_v53  ;;  %v3928_v59 = vcombine.low %v3895_v10, %v3909_v22  ;;  %v13540_v53 = vld [vmem:[%s16510_s3 + $0x300] sm:$0xff]  }
 0x1a4   : > { %12607 = vmatpush3.bf16.msra.mxu0 %v13501_v46  ;;  %12622 = vmatprep.mubr.msk.bf16.mxu0 %vm13872_vm0, %v13871_v1  ;;  %v4103_v46 = vsel %vm14033_vm7, %v14832_v51, %v4102_v55  ;;  %v13536_v51 = vld [vmem:[%s16510_s3 + $0x310] sm:$0xff]  }
 0x1a5   : > { %12608 = vmatprep.subr.bf16.mxu0 %v13871_v1  ;;  %v3942_v26 = vrot.slane %v3928_v59, %v14014_v33  ;;  %v4149_v55 = vcombine.low %v4089_v11, %v4103_v46 }
 0x1a6   : > { %12597 = vmatpush3.bf16.msra.mxu1 %v13500_v39  ;;  %v13532_v39 = vld [vmem:[%s16510_s3 + $0x320] sm:$0xff]  }
 0x1a7   : > { %12598 = vmatprep.subr.bf16.mxu1 %v13871_v1  ;;  %v3943_v27 = vcombine.low %v3935_v48, %v3942_v26  ;;  %v4157_v58 = vrot.slane %v4149_v55, %v14014_v33  ;;  %v13550_v26 = vld [vmem:[%s16510_s3 + $0x3a0] sm:$0xff]  }
 0x1a8   : > { %12609 = vmatpush3.bf16.msra.mxu0 %v13503_v54  ;;  %v13543_v54 = vld [vmem:[%s16510_s3 + $0x368] sm:$0xff]   ;;  %v13844_v55 = vld.sshfl [vmem:[#allocation2 + $0x40] sm:$0xf pattern:$0x76325410] }
 0x1a9   : > { %12610 = vmatprep.subr.bf16.mxu0 %v13871_v1  ;;  %v4165_v0 = vcombine.low %v4157_v58, %v4164_v52  ;;  %v13553_v58 = vld [vmem:[%s16510_s3 + $0x340] sm:$0xff]  }
 0x1aa   : > { %12599 = vmatpush3.bf16.msra.mxu1 %v13502_v50  ;;  %v13539_v50 = vld [vmem:[%s16510_s3 + $0x370] sm:$0xff]  }
 0x1ab   : > { %12600 = vmatprep.subr.bf16.mxu1 %v13871_v1 }
 0x1ac   : > { %12611 = vmatpush3.bf16.msra.mxu0 %v13507_v60 }
 0x1ad   : > { %12612 = vmatprep.subr.bf16.mxu0 %v13871_v1 }
 0x1ae   : > { %12601 = vmatpush3.bf16.msra.mxu1 %v13504_v57  ;;  %v4300_v57 = vcombine.low %v13842_v36, %v13841_v41  ;;  %v10575_v36 = vld [vmem:[%s16511_s4] ss:$0 sm:$0xff] }
 0x1af   : > { %12626 = vmatprep.subr.bf16.mxu1 %v13871_v1 }
 0x1b0   : > { %12613 = vmatpush3.bf16.msra.mxu0 %v13509_v2  ;;  %v10914_v2 = vld.sshfl [vmem:[#allocation2 + $0x34] sm:$0x13 pattern:$0x76325410] }
 0x1b1   : > { %12603 = vmatmul.mubr.bf16.vlgmr.msra.gmra.mxu1 %v3587_v63  ;;  %12614 = vmatprep.subr.bf16.mxu0 %v13871_v1  ;;  %v13545_v63 = vld [vmem:[%s16510_s3 + $0x360] sm:$0xff]   ;;  %v4600_v15 = vshll.u32 %v10914_v2, 16 }
 0x1b2   : > { %12627 = vmatpush3.bf16.msra.mxu1 %v13508_v62  ;;  %12642 = vmatprep.mubr.msk.bf16.mxu1 %vm13872_vm0, %v13871_v1  ;;  %v10915_v62 = vld.sshfl [vmem:[#allocation2 + $0x38] sm:$0x13 pattern:$0x76325410] }
 0x1b3   : > { %12628 = vmatprep.subr.bf16.mxu1 %v13871_v1  ;;  %v4602_v3 = vrot.slane %v4600_v15, 7  ;;  %v10942_v15 = vld.sshfl [vmem:[#allocation2 + $0x48] sm:$0x13 pattern:$0x76325410] }
 0x1b4   : > { %12615 = vmatpush3.bf16.msra.mxu0 %v13511_v5  ;;  %v13546_v5 = vld [vmem:[%s16510_s3 + $0x3b0] sm:$0xff]  }
 0x1b5   : > { %12616 = vmatprep.subr.bf16.mxu0 %v13871_v1 }
 0x1b6   : > { %12629 = vmatpush3.bf16.msra.mxu1 %v13510_v4 }
 0x1b7   : > { %12630 = vmatprep.subr.bf16.mxu1 %v13871_v1 }
 0x1b8   : > { %12617 = vmatpush3.bf16.msra.mxu0 %v13513_v9  ;;  %v4611_v9 = vshrl.u32 %v10915_v62, 16 }
 0x1b9   : > { %12618 = vmatprep.subr.bf16.mxu0 %v13871_v1 }
 0x1ba   : > { %12631 = vmatpush3.bf16.msra.mxu1 %v13512_v7  ;;  %v10913_v7 = vld.sshfl [vmem:[#allocation2 + $0x30] sm:$0x13 pattern:$0x76325410]  ;;  %v4613_v61 = vrot.slane %v4611_v9, 6 }
 0x1bb   : > { %12632 = vmatprep.subr.bf16.mxu1 %v13871_v1  ;;  %v4586_v22 = vshll.u32 %v10913_v7, 16 }
 0x1bc   : > { %12619 = vmatpush3.bf16.msra.mxu0 %v13515_v13 }
 0x1bd   : > { %12620 = vmatprep.subr.bf16.mxu0 %v13871_v1  ;;  %v4588_v48 = vrot.slane %v4586_v22, 7  ;;  %v10941_v22 = vld.sshfl [vmem:[#allocation2 + $0x44] sm:$0x13 pattern:$0x76325410] }
 0x1be   : > { %12633 = vmatpush3.bf16.msra.mxu1 %v13514_v12  ;;  %v4614_v12 = vshll.u32 %v10915_v62, 16 }
 0x1bf   : > { %12634 = vmatprep.subr.bf16.mxu1 %v13871_v1 }
 0x1c0   : > { %12621 = vmatpush3.bf16.msra.mxu0 %v13517_v17  ;;  %v10912_v17 = vld.sshfl [vmem:[#allocation2 + $0x2c] sm:$0x13 pattern:$0x76325410]  ;;  %v4616_v10 = vrot.slane %v4614_v12, 7 }
 0x1c1   : > { %12646 = vmatprep.subr.bf16.mxu0 %v13871_v1  ;;  %v4572_v59 = vshll.u32 %v10912_v17, 16  ;;  %v4543_v46 = vcombine.high %v10912_v17, %v10912_v17 }
 0x1c2   : > { %12635 = vmatpush3.bf16.msra.mxu1 %v13516_v14  ;;  %v4597_v14 = vshrl.u32 %v10914_v2, 16 }
 0x1c3   : > { %12636 = vmatprep.subr.bf16.mxu1 %v13871_v1  ;;  %12623 = vmatmul.mubr.bf16.vlgmr.msra.gmra.mxu0 %v3721_v29  ;;  %v4567_v29 = vcombine.high %v10915_v62, %v10915_v62  ;;  %v4435_v62 = vcombine.low %v13844_v55, %v13843_v43 }
 0x1c4   : > { %12647 = vmatpush3.bf16.msra.mxu0 %v13521_v18  ;;  %12662 = vmatprep.mubr.msk.bf16.mxu0 %vm13872_vm0, %v13871_v1  ;;  %v13548_v18 = vld [vmem:[%s16510_s3 + $0x3a8] sm:$0xff]  }
 0x1c5   : > { %12648 = vmatprep.subr.bf16.mxu0 %v13871_v1 }
 0x1c6   : > { %12637 = vmatpush3.bf16.msra.mxu1 %v13518_v20 }
 0x1c7   : > { %12638 = vmatprep.subr.bf16.mxu1 %v13871_v1 }
 0x1c8   : > { %12649 = vmatpush3.bf16.msra.mxu0 %v13523_v44  ;;  %v4569_v44 = vshrl.u32 %v10912_v17, 16  ;;  %v13559_v17 = vld [vmem:[%s16510_s3 + $0x3f0] sm:$0xff]  }
 0x1c9   : > { %12650 = vmatprep.subr.bf16.mxu0 %v13871_v1 }
 0x1ca   : > { %12639 = vmatpush3.bf16.msra.mxu1 %v13522_v21  ;;  %v4583_v21 = vshrl.u32 %v10913_v7, 16 }
 0x1cb   : > { %12640 = vmatprep.subr.bf16.mxu1 %v13871_v1 }
 0x1cc   : > { %12651 = vmatpush3.bf16.msra.mxu0 %v13525_v23  ;;  %v4559_v23 = vcombine.high %v10914_v2, %v10914_v2 }
 0x1cd   : > { %12652 = vmatprep.subr.bf16.mxu0 %v13871_v1 }
 0x1ce   : > { %12641 = vmatpush3.bf16.msra.mxu1 %v13524_v40  ;;  %v4599_v40 = vrot.slane %v4597_v14, 6 }
 0x1cf   : > { %12666 = vmatprep.subr.bf16.mxu1 %v13871_v1 }
 0x1d0   : > { %12653 = vmatpush3.bf16.msra.mxu0 %v13527_v37  ;;  %v4620_v37 = vshll.u32 %v4567_v29, 16 }
 0x1d1   : > { %12643 = vmatmul.mubr.bf16.vlgmr.msra.gmra.mxu1 %v3943_v27  ;;  %12654 = vmatprep.subr.bf16.mxu0 %v13871_v1  ;;  %v4617_v27 = vor.u32 %v4616_v10, %v4613_v61 }
 0x1d2   : > { %12667 = vmatpush3.bf16.msra.mxu1 %v13526_v38  ;;  %12682 = vmatprep.mubr.msk.bf16.mxu1 %vm13872_vm0, %v13871_v1  ;;  %v4585_v38 = vrot.slane %v4583_v21, 6  ;;  %v4622_v11 = vrot.slane %v4620_v37, 7  ;;  %v13560_v21 = vld [vmem:[%s16510_s3 + $0x380] sm:$0xff]  }
 0x1d3   : > { %12668 = vmatprep.subr.bf16.mxu1 %v13871_v1  ;;  %v4618_v45 = vrot.slane %v4617_v27, 2 }
 0x1d4   : > { %12655 = vmatpush3.bf16.msra.mxu0 %v13529_v31  ;;  %v4571_v31 = vrot.slane %v4569_v44, 6  ;;  %v4589_v47 = vor.u32 %v4588_v48, %v4585_v38  ;;  %v10940_v44 = vld.sshfl [vmem:[#allocation2 + $0x40] sm:$0x13 pattern:$0x76325410]  ;;  %v4805_v38 = vshrl.u32 %v10941_v22, 16 }
 0x1d5   : > { %12656 = vmatprep.subr.bf16.mxu0 %v13871_v1  ;;  %v4808_v48 = vshll.u32 %v10941_v22, 16  ;;  %v4791_v37 = vshrl.u32 %v10940_v44, 16 }
 0x1d6   : > { %12669 = vmatpush3.bf16.msra.mxu1 %v13528_v25  ;;  %v4551_v25 = vcombine.high %v10913_v7, %v10913_v7 }
 0x1d7   : > { %12670 = vmatprep.subr.bf16.mxu1 %v13871_v1 }
 0x1d8   : > { %12657 = vmatpush3.bf16.msra.mxu0 %v13531_v8  ;;  %v4603_v8 = vor.u32 %v4602_v3, %v4599_v40  ;;  %v4822_v40 = vshll.u32 %v10942_v15, 16 }
 0x1d9   : > { %12658 = vmatprep.subr.bf16.mxu0 %v13871_v1 }
 0x1da   : > { %12671 = vmatpush3.bf16.msra.mxu1 %v13530_v34  ;;  %v4574_v34 = vrot.slane %v4572_v59, 7  ;;  %v4604_v52 = vrot.slane %v4603_v8, 2  ;;  %v4819_v59 = vshrl.u32 %v10942_v15, 16  ;;  %v4794_v8 = vshll.u32 %v10940_v44, 16 }
 0x1db   : > { %12672 = vmatprep.subr.bf16.mxu1 %v13871_v1 }
 0x1dc   : > { %12659 = vmatpush3.bf16.msra.mxu0 %v13533_v42  ;;  %v13552_v42 = vld [vmem:[%s16510_s3 + $0x398] sm:$0xff]  }
 0x1dd   : > { %12660 = vmatprep.subr.bf16.mxu0 %v13871_v1 }
 0x1de   : > { %12673 = vmatpush3.bf16.msra.mxu1 %v13532_v39  ;;  %v13551_v39 = vld [vmem:[%s16510_s3 + $0x348] sm:$0xff]  }
 0x1df   : > { %12674 = vmatprep.subr.bf16.mxu1 %v13871_v1 }
 0x1e0   : > { %12661 = vmatpush3.bf16.msra.mxu0 %v13535_v28  ;;  %v4575_v28 = vor.u32 %v4574_v34, %v4571_v31 }
 0x1e1   : > { %12686 = vmatprep.subr.bf16.mxu0 %v13871_v1 }
 0x1e2   : > { %12675 = vmatpush3.bf16.msra.mxu1 %v13534_v32  ;;  %v4606_v32 = vshll.u32 %v4559_v23, 16  ;;  %v13561_v23 = vld [vmem:[%s16510_s3 + $0x3e8] sm:$0xff]  }
 0x1e3   : > { %12676 = vmatprep.subr.bf16.mxu1 %v13871_v1  ;;  %12663 = vmatmul.mubr.bf16.vlgmr.msra.gmra.mxu0 %v4165_v0  ;;  %v4578_v0 = vshll.u32 %v4543_v46, 16 }
 0x1e4   : > { %12687 = vmatpush3.bf16.msra.mxu0 %v13537_v19  ;;  %12702 = vmatprep.mubr.msk.bf16.mxu0 %vm13872_vm0, %v13871_v1  ;;  %v13554_v19 = vld [vmem:[%s16510_s3 + $0x390] sm:$0xff]   ;;  %v4608_v41 = vrot.slane %v4606_v32, 7  ;;  %v4781_v32 = vcombine.high %v10942_v15, %v10942_v15 }
 0x1e5   : > { %12688 = vmatprep.subr.bf16.mxu0 %v13871_v1  ;;  %v4580_v2 = vrot.slane %v4578_v0, 7 }
 0x1e6   : > { %12677 = vmatpush3.bf16.msra.mxu1 %v13536_v51  ;;  %v4592_v51 = vshll.u32 %v4551_v25, 16 }
 0x1e7   : > { %12678 = vmatprep.subr.bf16.mxu1 %v13871_v1 }
 0x1e8   : > { %12689 = vmatpush3.bf16.msra.mxu0 %v13539_v50  ;;  %v4623_v50 = vsel %vm14033_vm7, %v4618_v45, %v4622_v11  ;;  %v4807_v45 = vrot.slane %v4805_v38, 6  ;;  %v4810_v11 = vrot.slane %v4808_v48, 7 }
 0x1e9   : > { %12690 = vmatprep.subr.bf16.mxu0 %v13871_v1 }
 0x1ea   : > { %12679 = vmatpush3.bf16.msra.mxu1 %v13538_v30  ;;  %v15095_v60 = vpop.f32.mrf.mxu1  ;;  %v4590_v30 = vrot.slane %v4589_v47, 2  ;;  %v13562_v47 = vld [vmem:[%s16510_s3 + $0x3e0] sm:$0xff]  }
 0x1eb   : > { %12680 = vmatprep.subr.bf16.mxu1 %v13871_v1  ;;  %v2254_v7 = vadd.f32 %v10575_v36, %v15095_v60 }
 0x1ec   : > { %12691 = vmatpush3.bf16.msra.mxu0 %v13543_v54  ;;  %v12444_v4 = vpop.f32.mrf.mxu1  ;;  %v4594_v54 = vrot.slane %v4592_v51, 7 }
 0x1ed   : > { %12692 = vmatprep.subr.bf16.mxu0 %v13871_v1 }
 0x1ee   : > { %12681 = vmatpush3.bf16.msra.mxu1 %v13540_v53  ;;  %v15107_v13 = vpop.f32.mrf.mxu1  ;;  %v4576_v53 = vrot.slane %v4575_v28, 2  ;;  %v4595_v4 = vsel %vm14033_vm7, %v4590_v30, %v4594_v54  ;;  %v4828_v54 = vshll.u32 %v4781_v32, 16 }
 0x1ef   : > { %12706 = vmatprep.subr.bf16.mxu1 %v13871_v1  ;;  %v2255_v61 = vadd.f32 %v10575_v36, %v15107_v13  ;;  %v4765_v36 = vcombine.high %v10940_v44, %v10940_v44 }
 0x1f0   : > { %12693 = vmatpush3.bf16.msra.mxu0 %v13545_v63  ;;  %v12445_v20 = vpop.f32.mrf.mxu1  ;;  %v13558_v63 = vld [vmem:[%s16510_s3 + $0x388] sm:$0xff]   ;;  %v4581_v14 = vsel %vm14033_vm7, %v4576_v53, %v4580_v2  ;;  %v4811_v53 = vor.u32 %v4810_v11, %v4807_v45 }
 0x1f1   : > { %12683 = vmatmul.mubr.bf16.vlgmr.msra.gmra.mxu1 %v4300_v57  ;;  %12694 = vmatprep.subr.bf16.mxu0 %v13871_v1  ;;  %v13557_v57 = vld [vmem:[%s16510_s3 + $0x3f8] sm:$0xff]   ;;  %v4641_v20 = vcombine.low %v4581_v14, %v4595_v4 }
 0x1f2   : > { %12707 = vmatpush3.bf16.msra.mxu1 %v13544_v56  ;;  %12722 = vmatprep.mubr.msk.bf16.mxu1 %vm13872_vm0, %v13871_v1  ;;  %v4609_v56 = vsel %vm14033_vm7, %v4604_v52, %v4608_v41  ;;  %v4773_v52 = vcombine.high %v10941_v22, %v10941_v22 }
 0x1f3   : > { %12708 = vmatprep.subr.bf16.mxu1 %v13871_v1  ;;  %v4642_v9 = vcombine.low %v4609_v56, %v4623_v50  ;;  %v13563_v50 = vld [vmem:[%s16510_s3 + $0x3d8] sm:$0xff]  }
 0x1f4   : > { %12695 = vmatpush3.bf16.msra.mxu0 %v13547_v16 }
 0x1f5   : > { %12696 = vmatprep.subr.bf16.mxu0 %v13871_v1  ;;  %v4656_v10 = vrot.slane %v4642_v9, %v14014_v33  ;;  %v4812_v9 = vrot.slane %v4811_v53, 2 }
 0x1f6   : > { %12709 = vmatpush3.bf16.msra.mxu1 %v13546_v5  ;;  %v10943_v5 = vld.sshfl [vmem:[#allocation2 + $0x4c] sm:$0x13 pattern:$0x76325410] }
 0x1f7   : > { %12710 = vmatprep.subr.bf16.mxu1 %v13871_v1  ;;  %v4833_v60 = vshrl.u32 %v10943_v5, 16  ;;  %v4836_v29 = vshll.u32 %v10943_v5, 16  ;;  %v4789_v27 = vcombine.high %v10943_v5, %v10943_v5  ;;  %v13564_v5 = vld [vmem:[%s16510_s3 + $0x3d0] sm:$0xff]  }
 0x1f8   : > { %12697 = vmatpush3.bf16.msra.mxu0 %v13549_v6 }
 0x1f9   : > { %12698 = vmatprep.subr.bf16.mxu0 %v13871_v1  ;;  %v4835_v25 = vrot.slane %v4833_v60, 6  ;;  %v4838_v31 = vrot.slane %v4836_v29, 7  ;;  %v4842_v51 = vshll.u32 %v4789_v27, 16 }
 0x1fa   : > { %12711 = vmatpush3.bf16.msra.mxu1 %v13548_v18 }
 0x1fb   : > { %12712 = vmatprep.subr.bf16.mxu1 %v13871_v1  ;;  %v4839_v28 = vor.u32 %v4838_v31, %v4835_v25  ;;  %v4844_v4 = vrot.slane %v4842_v51, 7  ;;  %v425_v51 = vld [vmem:[#allocation3 + $0x4] sm:$0x1] }
 0x1fc   : > { %12699 = vmatpush3.bf16.msra.mxu0 %v13551_v39  ;;  %v4821_v39 = vrot.slane %v4819_v59, 6 }
 0x1fd   : > { %12700 = vmatprep.subr.bf16.mxu0 %v13871_v1 }
 0x1fe   : > { %12713 = vmatpush3.bf16.msra.mxu1 %v13550_v26  ;;  %v4649_v26 = vrot.slane %v4641_v20, %v14014_v33  ;;  %v13565_v20 = vld [vmem:[%s16510_s3 + $0x3c8] sm:$0xff]  }
 0x1ff   : > { %12714 = vmatprep.subr.bf16.mxu1 %v13871_v1 }
 0x200   : > { %12701 = vmatpush3.bf16.msra.mxu0 %v13553_v58  ;;  %v4657_v34 = vcombine.low %v4649_v26, %v4656_v10  ;;  %v4793_v58 = vrot.slane %v4791_v37, 6 }
 0x201   : > { %12726 = vmatprep.subr.bf16.mxu0 %v13871_v1 }
 0x202   : > { %12715 = vmatpush3.bf16.msra.mxu1 %v13552_v42  ;;  %v4824_v42 = vrot.slane %v4822_v40, 7 }
 0x203   : > { %12716 = vmatprep.subr.bf16.mxu1 %v13871_v1  ;;  %12703 = vmatmul.mubr.bf16.vlgmr.msra.gmra.mxu0 %v4435_v62  ;;  %v2381_v12 = vpop.f32.mrf.mxu0 }
 0x204   : > { %v2388_v16 = vadd.f32 %v2381_v12, %v2254_v7  ;;  %12727 = vmatpush3.bf16.msra.mxu0 %v13557_v57  ;;  %12742 = vmatprep.mubr.msk.bf16.mxu0 %vm13872_vm0, %v13871_v1  ;;  %v4825_v0 = vor.u32 %v4824_v42, %v4821_v39  ;;  %v4840_v57 = vrot.slane %v4839_v28, 2  ;;  %v4800_v7 = vshll.u32 %v4765_v36, 16 }
 0x205   : > { %v12464_v18 = vpop.f32.mrf.mxu0  ;;  %12728 = vmatprep.subr.bf16.mxu0 %v13871_v1  ;;  %v4830_v12 = vrot.slane %v4828_v54, 7 }
 0x206   : > { %12717 = vmatpush3.bf16.msra.mxu1 %v13554_v19  ;;  %v4796_v19 = vrot.slane %v4794_v8, 7  ;;  %v4826_v2 = vrot.slane %v4825_v0, 2  ;;  %v4802_v60 = vrot.slane %v4800_v7, 7 }
 0x207   : > { %12718 = vmatprep.subr.bf16.mxu1 %v13871_v1  ;;  %v2384_v3 = vpop.f32.mrf.mxu0 }
 0x208   : > { %v2389_v6 = vadd.f32 %v2384_v3, %v2255_v61  ;;  %12729 = vmatpush3.bf16.msra.mxu0 %v13559_v17  ;;  %v4797_v62 = vor.u32 %v4796_v19, %v4793_v58  ;;  %v4845_v17 = vsel %vm14033_vm7, %v4840_v57, %v4844_v4  ;;  %v13566_v61 = vld [vmem:[%s16510_s3 + $0x3c0] sm:$0xff]   ;;  %v426_v58 = vsel %vm14292_vm10, 0, %v425_v51 }
 0x209   : > { %v12465_v13 = vpop.f32.mrf.mxu0  ;;  %12730 = vmatprep.subr.bf16.mxu0 %v13871_v1  ;;  %427 = vst [vmem:[#allocation3 + $0x4] sm:$0x1] %v426_v58 }
 0x20a   : > { %12719 = vmatpush3.bf16.msra.mxu1 %v13558_v63  ;;  %v2603_v43 = vpop.f32.mrf.mxu1  ;;  %v4814_v63 = vshll.u32 %v4773_v52, 16  ;;  %v4798_v14 = vrot.slane %v4797_v62, 2  ;;  %v428_v52 = vld [vmem:[#allocation3 + $0x8] sm:$0x1] }
 0x20b   : > { %12720 = vmatprep.subr.bf16.mxu1 %v13871_v1  ;;  %v2610_v46 = vadd.f32 %v2603_v43, %v2388_v16  ;;  %v4831_v16 = vsel %vm14033_vm7, %v4826_v2, %v4830_v12  ;;  %v429_v19 = vsel %vm14292_vm10, 0, %v428_v52  ;;  %v13586_v52 = vld [vmem:[%s16512_s5 + $0x40] sm:$0xff]  }
 0x20c   : > { %12731 = vmatpush3.bf16.msra.mxu0 %v13561_v23  ;;  %v12484_v55 = vpop.f32.mrf.mxu1  ;;  %v4816_v15 = vrot.slane %v4814_v63, 7  ;;  %v4803_v22 = vsel %vm14033_vm7, %v4798_v14, %v4802_v60  ;;  %430 = vst [vmem:[#allocation3 + $0x8] sm:$0x1] %v429_v19  ;;  %v13567_v14 = vld [vmem:[%s16512_s5 + $0x38] sm:$0xff]  }
 0x20d   : > { %12732 = vmatprep.subr.bf16.mxu0 %v13871_v1  ;;  %v451_v60 = vld [vmem:[#allocation3 + $0xc] sm:$0x4] }
 0x20e   : > { %12721 = vmatpush3.bf16.msra.mxu1 %v13560_v21  ;;  %v2606_v30 = vpop.f32.mrf.mxu1  ;;  %v4817_v18 = vsel %vm14033_vm7, %v4812_v9, %v4816_v15  ;;  %v4864_v21 = vcombine.low %v4831_v16, %v4845_v17  ;;  %v431_v15 = vld [vmem:[#allocation3 + $0xc] sm:$0x1]  ;;  %v434_v16 = vld [vmem:[#allocation3 + $0x10] sm:$0x1] }
 0x20f   : > { %12746 = vmatprep.subr.bf16.mxu1 %v13871_v1  ;;  %v2611_v41 = vadd.f32 %v2606_v30, %v2389_v6  ;;  %v4863_v29 = vcombine.low %v4803_v22, %v4817_v18  ;;  %v445_v30 = vld [vmem:[#allocation3 + $0x4] sm:$0x4]  ;;  %v432_v17 = vsel %vm14292_vm10, 0, %v431_v15  ;;  %v454_v18 = vld [vmem:[#allocation3 + $0x10] sm:$0x4] }
 0x210   : > { %12733 = vmatpush3.bf16.msra.mxu0 %v13562_v47  ;;  %v12485_v56 = vpop.f32.mrf.mxu1  ;;  %v4878_v10 = vrot.slane %v4864_v21, %v14014_v33  ;;  %433 = vst [vmem:[#allocation3 + $0xc] sm:$0x1] %v432_v17  ;;  %v452_v21 = vsel %vm15219_vm4, 0, %v451_v60  ;;  %v455_v22 = vsel %vm15219_vm4, 0, %v454_v18 }
 0x211   : > { %12723 = vmatmul.mubr.bf16.vlgmr.msra.gmra.mxu1 %v4657_v34  ;;  %12734 = vmatprep.subr.bf16.mxu0 %v13871_v1  ;;  %v4871_v44 = vrot.slane %v4863_v29, %v14014_v33  ;;  %453 = vst [vmem:[#allocation3 + $0xc] sm:$0x4] %v452_v21  ;;  %456 = vst [vmem:[#allocation3 + $0x10] sm:$0x4] %v455_v22  ;;  %v13568_v29 = vld [vmem:[%s16512_s5 + $0x30] sm:$0xff]  }
 0x212   : > { %12762 = vmatprep.mubr.msk.bf16.mxu1 %vm13872_vm0, %v13871_v1  ;;  %12747 = vmatpush3.bf16.msra.mxu1 %v13567_v14 }
 0x213   : > { %v4879_v59 = vcombine.low %v4871_v44, %v4878_v10  ;;  %12748 = vmatprep.subr.bf16.mxu1 %v13871_v1  ;;  %v13874_v10 = vmov 0   ;;  %v13569_v44 = vld [vmem:[%s16512_s5 + $0x28] sm:$0xff]  }
 0x214   : > { %12735 = vmatpush3.bf16.msra.mxu0 %v13563_v50  ;;  %v446_v50 = vsel %vm15219_vm4, 0, %v445_v30  ;;  %419 = vst [vmem:[#allocation3] sm:$0x7] %v13874_v10  ;;  %421 = vst [vmem:[#allocation3 + $0x14] sm:$0x7] %v13874_v10 }
 0x215   : > { %12736 = vmatprep.subr.bf16.mxu0 %v13871_v1  ;;  %447 = vst [vmem:[#allocation3 + $0x4] sm:$0x4] %v446_v50 }
 0x216   : > { %12749 = vmatpush3.bf16.msra.mxu1 %v13568_v29 }
 0x217   : > { %12750 = vmatprep.subr.bf16.mxu1 %v13871_v1 }
 0x218   : > { %12737 = vmatpush3.bf16.msra.mxu0 %v13564_v5 }
 0x219   : > { %12738 = vmatprep.subr.bf16.mxu0 %v13871_v1 }
 0x21a   : > { %12751 = vmatpush3.bf16.msra.mxu1 %v13569_v44 }
 0x21b   : > { %12752 = vmatprep.subr.bf16.mxu1 %v13871_v1  ;;  %v437_v58 = vld [vmem:[#allocation3 + $0x14] sm:$0x1]  ;;  %v457_v19 = vld [vmem:[#allocation3 + $0x14] sm:$0x4] }
 0x21c   : > { %12739 = vmatpush3.bf16.msra.mxu0 %v13565_v20  ;;  %v435_v20 = vsel %vm14292_vm10, 0, %v434_v16  ;;  %v458_v50 = vsel %vm15219_vm4, 0, %v457_v19 }
 0x21d   : > { %12740 = vmatprep.subr.bf16.mxu0 %v13871_v1  ;;  %436 = vst [vmem:[#allocation3 + $0x10] sm:$0x1] %v435_v20  ;;  %459 = vst [vmem:[#allocation3 + $0x14] sm:$0x4] %v458_v50 }
 0x220   : > { %12741 = vmatpush3.bf16.msra.mxu0 %v13566_v61  ;;  %v13570_v61 = vld [vmem:[%s16512_s5 + $0x78] sm:$0xff]  }
 0x221   : > { %12766 = vmatprep.subr.bf16.mxu0 %v13871_v1 }
 0x223   : > { %v2825_v40 = vpop.f32.mrf.mxu0  ;;  %12743 = vmatmul.mubr.bf16.vlgmr.msra.gmra.mxu0 %v4879_v59  ;;  %v13572_v59 = vld [vmem:[%s16512_s5 + $0x70] sm:$0xff]  }
 0x224   : > { %v2832_v3 = vadd.f32 %v2825_v40, %v2610_v46  ;;  %12782 = vmatprep.mubr.msk.bf16.mxu0 %vm13872_vm0, %v13871_v1  ;;  %12767 = vmatpush3.bf16.msra.mxu0 %v13570_v61  ;;  %v13571_v40 = vld [vmem:[%s16512_s5 + $0x20] sm:$0xff]  }
 0x225   : > { %v12504_v6 = vpop.f32.mrf.mxu0  ;;  %12768 = vmatprep.subr.bf16.mxu0 %v13871_v1  ;;  %12753 = vmatpush3.bf16.msra.mxu1 %v13571_v40  ;;  %v5038_v50 = vld [vmem:[#allocation3 + $0x10] sm:$0x7] }
 0x226   : > { %v422_v6 = vld [vmem:[#allocation3] sm:$0x1]  ;;  %12754 = vmatprep.subr.bf16.mxu1 %v13871_v1 }
 0x227   : > { %v2828_v26 = vpop.f32.mrf.mxu0 }
 0x228   : > { %v2833_v23 = vadd.f32 %v2828_v26, %v2611_v41  ;;  %v448_v41 = vld [vmem:[#allocation3 + $0x8] sm:$0x4]  ;;  %12769 = vmatpush3.bf16.msra.mxu0 %v13572_v59  ;;  %v423_v26 = vsel %vm14292_vm10, 0, %v422_v6 }
 0x229   : > { %v12505_v38 = vpop.f32.mrf.mxu0  ;;  %v449_v36 = vsel %vm15219_vm4, 0, %v448_v41  ;;  %12770 = vmatprep.subr.bf16.mxu0 %v13871_v1  ;;  %424 = vst [vmem:[#allocation3] sm:$0x1] %v423_v26  ;;  %v438_v41 = vsel %vm14292_vm10, 0, %v437_v58  ;;  %vm15375_vm10 = vmor %vm5445_vm8, %vm5446_vm9 }
 0x22a   : > { %450 = vst [vmem:[#allocation3 + $0x8] sm:$0x4] %v449_v36  ;;  %v13576_v38 = vld [vmem:[%s16512_s5 + $0x60] sm:$0xff]   ;;  %439 = vst [vmem:[#allocation3 + $0x14] sm:$0x1] %v438_v41 }
 0x22c   : > { %v2959_v48 = vpop.f32.mrf.mxu1 }
 0x22d   : > { %v2966_v13 = vadd.f32 %v2959_v48, %v2832_v3  ;;  %v13574_v3 = vld [vmem:[%s16512_s5 + $0x68] sm:$0xff]  }
 0x22e   : > { %v12524_v27 = vpop.f32.mrf.mxu1  ;;  %12771 = vmatpush3.bf16.msra.mxu0 %v13574_v3 }
 0x22f   : > { %12772 = vmatprep.subr.bf16.mxu0 %v13871_v1 }
 0x230   : > { %v2962_v37 = vpop.f32.mrf.mxu1 }
 0x231   : > { %v2967_v25 = vadd.f32 %v2962_v37, %v2833_v23  ;;  %v13573_v23 = vld [vmem:[%s16512_s5 + $0x18] sm:$0xff]   ;;  %v13575_v37 = vld [vmem:[%s16512_s5 + $0x10] sm:$0xff]  }
 0x232   : > { %v12525_v31 = vpop.f32.mrf.mxu1  ;;  %12755 = vmatpush3.bf16.msra.mxu1 %v13573_v23  ;;  %12773 = vmatpush3.bf16.msra.mxu0 %v13576_v38 }
 0x233   : > { %12756 = vmatprep.subr.bf16.mxu1 %v13871_v1  ;;  %12774 = vmatprep.subr.bf16.mxu0 %v13871_v1 }
 0x236   : > { %12757 = vmatpush3.bf16.msra.mxu1 %v13575_v37 }
 0x237   : > { %12758 = vmatprep.subr.bf16.mxu1 %v13871_v1 }
 0x243   : > { %v3093_v34 = vpop.f32.mrf.mxu0 }
 0x244   : > { %v3100_v8 = vadd.f32 %v3093_v34, %v2966_v13 }
 0x245   : > { %v12544_v39 = vpop.f32.mrf.mxu0 }
 0x246   : > { %v13577_v39 = vld [vmem:[%s16512_s5 + $0x8] sm:$0xff]  }
 0x247   : > { %v3096_v42 = vpop.f32.mrf.mxu0  ;;  %12759 = vmatpush3.bf16.msra.mxu1 %v13577_v39 }
 0x248   : > { %v3101_v43 = vadd.f32 %v3096_v42, %v2967_v25  ;;  %v13578_v25 = vld [vmem:[%s16512_s5 + $0x58] sm:$0xff]   ;;  %v13580_v42 = vld [vmem:[%s16512_s5 + $0x50] sm:$0xff]   ;;  %12760 = vmatprep.subr.bf16.mxu1 %v13871_v1 }
 0x249   : > { %v12545_v47 = vpop.f32.mrf.mxu0  ;;  %12775 = vmatpush3.bf16.msra.mxu0 %v13578_v25 }
 0x24a   : > { %12776 = vmatprep.subr.bf16.mxu0 %v13871_v1 }
 0x24d   : > { %12777 = vmatpush3.bf16.msra.mxu0 %v13580_v42 }
 0x24e   : > { %12778 = vmatprep.subr.bf16.mxu0 %v13871_v1 }
 0x251   : > { %v3315_v46 = vpop.f32.mrf.mxu1 }
 0x252   : > { %v3322_v32 = vadd.f32 %v3315_v46, %v3100_v8 }
 0x253   : > { %v12564_v45 = vpop.f32.mrf.mxu1 }
 0x254   : > { %v13579_v45 = vld [vmem:[%s16512_s5] sm:$0xff]  }
 0x255   : > { %v3318_v11 = vpop.f32.mrf.mxu1  ;;  %12761 = vmatpush3.bf16.msra.mxu1 %v13579_v45 }
 0x256   : > { %v3323_v55 = vadd.f32 %v3318_v11, %v3101_v43  ;;  %v442_v43 = vld [vmem:[#allocation3] sm:$0x4]  ;;  %v13584_v11 = vld [vmem:[%s16512_s5 + $0x48] sm:$0xff]   ;;  %12786 = vmatprep.subr.bf16.mxu1 %v13871_v1 }
 0x257   : > { %v12565_v28 = vpop.f32.mrf.mxu1  ;;  %v443_v46 = vsel %vm15219_vm4, 0, %v442_v43  ;;  %12779 = vmatpush3.bf16.msra.mxu0 %v13584_v11 }
 0x258   : > { %444 = vst [vmem:[#allocation3] sm:$0x4] %v443_v46  ;;  %12780 = vmatprep.subr.bf16.mxu0 %v13871_v1 }
 0x25b   : > { %12781 = vmatpush3.bf16.msra.mxu0 %v13586_v52 }
 0x25c   : > { %12806 = vmatprep.subr.bf16.mxu0 %v13871_v1 }
 0x263   : > { %v3537_v53 = vpop.f32.mrf.mxu0 }
 0x264   : > { %v3544_v54 = vadd.f32 %v3537_v53, %v3322_v32 }
 0x265   : > { %v12584_v56 = vpop.f32.mrf.mxu0 }
 0x267   : > { %v3540_v57 = vpop.f32.mrf.mxu0 }
 0x268   : > { %v3545_v62 = vadd.f32 %v3540_v57, %v3323_v55 }
 0x269   : > { %v12585_v63 = vpop.f32.mrf.mxu0 }
 0x271   : > { %v3671_v2 = vpop.f32.mrf.mxu1 }
 0x272   : > { %v3678_v4 = vadd.f32 %v3671_v2, %v3544_v54 }
 0x273   : > { %v12604_v5 = vpop.f32.mrf.mxu1 }
 0x275   : > { %v3674_v7 = vpop.f32.mrf.mxu1 }
 0x276   : > { %v3679_v9 = vadd.f32 %v3674_v7, %v3545_v62 }
 0x277   : > { %v12605_v12 = vpop.f32.mrf.mxu1 }
 0x283   : > { %v3805_v48 = vpop.f32.mrf.mxu0 }
 0x284   : > { %v3812_v13 = vadd.f32 %v3805_v48, %v3678_v4 }
 0x285   : > { %v12624_v27 = vpop.f32.mrf.mxu0 }
 0x287   : > { %v3808_v31 = vpop.f32.mrf.mxu0 }
 0x288   : > { %v3813_v34 = vadd.f32 %v3808_v31, %v3679_v9  ;;  %v5029_v31 = vld [vmem:[#allocation3 + $0x4] sm:$0x7] }
 0x289   : > { %v12625_v8 = vpop.f32.mrf.mxu0 }
 0x291   : > { %v4027_v47 = vpop.f32.mrf.mxu1 }
 0x292   : > { %v4034_v32 = vadd.f32 %v4027_v47, %v3812_v13  ;;  %v5032_v47 = vld [vmem:[#allocation3 + $0x8] sm:$0x7] }
 0x293   : > { %v12644_v55 = vpop.f32.mrf.mxu1 }
 0x295   : > { %v4030_v28 = vpop.f32.mrf.mxu1 }
 0x296   : > { %v4035_v51 = vadd.f32 %v4030_v28, %v3813_v34 }
 0x297   : > { %v12645_v30 = vpop.f32.mrf.mxu1 }
 0x298   : > { %v5035_v30 = vld [vmem:[#allocation3 + $0xc] sm:$0x7] }
 0x2a3   : > { %v4249_v36 = vpop.f32.mrf.mxu0 }
 0x2a4   : > { %v4256_v15 = vadd.f32 %v4249_v36, %v4034_v32 }
 0x2a5   : > { %v12664_v53 = vpop.f32.mrf.mxu0 }
 0x2a7   : > { %v4252_v54 = vpop.f32.mrf.mxu0 }
 0x2a8   : > { %v4257_v17 = vadd.f32 %v4252_v54, %v4035_v51  ;;  %v10981_v51 = vld.sshfl [vmem:[#allocation3] sm:$0x13 pattern:$0x76325410] }
 0x2a9   : > { %v12665_v56 = vpop.f32.mrf.mxu0  ;;  %v5222_v53 = vshrl.u32 %v10981_v51, 16  ;;  %v5225_v54 = vshll.u32 %v10981_v51, 16 }
 0x2b1   : > { %v4384_v57 = vpop.f32.mrf.mxu1 }
 0x2b2   : > { %v4391_v16 = vadd.f32 %v4384_v57, %v4256_v15 }
 0x2b3   : > { %v12684_v62 = vpop.f32.mrf.mxu1 }
 0x2b4   : > { %v5196_v62 = vcombine.high %v10981_v51, %v10981_v51 }
 0x2b5   : > { %v4387_v63 = vpop.f32.mrf.mxu1 }
 0x2b6   : > { %v4392_v60 = vadd.f32 %v4387_v63, %v4257_v17  ;;  %v5224_v63 = vrot.slane %v5222_v53, 6  ;;  %v5231_v15 = vshll.u32 %v5196_v62, 16  ;;  %v13591_v62 = vld [vmem:[%s16512_s5 + $0x98] sm:$0xff]  }
 0x2b7   : > { %v12685_v2 = vpop.f32.mrf.mxu1 }
 0x2b8   : > { %v5227_v2 = vrot.slane %v5225_v54, 7 }
 0x2c3   : > { %v4519_v4 = vpop.f32.mrf.mxu0 }
 0x2c4   : > { %v4526_v20 = vadd.f32 %v4519_v4, %v4391_v16 }
 0x2c5   : > { %v12704_v5 = vpop.f32.mrf.mxu0 }
 0x2c7   : > { %v4522_v35 = vpop.f32.mrf.mxu0 }
 0x2c8   : > { %v4527_v22 = vadd.f32 %v4522_v35, %v4392_v60 }
 0x2c9   : > { %v12705_v7 = vpop.f32.mrf.mxu0 }
 0x2d1   : > { %v4741_v9 = vpop.f32.mrf.mxu1 }
 0x2d2   : > { %v4748_v18 = vadd.f32 %v4741_v9, %v4526_v20 }
 0x2d3   : > { %v12724_v0 = vpop.f32.mrf.mxu1 }
 0x2d5   : > { %v4744_v12 = vpop.f32.mrf.mxu1 }
 0x2d6   : > { %v4749_v10 = vadd.f32 %v4744_v12, %v4527_v22 }
 0x2d7   : > { %v12725_v14 = vpop.f32.mrf.mxu1 }
 0x2d8   : > { %v5228_v14 = vor.u32 %v5227_v2, %v5224_v63 }
 0x2e3   : > { %v4963_v21 = vpop.f32.mrf.mxu0 }
 0x2e4   : > { %v4970_v29 = vadd.f32 %v4963_v21, %v4748_v18 }
 0x2e5   : > { %v12744_v61 = vpop.f32.mrf.mxu0 }
 0x2e6   : > { %v4972_v44 = vmax.f32 %v4970_v29, 0.0  ;;  %v13583_v61 = vld [vmem:[%s16512_s5 + $0xb8] sm:$0xff]  }
 0x2e7   : > { %v4966_v59 = vpop.f32.mrf.mxu0 }
 0x2e8   : > { %v4976_v40 = vcombine.high %v4972_v44, %v4972_v44  ;;  %v11748_v3 = vpack.c.bf16 %v4972_v44, %v4972_v44  ;;  %v4971_v6 = vadd.f32 %v4966_v59, %v4749_v10 }
 0x2e9   : > { %v12745_v26 = vpop.f32.mrf.mxu0 }
 0x2ea   : > { %v11749_v23 = vpack.c.bf16 %v4976_v40, %v4976_v40  ;;  %v4997_v38 = vshrl.u32 %v11748_v3, 16  ;;  %v4973_v48 = vmax.f32 %v4971_v6, 0.0  ;;  %v5000_v27 = vshll.u32 %v11748_v3, 16 }
 0x2eb   : > { %v5229_v40 = vrot.slane %v5228_v14, 2  ;;  %v5233_v3 = vrot.slane %v5231_v15, 7 }
 0x2ec   : > { %v4999_v13 = vrot.slane %v4997_v38, 7  ;;  %v5004_v37 = vshrl.u32 %v11749_v23, 16  ;;  %v4977_v25 = vcombine.high %v4973_v48, %v4973_v48  ;;  %v11750_v34 = vpack.c.bf16 %v4973_v48, %v4973_v48 }
 0x2ed   : > { %v5007_v42 = vshll.u32 %v11749_v23, 16 }
 0x2ee   : > { %v5002_v8 = vor.u32 %v5000_v27, %v4999_v13  ;;  %v5006_v39 = vrot.slane %v5004_v37, 7  ;;  %v11751_v43 = vpack.c.bf16 %v4977_v25, %v4977_v25  ;;  %v5011_v46 = vshrl.u32 %v11750_v34, 16 }
 0x2ef   : > { %v5014_v28 = vshll.u32 %v11750_v34, 16  ;;  %v13585_v34 = vld [vmem:[%s16512_s5 + $0xb0] sm:$0xff]  }
 0x2f0   : > { %v5009_v32 = vor.u32 %v5007_v42, %v5006_v39  ;;  %v5030_v45 = vsel %vm14462_vm2, %v5002_v8, %v5029_v31  ;;  %v5018_v11 = vshrl.u32 %v11751_v43, 16  ;;  %v5013_v55 = vrot.slane %v5011_v46, 7 }
 0x2f1   : > { %5031 = vst [vmem:[#allocation3 + $0x4] sm:$0x7] %v5030_v45  ;;  %v5021_v19 = vshll.u32 %v11751_v43, 16  ;;  %v5234_v8 = vsel %vm14033_vm7, %v5229_v40, %v5233_v3  ;;  %v13597_v40 = vld [vmem:[%s16512_s5 + $0x80] sm:$0xff]  }
 0x2f2   : > { %v5033_v52 = vsel %vm14462_vm2, %v5009_v32, %v5032_v47  ;;  %v5020_v58 = vrot.slane %v5018_v11, 7  ;;  %v5016_v41 = vor.u32 %v5014_v28, %v5013_v55  ;;  %v13587_v11 = vld [vmem:[%s16512_s5 + $0xa8] sm:$0xff]  }
 0x2f3   : > { %5034 = vst [vmem:[#allocation3 + $0x8] sm:$0x7] %v5033_v52 }
 0x2f4   : > { %v5023_v36 = vor.u32 %v5021_v19, %v5020_v58  ;;  %v5036_v56 = vsel %vm14462_vm2, %v5016_v41, %v5035_v30  ;;  %v11009_v19 = vld.sshfl [vmem:[#allocation3] sm:$0x12 pattern:$0x76325410]  ;;  %v13588_v41 = vld [vmem:[%s16512_s5 + $0xf8] sm:$0xff]  }
 0x2f5   : > { %5037 = vst [vmem:[#allocation3 + $0xc] sm:$0x7] %v5036_v56  ;;  %v5418_v63 = vcombine.high %v11009_v19, %v11009_v19 }
 0x2f6   : > { %v5039_v57 = vsel %vm14462_vm2, %v5023_v36, %v5038_v50  ;;  %v13589_v50 = vld [vmem:[%s16512_s5 + $0xa0] sm:$0xff]  }
 0x2f7   : > { %5040 = vst [vmem:[#allocation3 + $0x10] sm:$0x7] %v5039_v57  ;;  %v13590_v57 = vld [vmem:[%s16512_s5 + $0xf0] sm:$0xff]  }
 0x2f8   : > { %v13845_v4 = vld.sshfl [vmem:[#allocation3] sm:$0xf pattern:$0x76325410] }
 0x2f9   : > { %v10982_v5 = vld.sshfl [vmem:[#allocation3 + $0x4] sm:$0x13 pattern:$0x76325410] }
 0x2fa   : > { %v10983_v35 = vld.sshfl [vmem:[#allocation3 + $0x8] sm:$0x13 pattern:$0x76325410]  ;;  %v5204_v7 = vcombine.high %v10982_v5, %v10982_v5  ;;  %v5236_v9 = vshrl.u32 %v10982_v5, 16  ;;  %v5239_v0 = vshll.u32 %v10982_v5, 16 }
 0x2fb   : > { %v5250_v12 = vshrl.u32 %v10983_v35, 16  ;;  %v5253_v17 = vshll.u32 %v10983_v35, 16  ;;  %v5212_v22 = vcombine.high %v10983_v35, %v10983_v35  ;;  %v11010_v36 = vld.sshfl [vmem:[#allocation3 + $0x4] sm:$0x12 pattern:$0x76325410] }
 0x2fc   : > { %v5245_v16 = vshll.u32 %v5204_v7, 16  ;;  %v13846_v20 = vld.sshfl [vmem:[#allocation3 + $0x8] sm:$0xf pattern:$0x76325410]  ;;  %v5238_v60 = vrot.slane %v5236_v9, 6  ;;  %v5426_v2 = vcombine.high %v11010_v36, %v11010_v36 }
 0x2fd   : > { %v5241_v18 = vrot.slane %v5239_v0, 7  ;;  %v10984_v21 = vld.sshfl [vmem:[#allocation3 + $0xc] sm:$0x13 pattern:$0x76325410]  ;;  %v5252_v29 = vrot.slane %v5250_v12, 6  ;;  %v5082_v23 = vcombine.low %v13845_v4, %v13846_v20 }
 0x2fe   : > { %v5220_v10 = vcombine.high %v10984_v21, %v10984_v21  ;;  %v5255_v59 = vrot.slane %v5253_v17, 7  ;;  %v5264_v6 = vshrl.u32 %v10984_v21, 16  ;;  %v5267_v26 = vshll.u32 %v10984_v21, 16  ;;  %v13592_v7 = vld [vmem:[%s16512_s5 + $0xe8] sm:$0xff]   ;;  %v13593_v9 = vld [vmem:[%s16512_s5 + $0x90] sm:$0xff]  }
 0x2ff   : > { %v5242_v44 = vor.u32 %v5241_v18, %v5238_v60  ;;  %v5247_v48 = vrot.slane %v5245_v16, 7  ;;  %v5259_v27 = vshll.u32 %v5212_v22, 16  ;;  %12763 = vmatmul.mubr.bf16.vlgmr.msra.gmra.mxu1 %v5082_v23  ;;  %v11012_v30 = vld.sshfl [vmem:[#allocation3 + $0xc] sm:$0x12 pattern:$0x76325410] }
 0x300   : > { %v5256_v13 = vor.u32 %v5255_v59, %v5252_v29  ;;  %v5266_v37 = vrot.slane %v5264_v6, 6  ;;  %v5269_v25 = vrot.slane %v5267_v26, 7  ;;  %v5273_v31 = vshll.u32 %v5220_v10, 16  ;;  %12787 = vmatpush3.bf16.msra.mxu1 %v13583_v61  ;;  %12802 = vmatprep.mubr.msk.bf16.mxu1 %vm13872_vm0, %v13871_v1  ;;  %v13594_v18 = vld [vmem:[%s16512_s5 + $0xe0] sm:$0xff]   ;;  %v13595_v21 = vld [vmem:[%s16512_s5 + $0x88] sm:$0xff]   ;;  %v13596_v59 = vld [vmem:[%s16512_s5 + $0xd8] sm:$0xff]  }
 0x301   : > { %v5243_v38 = vrot.slane %v5242_v44, 2  ;;  %12788 = vmatprep.subr.bf16.mxu1 %v13871_v1  ;;  %v5261_v47 = vrot.slane %v5259_v27, 7  ;;  %v11011_v54 = vld.sshfl [vmem:[#allocation3 + $0x8] sm:$0x12 pattern:$0x76325410]  ;;  %v5442_v56 = vcombine.high %v11012_v30, %v11012_v30 }
 0x302   : > { %v5257_v42 = vrot.slane %v5256_v13, 2  ;;  %v5270_v43 = vor.u32 %v5269_v25, %v5266_v37  ;;  %v5275_v32 = vrot.slane %v5273_v31, 7  ;;  %v5434_v4 = vcombine.high %v11011_v54, %v11011_v54  ;;  %v13598_v26 = vld [vmem:[%s16512_s5 + $0xd0] sm:$0xff]   ;;  %v13599_v23 = vld [vmem:[%s16512_s5 + $0x138] sm:$0xff]   ;;  %v13600_v13 = vld [vmem:[%s16512_s5 + $0xc8] sm:$0xff]  }
 0x303   : > { %v15325_v39 = vsel %vm14033_vm7, %v5243_v38, %v5247_v48  ;;  %v5462_v5 = vrot.slane %v5442_v56, 7  ;;  %v11013_v35 = vrot.slane %v11009_v19, 9  ;;  %v5450_v0 = vrot.slane %v5418_v63, 7  ;;  %v13601_v27 = vld [vmem:[%s16512_s5 + $0x130] sm:$0xff]   ;;  %v13609_v19 = vld [vmem:[%s16512_s5 + $0x118] sm:$0xff]  }
 0x304   : > { %v5271_v46 = vrot.slane %v5270_v43, 2  ;;  %v5294_v45 = vcombine.low %v5234_v8, %v15325_v39  ;;  %12789 = vmatpush3.bf16.msra.mxu1 %v13585_v34  ;;  %v15336_v55 = vsel %vm14033_vm7, %v5257_v42, %v5261_v47  ;;  %v5454_v12 = vrot.slane %v5426_v2, 7  ;;  %v11068_v48 = vld.sshfl [vmem:[#allocation3 + $0x10] sm:$0x13 pattern:$0x76325410] }
 0x305   : > { %12790 = vmatprep.subr.bf16.mxu1 %v13871_v1  ;;  %v5458_v14 = vrot.slane %v5434_v4, 7  ;;  %v11016_v15 = vrot.slane %v11012_v30, 9  ;;  %v11014_v17 = vrot.slane %v11010_v36, 9  ;;  %v11015_v20 = vrot.slane %v11011_v54, 9  ;;  %v13602_v8 = vld [vmem:[%s16512_s5 + $0xc0] sm:$0xff]   ;;  %v13605_v42 = vld [vmem:[%s16512_s5 + $0x128] sm:$0xff]  }
 0x306   : > { %v15340_v28 = vsel %vm14033_vm7, %v5271_v46, %v5275_v32  ;;  %v5302_v52 = vrot.slane %v5294_v45, %v14014_v33  ;;  %v5451_v22 = vsel %vm15375_vm10, %v11013_v35, %v5450_v0  ;;  %v13847_v37 = vld.sshfl [vmem:[#allocation3 + $0xc] sm:$0xf pattern:$0x76325410]  ;;  %v5807_v25 = vshrl.u32 %v11068_v48, 16  ;;  %v13611_v36 = vld [vmem:[%s16512_s5 + $0x110] sm:$0xff]  }
 0x307   : > { %v5295_v51 = vcombine.low %v15336_v55, %v15340_v28  ;;  %v15383_v60 = vsel %vm15375_vm10, %v11016_v15, %v5462_v5  ;;  %v15395_v29 = vsel %vm15375_vm10, %v11014_v17, %v5454_v12  ;;  %v15399_v61 = vsel %vm15375_vm10, %v11015_v20, %v5458_v14  ;;  %v13848_v34 = vld.sshfl [vmem:[#allocation3 + $0x4] sm:$0xf pattern:$0x76325410]  ;;  %v13607_v32 = vld [vmem:[%s16512_s5 + $0x120] sm:$0xff]   ;;  %v13618_v15 = vld [vmem:[%s16512_s5 + $0x148] sm:$0xff]  }
 0x308   : > { %12791 = vmatpush3.bf16.msra.mxu1 %v13587_v11  ;;  %v5482_v10 = vcombine.low %v15399_v61, %v15383_v60  ;;  %v5481_v44 = vcombine.low %v5451_v22, %v15395_v29  ;;  %v5810_v31 = vshll.u32 %v11068_v48, 16  ;;  %v5809_v43 = vrot.slane %v5807_v25, 6  ;;  %v13606_v46 = vld [vmem:[%s16512_s5 + $0x178] sm:$0xff]   ;;  %v13615_v35 = vld [vmem:[%s16512_s5 + $0x100] sm:$0xff]   ;;  %v13619_v17 = vld [vmem:[%s16512_s5 + $0x1b0] sm:$0xff]  }
 0x309   : > { %v15347_v58 = vrot.slane %v5295_v51, %v14014_v33  ;;  %12792 = vmatprep.subr.bf16.mxu1 %v13871_v1  ;;  %v5763_v45 = vcombine.high %v11068_v48, %v11068_v48  ;;  %v5631_v11 = vcombine.low %v13848_v34, %v13847_v37  ;;  %v11096_v56 = vld.sshfl [vmem:[#allocation3 + $0x10] sm:$0x12 pattern:$0x76325410]  ;;  %v5837_v4 = vcombine.low %v15325_v39, %v15336_v55  ;;  %v13614_v5 = vld [vmem:[%s16512_s5 + $0x158] sm:$0xff]   ;;  %v13616_v39 = vld [vmem:[%s16512_s5 + $0x150] sm:$0xff]  }
 0x30a   : > { %v15415_v3 = vrot.slane %v5482_v10, %v14014_v33  ;;  %v5489_v6 = vrot.slane %v5481_v44, %v14014_v33  ;;  %v5812_v47 = vrot.slane %v5810_v31, 7  ;;  %v5985_v2 = vcombine.high %v11096_v56, %v11096_v56  ;;  %v13617_v55 = vld [vmem:[%s16512_s5 + $0x1b8] sm:$0xff]   ;;  %v13621_v22 = vld [vmem:[%s16512_s5 + $0x1a8] sm:$0xff]   ;;  %v13627_v48 = vld [vmem:[%s16512_s5 + $0x190] sm:$0xff]  }
 0x30b   : > { %v5310_v53 = vcombine.low %v5302_v52, %v15347_v58  ;;  %v13608_v52 = vld [vmem:[%s16512_s5 + $0x170] sm:$0xff]   ;;  %v5816_v30 = vshll.u32 %v5763_v45, 16  ;;  %v11100_v0 = vrot.slane %v11096_v56, 9  ;;  %v13628_v25 = vld [vmem:[%s16512_s5 + $0x1e0] sm:$0xff]   ;;  %v13629_v31 = vld [vmem:[%s16512_s5 + $0x188] sm:$0xff]  }
 0x30c   : > { %12793 = vmatpush3.bf16.msra.mxu1 %v13589_v50  ;;  %v5497_v38 = vcombine.low %v5489_v6, %v15415_v3  ;;  %v5813_v51 = vor.u32 %v5812_v47, %v5809_v43  ;;  %v13610_v50 = vld [vmem:[%s16512_s5 + $0x168] sm:$0xff]   ;;  %v13625_v6 = vld [vmem:[%s16512_s5 + $0x198] sm:$0xff]   ;;  %v13849_v34 = vld.sshfl [vmem:[#allocation3 + $0x10] sm:$0xf pattern:$0x76325410] }
 0x30d   : > { %12783 = vmatmul.mubr.bf16.vlgmr.msra.gmra.mxu0 %v5310_v53  ;;  %12794 = vmatprep.subr.bf16.mxu1 %v13871_v1  ;;  %v5818_v53 = vrot.slane %v5816_v30, 7  ;;  %v13850_v43 = vld.sshfl [vmem:[#allocation3 + $0x8] sm:$0xf pattern:$0x76325410]  ;;  %v13636_v30 = vld [vmem:[%s16512_s5 + $0x1c8] sm:$0xff]  }
 0x30e   : > { %12807 = vmatpush3.bf16.msra.mxu0 %v13588_v41  ;;  %12822 = vmatprep.mubr.msk.bf16.mxu0 %vm13872_vm0, %v13871_v1  ;;  %v5814_v41 = vrot.slane %v5813_v51, 2  ;;  %v13630_v47 = vld [vmem:[%s16512_s5 + $0x1d8] sm:$0xff]  }
 0x30f   : > { %12808 = vmatprep.subr.bf16.mxu0 %v13871_v1  ;;  %v13635_v51 = vld [vmem:[%s16512_s5 + $0x238] sm:$0xff]  }
 0x310   : > { %12795 = vmatpush3.bf16.msra.mxu1 %v13591_v62  ;;  %v15473_v54 = vsel %vm14033_vm7, %v5814_v41, %v5818_v53  ;;  %v13613_v62 = vld [vmem:[%s16512_s5 + $0x108] sm:$0xff]   ;;  %v13637_v41 = vld [vmem:[%s16512_s5 + $0x230] sm:$0xff]  }
 0x311   : > { %12796 = vmatprep.subr.bf16.mxu1 %v13871_v1  ;;  %v5838_v63 = vcombine.low %v15340_v28, %v15473_v54  ;;  %v13639_v53 = vld [vmem:[%s16512_s5 + $0x228] sm:$0xff]  }
 0x312   : > { %12809 = vmatpush3.bf16.msra.mxu0 %v13590_v57  ;;  %v13612_v57 = vld [vmem:[%s16512_s5 + $0x160] sm:$0xff]  }
 0x313   : > { %12810 = vmatprep.subr.bf16.mxu0 %v13871_v1  ;;  %v5852_v28 = vrot.slane %v5838_v63, %v14014_v33 }
 0x314   : > { %12797 = vmatpush3.bf16.msra.mxu1 %v13593_v9  ;;  %v5845_v9 = vrot.slane %v5837_v4, %v14014_v33 }
 0x315   : > { %12798 = vmatprep.subr.bf16.mxu1 %v13871_v1 }
 0x316   : > { %12811 = vmatpush3.bf16.msra.mxu0 %v13592_v7  ;;  %v6000_v7 = vrot.slane %v5985_v2, 7  ;;  %v5853_v12 = vcombine.low %v5845_v9, %v5852_v28  ;;  %v13641_v2 = vld [vmem:[%s16512_s5 + $0x218] sm:$0xff]   ;;  %v13643_v28 = vld [vmem:[%s16512_s5 + $0x208] sm:$0xff]   ;;  %v13644_v9 = vld [vmem:[%s16512_s5 + $0x200] sm:$0xff]  }
 0x317   : > { %12812 = vmatprep.subr.bf16.mxu0 %v13871_v1 }
 0x318   : > { %12799 = vmatpush3.bf16.msra.mxu1 %v13595_v21  ;;  %v15507_v14 = vsel %vm15375_vm10, %v11100_v0, %v6000_v7  ;;  %v13620_v21 = vld [vmem:[%s16512_s5 + $0x140] sm:$0xff]  }
 0x319   : > { %12800 = vmatprep.subr.bf16.mxu1 %v13871_v1  ;;  %v6020_v20 = vcombine.low %v15383_v60, %v15507_v14 }
 0x31a   : > { %12813 = vmatpush3.bf16.msra.mxu0 %v13594_v18  ;;  %v6019_v18 = vcombine.low %v15395_v29, %v15399_v61  ;;  %v13622_v29 = vld [vmem:[%s16512_s5 + $0x1f8] sm:$0xff]   ;;  %v13623_v61 = vld [vmem:[%s16512_s5 + $0x1a0] sm:$0xff]  }
 0x31b   : > { %12814 = vmatprep.subr.bf16.mxu0 %v13871_v1  ;;  %v6034_v60 = vrot.slane %v6020_v20, %v14014_v33 }
 0x31c   : > { %12801 = vmatpush3.bf16.msra.mxu1 %v13597_v40  ;;  %v6027_v10 = vrot.slane %v6019_v18, %v14014_v33  ;;  %v13624_v40 = vld [vmem:[%s16512_s5 + $0x1f0] sm:$0xff]  }
 0x31d   : > { %12826 = vmatprep.subr.bf16.mxu1 %v13871_v1 }
 0x31e   : > { %12815 = vmatpush3.bf16.msra.mxu0 %v13596_v59  ;;  %v6035_v44 = vcombine.low %v6027_v10, %v6034_v60  ;;  %v11152_v59 = vld.sshfl [vmem:[#allocation3 + $0x14] sm:$0x13 pattern:$0x76325410]  ;;  %v13645_v10 = vld [vmem:[%s16514_s7 + $0x38] sm:$0xff]  }
 0x31f   : > { %12816 = vmatprep.subr.bf16.mxu0 %v13871_v1  ;;  %12803 = vmatmul.mubr.bf16.vlgmr.msra.gmra.mxu1 %v5497_v38  ;;  %v13626_v38 = vld [vmem:[%s16512_s5 + $0x1e8] sm:$0xff]  }
 0x320   : > { %12827 = vmatpush3.bf16.msra.mxu1 %v13599_v23  ;;  %12842 = vmatprep.mubr.msk.bf16.mxu1 %vm13872_vm0, %v13871_v1  ;;  %v6349_v23 = vshll.u32 %v11152_v59, 16 }
 0x321   : > { %12828 = vmatprep.subr.bf16.mxu1 %v13871_v1 }
 0x322   : > { %12817 = vmatpush3.bf16.msra.mxu0 %v13598_v26  ;;  %v6346_v26 = vshrl.u32 %v11152_v59, 16  ;;  %v6351_v37 = vrot.slane %v6349_v23, 7  ;;  %v13652_v23 = vld [vmem:[%s16514_s7 + $0x68] sm:$0xff]  }
 0x323   : > { %12818 = vmatprep.subr.bf16.mxu0 %v13871_v1 }
 0x324   : > { %12829 = vmatpush3.bf16.msra.mxu1 %v13601_v27  ;;  %v6348_v27 = vrot.slane %v6346_v26, 6  ;;  %v13649_v26 = vld [vmem:[%s16514_s7 + $0x20] sm:$0xff]  }
 0x325   : > { %12830 = vmatprep.subr.bf16.mxu1 %v13871_v1 }
 0x326   : > { %12819 = vmatpush3.bf16.msra.mxu0 %v13600_v13  ;;  %v6302_v13 = vcombine.high %v11152_v59, %v11152_v59  ;;  %v13648_v59 = vld [vmem:[%s16514_s7 + $0x78] sm:$0xff]  }
 0x327   : > { %12820 = vmatprep.subr.bf16.mxu0 %v13871_v1 }
 0x328   : > { %12831 = vmatpush3.bf16.msra.mxu1 %v13605_v42  ;;  %v6355_v42 = vshll.u32 %v6302_v13, 16 }
 0x329   : > { %12832 = vmatprep.subr.bf16.mxu1 %v13871_v1 }
 0x32a   : > { %12821 = vmatpush3.bf16.msra.mxu0 %v13602_v8  ;;  %v6352_v8 = vor.u32 %v6351_v37, %v6348_v27  ;;  %v6357_v45 = vrot.slane %v6355_v42, 7 }
 0x32b   : > { %12846 = vmatprep.subr.bf16.mxu0 %v13871_v1 }
 0x32c   : > { %12833 = vmatpush3.bf16.msra.mxu1 %v13607_v32  ;;  %v6353_v32 = vrot.slane %v6352_v8, 2 }
 0x32d   : > { %12823 = vmatmul.mubr.bf16.vlgmr.msra.gmra.mxu0 %v5631_v11  ;;  %12834 = vmatprep.subr.bf16.mxu1 %v13871_v1  ;;  %v13632_v11 = vld [vmem:[%s16512_s5 + $0x1d0] sm:$0xff]  }
 0x32e   : > { %12847 = vmatpush3.bf16.msra.mxu0 %v13606_v46  ;;  %12862 = vmatprep.mubr.msk.bf16.mxu0 %vm13872_vm0, %v13871_v1  ;;  %v13631_v46 = vld [vmem:[%s16512_s5 + $0x180] sm:$0xff]  }
 0x32f   : > { %12848 = vmatprep.subr.bf16.mxu0 %v13871_v1 }
 0x330   : > { %12835 = vmatpush3.bf16.msra.mxu1 %v13609_v19  ;;  %v6358_v19 = vsel %vm14033_vm7, %v6353_v32, %v6357_v45  ;;  %v13662_v32 = vld [vmem:[%s16514_s7 + $0x48] sm:$0xff]  }
 0x331   : > { %12836 = vmatprep.subr.bf16.mxu1 %v13871_v1 }
 0x332   : > { %12849 = vmatpush3.bf16.msra.mxu0 %v13608_v52  ;;  %v6170_v52 = vcombine.low %v13850_v43, %v13849_v34  ;;  %v13655_v43 = vld [vmem:[%s16514_s7 + $0x8] sm:$0xff]  }
 0x333   : > { %12850 = vmatprep.subr.bf16.mxu0 %v13871_v1 }
 0x334   : > { %12837 = vmatpush3.bf16.msra.mxu1 %v13611_v36  ;;  %v13638_v36 = vld [vmem:[%s16512_s5 + $0x1c0] sm:$0xff]  }
 0x335   : > { %12838 = vmatprep.subr.bf16.mxu1 %v13871_v1 }
 0x336   : > { %12851 = vmatpush3.bf16.msra.mxu0 %v13610_v50  ;;  %v6377_v50 = vcombine.low %v15473_v54, %v6358_v19  ;;  %v11180_v54 = vld.sshfl [vmem:[#allocation3 + $0x14] sm:$0x12 pattern:$0x76325410] }
 0x337   : > { %12852 = vmatprep.subr.bf16.mxu0 %v13871_v1  ;;  %v6524_v63 = vcombine.high %v11180_v54, %v11180_v54  ;;  %v11184_v4 = vrot.slane %v11180_v54, 9 }
 0x338   : > { %12839 = vmatpush3.bf16.msra.mxu1 %v13613_v62  ;;  %v6391_v56 = vrot.slane %v6377_v50, %v14014_v33 }
 0x339   : > { %12840 = vmatprep.subr.bf16.mxu1 %v13871_v1 }
 0x33a   : > { %12853 = vmatpush3.bf16.msra.mxu0 %v13612_v57  ;;  %v13640_v57 = vld [vmem:[%s16512_s5 + $0x220] sm:$0xff]   ;;  %v6392_v62 = vcombine.low %v15347_v58, %v6391_v56  ;;  %v13642_v58 = vld [vmem:[%s16512_s5 + $0x210] sm:$0xff]  }
 0x33b   : > { %12854 = vmatprep.subr.bf16.mxu0 %v13871_v1 }
 0x33c   : > { %12841 = vmatpush3.bf16.msra.mxu1 %v13615_v35 }
 0x33d   : > { %12866 = vmatprep.subr.bf16.mxu1 %v13871_v1 }
 0x33e   : > { %12855 = vmatpush3.bf16.msra.mxu0 %v13614_v5  ;;  %v6539_v5 = vrot.slane %v6524_v63, 7 }
 0x33f   : > { %12856 = vmatprep.subr.bf16.mxu0 %v13871_v1  ;;  %12843 = vmatmul.mubr.bf16.vlgmr.msra.gmra.mxu1 %v5853_v12 }
 0x340   : > { %12867 = vmatpush3.bf16.msra.mxu1 %v13617_v55  ;;  %12882 = vmatprep.mubr.msk.bf16.mxu1 %vm13872_vm0, %v13871_v1  ;;  %v6540_v35 = vsel %vm15375_vm10, %v11184_v4, %v6539_v5 }
 0x341   : > { %12868 = vmatprep.subr.bf16.mxu1 %v13871_v1  ;;  %v6559_v7 = vcombine.low %v15507_v14, %v6540_v35 }
 0x342   : > { %12857 = vmatpush3.bf16.msra.mxu0 %v13616_v39 }
 0x343   : > { %12858 = vmatprep.subr.bf16.mxu0 %v13871_v1  ;;  %v6573_v39 = vrot.slane %v6559_v7, %v14014_v33 }
 0x344   : > { %12869 = vmatpush3.bf16.msra.mxu1 %v13619_v17  ;;  %v10980_v17 = vld [vmem:[%s16513_s6] ss:$0 sm:$0xff] }
 0x345   : > { %12870 = vmatprep.subr.bf16.mxu1 %v13871_v1  ;;  %v6574_v55 = vcombine.low %v15415_v3, %v6573_v39 }
 0x346   : > { %12859 = vmatpush3.bf16.msra.mxu0 %v13618_v15 }
 0x347   : > { %12860 = vmatprep.subr.bf16.mxu0 %v13871_v1 }
 0x348   : > { %12871 = vmatpush3.bf16.msra.mxu1 %v13621_v22 }
 0x349   : > { %12872 = vmatprep.subr.bf16.mxu1 %v13871_v1 }
 0x34a   : > { %12861 = vmatpush3.bf16.msra.mxu0 %v13620_v21 }
 0x34b   : > { %12886 = vmatprep.subr.bf16.mxu0 %v13871_v1 }
 0x34c   : > { %12873 = vmatpush3.bf16.msra.mxu1 %v13623_v61 }
 0x34d   : > { %12863 = vmatmul.mubr.bf16.vlgmr.msra.gmra.mxu0 %v6035_v44  ;;  %12874 = vmatprep.subr.bf16.mxu1 %v13871_v1  ;;  %v13646_v44 = vld [vmem:[%s16514_s7 + $0x30] sm:$0xff]  }
 0x34e   : > { %12887 = vmatpush3.bf16.msra.mxu0 %v13622_v29  ;;  %12902 = vmatprep.mubr.msk.bf16.mxu0 %vm13872_vm0, %v13871_v1 }
 0x34f   : > { %12888 = vmatprep.subr.bf16.mxu0 %v13871_v1 }
 0x350   : > { %12875 = vmatpush3.bf16.msra.mxu1 %v13625_v6  ;;  %v13650_v6 = vld [vmem:[%s16514_s7 + $0x70] sm:$0xff]  }
 0x351   : > { %12876 = vmatprep.subr.bf16.mxu1 %v13871_v1 }
 0x352   : > { %12889 = vmatpush3.bf16.msra.mxu0 %v13624_v40  ;;  %v13647_v40 = vld [vmem:[%s16514_s7 + $0x28] sm:$0xff]  }
 0x353   : > { %12890 = vmatprep.subr.bf16.mxu0 %v13871_v1 }
 0x354   : > { %12877 = vmatpush3.bf16.msra.mxu1 %v13627_v48  ;;  %v13654_v48 = vld [vmem:[%s16514_s7 + $0x60] sm:$0xff]  }
 0x355   : > { %12878 = vmatprep.subr.bf16.mxu1 %v13871_v1 }
 0x356   : > { %12891 = vmatpush3.bf16.msra.mxu0 %v13626_v38  ;;  %v13651_v38 = vld [vmem:[%s16514_s7 + $0x18] sm:$0xff]  }
 0x357   : > { %12892 = vmatprep.subr.bf16.mxu0 %v13871_v1 }
 0x358   : > { %12879 = vmatpush3.bf16.msra.mxu1 %v13629_v31  ;;  %v13656_v31 = vld [vmem:[%s16514_s7 + $0x58] sm:$0xff]  }
 0x359   : > { %12880 = vmatprep.subr.bf16.mxu1 %v13871_v1 }
 0x35a   : > { %12893 = vmatpush3.bf16.msra.mxu0 %v13628_v25  ;;  %v13653_v25 = vld [vmem:[%s16514_s7 + $0x10] sm:$0xff]  }
 0x35b   : > { %12894 = vmatprep.subr.bf16.mxu0 %v13871_v1 }
 0x35c   : > { %12881 = vmatpush3.bf16.msra.mxu1 %v13631_v46  ;;  %v13657_v46 = vld [vmem:[%s16514_s7] sm:$0xff]  }
 0x35d   : > { %12906 = vmatprep.subr.bf16.mxu1 %v13871_v1 }
 0x35e   : > { %12895 = vmatpush3.bf16.msra.mxu0 %v13630_v47  ;;  %v13658_v47 = vld [vmem:[%s16514_s7 + $0x50] sm:$0xff]  }
 0x35f   : > { %12896 = vmatprep.subr.bf16.mxu0 %v13871_v1  ;;  %12883 = vmatmul.mubr.bf16.vlgmr.msra.gmra.mxu1 %v6170_v52  ;;  %v13664_v52 = vld [vmem:[%s16514_s7 + $0x40] sm:$0xff]  }
 0x360   : > { %12907 = vmatpush3.bf16.msra.mxu1 %v13635_v51  ;;  %12922 = vmatprep.mubr.msk.bf16.mxu1 %vm13872_vm0, %v13871_v1 }
 0x361   : > { %12908 = vmatprep.subr.bf16.mxu1 %v13871_v1 }
 0x362   : > { %12897 = vmatpush3.bf16.msra.mxu0 %v13632_v11 }
 0x363   : > { %12898 = vmatprep.subr.bf16.mxu0 %v13871_v1 }
 0x364   : > { %12909 = vmatpush3.bf16.msra.mxu1 %v13637_v41 }
 0x365   : > { %12910 = vmatprep.subr.bf16.mxu1 %v13871_v1 }
 0x366   : > { %12899 = vmatpush3.bf16.msra.mxu0 %v13636_v30 }
 0x367   : > { %12900 = vmatprep.subr.bf16.mxu0 %v13871_v1 }
 0x368   : > { %12911 = vmatpush3.bf16.msra.mxu1 %v13639_v53 }
 0x369   : > { %12912 = vmatprep.subr.bf16.mxu1 %v13871_v1 }
 0x36a   : > { %12901 = vmatpush3.bf16.msra.mxu0 %v13638_v36 }
 0x36b   : > { %12926 = vmatprep.subr.bf16.mxu0 %v13871_v1 }
 0x36c   : > { %12913 = vmatpush3.bf16.msra.mxu1 %v13640_v57 }
 0x36d   : > { %12903 = vmatmul.mubr.bf16.vlgmr.msra.gmra.mxu0 %v6392_v62  ;;  %12914 = vmatprep.subr.bf16.mxu1 %v13871_v1 }
 0x36e   : > { %12942 = vmatprep.mubr.msk.bf16.mxu0 %vm13872_vm0, %v13871_v1  ;;  %12927 = vmatpush3.bf16.msra.mxu0 %v13648_v59 }
 0x36f   : > { %12928 = vmatprep.subr.bf16.mxu0 %v13871_v1 }
 0x370   : > { %12915 = vmatpush3.bf16.msra.mxu1 %v13641_v2 }
 0x371   : > { %12916 = vmatprep.subr.bf16.mxu1 %v13871_v1 }
 0x372   : > { %12929 = vmatpush3.bf16.msra.mxu0 %v13650_v6 }
 0x373   : > { %12930 = vmatprep.subr.bf16.mxu0 %v13871_v1 }
 0x374   : > { %12917 = vmatpush3.bf16.msra.mxu1 %v13642_v58 }
 0x375   : > { %12918 = vmatprep.subr.bf16.mxu1 %v13871_v1 }
 0x376   : > { %12931 = vmatpush3.bf16.msra.mxu0 %v13652_v23 }
 0x377   : > { %12932 = vmatprep.subr.bf16.mxu0 %v13871_v1 }
 0x378   : > { %12919 = vmatpush3.bf16.msra.mxu1 %v13643_v28 }
 0x379   : > { %12920 = vmatprep.subr.bf16.mxu1 %v13871_v1 }
 0x37a   : > { %12933 = vmatpush3.bf16.msra.mxu0 %v13654_v48 }
 0x37b   : > { %12934 = vmatprep.subr.bf16.mxu0 %v13871_v1 }
 0x37c   : > { %12921 = vmatpush3.bf16.msra.mxu1 %v13644_v9 }
 0x37d   : > { %12946 = vmatprep.subr.bf16.mxu1 %v13871_v1 }
 0x37e   : > { %12935 = vmatpush3.bf16.msra.mxu0 %v13656_v31 }
 0x37f   : > { %12923 = vmatmul.mubr.bf16.vlgmr.msra.gmra.mxu1 %v6574_v55  ;;  %12936 = vmatprep.subr.bf16.mxu0 %v13871_v1 }
 0x380   : > { %12962 = vmatprep.mubr.msk.bf16.mxu1 %vm13872_vm0, %v13871_v1  ;;  %12947 = vmatpush3.bf16.msra.mxu1 %v13645_v10 }
 0x381   : > { %12948 = vmatprep.subr.bf16.mxu1 %v13871_v1 }
 0x382   : > { %12937 = vmatpush3.bf16.msra.mxu0 %v13658_v47 }
 0x383   : > { %12938 = vmatprep.subr.bf16.mxu0 %v13871_v1 }
 0x384   : > { %12949 = vmatpush3.bf16.msra.mxu1 %v13646_v44 }
 0x385   : > { %12950 = vmatprep.subr.bf16.mxu1 %v13871_v1 }
 0x386   : > { %12939 = vmatpush3.bf16.msra.mxu0 %v13662_v32  ;;  %v6730_v32 = vld [vmem:[#allocation3 + $0x8] sm:$0x7] }
 0x387   : > { %12940 = vmatprep.subr.bf16.mxu0 %v13871_v1 }
 0x388   : > { %12951 = vmatpush3.bf16.msra.mxu1 %v13647_v40 }
 0x389   : > { %12952 = vmatprep.subr.bf16.mxu1 %v13871_v1 }
 0x38a   : > { %12941 = vmatpush3.bf16.msra.mxu0 %v13664_v52 }
 0x38b   : > { %12966 = vmatprep.subr.bf16.mxu0 %v13871_v1 }
 0x38c   : > { %12953 = vmatpush3.bf16.msra.mxu1 %v13649_v26 }
 0x38d   : > { %12954 = vmatprep.subr.bf16.mxu1 %v13871_v1 }
 0x390   : > { %12955 = vmatpush3.bf16.msra.mxu1 %v13651_v38 }
 0x391   : > { %12956 = vmatprep.subr.bf16.mxu1 %v13871_v1 }
 0x394   : > { %12957 = vmatpush3.bf16.msra.mxu1 %v13653_v25 }
 0x395   : > { %12958 = vmatprep.subr.bf16.mxu1 %v13871_v1 }
 0x398   : > { %12959 = vmatpush3.bf16.msra.mxu1 %v13655_v43 }
 0x399   : > { %12960 = vmatprep.subr.bf16.mxu1 %v13871_v1 }
 0x39c   : > { %12961 = vmatpush3.bf16.msra.mxu1 %v13657_v46 }
 0x39d   : > { %12986 = vmatprep.subr.bf16.mxu1 %v13871_v1 }
 0x3bf   : > { %v5166_v0 = vpop.f32.mrf.mxu1 }
 0x3c0   : > { %v5179_v20 = vadd.f32 %v10980_v17, %v5166_v0 }
 0x3c1   : > { %v12764_v12 = vpop.f32.mrf.mxu1 }
 0x3c3   : > { %v5169_v14 = vpop.f32.mrf.mxu1 }
 0x3c4   : > { %v5180_v60 = vadd.f32 %v10980_v17, %v5169_v14 }
 0x3c5   : > { %v12765_v15 = vpop.f32.mrf.mxu1 }
 0x3cd   : > { %v5394_v18 = vpop.f32.mrf.mxu0 }
 0x3ce   : > { %v5401_v21 = vadd.f32 %v5394_v18, %v5179_v20 }
 0x3cf   : > { %v12784_v22 = vpop.f32.mrf.mxu0 }
 0x3d1   : > { %v5397_v3 = vpop.f32.mrf.mxu0 }
 0x3d2   : > { %v5402_v29 = vadd.f32 %v5397_v3, %v5180_v60 }
 0x3d3   : > { %v12785_v61 = vpop.f32.mrf.mxu0 }
 0x3df   : > { %v5581_v13 = vpop.f32.mrf.mxu1 }
 0x3e0   : > { %v5588_v27 = vadd.f32 %v5581_v13, %v5401_v21 }
 0x3e1   : > { %v12804_v37 = vpop.f32.mrf.mxu1 }
 0x3e3   : > { %v5584_v34 = vpop.f32.mrf.mxu1 }
 0x3e4   : > { %v5589_v8 = vadd.f32 %v5584_v34, %v5402_v29  ;;  %v11213_v34 = vld.sshfl [vmem:[#allocation3] sm:$0x13 pattern:$0x76325410] }
 0x3e5   : > { %v12805_v42 = vpop.f32.mrf.mxu1 }
 0x3ed   : > { %v5715_v45 = vpop.f32.mrf.mxu0 }
 0x3ee   : > { %v5722_v11 = vadd.f32 %v5715_v45, %v5588_v27 }
 0x3ef   : > { %v12824_v51 = vpop.f32.mrf.mxu0 }
 0x3f0   : > { %v6800_v51 = vshrl.u32 %v11213_v34, 16 }
 0x3f1   : > { %v5718_v19 = vpop.f32.mrf.mxu0 }
 0x3f2   : > { %v5723_v30 = vadd.f32 %v5718_v19, %v5589_v8  ;;  %v6727_v8 = vld [vmem:[#allocation3 + $0x4] sm:$0x7] }
 0x3f3   : > { %v12825_v41 = vpop.f32.mrf.mxu0 }
 0x3f4   : > { %v6803_v41 = vshll.u32 %v11213_v34, 16 }
 0x3ff   : > { %v5937_v50 = vpop.f32.mrf.mxu1 }
 0x400   : > { %v5944_v39 = vadd.f32 %v5937_v50, %v5722_v11 }
 0x401   : > { %v12844_v36 = vpop.f32.mrf.mxu1 }
 0x403   : > { %v5940_v53 = vpop.f32.mrf.mxu1 }
 0x404   : > { %v5945_v0 = vadd.f32 %v5940_v53, %v5723_v30  ;;  %v6733_v53 = vld [vmem:[#allocation3 + $0xc] sm:$0x7] }
 0x405   : > { %v12845_v56 = vpop.f32.mrf.mxu1 }
 0x406   : > { %v6774_v56 = vcombine.high %v11213_v34, %v11213_v34 }
 0x40d   : > { %v6119_v54 = vpop.f32.mrf.mxu0 }
 0x40e   : > { %v6126_v55 = vadd.f32 %v6119_v54, %v5944_v39 }
 0x40f   : > { %v12864_v57 = vpop.f32.mrf.mxu0 }
 0x410   : > { %v6736_v57 = vld [vmem:[#allocation3 + $0x10] sm:$0x7] }
 0x411   : > { %v6122_v62 = vpop.f32.mrf.mxu0 }
 0x412   : > { %v6127_v14 = vadd.f32 %v6122_v62, %v5945_v0 }
 0x413   : > { %v12865_v63 = vpop.f32.mrf.mxu0 }
 0x414   : > { %v6802_v63 = vrot.slane %v6800_v51, 6 }
 0x41f   : > { %v6254_v2 = vpop.f32.mrf.mxu1 }
 0x420   : > { %v6261_v12 = vadd.f32 %v6254_v2, %v6126_v55  ;;  %v6805_v2 = vrot.slane %v6803_v41, 7 }
 0x421   : > { %v12884_v4 = vpop.f32.mrf.mxu1 }
 0x422   : > { %v6809_v4 = vshll.u32 %v6774_v56, 16 }
 0x423   : > { %v6257_v5 = vpop.f32.mrf.mxu1 }
 0x424   : > { %v6262_v20 = vadd.f32 %v6257_v5, %v6127_v14  ;;  %v6811_v0 = vrot.slane %v6809_v4, 7 }
 0x425   : > { %v12885_v58 = vpop.f32.mrf.mxu1 }
 0x42d   : > { %v6476_v35 = vpop.f32.mrf.mxu0 }
 0x42e   : > { %v6483_v15 = vadd.f32 %v6476_v35, %v6261_v12 }
 0x42f   : > { %v12904_v28 = vpop.f32.mrf.mxu0 }
 0x431   : > { %v6479_v7 = vpop.f32.mrf.mxu0 }
 0x432   : > { %v6484_v22 = vadd.f32 %v6479_v7, %v6262_v20  ;;  %v6806_v7 = vor.u32 %v6805_v2, %v6802_v63  ;;  %v13665_v63 = vld [vmem:[%s16514_s7 + $0xe8] sm:$0xff]  }
 0x433   : > { %v12905_v9 = vpop.f32.mrf.mxu0 }
 0x43f   : > { %v6658_v17 = vpop.f32.mrf.mxu1 }
 0x440   : > { %v15704_v18 = vadd.f32 %v6658_v17, %v6483_v15 }
 0x441   : > { %v12924_v21 = vpop.f32.mrf.mxu1 }
 0x442   : > { %v6671_v60 = vmax.f32 %v15704_v18, 0.0 }
 0x443   : > { %v6661_v3 = vpop.f32.mrf.mxu1 }
 0x444   : > { %v6675_v10 = vcombine.high %v6671_v60, %v6671_v60  ;;  %v11752_v29 = vpack.c.bf16 %v6671_v60, %v6671_v60  ;;  %v15707_v61 = vadd.f32 %v6661_v3, %v6484_v22  ;;  %v6807_v60 = vrot.slane %v6806_v7, 2 }
 0x445   : > { %v12925_v44 = vpop.f32.mrf.mxu1 }
 0x446   : > { %v11753_v59 = vpack.c.bf16 %v6675_v10, %v6675_v10  ;;  %v6696_v40 = vshrl.u32 %v11752_v29, 16  ;;  %v6672_v6 = vmax.f32 %v15707_v61, 0.0  ;;  %v6699_v23 = vshll.u32 %v11752_v29, 16 }
 0x447   : > { %v6812_v34 = vsel %vm14033_vm7, %v6807_v60, %v6811_v0 }
 0x448   : > { %v6698_v26 = vrot.slane %v6696_v40, 7  ;;  %v6703_v38 = vshrl.u32 %v11753_v59, 16  ;;  %v6676_v48 = vcombine.high %v6672_v6, %v6672_v6  ;;  %v11754_v13 = vpack.c.bf16 %v6672_v6, %v6672_v6 }
 0x449   : > { %v6706_v25 = vshll.u32 %v11753_v59, 16  ;;  %v13661_v59 = vld [vmem:[%s16514_s7 + $0xf8] sm:$0xff]  }
 0x44a   : > { %v6701_v27 = vor.u32 %v6699_v23, %v6698_v26  ;;  %v6705_v37 = vrot.slane %v6703_v38, 7  ;;  %v11755_v31 = vpack.c.bf16 %v6676_v48, %v6676_v48  ;;  %v6710_v42 = vshrl.u32 %v11754_v13, 16 }
 0x44b   : > { %v6713_v11 = vshll.u32 %v11754_v13, 16  ;;  %v11420_v13 = vld.sshfl [vmem:[#allocation3 + $0x14] sm:$0x12 pattern:$0x76325410] }
 0x44c   : > { %v6708_v43 = vor.u32 %v6706_v25, %v6705_v37  ;;  %v6728_v47 = vsel %vm14462_vm2, %v6701_v27, %v6727_v8  ;;  %v6717_v46 = vshrl.u32 %v11755_v31, 16  ;;  %v6712_v45 = vrot.slane %v6710_v42, 7  ;;  %v13663_v42 = vld [vmem:[%s16514_s7 + $0xf0] sm:$0xff]  }
 0x44d   : > { %6729 = vst [vmem:[#allocation3 + $0x4] sm:$0x7] %v6728_v47  ;;  %v6720_v30 = vshll.u32 %v11755_v31, 16 }
 0x44e   : > { %v6731_v52 = vsel %vm14462_vm2, %v6708_v43, %v6730_v32  ;;  %v6719_v19 = vrot.slane %v6717_v46, 7  ;;  %v6715_v50 = vor.u32 %v6713_v11, %v6712_v45  ;;  %v8205_v45 = vcombine.high %v11420_v13, %v11420_v13 }
 0x44f   : > { %6732 = vst [vmem:[#allocation3 + $0x8] sm:$0x7] %v6731_v52 }
 0x450   : > { %v6722_v36 = vor.u32 %v6720_v30, %v6719_v19  ;;  %v6734_v54 = vsel %vm14462_vm2, %v6715_v50, %v6733_v53  ;;  %v11424_v19 = vrot.slane %v11420_v13, 9 }
 0x451   : > { %6735 = vst [vmem:[#allocation3 + $0xc] sm:$0x7] %v6734_v54 }
 0x452   : > { %v6737_v62 = vsel %vm14462_vm2, %v6722_v36, %v6736_v57 }
 0x453   : > { %6738 = vst [vmem:[#allocation3 + $0x10] sm:$0x7] %v6737_v62 }
 0x454   : > { %v13851_v5 = vld.sshfl [vmem:[#allocation3] sm:$0xf pattern:$0x76325410] }
 0x455   : > { %v11214_v58 = vld.sshfl [vmem:[#allocation3 + $0x4] sm:$0x13 pattern:$0x76325410] }
 0x456   : > { %v11215_v35 = vld.sshfl [vmem:[#allocation3 + $0x8] sm:$0x13 pattern:$0x76325410]  ;;  %v6782_v28 = vcombine.high %v11214_v58, %v11214_v58  ;;  %v6814_v9 = vshrl.u32 %v11214_v58, 16  ;;  %v6817_v39 = vshll.u32 %v11214_v58, 16 }
 0x457   : > { %v6828_v55 = vshrl.u32 %v11215_v35, 16  ;;  %v6831_v14 = vshll.u32 %v11215_v35, 16  ;;  %v6790_v22 = vcombine.high %v11215_v35, %v11215_v35  ;;  %v11251_v8 = vld.sshfl [vmem:[#allocation3 + $0x8] sm:$0x12 pattern:$0x76325410] }
 0x458   : > { %v6823_v12 = vshll.u32 %v6782_v28, 16  ;;  %v13852_v15 = vld.sshfl [vmem:[#allocation3 + $0x8] sm:$0xf pattern:$0x76325410]  ;;  %v6816_v17 = vrot.slane %v6814_v9, 6  ;;  %v7121_v11 = vcombine.high %v11251_v8, %v11251_v8 }
 0x459   : > { %v6819_v20 = vrot.slane %v6817_v39, 7  ;;  %v11216_v21 = vld.sshfl [vmem:[#allocation3 + $0xc] sm:$0x13 pattern:$0x76325410]  ;;  %v6830_v3 = vrot.slane %v6828_v55, 6  ;;  %v6999_v26 = vcombine.low %v13851_v5, %v13852_v15 }
 0x45a   : > { %v6798_v10 = vcombine.high %v11216_v21, %v11216_v21  ;;  %v6833_v44 = vrot.slane %v6831_v14, 7  ;;  %v6842_v40 = vshrl.u32 %v11216_v21, 16  ;;  %v6845_v6 = vshll.u32 %v11216_v21, 16 }
 0x45b   : > { %v6820_v29 = vor.u32 %v6819_v20, %v6816_v17  ;;  %v6825_v38 = vrot.slane %v6823_v12, 7  ;;  %v6837_v27 = vshll.u32 %v6790_v22, 16  ;;  %12963 = vmatmul.mubr.bf16.vlgmr.msra.gmra.mxu1 %v6999_v26  ;;  %v11252_v32 = vld.sshfl [vmem:[#allocation3 + $0xc] sm:$0x12 pattern:$0x76325410] }
 0x45c   : > { %v6834_v48 = vor.u32 %v6833_v44, %v6830_v3  ;;  %v6844_v37 = vrot.slane %v6842_v40, 6  ;;  %v6847_v25 = vrot.slane %v6845_v6, 7  ;;  %v6851_v31 = vshll.u32 %v6798_v10, 16  ;;  %12987 = vmatpush3.bf16.msra.mxu1 %v13661_v59  ;;  %13002 = vmatprep.mubr.msk.bf16.mxu1 %vm13872_vm0, %v13871_v1  ;;  %v13666_v17 = vld [vmem:[%s16514_s7 + $0xb8] sm:$0xff]   ;;  %v13667_v20 = vld [vmem:[%s16514_s7 + $0xe0] sm:$0xff]   ;;  %v13668_v26 = vld [vmem:[%s16514_s7 + $0xb0] sm:$0xff]  }
 0x45d   : > { %v6821_v23 = vrot.slane %v6820_v29, 2  ;;  %12988 = vmatprep.subr.bf16.mxu1 %v13871_v1  ;;  %v7129_v51 = vcombine.high %v11252_v32, %v11252_v32  ;;  %v11336_v52 = vld.sshfl [vmem:[#allocation3 + $0x10] sm:$0x12 pattern:$0x76325410]  ;;  %v6839_v30 = vrot.slane %v6837_v27, 7 }
 0x45e   : > { %v6835_v47 = vrot.slane %v6834_v48, 2  ;;  %v6848_v46 = vor.u32 %v6847_v25, %v6844_v37  ;;  %v6853_v50 = vrot.slane %v6851_v31, 7  ;;  %v11256_v36 = vrot.slane %v11252_v32, 9  ;;  %v13670_v31 = vld [vmem:[%s16514_s7 + $0xa8] sm:$0xff]  }
 0x45f   : > { %v15728_v43 = vsel %vm14033_vm7, %v6821_v23, %v6825_v38  ;;  %v7140_v56 = vrot.slane %v7121_v11, 7  ;;  %v7144_v54 = vrot.slane %v7129_v51, 7  ;;  %v7667_v57 = vcombine.high %v11336_v52, %v11336_v52  ;;  %v11308_v62 = vld.sshfl [vmem:[#allocation3 + $0x10] sm:$0x13 pattern:$0x76325410] }
 0x460   : > { %v6849_v41 = vrot.slane %v6848_v46, 2  ;;  %v6872_v53 = vcombine.low %v6812_v34, %v15728_v43  ;;  %12989 = vmatpush3.bf16.msra.mxu1 %v13663_v42  ;;  %v6840_v2 = vsel %vm14033_vm7, %v6835_v47, %v6839_v30  ;;  %v11255_v5 = vrot.slane %v11251_v8, 9  ;;  %v13669_v23 = vld [vmem:[%s16514_s7 + $0xd8] sm:$0xff]   ;;  %v13671_v34 = vld [vmem:[%s16514_s7 + $0xd0] sm:$0xff]   ;;  %v13672_v47 = vld [vmem:[%s16514_s7 + $0xa0] sm:$0xff]  }
 0x461   : > { %v8220_v58 = vrot.slane %v8205_v45, 7  ;;  %12990 = vmatprep.subr.bf16.mxu1 %v13871_v1  ;;  %v15744_v28 = vsel %vm15375_vm10, %v11256_v36, %v7144_v54  ;;  %v7682_v7 = vrot.slane %v7667_v57, 7  ;;  %v7445_v9 = vcombine.high %v11308_v62, %v11308_v62  ;;  %v13673_v46 = vld [vmem:[%s16514_s7 + $0xc8] sm:$0xff]   ;;  %v13675_v30 = vld [vmem:[%s16514_s7 + $0xc0] sm:$0xff]   ;;  %v13676_v36 = vld [vmem:[%s16514_s7 + $0x90] sm:$0xff]  }
 0x462   : > { %v6854_v4 = vsel %vm14033_vm7, %v6849_v41, %v6853_v50  ;;  %v11340_v39 = vrot.slane %v11336_v52, 9  ;;  %v7489_v55 = vshrl.u32 %v11308_v62, 16  ;;  %v6880_v0 = vrot.slane %v6872_v53, %v14014_v33  ;;  %v11249_v32 = vld.sshfl [vmem:[#allocation3] sm:$0x12 pattern:$0x76325410] }
 0x463   : > { %v6873_v35 = vcombine.low %v6840_v2, %v6854_v4  ;;  %v15752_v14 = vsel %vm15375_vm10, %v11255_v5, %v7140_v56  ;;  %v7492_v15 = vshll.u32 %v11308_v62, 16  ;;  %v8221_v3 = vsel %vm15375_vm10, %v11424_v19, %v8220_v58  ;;  %v13853_v11 = vld.sshfl [vmem:[#allocation3 + $0xc] sm:$0xf pattern:$0x76325410] }
 0x464   : > { %12991 = vmatpush3.bf16.msra.mxu1 %v13665_v63  ;;  %v7164_v21 = vcombine.low %v15752_v14, %v15744_v28  ;;  %v15764_v22 = vsel %vm15375_vm10, %v11340_v39, %v7682_v7  ;;  %v7491_v60 = vrot.slane %v7489_v55, 6  ;;  %v7498_v44 = vshll.u32 %v7445_v9, 16  ;;  %v11250_v51 = vld.sshfl [vmem:[#allocation3 + $0x4] sm:$0x12 pattern:$0x76325410] }
 0x465   : > { %v15748_v12 = vrot.slane %v6873_v35, %v14014_v33  ;;  %12992 = vmatprep.subr.bf16.mxu1 %v13871_v1  ;;  %v7494_v29 = vrot.slane %v7492_v15, 7  ;;  %v7519_v59 = vcombine.low %v15728_v43, %v6840_v2  ;;  %v8240_v6 = vcombine.low %v15764_v22, %v8221_v3  ;;  %v13854_v52 = vld.sshfl [vmem:[#allocation3 + $0x4] sm:$0xf pattern:$0x76325410]  ;;  %v13680_v2 = vld [vmem:[%s16514_s7 + $0x88] sm:$0xff]  }
 0x466   : > { %v15781_v38 = vrot.slane %v7164_v21, %v14014_v33  ;;  %v7500_v13 = vrot.slane %v7498_v44, 7  ;;  %v13674_v19 = vld [vmem:[%s16514_s7 + $0x98] sm:$0xff]   ;;  %v7105_v41 = vcombine.high %v11249_v32, %v11249_v32  ;;  %v7113_v50 = vcombine.high %v11250_v51, %v11250_v51  ;;  %v13682_v7 = vld [vmem:[%s16514_s7 + $0x80] sm:$0xff]   ;;  %v13683_v9 = vld [vmem:[%s16514_s7 + $0x168] sm:$0xff]  }
 0x467   : > { %v6888_v10 = vcombine.low %v6880_v0, %v15748_v12  ;;  %v7495_v40 = vor.u32 %v7494_v29, %v7491_v60  ;;  %v15784_v27 = vrot.slane %v8240_v6, %v14014_v33  ;;  %v15804_v42 = vrot.slane %v7519_v59, %v14014_v33  ;;  %v13679_v53 = vld [vmem:[%s16514_s7 + $0x178] sm:$0xff]   ;;  %v13685_v0 = vld [vmem:[%s16514_s7 + $0x160] sm:$0xff]   ;;  %v13688_v21 = vld [vmem:[%s16514_s7 + $0x128] sm:$0xff]  }
 0x468   : > { %12993 = vmatpush3.bf16.msra.mxu1 %v13667_v20  ;;  %v11253_v56 = vrot.slane %v11249_v32, 9  ;;  %v7132_v54 = vrot.slane %v7105_v41, 7  ;;  %v7136_v57 = vrot.slane %v7113_v50, 7  ;;  %v7313_v62 = vcombine.low %v13854_v52, %v13853_v11  ;;  %v13684_v55 = vld [vmem:[%s16514_s7 + $0x138] sm:$0xff]   ;;  %v13689_v60 = vld [vmem:[%s16514_s7 + $0x150] sm:$0xff]   ;;  %v13690_v3 = vld [vmem:[%s16514_s7 + $0x120] sm:$0xff]  }
 0x469   : > { %12943 = vmatmul.mubr.bf16.vlgmr.msra.gmra.mxu0 %v6888_v10  ;;  %12994 = vmatprep.subr.bf16.mxu1 %v13871_v1  ;;  %v7496_v48 = vrot.slane %v7495_v40, 2  ;;  %v8255_v25 = vcombine.low %v15781_v38, %v15784_v27  ;;  %v11254_v63 = vrot.slane %v11250_v51, 9  ;;  %v13687_v20 = vld [vmem:[%s16514_s7 + $0x158] sm:$0xff]   ;;  %v13691_v10 = vld [vmem:[%s16514_s7 + $0x148] sm:$0xff]   ;;  %v7702_v29 = vcombine.low %v15744_v28, %v15764_v22  ;;  %v13693_v40 = vld [vmem:[%s16514_s7 + $0x140] sm:$0xff]  }
 0x46a   : > { %12967 = vmatpush3.bf16.msra.mxu0 %v13666_v17  ;;  %12982 = vmatprep.mubr.msk.bf16.mxu0 %vm13872_vm0, %v13871_v1  ;;  %v7133_v5 = vsel %vm15375_vm10, %v11253_v56, %v7132_v54  ;;  %v13686_v17 = vld [vmem:[%s16514_s7 + $0x130] sm:$0xff]   ;;  %v13692_v59 = vld [vmem:[%s16514_s7 + $0x118] sm:$0xff]   ;;  %v13701_v52 = vld [vmem:[%s16514_s7 + $0x1e0] sm:$0xff]  }
 0x46b   : > { %12968 = vmatprep.subr.bf16.mxu0 %v13871_v1  ;;  %v15790_v37 = vsel %vm14033_vm7, %v7496_v48, %v7500_v13  ;;  %v7137_v58 = vsel %vm15375_vm10, %v11254_v63, %v7136_v57  ;;  %v7716_v6 = vrot.slane %v7702_v29, %v14014_v33  ;;  %v13695_v22 = vld [vmem:[%s16514_s7 + $0x1f8] sm:$0xff]   ;;  %v13696_v48 = vld [vmem:[%s16514_s7 + $0x108] sm:$0xff]   ;;  %v13697_v13 = vld [vmem:[%s16514_s7 + $0x1f0] sm:$0xff]  }
 0x46c   : > { %12995 = vmatpush3.bf16.msra.mxu1 %v13669_v23  ;;  %v7520_v8 = vcombine.low %v6854_v4, %v15790_v37  ;;  %v13681_v4 = vld [vmem:[%s16514_s7 + $0x170] sm:$0xff]   ;;  %v7163_v35 = vcombine.low %v7133_v5, %v7137_v58  ;;  %v7701_v44 = vcombine.low %v7137_v58, %v15752_v14  ;;  %v11392_v23 = vld.sshfl [vmem:[#allocation3 + $0x14] sm:$0x13 pattern:$0x76325410]  ;;  %v13700_v51 = vld [vmem:[%s16514_s7 + $0x1b8] sm:$0xff]  }
 0x46d   : > { %12996 = vmatprep.subr.bf16.mxu1 %v13871_v1  ;;  %v13694_v14 = vld [vmem:[%s16514_s7 + $0x110] sm:$0xff]   ;;  %v13703_v50 = vld [vmem:[%s16514_s7 + $0x1d8] sm:$0xff]   ;;  %v13706_v56 = vld [vmem:[%s16514_s7 + $0x1a0] sm:$0xff]  }
 0x46e   : > { %12969 = vmatpush3.bf16.msra.mxu0 %v13668_v26  ;;  %v15807_v43 = vrot.slane %v7520_v8, %v14014_v33  ;;  %v7171_v39 = vrot.slane %v7163_v35, %v14014_v33  ;;  %v7709_v28 = vrot.slane %v7701_v44, %v14014_v33  ;;  %v13698_v8 = vld [vmem:[%s16514_s7 + $0x100] sm:$0xff]   ;;  %v13702_v41 = vld [vmem:[%s16514_s7 + $0x1b0] sm:$0xff]   ;;  %v13707_v54 = vld [vmem:[%s16514_s7 + $0x1c8] sm:$0xff]  }
 0x46f   : > { %12970 = vmatprep.subr.bf16.mxu0 %v13871_v1  ;;  %v13709_v63 = vld [vmem:[%s16514_s7 + $0x1c0] sm:$0xff]   ;;  %v13711_v5 = vld [vmem:[%s16514_s7 + $0x188] sm:$0xff]   ;;  %v13856_v35 = vld.sshfl [vmem:[#allocation3 + $0x8] sm:$0xf pattern:$0x76325410] }
 0x470   : > { %12997 = vmatpush3.bf16.msra.mxu1 %v13671_v34  ;;  %v7535_v45 = vcombine.low %v15804_v42, %v15807_v43  ;;  %v7179_v15 = vcombine.low %v7171_v39, %v15781_v38  ;;  %v7717_v26 = vcombine.low %v7709_v28, %v7716_v6  ;;  %v8030_v34 = vshll.u32 %v11392_v23, 16  ;;  %v13704_v42 = vld [vmem:[%s16514_s7 + $0x1a8] sm:$0xff]   ;;  %v13705_v43 = vld [vmem:[%s16514_s7 + $0x1d0] sm:$0xff]   ;;  %v13726_v27 = vld [vmem:[%s16515_s8 + $0x20] sm:$0xff]  }
 0x471   : > { %12998 = vmatprep.subr.bf16.mxu1 %v13871_v1  ;;  %v13855_v58 = vld.sshfl [vmem:[#allocation3 + $0x10] sm:$0xf pattern:$0x76325410]  ;;  %v13716_v39 = vld [vmem:[%s16514_s7 + $0x230] sm:$0xff]   ;;  %v13725_v38 = vld [vmem:[%s16515_s8 + $0x28] sm:$0xff]  }
 0x472   : > { %12971 = vmatpush3.bf16.msra.mxu0 %v13670_v31  ;;  %v8027_v31 = vshrl.u32 %v11392_v23, 16  ;;  %v8032_v11 = vrot.slane %v8030_v34, 7 }
 0x473   : > { %12972 = vmatprep.subr.bf16.mxu0 %v13871_v1 }
 0x474   : > { %12999 = vmatpush3.bf16.msra.mxu1 %v13673_v46  ;;  %v7983_v46 = vcombine.high %v11392_v23, %v11392_v23  ;;  %v8029_v32 = vrot.slane %v8027_v31, 6 }
 0x475   : > { %13000 = vmatprep.subr.bf16.mxu1 %v13871_v1 }
 0x476   : > { %12973 = vmatpush3.bf16.msra.mxu0 %v13672_v47  ;;  %v13699_v47 = vld [vmem:[%s16514_s7 + $0x1e8] sm:$0xff]  }
 0x477   : > { %12974 = vmatprep.subr.bf16.mxu0 %v13871_v1 }
 0x478   : > { %13001 = vmatpush3.bf16.msra.mxu1 %v13675_v30  ;;  %v8036_v30 = vshll.u32 %v7983_v46, 16 }
 0x479   : > { %13026 = vmatprep.subr.bf16.mxu1 %v13871_v1 }
 0x47a   : > { %12975 = vmatpush3.bf16.msra.mxu0 %v13674_v19  ;;  %v8033_v19 = vor.u32 %v8032_v11, %v8029_v32 }
 0x47b   : > { %12976 = vmatprep.subr.bf16.mxu0 %v13871_v1  ;;  %13003 = vmatmul.mubr.bf16.vlgmr.msra.gmra.mxu1 %v7313_v62  ;;  %v13708_v62 = vld [vmem:[%s16514_s7 + $0x198] sm:$0xff]  }
 0x47c   : > { %13027 = vmatpush3.bf16.msra.mxu1 %v13679_v53  ;;  %13042 = vmatprep.mubr.msk.bf16.mxu1 %vm13872_vm0, %v13871_v1  ;;  %v8038_v53 = vrot.slane %v8036_v30, 7 }
 0x47d   : > { %13028 = vmatprep.subr.bf16.mxu1 %v13871_v1 }
 0x47e   : > { %12977 = vmatpush3.bf16.msra.mxu0 %v13676_v36  ;;  %v8034_v36 = vrot.slane %v8033_v19, 2 }
 0x47f   : > { %12978 = vmatprep.subr.bf16.mxu0 %v13871_v1 }
 0x480   : > { %13029 = vmatpush3.bf16.msra.mxu1 %v13681_v4 }
 0x481   : > { %13030 = vmatprep.subr.bf16.mxu1 %v13871_v1 }
 0x482   : > { %12979 = vmatpush3.bf16.msra.mxu0 %v13680_v2 }
 0x483   : > { %12980 = vmatprep.subr.bf16.mxu0 %v13871_v1 }
 0x484   : > { %13031 = vmatpush3.bf16.msra.mxu1 %v13683_v9  ;;  %v7851_v9 = vcombine.low %v13856_v35, %v13855_v58 }
 0x485   : > { %13032 = vmatprep.subr.bf16.mxu1 %v13871_v1 }
 0x486   : > { %12981 = vmatpush3.bf16.msra.mxu0 %v13682_v7  ;;  %v13715_v7 = vld [vmem:[%s16514_s7 + $0x238] sm:$0xff]  }
 0x487   : > { %13006 = vmatprep.subr.bf16.mxu0 %v13871_v1 }
 0x488   : > { %13033 = vmatpush3.bf16.msra.mxu1 %v13685_v0  ;;  %v13718_v0 = vld [vmem:[%s16514_s7 + $0x220] sm:$0xff]  }
 0x489   : > { %12983 = vmatmul.mubr.bf16.vlgmr.msra.gmra.mxu0 %v7179_v15  ;;  %13034 = vmatprep.subr.bf16.mxu1 %v13871_v1  ;;  %v13719_v15 = vld [vmem:[%s16514_s7 + $0x218] sm:$0xff]  }
 0x48a   : > { %13007 = vmatpush3.bf16.msra.mxu0 %v13684_v55  ;;  %13022 = vmatprep.mubr.msk.bf16.mxu0 %vm13872_vm0, %v13871_v1  ;;  %v13717_v55 = vld [vmem:[%s16514_s7 + $0x228] sm:$0xff]  }
 0x48b   : > { %13008 = vmatprep.subr.bf16.mxu0 %v13871_v1 }
 0x48c   : > { %13035 = vmatpush3.bf16.msra.mxu1 %v13687_v20  ;;  %v13721_v20 = vld [vmem:[%s16514_s7 + $0x208] sm:$0xff]  }
 0x48d   : > { %13036 = vmatprep.subr.bf16.mxu1 %v13871_v1 }
 0x48e   : > { %13009 = vmatpush3.bf16.msra.mxu0 %v13686_v17  ;;  %v13720_v17 = vld [vmem:[%s16514_s7 + $0x210] sm:$0xff]  }
 0x48f   : > { %13010 = vmatprep.subr.bf16.mxu0 %v13871_v1 }
 0x490   : > { %13037 = vmatpush3.bf16.msra.mxu1 %v13689_v60  ;;  %v13723_v60 = vld [vmem:[%s16515_s8 + $0x38] sm:$0xff]  }
 0x491   : > { %13038 = vmatprep.subr.bf16.mxu1 %v13871_v1 }
 0x492   : > { %13011 = vmatpush3.bf16.msra.mxu0 %v13688_v21  ;;  %v13722_v21 = vld [vmem:[%s16514_s7 + $0x200] sm:$0xff]  }
 0x493   : > { %13012 = vmatprep.subr.bf16.mxu0 %v13871_v1 }
 0x494   : > { %13039 = vmatpush3.bf16.msra.mxu1 %v13691_v10  ;;  %v13727_v10 = vld [vmem:[%s16515_s8 + $0x18] sm:$0xff]  }
 0x495   : > { %13040 = vmatprep.subr.bf16.mxu1 %v13871_v1 }
 0x496   : > { %13013 = vmatpush3.bf16.msra.mxu0 %v13690_v3  ;;  %v13724_v3 = vld [vmem:[%s16515_s8 + $0x30] sm:$0xff]  }
 0x497   : > { %13014 = vmatprep.subr.bf16.mxu0 %v13871_v1 }
 0x498   : > { %13041 = vmatpush3.bf16.msra.mxu1 %v13693_v40 }
 0x499   : > { %13066 = vmatprep.subr.bf16.mxu1 %v13871_v1 }
 0x49a   : > { %13015 = vmatpush3.bf16.msra.mxu0 %v13692_v59 }
 0x49b   : > { %13016 = vmatprep.subr.bf16.mxu0 %v13871_v1  ;;  %13043 = vmatmul.mubr.bf16.vlgmr.msra.gmra.mxu1 %v7717_v26 }
 0x49c   : > { %13067 = vmatpush3.bf16.msra.mxu1 %v13695_v22  ;;  %13082 = vmatprep.mubr.msk.bf16.mxu1 %vm13872_vm0, %v13871_v1 }
 0x49d   : > { %13068 = vmatprep.subr.bf16.mxu1 %v13871_v1 }
 0x49e   : > { %13017 = vmatpush3.bf16.msra.mxu0 %v13694_v14  ;;  %v13728_v14 = vld [vmem:[%s16515_s8 + $0x10] sm:$0xff]  }
 0x49f   : > { %13018 = vmatprep.subr.bf16.mxu0 %v13871_v1 }
 0x4a0   : > { %13069 = vmatpush3.bf16.msra.mxu1 %v13697_v13  ;;  %v13730_v13 = vld [vmem:[%s16515_s8] sm:$0xff]  }
 0x4a1   : > { %13070 = vmatprep.subr.bf16.mxu1 %v13871_v1 }
 0x4a2   : > { %13019 = vmatpush3.bf16.msra.mxu0 %v13696_v48  ;;  %v13729_v48 = vld [vmem:[%s16515_s8 + $0x8] sm:$0xff]  }
 0x4a3   : > { %13020 = vmatprep.subr.bf16.mxu0 %v13871_v1 }
 0x4a4   : > { %13071 = vmatpush3.bf16.msra.mxu1 %v13699_v47 }
 0x4a5   : > { %13072 = vmatprep.subr.bf16.mxu1 %v13871_v1 }
 0x4a6   : > { %13021 = vmatpush3.bf16.msra.mxu0 %v13698_v8 }
 0x4a7   : > { %13046 = vmatprep.subr.bf16.mxu0 %v13871_v1 }
 0x4a8   : > { %13073 = vmatpush3.bf16.msra.mxu1 %v13701_v52 }
 0x4a9   : > { %13023 = vmatmul.mubr.bf16.vlgmr.msra.gmra.mxu0 %v7535_v45  ;;  %13074 = vmatprep.subr.bf16.mxu1 %v13871_v1  ;;  %v8039_v45 = vsel %vm14033_vm7, %v8034_v36, %v8038_v53 }
 0x4aa   : > { %13047 = vmatpush3.bf16.msra.mxu0 %v13700_v51  ;;  %13062 = vmatprep.mubr.msk.bf16.mxu0 %vm13872_vm0, %v13871_v1  ;;  %v8058_v57 = vcombine.low %v15790_v37, %v8039_v45  ;;  %v13710_v37 = vld [vmem:[%s16514_s7 + $0x190] sm:$0xff]  }
 0x4ab   : > { %13048 = vmatprep.subr.bf16.mxu0 %v13871_v1 }
 0x4ac   : > { %13075 = vmatpush3.bf16.msra.mxu1 %v13703_v50  ;;  %v8072_v2 = vrot.slane %v8058_v57, %v14014_v33 }
 0x4ad   : > { %13076 = vmatprep.subr.bf16.mxu1 %v13871_v1 }
 0x4ae   : > { %13049 = vmatpush3.bf16.msra.mxu0 %v13702_v41  ;;  %v8073_v4 = vcombine.low %v15748_v12, %v8072_v2  ;;  %v13712_v12 = vld [vmem:[%s16514_s7 + $0x180] sm:$0xff]  }
 0x4af   : > { %13050 = vmatprep.subr.bf16.mxu0 %v13871_v1 }
 0x4b0   : > { %13077 = vmatpush3.bf16.msra.mxu1 %v13705_v43 }
 0x4b1   : > { %13078 = vmatprep.subr.bf16.mxu1 %v13871_v1 }
 0x4b2   : > { %13051 = vmatpush3.bf16.msra.mxu0 %v13704_v42 }
 0x4b3   : > { %13052 = vmatprep.subr.bf16.mxu0 %v13871_v1 }
 0x4b4   : > { %13079 = vmatpush3.bf16.msra.mxu1 %v13707_v54 }
 0x4b5   : > { %13080 = vmatprep.subr.bf16.mxu1 %v13871_v1 }
 0x4b6   : > { %13053 = vmatpush3.bf16.msra.mxu0 %v13706_v56 }
 0x4b7   : > { %13054 = vmatprep.subr.bf16.mxu0 %v13871_v1 }
 0x4b8   : > { %13081 = vmatpush3.bf16.msra.mxu1 %v13709_v63 }
 0x4b9   : > { %13106 = vmatprep.subr.bf16.mxu1 %v13871_v1 }
 0x4ba   : > { %13055 = vmatpush3.bf16.msra.mxu0 %v13708_v62 }
 0x4bb   : > { %13056 = vmatprep.subr.bf16.mxu0 %v13871_v1  ;;  %13083 = vmatmul.mubr.bf16.vlgmr.msra.gmra.mxu1 %v8073_v4 }
 0x4bc   : > { %13122 = vmatprep.mubr.msk.bf16.mxu1 %vm13872_vm0, %v13871_v1  ;;  %13107 = vmatpush3.bf16.msra.mxu1 %v13723_v60 }
 0x4bd   : > { %13108 = vmatprep.subr.bf16.mxu1 %v13871_v1 }
 0x4be   : > { %13057 = vmatpush3.bf16.msra.mxu0 %v13710_v37 }
 0x4bf   : > { %13058 = vmatprep.subr.bf16.mxu0 %v13871_v1 }
 0x4c0   : > { %13109 = vmatpush3.bf16.msra.mxu1 %v13724_v3 }
 0x4c1   : > { %13110 = vmatprep.subr.bf16.mxu1 %v13871_v1 }
 0x4c2   : > { %13059 = vmatpush3.bf16.msra.mxu0 %v13711_v5 }
 0x4c3   : > { %13060 = vmatprep.subr.bf16.mxu0 %v13871_v1 }
 0x4c4   : > { %13111 = vmatpush3.bf16.msra.mxu1 %v13725_v38 }
 0x4c5   : > { %13112 = vmatprep.subr.bf16.mxu1 %v13871_v1 }
 0x4c6   : > { %13061 = vmatpush3.bf16.msra.mxu0 %v13712_v12 }
 0x4c7   : > { %13086 = vmatprep.subr.bf16.mxu0 %v13871_v1 }
 0x4c8   : > { %13113 = vmatpush3.bf16.msra.mxu1 %v13726_v27 }
 0x4c9   : > { %13063 = vmatmul.mubr.bf16.vlgmr.msra.gmra.mxu0 %v7851_v9  ;;  %13114 = vmatprep.subr.bf16.mxu1 %v13871_v1 }
 0x4ca   : > { %13087 = vmatpush3.bf16.msra.mxu0 %v13715_v7  ;;  %13102 = vmatprep.mubr.msk.bf16.mxu0 %vm13872_vm0, %v13871_v1 }
 0x4cb   : > { %13088 = vmatprep.subr.bf16.mxu0 %v13871_v1 }
 0x4cc   : > { %13115 = vmatpush3.bf16.msra.mxu1 %v13727_v10 }
 0x4cd   : > { %13116 = vmatprep.subr.bf16.mxu1 %v13871_v1 }
 0x4ce   : > { %13089 = vmatpush3.bf16.msra.mxu0 %v13716_v39 }
 0x4cf   : > { %13090 = vmatprep.subr.bf16.mxu0 %v13871_v1 }
 0x4d0   : > { %13117 = vmatpush3.bf16.msra.mxu1 %v13728_v14  ;;  %v13738_v14 = vld [vmem:[%s16514_s7 + $0x2a8] sm:$0xff]  }
 0x4d1   : > { %13118 = vmatprep.subr.bf16.mxu1 %v13871_v1 }
 0x4d2   : > { %13091 = vmatpush3.bf16.msra.mxu0 %v13717_v55 }
 0x4d3   : > { %13092 = vmatprep.subr.bf16.mxu0 %v13871_v1 }
 0x4d4   : > { %13119 = vmatpush3.bf16.msra.mxu1 %v13729_v48  ;;  %v13742_v48 = vld [vmem:[%s16514_s7 + $0x298] sm:$0xff]  }
 0x4d5   : > { %13120 = vmatprep.subr.bf16.mxu1 %v13871_v1 }
 0x4d6   : > { %13093 = vmatpush3.bf16.msra.mxu0 %v13718_v0 }
 0x4d7   : > { %13094 = vmatprep.subr.bf16.mxu0 %v13871_v1 }
 0x4d8   : > { %13121 = vmatpush3.bf16.msra.mxu1 %v13730_v13  ;;  %v13741_v13 = vld [vmem:[%s16514_s7 + $0x248] sm:$0xff]  }
 0x4d9   : > { %13146 = vmatprep.subr.bf16.mxu1 %v13871_v1 }
 0x4da   : > { %13095 = vmatpush3.bf16.msra.mxu0 %v13719_v15 }
 0x4db   : > { %13096 = vmatprep.subr.bf16.mxu0 %v13871_v1 }
 0x4de   : > { %13097 = vmatpush3.bf16.msra.mxu0 %v13720_v17 }
 0x4df   : > { %13098 = vmatprep.subr.bf16.mxu0 %v13871_v1 }
 0x4e2   : > { %13099 = vmatpush3.bf16.msra.mxu0 %v13721_v20 }
 0x4e3   : > { %13100 = vmatprep.subr.bf16.mxu0 %v13871_v1 }
 0x4e6   : > { %13101 = vmatpush3.bf16.msra.mxu0 %v13722_v21 }
 0x4e7   : > { %13126 = vmatprep.subr.bf16.mxu0 %v13871_v1 }
 0x4e9   : > { %13103 = vmatmul.mubr.bf16.vlgmr.msra.gmra.mxu0 %v8255_v25 }
 0x4ea   : > { %13142 = vmatprep.mubr.msk.bf16.mxu0 %vm13872_vm0, %v13871_v1 }
 0x51b   : > { %v7083_v25 = vpop.f32.mrf.mxu1 }
 0x51d   : > { %v12964_v29 = vpop.f32.mrf.mxu1 }
 0x51e   : > { %v13731_v29 = vld [vmem:[%s16514_s7 + $0x278] sm:$0xff]  }
 0x51f   : > { %v7086_v44 = vpop.f32.mrf.mxu1 }
 0x521   : > { %v12965_v59 = vpop.f32.mrf.mxu1 }
 0x522   : > { %v13734_v59 = vld [vmem:[%s16514_s7 + $0x2b8] sm:$0xff]  }
 0x523   : > { %13127 = vmatpush3.bf16.msra.mxu0 %v13734_v59 }
 0x524   : > { %13128 = vmatprep.subr.bf16.mxu0 %v13871_v1 }
 0x529   : > { %v6972_v40 = vpop.f32.mrf.mxu0 }
 0x52a   : > { %v7084_v6 = vadd.f32 %v7083_v25, %v6972_v40  ;;  %v13733_v40 = vld [vmem:[%s16514_s7 + $0x268] sm:$0xff]  }
 0x52b   : > { %v12944_v28 = vpop.f32.mrf.mxu0 }
 0x52c   : > { %v13735_v28 = vld [vmem:[%s16514_s7 + $0x260] sm:$0xff]  }
 0x52d   : > { %v6975_v22 = vpop.f32.mrf.mxu0 }
 0x52e   : > { %v7087_v26 = vadd.f32 %v7086_v44, %v6975_v22  ;;  %v13732_v44 = vld [vmem:[%s16514_s7 + $0x270] sm:$0xff]   ;;  %v13737_v22 = vld [vmem:[%s16514_s7 + $0x258] sm:$0xff]  }
 0x52f   : > { %v12945_v23 = vpop.f32.mrf.mxu0 }
 0x530   : > { %v13739_v23 = vld [vmem:[%s16514_s7 + $0x250] sm:$0xff]  }
 0x53b   : > { %v7397_v31 = vpop.f32.mrf.mxu1 }
 0x53d   : > { %v13004_v34 = vpop.f32.mrf.mxu1 }
 0x53e   : > { %v13743_v34 = vld [vmem:[%s16514_s7 + $0x240] sm:$0xff]  }
 0x53f   : > { %v7400_v8 = vpop.f32.mrf.mxu1 }
 0x541   : > { %v13005_v47 = vpop.f32.mrf.mxu1 }
 0x542   : > { %v13750_v47 = vld [vmem:[%s16514_s7 + $0x280] sm:$0xff]  }
 0x549   : > { %v7263_v46 = vpop.f32.mrf.mxu0 }
 0x54a   : > { %v7270_v32 = vadd.f32 %v7263_v46, %v7084_v6  ;;  %v13736_v6 = vld [vmem:[%s16514_s7 + $0x2b0] sm:$0xff]  }
 0x54b   : > { %v12984_v11 = vpop.f32.mrf.mxu0  ;;  %13129 = vmatpush3.bf16.msra.mxu0 %v13736_v6 }
 0x54c   : > { %v7404_v51 = vadd.f32 %v7397_v31, %v7270_v32  ;;  %13130 = vmatprep.subr.bf16.mxu0 %v13871_v1  ;;  %v13744_v31 = vld [vmem:[%s16514_s7 + $0x290] sm:$0xff]  }
 0x54d   : > { %v7266_v52 = vpop.f32.mrf.mxu0 }
 0x54e   : > { %v7271_v19 = vadd.f32 %v7266_v52, %v7087_v26  ;;  %v13740_v26 = vld [vmem:[%s16514_s7 + $0x2a0] sm:$0xff]  }
 0x54f   : > { %v12985_v30 = vpop.f32.mrf.mxu0  ;;  %13131 = vmatpush3.bf16.msra.mxu0 %v13738_v14 }
 0x550   : > { %v7405_v41 = vadd.f32 %v7400_v8, %v7271_v19  ;;  %13132 = vmatprep.subr.bf16.mxu0 %v13871_v1  ;;  %v13748_v8 = vld [vmem:[%s16514_s7 + $0x288] sm:$0xff]  }
 0x553   : > { %13133 = vmatpush3.bf16.msra.mxu0 %v13740_v26 }
 0x554   : > { %13134 = vmatprep.subr.bf16.mxu0 %v13871_v1 }
 0x557   : > { %13135 = vmatpush3.bf16.msra.mxu0 %v13742_v48 }
 0x558   : > { %13136 = vmatprep.subr.bf16.mxu0 %v13871_v1 }
 0x55b   : > { %v7801_v50 = vpop.f32.mrf.mxu1  ;;  %13137 = vmatpush3.bf16.msra.mxu0 %v13744_v31 }
 0x55c   : > { %13138 = vmatprep.subr.bf16.mxu0 %v13871_v1 }
 0x55d   : > { %v13044_v36 = vpop.f32.mrf.mxu1 }
 0x55f   : > { %v7804_v53 = vpop.f32.mrf.mxu1  ;;  %13139 = vmatpush3.bf16.msra.mxu0 %v13748_v8 }
 0x560   : > { %13140 = vmatprep.subr.bf16.mxu0 %v13871_v1 }
 0x561   : > { %v13045_v42 = vpop.f32.mrf.mxu1 }
 0x563   : > { %13141 = vmatpush3.bf16.msra.mxu0 %v13750_v47 }
 0x564   : > { %13166 = vmatprep.subr.bf16.mxu0 %v13871_v1 }
 0x569   : > { %v7619_v43 = vpop.f32.mrf.mxu0 }
 0x56a   : > { %v7626_v45 = vadd.f32 %v7619_v43, %v7404_v51 }
 0x56b   : > { %v13024_v56 = vpop.f32.mrf.mxu0 }
 0x56c   : > { %v7808_v54 = vadd.f32 %v7801_v50, %v7626_v45 }
 0x56d   : > { %v7622_v57 = vpop.f32.mrf.mxu0 }
 0x56e   : > { %v7627_v62 = vadd.f32 %v7622_v57, %v7405_v41 }
 0x56f   : > { %v13025_v63 = vpop.f32.mrf.mxu0 }
 0x570   : > { %v7809_v2 = vadd.f32 %v7804_v53, %v7627_v62 }
 0x57b   : > { %v8157_v37 = vpop.f32.mrf.mxu1 }
 0x57d   : > { %v13084_v4 = vpop.f32.mrf.mxu1 }
 0x57e   : > { %v8520_v4 = vld [vmem:[#allocation3 + $0x4] sm:$0x7] }
 0x57f   : > { %v8160_v5 = vpop.f32.mrf.mxu1 }
 0x581   : > { %v13085_v58 = vpop.f32.mrf.mxu1 }
 0x589   : > { %v7935_v35 = vpop.f32.mrf.mxu0 }
 0x58a   : > { %v7942_v39 = vadd.f32 %v7935_v35, %v7808_v54 }
 0x58b   : > { %v13064_v12 = vpop.f32.mrf.mxu0 }
 0x58c   : > { %v8164_v15 = vadd.f32 %v8157_v37, %v7942_v39  ;;  %v11477_v37 = vld.sshfl [vmem:[#allocation3] sm:$0x13 pattern:$0x76325410]  ;;  %v8523_v12 = vld [vmem:[#allocation3 + $0x8] sm:$0x7] }
 0x58d   : > { %v7938_v7 = vpop.f32.mrf.mxu0  ;;  %v8594_v39 = vshrl.u32 %v11477_v37, 16 }
 0x58e   : > { %v7943_v55 = vadd.f32 %v7938_v7, %v7809_v2 }
 0x58f   : > { %v13065_v9 = vpop.f32.mrf.mxu0 }
 0x590   : > { %v8165_v21 = vadd.f32 %v8160_v5, %v7943_v55 }
 0x5a9   : > { %v8339_v0 = vpop.f32.mrf.mxu0 }
 0x5aa   : > { %v8346_v20 = vadd.f32 %v8339_v0, %v8164_v15 }
 0x5ab   : > { %v13104_v17 = vpop.f32.mrf.mxu0 }
 0x5ac   : > { %v8348_v27 = vmax.f32 %v8346_v20, 0.0  ;;  %v8597_v17 = vshll.u32 %v11477_v37, 16 }
 0x5ad   : > { %v8342_v60 = vpop.f32.mrf.mxu0 }
 0x5ae   : > { %v8347_v3 = vadd.f32 %v8342_v60, %v8165_v21  ;;  %v8526_v60 = vld [vmem:[#allocation3 + $0xc] sm:$0x7] }
 0x5af   : > { %v13105_v38 = vpop.f32.mrf.mxu0 }
 0x5b0   : > { %v8349_v25 = vmax.f32 %v8347_v3, 0.0  ;;  %v8568_v3 = vcombine.high %v11477_v37, %v11477_v37 }
 0x5b2   : > { %v8350_v10 = vpack.c.bf16 %v8349_v25, %v8348_v27  ;;  %v8529_v27 = vld [vmem:[#allocation3 + $0x10] sm:$0x7] }
 0x5b4   : > { %13123 = vmatmul.mubr.bf16.vlgmr.msra.gmra.mxu1 %v8350_v10  ;;  %v8596_v10 = vrot.slane %v8594_v39, 6 }
 0x5b5   : > { %13162 = vmatprep.mubr.msk.bf16.mxu1 %vm13872_vm0, %v13871_v1  ;;  %13147 = vmatpush3.bf16.msra.mxu1 %v13731_v29  ;;  %v8599_v29 = vrot.slane %v8597_v17, 7 }
 0x5b6   : > { %13148 = vmatprep.subr.bf16.mxu1 %v13871_v1 }
 0x5b7   : > { %v8600_v14 = vor.u32 %v8599_v29, %v8596_v10 }
 0x5b9   : > { %13149 = vmatpush3.bf16.msra.mxu1 %v13732_v44  ;;  %v8603_v44 = vshll.u32 %v8568_v3, 16 }
 0x5ba   : > { %13150 = vmatprep.subr.bf16.mxu1 %v13871_v1 }
 0x5bb   : > { %v8605_v48 = vrot.slane %v8603_v44, 7 }
 0x5bd   : > { %13151 = vmatpush3.bf16.msra.mxu1 %v13733_v40 }
 0x5be   : > { %13152 = vmatprep.subr.bf16.mxu1 %v13871_v1 }
 0x5c1   : > { %13153 = vmatpush3.bf16.msra.mxu1 %v13735_v28 }
 0x5c2   : > { %13154 = vmatprep.subr.bf16.mxu1 %v13871_v1 }
 0x5c5   : > { %13155 = vmatpush3.bf16.msra.mxu1 %v13737_v22 }
 0x5c6   : > { %13156 = vmatprep.subr.bf16.mxu1 %v13871_v1 }
 0x5c9   : > { %13157 = vmatpush3.bf16.msra.mxu1 %v13739_v23 }
 0x5ca   : > { %13158 = vmatprep.subr.bf16.mxu1 %v13871_v1 }
 0x5cd   : > { %13159 = vmatpush3.bf16.msra.mxu1 %v13741_v13 }
 0x5ce   : > { %13160 = vmatprep.subr.bf16.mxu1 %v13871_v1 }
 0x5d1   : > { %13161 = vmatpush3.bf16.msra.mxu1 %v13743_v34 }
 0x5d2   : > { %13186 = vmatprep.subr.bf16.mxu1 %v13871_v1 }
 0x674   : > { %v8451_v46 = vpop.f32.mrf.mxu1 }
 0x675   : > { %v16136_v32 = vadd.f32 %v8451_v46, %v15704_v18 }
 0x676   : > { %v13124_v11 = vpop.f32.mrf.mxu1 }
 0x677   : > { %v8464_v51 = vmax.f32 %v16136_v32, 0.0  ;;  %v8601_v11 = vrot.slane %v8600_v14, 2 }
 0x678   : > { %v8454_v52 = vpop.f32.mrf.mxu1 }
 0x679   : > { %v8468_v19 = vcombine.high %v8464_v51, %v8464_v51  ;;  %v11756_v30 = vpack.c.bf16 %v8464_v51, %v8464_v51  ;;  %v16140_v41 = vadd.f32 %v8454_v52, %v15707_v61 }
 0x67a   : > { %v13125_v50 = vpop.f32.mrf.mxu1 }
 0x67b   : > { %v11757_v36 = vpack.c.bf16 %v8468_v19, %v8468_v19  ;;  %v8489_v53 = vshrl.u32 %v11756_v30, 16  ;;  %v8465_v42 = vmax.f32 %v16140_v41, 0.0  ;;  %v8492_v45 = vshll.u32 %v11756_v30, 16  ;;  %v13747_v50 = vld [vmem:[%s16514_s7 + $0x338] sm:$0xff]  }
 0x67d   : > { %v8491_v43 = vrot.slane %v8489_v53, 7  ;;  %v8496_v56 = vshrl.u32 %v11757_v36, 16  ;;  %v8469_v54 = vcombine.high %v8465_v42, %v8465_v42  ;;  %v11758_v18 = vpack.c.bf16 %v8465_v42, %v8465_v42 }
 0x67e   : > { %v8499_v63 = vshll.u32 %v11757_v36, 16 }
 0x67f   : > { %v8494_v57 = vor.u32 %v8492_v45, %v8491_v43  ;;  %v8498_v62 = vrot.slane %v8496_v56, 7  ;;  %v11759_v2 = vpack.c.bf16 %v8469_v54, %v8469_v54  ;;  %v8503_v5 = vshrl.u32 %v11758_v18, 16  ;;  %v11684_v54 = vld.sshfl [vmem:[#allocation3 + $0x14] sm:$0x12 pattern:$0x76325410] }
 0x680   : > { %v8506_v9 = vshll.u32 %v11758_v18, 16 }
 0x681   : > { %v8501_v58 = vor.u32 %v8499_v63, %v8498_v62  ;;  %v8521_v61 = vsel %vm14462_vm2, %v8494_v57, %v8520_v4  ;;  %v8510_v35 = vshrl.u32 %v11759_v2, 16  ;;  %v8505_v7 = vrot.slane %v8503_v5, 7  ;;  %v13749_v4 = vld [vmem:[%s16514_s7 + $0x330] sm:$0xff]  }
 0x682   : > { %8522 = vst [vmem:[#allocation3 + $0x4] sm:$0x7] %v8521_v61  ;;  %v8513_v15 = vshll.u32 %v11759_v2, 16  ;;  %v8606_v2 = vsel %vm14033_vm7, %v8601_v11, %v8605_v48 }
 0x683   : > { %v8524_v55 = vsel %vm14462_vm2, %v8501_v58, %v8523_v12  ;;  %v8512_v0 = vrot.slane %v8510_v35, 7  ;;  %v8508_v20 = vor.u32 %v8506_v9, %v8505_v7  ;;  %v9999_v12 = vcombine.high %v11684_v54, %v11684_v54 }
 0x684   : > { %8525 = vst [vmem:[#allocation3 + $0x8] sm:$0x7] %v8524_v55  ;;  %v11688_v55 = vrot.slane %v11684_v54, 9 }
 0x685   : > { %v8515_v21 = vor.u32 %v8513_v15, %v8512_v0  ;;  %v8527_v38 = vsel %vm14462_vm2, %v8508_v20, %v8526_v60 }
 0x686   : > { %8528 = vst [vmem:[#allocation3 + $0xc] sm:$0x7] %v8527_v38 }
 0x687   : > { %v8530_v25 = vsel %vm14462_vm2, %v8515_v21, %v8529_v27 }
 0x688   : > { %8531 = vst [vmem:[#allocation3 + $0x10] sm:$0x7] %v8530_v25  ;;  %v13751_v25 = vld [vmem:[%s16514_s7 + $0x328] sm:$0xff]  }
 0x689   : > { %v13857_v59 = vld.sshfl [vmem:[#allocation3] sm:$0xf pattern:$0x76325410] }
 0x68a   : > { %v11478_v40 = vld.sshfl [vmem:[#allocation3 + $0x4] sm:$0x13 pattern:$0x76325410] }
 0x68b   : > { %v11479_v6 = vld.sshfl [vmem:[#allocation3 + $0x8] sm:$0x13 pattern:$0x76325410]  ;;  %v8576_v28 = vcombine.high %v11478_v40, %v11478_v40  ;;  %v8608_v22 = vshrl.u32 %v11478_v40, 16  ;;  %v8611_v26 = vshll.u32 %v11478_v40, 16 }
 0x68c   : > { %v8622_v23 = vshrl.u32 %v11479_v6, 16  ;;  %v8625_v31 = vshll.u32 %v11479_v6, 16  ;;  %v8584_v46 = vcombine.high %v11479_v6, %v11479_v6  ;;  %v11515_v37 = vld.sshfl [vmem:[#allocation3 + $0x8] sm:$0x12 pattern:$0x76325410] }
 0x68d   : > { %v8617_v13 = vshll.u32 %v8576_v28, 16  ;;  %v13858_v34 = vld.sshfl [vmem:[#allocation3 + $0x8] sm:$0xf pattern:$0x76325410]  ;;  %v8610_v8 = vrot.slane %v8608_v22, 6  ;;  %v8915_v7 = vcombine.high %v11515_v37, %v11515_v37 }
 0x68e   : > { %v8613_v24 = vrot.slane %v8611_v26, 7  ;;  %v11480_v47 = vld.sshfl [vmem:[#allocation3 + $0xc] sm:$0x13 pattern:$0x76325410]  ;;  %v8624_v51 = vrot.slane %v8622_v23, 6  ;;  %v8793_v42 = vcombine.low %v13857_v59, %v13858_v34 }
 0x68f   : > { %v8592_v52 = vcombine.high %v11480_v47, %v11480_v47  ;;  %v8627_v30 = vrot.slane %v8625_v31, 7  ;;  %v8636_v36 = vshrl.u32 %v11480_v47, 16  ;;  %v8639_v53 = vshll.u32 %v11480_v47, 16  ;;  %v13752_v34 = vld [vmem:[%s16514_s7 + $0x2f8] sm:$0xff]  }
 0x690   : > { %v8614_v19 = vor.u32 %v8613_v24, %v8610_v8  ;;  %v8619_v45 = vrot.slane %v8617_v13, 7  ;;  %v8631_v18 = vshll.u32 %v8584_v46, 16  ;;  %13163 = vmatmul.mubr.bf16.vlgmr.msra.gmra.mxu1 %v8793_v42  ;;  %v11516_v35 = vld.sshfl [vmem:[#allocation3 + $0xc] sm:$0x12 pattern:$0x76325410] }
 0x691   : > { %v8628_v56 = vor.u32 %v8627_v30, %v8624_v51  ;;  %v8638_v57 = vrot.slane %v8636_v36, 6  ;;  %v8641_v62 = vrot.slane %v8639_v53, 7  ;;  %v8645_v63 = vshll.u32 %v8592_v52, 16  ;;  %13187 = vmatpush3.bf16.msra.mxu1 %v13747_v50  ;;  %13202 = vmatprep.mubr.msk.bf16.mxu1 %vm13872_vm0, %v13871_v1  ;;  %v13753_v8 = vld [vmem:[%s16514_s7 + $0x320] sm:$0xff]   ;;  %v13754_v53 = vld [vmem:[%s16514_s7 + $0x2f0] sm:$0xff]   ;;  %v13755_v42 = vld [vmem:[%s16514_s7 + $0x318] sm:$0xff]  }
 0x692   : > { %v8615_v43 = vrot.slane %v8614_v19, 2  ;;  %13188 = vmatprep.subr.bf16.mxu1 %v13871_v1  ;;  %v8923_v9 = vcombine.high %v11516_v35, %v11516_v35  ;;  %v11600_v39 = vld.sshfl [vmem:[#allocation3 + $0x10] sm:$0x12 pattern:$0x76325410]  ;;  %v8633_v0 = vrot.slane %v8631_v18, 7 }
 0x693   : > { %v8629_v58 = vrot.slane %v8628_v56, 2  ;;  %v8642_v61 = vor.u32 %v8641_v62, %v8638_v57  ;;  %v8647_v17 = vrot.slane %v8645_v63, 7  ;;  %v11520_v20 = vrot.slane %v11516_v35, 9  ;;  %v13756_v62 = vld [vmem:[%s16514_s7 + $0x2e8] sm:$0xff]   ;;  %v13757_v63 = vld [vmem:[%s16514_s7 + $0x310] sm:$0xff]  }
 0x694   : > { %v16161_v5 = vsel %vm14033_vm7, %v8615_v43, %v8619_v45  ;;  %v8934_v60 = vrot.slane %v8915_v7, 7  ;;  %v8938_v3 = vrot.slane %v8923_v9, 7  ;;  %v9461_v38 = vcombine.high %v11600_v39, %v11600_v39  ;;  %v11572_v27 = vld.sshfl [vmem:[#allocation3 + $0x10] sm:$0x13 pattern:$0x76325410] }
 0x695   : > { %v8643_v15 = vrot.slane %v8642_v61, 2  ;;  %v8666_v21 = vcombine.low %v8606_v2, %v16161_v5  ;;  %13189 = vmatpush3.bf16.msra.mxu1 %v13749_v4  ;;  %v8634_v10 = vsel %vm14033_vm7, %v8629_v58, %v8633_v0  ;;  %v11519_v44 = vrot.slane %v11515_v37, 9  ;;  %v13759_v58 = vld [vmem:[%s16514_s7 + $0x308] sm:$0xff]  }
 0x696   : > { %v10014_v59 = vrot.slane %v9999_v12, 7  ;;  %13190 = vmatprep.subr.bf16.mxu1 %v13871_v1  ;;  %v16177_v6 = vsel %vm15375_vm10, %v11520_v20, %v8938_v3  ;;  %v9476_v28 = vrot.slane %v9461_v38, 7  ;;  %v9239_v14 = vcombine.high %v11572_v27, %v11572_v27  ;;  %v11513_v61 = vld.sshfl [vmem:[#allocation3] sm:$0x12 pattern:$0x76325410] }
 0x697   : > { %v8648_v29 = vsel %vm14033_vm7, %v8643_v15, %v8647_v17  ;;  %v11604_v22 = vrot.slane %v11600_v39, 9  ;;  %v9283_v26 = vshrl.u32 %v11572_v27, 16  ;;  %v8674_v23 = vrot.slane %v8666_v21, %v14014_v33  ;;  %v13859_v12 = vld.sshfl [vmem:[#allocation3 + $0xc] sm:$0xf pattern:$0x76325410] }
 0x698   : > { %v8667_v40 = vcombine.low %v8634_v10, %v8648_v29  ;;  %v16185_v13 = vsel %vm15375_vm10, %v11519_v44, %v8934_v60  ;;  %v9286_v31 = vshll.u32 %v11572_v27, 16  ;;  %v10015_v11 = vsel %vm15375_vm10, %v11688_v55, %v10014_v59  ;;  %v11514_v7 = vld.sshfl [vmem:[#allocation3 + $0x4] sm:$0x12 pattern:$0x76325410]  ;;  %v13760_v39 = vld [vmem:[%s16514_s7 + $0x2d8] sm:$0xff]  }
 0x699   : > { %13191 = vmatpush3.bf16.msra.mxu1 %v13751_v25  ;;  %v8958_v24 = vcombine.low %v16185_v13, %v16177_v6  ;;  %v16197_v47 = vsel %vm15375_vm10, %v11604_v22, %v9476_v28  ;;  %v9285_v46 = vrot.slane %v9283_v26, 6  ;;  %v9292_v19 = vshll.u32 %v9239_v14, 16  ;;  %v13860_v9 = vld.sshfl [vmem:[#allocation3 + $0x4] sm:$0xf pattern:$0x76325410] }
 0x69a   : > { %v16181_v48 = vrot.slane %v8667_v40, %v14014_v33  ;;  %13192 = vmatprep.subr.bf16.mxu1 %v13871_v1  ;;  %v9288_v52 = vrot.slane %v9286_v31, 7  ;;  %v9313_v30 = vcombine.low %v16161_v5, %v8634_v10  ;;  %v10034_v36 = vcombine.low %v16197_v47, %v10015_v11  ;;  %v13758_v5 = vld [vmem:[%s16514_s7 + $0x2e0] sm:$0xff]   ;;  %v13762_v17 = vld [vmem:[%s16514_s7 + $0x2d0] sm:$0xff]   ;;  %v13765_v20 = vld [vmem:[%s16514_s7 + $0x3b8] sm:$0xff]  }
 0x69b   : > { %v16214_v43 = vrot.slane %v8958_v24, %v14014_v33  ;;  %v9294_v56 = vrot.slane %v9292_v19, 7  ;;  %v13761_v55 = vld [vmem:[%s16514_s7 + $0x300] sm:$0xff]   ;;  %v8899_v0 = vcombine.high %v11513_v61, %v11513_v61  ;;  %v8907_v15 = vcombine.high %v11514_v7, %v11514_v7  ;;  %v13766_v25 = vld [vmem:[%s16514_s7 + $0x2c8] sm:$0xff]   ;;  %v13767_v10 = vld [vmem:[%s16514_s7 + $0x3b0] sm:$0xff]  }
 0x69c   : > { %v8682_v51 = vcombine.low %v8674_v23, %v16181_v48  ;;  %v9289_v50 = vor.u32 %v9288_v52, %v9285_v46  ;;  %v16217_v54 = vrot.slane %v10034_v36, %v14014_v33  ;;  %v16237_v37 = vrot.slane %v9313_v30, %v14014_v33  ;;  %v13768_v40 = vld [vmem:[%s16514_s7 + $0x2c0] sm:$0xff]   ;;  %v13769_v28 = vld [vmem:[%s16514_s7 + $0x3a8] sm:$0xff]   ;;  %v13770_v14 = vld [vmem:[%s16514_s7 + $0x378] sm:$0xff]  }
 0x69d   : > { %13193 = vmatpush3.bf16.msra.mxu1 %v13753_v8  ;;  %v11517_v21 = vrot.slane %v11513_v61, 9  ;;  %v8926_v60 = vrot.slane %v8899_v0, 7  ;;  %v8930_v3 = vrot.slane %v8907_v15, 7  ;;  %v9107_v38 = vcombine.low %v13860_v9, %v13859_v12  ;;  %v13771_v22 = vld [vmem:[%s16514_s7 + $0x3a0] sm:$0xff]   ;;  %v13772_v23 = vld [vmem:[%s16514_s7 + $0x370] sm:$0xff]   ;;  %v13773_v31 = vld [vmem:[%s16514_s7 + $0x398] sm:$0xff]  }
 0x69e   : > { %13143 = vmatmul.mubr.bf16.vlgmr.msra.gmra.mxu0 %v8682_v51  ;;  %13194 = vmatprep.subr.bf16.mxu1 %v13871_v1  ;;  %v9290_v45 = vrot.slane %v9289_v50, 2  ;;  %v10049_v57 = vcombine.low %v16214_v43, %v16217_v54  ;;  %v11518_v27 = vrot.slane %v11514_v7, 9  ;;  %v13775_v8 = vld [vmem:[%s16514_s7 + $0x390] sm:$0xff]   ;;  %v13776_v24 = vld [vmem:[%s16514_s7 + $0x360] sm:$0xff]   ;;  %v13777_v46 = vld [vmem:[%s16514_s7 + $0x388] sm:$0xff]   ;;  %v9496_v11 = vcombine.low %v16177_v6, %v16197_v47 }
 0x69f   : > { %13167 = vmatpush3.bf16.msra.mxu0 %v13752_v34  ;;  %13182 = vmatprep.mubr.msk.bf16.mxu0 %vm13872_vm0, %v13871_v1  ;;  %v13774_v34 = vld [vmem:[%s16514_s7 + $0x368] sm:$0xff]   ;;  %v13778_v52 = vld [vmem:[%s16514_s7 + $0x358] sm:$0xff]   ;;  %v13779_v19 = vld [vmem:[%s16514_s7 + $0x380] sm:$0xff]  }
 0x6a0   : > { %13168 = vmatprep.subr.bf16.mxu0 %v13871_v1  ;;  %v16223_v18 = vsel %vm14033_vm7, %v9290_v45, %v9294_v56  ;;  %v8931_v44 = vsel %vm15375_vm10, %v11518_v27, %v8930_v3  ;;  %v9510_v30 = vrot.slane %v9496_v11, %v14014_v33  ;;  %v13781_v47 = vld [vmem:[%s16514_s7 + $0x438] sm:$0xff]   ;;  %v11656_v36 = vld.sshfl [vmem:[#allocation3 + $0x14] sm:$0x13 pattern:$0x76325410]  ;;  %v13797_v27 = vld [vmem:[%s16514_s7 + $0x3c8] sm:$0xff]  }
 0x6a1   : > { %13195 = vmatpush3.bf16.msra.mxu1 %v13755_v42  ;;  %v9314_v2 = vcombine.low %v8648_v29, %v16223_v18  ;;  %v8927_v29 = vsel %vm15375_vm10, %v11517_v21, %v8926_v60  ;;  %v9495_v51 = vcombine.low %v8931_v44, %v16185_v13  ;;  %v13780_v13 = vld [vmem:[%s16514_s7 + $0x350] sm:$0xff]   ;;  %v9821_v45 = vshrl.u32 %v11656_v36, 16  ;;  %v13786_v61 = vld [vmem:[%s16514_s7 + $0x3f8] sm:$0xff]   ;;  %v13787_v12 = vld [vmem:[%s16514_s7 + $0x420] sm:$0xff]  }
 0x6a2   : > { %13196 = vmatprep.subr.bf16.mxu1 %v13871_v1  ;;  %v8957_v59 = vcombine.low %v8927_v29, %v8931_v44  ;;  %v13783_v42 = vld [vmem:[%s16514_s7 + $0x430] sm:$0xff]   ;;  %v9824_v56 = vshll.u32 %v11656_v36, 16  ;;  %v13795_v60 = vld [vmem:[%s16514_s7 + $0x400] sm:$0xff]  }
 0x6a3   : > { %13169 = vmatpush3.bf16.msra.mxu0 %v13754_v53  ;;  %v16240_v4 = vrot.slane %v9314_v2, %v14014_v33  ;;  %v9503_v6 = vrot.slane %v9495_v51, %v14014_v33  ;;  %v13782_v53 = vld [vmem:[%s16514_s7 + $0x348] sm:$0xff]   ;;  %v9777_v2 = vcombine.high %v11656_v36, %v11656_v36  ;;  %v13802_v44 = vld [vmem:[%s16514_s7 + $0x470] sm:$0xff]  }
 0x6a4   : > { %13170 = vmatprep.subr.bf16.mxu0 %v13871_v1  ;;  %v8965_v16 = vrot.slane %v8957_v59, %v14014_v33  ;;  %v13803_v59 = vld [vmem:[%s16514_s7 + $0x468] sm:$0xff]  }
 0x6a5   : > { %13197 = vmatpush3.bf16.msra.mxu1 %v13757_v63  ;;  %v9329_v35 = vcombine.low %v16237_v37, %v16240_v4  ;;  %v9511_v50 = vcombine.low %v9503_v6, %v9510_v30  ;;  %v13785_v63 = vld [vmem:[%s16514_s7 + $0x428] sm:$0xff]   ;;  %v9830_v9 = vshll.u32 %v9777_v2, 16  ;;  %v13791_v4 = vld [vmem:[%s16514_s7 + $0x410] sm:$0xff]  }
 0x6a6   : > { %13198 = vmatprep.subr.bf16.mxu1 %v13871_v1  ;;  %v8973_v26 = vcombine.low %v8965_v16, %v16214_v43  ;;  %v13790_v37 = vld [vmem:[%s16514_s7 + $0x3e8] sm:$0xff]   ;;  %v13806_v16 = vld [vmem:[%s16514_s7 + $0x450] sm:$0xff]   ;;  %v13812_v43 = vld [vmem:[%s16515_s8 + $0x60] sm:$0xff]  }
 0x6a7   : > { %13171 = vmatpush3.bf16.msra.mxu0 %v13756_v62  ;;  %v13784_v62 = vld [vmem:[%s16514_s7 + $0x340] sm:$0xff]   ;;  %v9832_v15 = vrot.slane %v9830_v9, 7 }
 0x6a8   : > { %13172 = vmatprep.subr.bf16.mxu0 %v13871_v1 }
 0x6a9   : > { %13199 = vmatpush3.bf16.msra.mxu1 %v13759_v58  ;;  %v9826_v58 = vrot.slane %v9824_v56, 7 }
 0x6aa   : > { %13200 = vmatprep.subr.bf16.mxu1 %v13871_v1 }
 0x6ab   : > { %13173 = vmatpush3.bf16.msra.mxu0 %v13758_v5  ;;  %v9823_v5 = vrot.slane %v9821_v45, 6 }
 0x6ac   : > { %13174 = vmatprep.subr.bf16.mxu0 %v13871_v1 }
 0x6ad   : > { %13201 = vmatpush3.bf16.msra.mxu1 %v13761_v55  ;;  %v9827_v7 = vor.u32 %v9826_v58, %v9823_v5  ;;  %v13789_v55 = vld [vmem:[%s16514_s7 + $0x418] sm:$0xff]  }
 0x6ae   : > { %13226 = vmatprep.subr.bf16.mxu1 %v13871_v1 }
 0x6af   : > { %13175 = vmatpush3.bf16.msra.mxu0 %v13760_v39  ;;  %v13788_v39 = vld [vmem:[%s16514_s7 + $0x3f0] sm:$0xff]   ;;  %v9828_v0 = vrot.slane %v9827_v7, 2 }
 0x6b0   : > { %13176 = vmatprep.subr.bf16.mxu0 %v13871_v1  ;;  %13203 = vmatmul.mubr.bf16.vlgmr.msra.gmra.mxu1 %v9107_v38 }
 0x6b1   : > { %13227 = vmatpush3.bf16.msra.mxu1 %v13765_v20  ;;  %13242 = vmatprep.mubr.msk.bf16.mxu1 %vm13872_vm0, %v13871_v1  ;;  %v13793_v20 = vld [vmem:[%s16514_s7 + $0x408] sm:$0xff]  }
 0x6b2   : > { %13228 = vmatprep.subr.bf16.mxu1 %v13871_v1 }
 0x6b3   : > { %13177 = vmatpush3.bf16.msra.mxu0 %v13762_v17  ;;  %v13792_v17 = vld [vmem:[%s16514_s7 + $0x3e0] sm:$0xff]  }
 0x6b4   : > { %13178 = vmatprep.subr.bf16.mxu0 %v13871_v1 }
 0x6b5   : > { %13229 = vmatpush3.bf16.msra.mxu1 %v13767_v10  ;;  %v13801_v10 = vld [vmem:[%s16514_s7 + $0x478] sm:$0xff]  }
 0x6b6   : > { %13230 = vmatprep.subr.bf16.mxu1 %v13871_v1 }
 0x6b7   : > { %13179 = vmatpush3.bf16.msra.mxu0 %v13766_v25  ;;  %v13862_v25 = vld.sshfl [vmem:[#allocation3 + $0x8] sm:$0xf pattern:$0x76325410] }
 0x6b8   : > { %13180 = vmatprep.subr.bf16.mxu0 %v13871_v1 }
 0x6b9   : > { %13231 = vmatpush3.bf16.msra.mxu1 %v13769_v28  ;;  %v13805_v28 = vld [vmem:[%s16514_s7 + $0x458] sm:$0xff]  }
 0x6ba   : > { %13232 = vmatprep.subr.bf16.mxu1 %v13871_v1 }
 0x6bb   : > { %13181 = vmatpush3.bf16.msra.mxu0 %v13768_v40  ;;  %v13804_v40 = vld [vmem:[%s16514_s7 + $0x460] sm:$0xff]  }
 0x6bc   : > { %13206 = vmatprep.subr.bf16.mxu0 %v13871_v1 }
 0x6bd   : > { %13233 = vmatpush3.bf16.msra.mxu1 %v13771_v22  ;;  %v13808_v22 = vld [vmem:[%s16514_s7 + $0x440] sm:$0xff]  }
 0x6be   : > { %13183 = vmatmul.mubr.bf16.vlgmr.msra.gmra.mxu0 %v8973_v26  ;;  %13234 = vmatprep.subr.bf16.mxu1 %v13871_v1  ;;  %v13809_v26 = vld [vmem:[%s16515_s8 + $0x78] sm:$0xff]  }
 0x6bf   : > { %13207 = vmatpush3.bf16.msra.mxu0 %v13770_v14  ;;  %13222 = vmatprep.mubr.msk.bf16.mxu0 %vm13872_vm0, %v13871_v1  ;;  %v13807_v14 = vld [vmem:[%s16514_s7 + $0x448] sm:$0xff]  }
 0x6c0   : > { %13208 = vmatprep.subr.bf16.mxu0 %v13871_v1 }
 0x6c1   : > { %13235 = vmatpush3.bf16.msra.mxu1 %v13773_v31  ;;  %v13811_v31 = vld [vmem:[%s16515_s8 + $0x68] sm:$0xff]  }
 0x6c2   : > { %13236 = vmatprep.subr.bf16.mxu1 %v13871_v1 }
 0x6c3   : > { %13209 = vmatpush3.bf16.msra.mxu0 %v13772_v23  ;;  %v13810_v23 = vld [vmem:[%s16515_s8 + $0x70] sm:$0xff]  }
 0x6c4   : > { %13210 = vmatprep.subr.bf16.mxu0 %v13871_v1 }
 0x6c5   : > { %13237 = vmatpush3.bf16.msra.mxu1 %v13775_v8 }
 0x6c6   : > { %13238 = vmatprep.subr.bf16.mxu1 %v13871_v1 }
 0x6c7   : > { %13211 = vmatpush3.bf16.msra.mxu0 %v13774_v34 }
 0x6c8   : > { %13212 = vmatprep.subr.bf16.mxu0 %v13871_v1 }
 0x6c9   : > { %13239 = vmatpush3.bf16.msra.mxu1 %v13777_v46 }
 0x6ca   : > { %13240 = vmatprep.subr.bf16.mxu1 %v13871_v1 }
 0x6cb   : > { %13213 = vmatpush3.bf16.msra.mxu0 %v13776_v24 }
 0x6cc   : > { %13214 = vmatprep.subr.bf16.mxu0 %v13871_v1 }
 0x6cd   : > { %13241 = vmatpush3.bf16.msra.mxu1 %v13779_v19 }
 0x6ce   : > { %13266 = vmatprep.subr.bf16.mxu1 %v13871_v1 }
 0x6cf   : > { %13215 = vmatpush3.bf16.msra.mxu0 %v13778_v52  ;;  %v13814_v52 = vld [vmem:[%s16515_s8 + $0x50] sm:$0xff]  }
 0x6d0   : > { %13216 = vmatprep.subr.bf16.mxu0 %v13871_v1  ;;  %13243 = vmatmul.mubr.bf16.vlgmr.msra.gmra.mxu1 %v9511_v50 }
 0x6d1   : > { %13267 = vmatpush3.bf16.msra.mxu1 %v13781_v47  ;;  %13282 = vmatprep.mubr.msk.bf16.mxu1 %vm13872_vm0, %v13871_v1  ;;  %v13816_v47 = vld [vmem:[%s16515_s8 + $0x40] sm:$0xff]  }
 0x6d2   : > { %13268 = vmatprep.subr.bf16.mxu1 %v13871_v1 }
 0x6d3   : > { %13217 = vmatpush3.bf16.msra.mxu0 %v13780_v13  ;;  %v13815_v13 = vld [vmem:[%s16515_s8 + $0x48] sm:$0xff]  }
 0x6d4   : > { %13218 = vmatprep.subr.bf16.mxu0 %v13871_v1 }
 0x6d5   : > { %13269 = vmatpush3.bf16.msra.mxu1 %v13783_v42 }
 0x6d6   : > { %13270 = vmatprep.subr.bf16.mxu1 %v13871_v1 }
 0x6d7   : > { %13219 = vmatpush3.bf16.msra.mxu0 %v13782_v53 }
 0x6d8   : > { %13220 = vmatprep.subr.bf16.mxu0 %v13871_v1 }
 0x6d9   : > { %13271 = vmatpush3.bf16.msra.mxu1 %v13785_v63 }
 0x6da   : > { %13272 = vmatprep.subr.bf16.mxu1 %v13871_v1 }
 0x6db   : > { %13221 = vmatpush3.bf16.msra.mxu0 %v13784_v62 }
 0x6dc   : > { %13246 = vmatprep.subr.bf16.mxu0 %v13871_v1 }
 0x6dd   : > { %13273 = vmatpush3.bf16.msra.mxu1 %v13787_v12 }
 0x6de   : > { %13223 = vmatmul.mubr.bf16.vlgmr.msra.gmra.mxu0 %v9329_v35  ;;  %13274 = vmatprep.subr.bf16.mxu1 %v13871_v1  ;;  %v9833_v35 = vsel %vm14033_vm7, %v9828_v0, %v9832_v15 }
 0x6df   : > { %13247 = vmatpush3.bf16.msra.mxu0 %v13786_v61  ;;  %13262 = vmatprep.mubr.msk.bf16.mxu0 %vm13872_vm0, %v13871_v1  ;;  %v9852_v21 = vcombine.low %v16223_v18, %v9833_v35  ;;  %v13796_v18 = vld [vmem:[%s16514_s7 + $0x3d0] sm:$0xff]  }
 0x6e0   : > { %13248 = vmatprep.subr.bf16.mxu0 %v13871_v1 }
 0x6e1   : > { %13275 = vmatpush3.bf16.msra.mxu1 %v13789_v55  ;;  %v9866_v3 = vrot.slane %v9852_v21, %v14014_v33  ;;  %v13861_v33 = vld.sshfl [vmem:[#allocation3 + $0x10] sm:$0xf pattern:$0x76325410] }
 0x6e2   : > { %13276 = vmatprep.subr.bf16.mxu1 %v13871_v1  ;;  %v9645_v29 = vcombine.low %v13862_v25, %v13861_v33 }
 0x6e3   : > { %13249 = vmatpush3.bf16.msra.mxu0 %v13788_v39  ;;  %v9867_v38 = vcombine.low %v16181_v48, %v9866_v3  ;;  %v13798_v48 = vld [vmem:[%s16514_s7 + $0x3c0] sm:$0xff]  }
 0x6e4   : > { %13250 = vmatprep.subr.bf16.mxu0 %v13871_v1 }
 0x6e5   : > { %13277 = vmatpush3.bf16.msra.mxu1 %v13791_v4 }
 0x6e6   : > { %13278 = vmatprep.subr.bf16.mxu1 %v13871_v1 }
 0x6e7   : > { %13251 = vmatpush3.bf16.msra.mxu0 %v13790_v37 }
 0x6e8   : > { %13252 = vmatprep.subr.bf16.mxu0 %v13871_v1 }
 0x6e9   : > { %13279 = vmatpush3.bf16.msra.mxu1 %v13793_v20 }
 0x6ea   : > { %13280 = vmatprep.subr.bf16.mxu1 %v13871_v1 }
 0x6eb   : > { %13253 = vmatpush3.bf16.msra.mxu0 %v13792_v17 }
 0x6ec   : > { %13254 = vmatprep.subr.bf16.mxu0 %v13871_v1 }
 0x6ed   : > { %13281 = vmatpush3.bf16.msra.mxu1 %v13795_v60 }
 0x6ee   : > { %13306 = vmatprep.subr.bf16.mxu1 %v13871_v1 }
 0x6ef   : > { %13255 = vmatpush3.bf16.msra.mxu0 %v13794_v49 }
 0x6f0   : > { %13256 = vmatprep.subr.bf16.mxu0 %v13871_v1  ;;  %13283 = vmatmul.mubr.bf16.vlgmr.msra.gmra.mxu1 %v9867_v38 }
 0x6f1   : > { %13322 = vmatprep.mubr.msk.bf16.mxu1 %vm13872_vm0, %v13871_v1  ;;  %13307 = vmatpush3.bf16.msra.mxu1 %v13809_v26 }
 0x6f2   : > { %13308 = vmatprep.subr.bf16.mxu1 %v13871_v1 }
 0x6f3   : > { %13257 = vmatpush3.bf16.msra.mxu0 %v13796_v18 }
 0x6f4   : > { %13258 = vmatprep.subr.bf16.mxu0 %v13871_v1 }
 0x6f5   : > { %13309 = vmatpush3.bf16.msra.mxu1 %v13810_v23 }
 0x6f6   : > { %13310 = vmatprep.subr.bf16.mxu1 %v13871_v1 }
 0x6f7   : > { %13259 = vmatpush3.bf16.msra.mxu0 %v13797_v27 }
 0x6f8   : > { %13260 = vmatprep.subr.bf16.mxu0 %v13871_v1 }
 0x6f9   : > { %13311 = vmatpush3.bf16.msra.mxu1 %v13811_v31 }
 0x6fa   : > { %13312 = vmatprep.subr.bf16.mxu1 %v13871_v1 }
 0x6fb   : > { %13261 = vmatpush3.bf16.msra.mxu0 %v13798_v48 }
 0x6fc   : > { %13286 = vmatprep.subr.bf16.mxu0 %v13871_v1 }
 0x6fd   : > { %13313 = vmatpush3.bf16.msra.mxu1 %v13812_v43 }
 0x6fe   : > { %13263 = vmatmul.mubr.bf16.vlgmr.msra.gmra.mxu0 %v9645_v29  ;;  %13314 = vmatprep.subr.bf16.mxu1 %v13871_v1 }
 0x6ff   : > { %13287 = vmatpush3.bf16.msra.mxu0 %v13801_v10  ;;  %13302 = vmatprep.mubr.msk.bf16.mxu0 %vm13872_vm0, %v13871_v1 }
 0x700   : > { %13288 = vmatprep.subr.bf16.mxu0 %v13871_v1 }
 0x703   : > { %13289 = vmatpush3.bf16.msra.mxu0 %v13802_v44 }
 0x704   : > { %13290 = vmatprep.subr.bf16.mxu0 %v13871_v1 }
 0x707   : > { %13291 = vmatpush3.bf16.msra.mxu0 %v13803_v59 }
 0x708   : > { %13292 = vmatprep.subr.bf16.mxu0 %v13871_v1 }
 0x70b   : > { %13293 = vmatpush3.bf16.msra.mxu0 %v13804_v40 }
 0x70c   : > { %13294 = vmatprep.subr.bf16.mxu0 %v13871_v1 }
 0x70f   : > { %13295 = vmatpush3.bf16.msra.mxu0 %v13805_v28 }
 0x710   : > { %13296 = vmatprep.subr.bf16.mxu0 %v13871_v1 }
 0x713   : > { %13297 = vmatpush3.bf16.msra.mxu0 %v13806_v16 }
 0x714   : > { %13298 = vmatprep.subr.bf16.mxu0 %v13871_v1 }
 0x717   : > { %13299 = vmatpush3.bf16.msra.mxu0 %v13807_v14 }
 0x718   : > { %13300 = vmatprep.subr.bf16.mxu0 %v13871_v1 }
 0x71b   : > { %13301 = vmatpush3.bf16.msra.mxu0 %v13808_v22 }
 0x71e   : > { %13303 = vmatmul.mubr.bf16.vlgmr.msra.gmra.mxu0 %v10049_v57  ;;  %v13813_v57 = vld [vmem:[%s16515_s8 + $0x58] sm:$0xff]  }
 0x71f   : > { %13315 = vmatpush3.bf16.msra.mxu1 %v13813_v57 }
 0x720   : > { %13316 = vmatprep.subr.bf16.mxu1 %v13871_v1 }
 0x723   : > { %13317 = vmatpush3.bf16.msra.mxu1 %v13814_v52 }
 0x724   : > { %13318 = vmatprep.subr.bf16.mxu1 %v13871_v1 }
 0x727   : > { %13319 = vmatpush3.bf16.msra.mxu1 %v13815_v13 }
 0x728   : > { %13320 = vmatprep.subr.bf16.mxu1 %v13871_v1 }
 0x72b   : > { %13321 = vmatpush3.bf16.msra.mxu1 %v13816_v47 }
 0x750   : > { %v8877_v54 = vpop.f32.mrf.mxu1 }
 0x752   : > { %v13164_v34 = vpop.f32.mrf.mxu1 }
 0x754   : > { %v8880_v8 = vpop.f32.mrf.mxu1 }
 0x756   : > { %v13165_v24 = vpop.f32.mrf.mxu1 }
 0x75e   : > { %v8766_v46 = vpop.f32.mrf.mxu0 }
 0x75f   : > { %v8878_v11 = vadd.f32 %v8877_v54, %v8766_v46 }
 0x760   : > { %v13144_v51 = vpop.f32.mrf.mxu0 }
 0x762   : > { %v8769_v19 = vpop.f32.mrf.mxu0 }
 0x763   : > { %v8881_v30 = vadd.f32 %v8880_v8, %v8769_v19 }
 0x764   : > { %v13145_v6 = vpop.f32.mrf.mxu0 }
 0x770   : > { %v9191_v50 = vpop.f32.mrf.mxu1 }
 0x772   : > { %v13204_v36 = vpop.f32.mrf.mxu1 }
 0x774   : > { %v9194_v53 = vpop.f32.mrf.mxu1 }
 0x776   : > { %v13205_v42 = vpop.f32.mrf.mxu1 }
 0x77e   : > { %v9057_v45 = vpop.f32.mrf.mxu0 }
 0x77f   : > { %v9064_v56 = vadd.f32 %v9057_v45, %v8878_v11 }
 0x780   : > { %v13184_v62 = vpop.f32.mrf.mxu0 }
 0x781   : > { %v9198_v63 = vadd.f32 %v9191_v50, %v9064_v56 }
 0x782   : > { %v9060_v2 = vpop.f32.mrf.mxu0 }
 0x783   : > { %v9065_v5 = vadd.f32 %v9060_v2, %v8881_v30 }
 0x784   : > { %v13185_v58 = vpop.f32.mrf.mxu0 }
 0x785   : > { %v9199_v61 = vadd.f32 %v9194_v53, %v9065_v5 }
 0x790   : > { %v9595_v12 = vpop.f32.mrf.mxu1 }
 0x792   : > { %v13244_v7 = vpop.f32.mrf.mxu1 }
 0x794   : > { %v9598_v9 = vpop.f32.mrf.mxu1 }
 0x796   : > { %v13245_v39 = vpop.f32.mrf.mxu1 }
 0x79e   : > { %v9413_v55 = vpop.f32.mrf.mxu0 }
 0x79f   : > { %v9420_v0 = vadd.f32 %v9413_v55, %v9198_v63 }
 0x7a0   : > { %v13224_v1 = vpop.f32.mrf.mxu0 }
 0x7a1   : > { %v9602_v15 = vadd.f32 %v9595_v12, %v9420_v0 }
 0x7a2   : > { %v9416_v37 = vpop.f32.mrf.mxu0 }
 0x7a3   : > { %v9421_v4 = vadd.f32 %v9416_v37, %v9199_v61 }
 0x7a4   : > { %v13225_v35 = vpop.f32.mrf.mxu0 }
 0x7a5   : > { %v9603_v17 = vadd.f32 %v9598_v9, %v9421_v4 }
 0x7b0   : > { %v9951_v20 = vpop.f32.mrf.mxu1 }
 0x7b2   : > { %v13284_v21 = vpop.f32.mrf.mxu1 }
 0x7b4   : > { %v9954_v49 = vpop.f32.mrf.mxu1 }
 0x7b6   : > { %v13285_v60 = vpop.f32.mrf.mxu1 }
 0x7be   : > { %v9729_v3 = vpop.f32.mrf.mxu0 }
 0x7bf   : > { %v9736_v33 = vadd.f32 %v9729_v3, %v9602_v15 }
 0x7c0   : > { %v13264_v18 = vpop.f32.mrf.mxu0 }
 0x7c1   : > { %v9958_v10 = vadd.f32 %v9951_v20, %v9736_v33 }
 0x7c2   : > { %v9732_v38 = vpop.f32.mrf.mxu0 }
 0x7c3   : > { %v9737_v25 = vadd.f32 %v9732_v38, %v9603_v17 }
 0x7c4   : > { %v13265_v27 = vpop.f32.mrf.mxu0 }
 0x7c5   : > { %v9959_v59 = vadd.f32 %v9954_v49, %v9737_v25 }
 0x7de   : > { %v10133_v48 = vpop.f32.mrf.mxu0 }
 0x7df   : > { %v10140_v44 = vadd.f32 %v10133_v48, %v9958_v10 }
 0x7e0   : > { %v13304_v29 = vpop.f32.mrf.mxu0 }
 0x7e1   : > { %v10142_v14 = vmax.f32 %v10140_v44, 0.0 }
 0x7e2   : > { %v10136_v40 = vpop.f32.mrf.mxu0 }
 0x7e3   : > { %v10141_v28 = vadd.f32 %v10136_v40, %v9959_v59 }
 0x7e4   : > { %v13305_v16 = vpop.f32.mrf.mxu0 }
 0x7e5   : > { %v10143_v22 = vmax.f32 %v10141_v28, 0.0 }
 0x7e7   : > { %v10144_v26 = vpack.c.bf16 %v10143_v22, %v10142_v14 }
 0x7e9   : > { %13323 = vmatmul.mubr.bf16.vlgmr.msra.gmra.mxu1 %v10144_v26 }
 0x8a9   : > { %v10246_v23 = vpop.f32.mrf.mxu1 }
 0x8aa   : > { %v10253_v31 = vadd.f32 %v10246_v23, %v16136_v32 }
 0x8ab   : > { %v13324_v43 = vpop.f32.mrf.mxu1 }
 0x8ac   : > { %v10259_v54 = vmax.f32 %v10253_v31, 0.0 }
 0x8ad   : > { %v10249_v57 = vpop.f32.mrf.mxu1 }
 0x8ae   : > { %v10263_v34 = vcombine.high %v10259_v54, %v10259_v54  ;;  %10267 = vst [vmem:[%s332_s20] sm:$0xf] %v10259_v54  ;;  %v10254_v8 = vadd.f32 %v10249_v57, %v16140_v41 }
 0x8af   : > { %v13325_v24 = vpop.f32.mrf.mxu1 }
 0x8b0   : > { %10268 = vst [vmem:[%s332_s20 + $0x4] sm:$0xf] %v10263_v34  ;;  %v10260_v46 = vmax.f32 %v10254_v8, 0.0 }
 0x8b2   : > { %v10264_v11 = vcombine.high %v10260_v46, %v10260_v46  ;;  %10269 = vst [vmem:[%s332_s20 + $0x8] sm:$0xf] %v10260_v46 }
 0x8b4   : > { %10270 = vst [vmem:[%s332_s20 + $0xc] sm:$0xf] %v10264_v11 }
 0x8b5 PF: > { %s19_s30 = sadd.s32 1, %s13869_s30  }
 0x8b6   : > { %p16_p4 = scmp.ge.s32.totalorder %s19_s30, 4  }
 0x8b8   :  { %18 = sbr.rel (!%p16_p4) target bundleno = 1 (0x1), region = 148 }

</bundles_post_ra>
